<compile_context>
chip_gen: v7x
topology: tpu7x:2x2x1
jax: 0.10.0
libtpu: 0.0.40
codegen_flags: <defaults>
</compile_context>

<pallas_src>
import math
import functools

import jax
import jax.numpy as jnp
import numpy as np
from jax.experimental import pallas as pl
from jax.experimental.pallas import tpu as pltpu


def _vmem_limit_bytes():
    """Per-generation scoped VMEM limit (v7x has 64 MiB physical, v5e/v6e 128 MiB)."""
    kind = ""
    try:
        kind = jax.devices()[0].device_kind.lower()
    except Exception:
        pass
    return (48 if "v7" in kind else 64) * 1024 * 1024


def _pick_tile(n, candidates, what):
    for c in candidates:
        if n % c == 0:
            return c
    if n <= 1024:          # full-extent block is still tiny; allowed by the tiling rules
        return n
    raise ValueError(f"{what}={n} is not divisible by any of {candidates}; pad the input")


# ------------- fused QKV linear + Q/K RMSNorm + RoPE:  x @ Wqkv -> (3H, M, D) -------------

def _qkv_norm_rope_kernel(x_ref, w_ref, ca_ref, cb_ref, sc_ref, o_ref, acc_ref,
                          *, head_dim, heads_per_blk, num_qk_blocks):
    D = head_dim
    j = pl.program_id(1)
    k = pl.program_id(2)

    @pl.when(k == 0)
    def _():
        acc_ref[...] = jnp.zeros_like(acc_ref)

    acc_ref[...] += jnp.dot(x_ref[...], w_ref[...], preferred_element_type=jnp.float32)

    last = k == pl.num_programs(2) - 1

    # Q / K blocks: RMSNorm (f32) * scale (q scale already includes 1/sqrt(D)), then RoPE
    # in the [even | odd] split layout: ca*x + cb*roll(x, D/2).  Done once per output tile.
    @pl.when(jnp.logical_and(last, j < num_qk_blocks))
    def _():
        ca = ca_ref[...]
        cb = cb_ref[...]
        sc = sc_ref[...]
        for hh in range(heads_per_blk):
            xh = acc_ref[:, hh * D:(hh + 1) * D]
            rrms = jax.lax.rsqrt(jnp.mean(xh * xh, axis=-1, keepdims=True) + 1e-6)
            xn = xh * rrms * sc
            xr = ca * xn + cb * pltpu.roll(xn, shift=D // 2, axis=1)
            o_ref[hh] = xr.astype(o_ref.dtype)

    # V blocks: plain cast + store.
    @pl.when(jnp.logical_and(last, j >= num_qk_blocks))
    def _():
        for hh in range(heads_per_blk):
            o_ref[hh] = acc_ref[:, hh * D:(hh + 1) * D].astype(o_ref.dtype)


def qkv_norm_rope_linear_pallas(x2d, w_qkv, ca, cb, scales, *, num_heads, head_dim,
                                heads_per_blk, tm, tk, vmem_limit):
    """x2d: (M, dim) bf16, w_qkv: (dim, 3*dim) bf16 (RoPE-permuted q/k columns),
       ca/cb: (M, D) f32 RoPE coefficients, scales: (n_nblk, 1, D) f32
       -> (3*H, M, D) bf16 where q/k rows are already normalized + rotated."""
    M, dim = x2d.shape
    D = head_dim
    H = num_heads
    n_nblk = (3 * H) // heads_per_blk
    num_qk_blocks = (2 * H) // heads_per_blk
    grid = (M // tm, n_nblk, dim // tk)
    kernel = functools.partial(_qkv_norm_rope_kernel, head_dim=D,
                               heads_per_blk=heads_per_blk, num_qk_blocks=num_qk_blocks)
    return pl.pallas_call(
        kernel,
        out_shape=jax.ShapeDtypeStruct((3 * H, M, D), jnp.bfloat16),
        grid_spec=pltpu.PrefetchScalarGridSpec(
            num_scalar_prefetch=0,
            grid=grid,
            in_specs=[pl.BlockSpec((tm, tk), lambda i, j, k: (i, k)),
                      pl.BlockSpec((tk, heads_per_blk * D), lambda i, j, k: (k, j)),
                      pl.BlockSpec((tm, D), lambda i, j, k: (i, 0)),
                      pl.BlockSpec((tm, D), lambda i, j, k: (i, 0)),
                      pl.BlockSpec((None, 1, D), lambda i, j, k: (j, 0, 0))],
            out_specs=pl.BlockSpec((heads_per_blk, tm, D), lambda i, j, k: (j, i, 0)),
            scratch_shapes=[pltpu.VMEM((tm, heads_per_blk * D), jnp.float32)]),
        compiler_params=pltpu.CompilerParams(
            dimension_semantics=("parallel", "parallel", "arbitrary"),
            vmem_limit_bytes=vmem_limit),
        cost_estimate=pl.CostEstimate(
            flops=int(2 * M * dim * 3 * dim),
            transcendentals=int(2 * M),
            bytes_accessed=int(2 * (M * dim + 3 * dim * dim + 3 * M * dim) + 8 * M * D)),
    )(x2d, w_qkv, ca, cb, scales)


# ----------------------------- flash attention (pure MXU + softmax) -----------------------

def _flash_attn_kernel(q_ref, k_ref, v_ref, o_ref, m_sc, l_sc, acc_sc):
    kv = pl.program_id(3)

    @pl.when(kv == 0)
    def _init():
        m_sc[...] = jnp.full_like(m_sc, -jnp.inf)
        l_sc[...] = jnp.zeros_like(l_sc)
        acc_sc[...] = jnp.zeros_like(acc_sc)

    # Scores: q/k are already RMS-normalized, scaled (1/sqrt(D) folded into q) and rotated.
    s = jax.lax.dot_general(q_ref[...], k_ref[...], (((1,), (1,)), ((), ())),
                            preferred_element_type=jnp.float32)        # (tq, tkv)

    m_prev = m_sc[...]
    m_new = jnp.maximum(m_prev, jnp.max(s, axis=-1, keepdims=True))
    alpha = jnp.exp(m_prev - m_new)
    p = jnp.exp(s - m_new)
    l_sc[...] = alpha * l_sc[...] + jnp.sum(p, axis=-1, keepdims=True)
    acc_sc[...] = alpha * acc_sc[...] + jnp.dot(
        p.astype(v_ref.dtype), v_ref[...], preferred_element_type=jnp.float32)
    m_sc[...] = m_new

    @pl.when(kv == pl.num_programs(3) - 1)
    def _finalize():
        o_ref[...] = (acc_sc[...] *
                      pl.reciprocal(l_sc[...], approx=True)).astype(o_ref.dtype)


def flash_attention_pallas(qkv5, *, tq, tkv, vmem_limit):
    """qkv5: (3, H, B, L, D) bf16 (q/k pre-normalized + rotated) -> (H, B, L, D) bf16."""
    _, H, B, L, D = qkv5.shape
    grid = (H, B, L // tq, L // tkv)

    q_spec = pl.BlockSpec((None, None, None, tq, D), lambda h, b, qi, ki: (0, h, b, qi, 0))
    k_spec = pl.BlockSpec((None, None, None, tkv, D), lambda h, b, qi, ki: (1, h, b, ki, 0))
    v_spec = pl.BlockSpec((None, None, None, tkv, D), lambda h, b, qi, ki: (2, h, b, ki, 0))
    o_spec = pl.BlockSpec((None, None, tq, D), lambda h, b, qi, ki: (h, b, qi, 0))

    flops = 4 * B * H * L * L * D + 16 * B * H * L * D
    transcendentals = B * H * L * L + 4 * B * H * L
    bytes_accessed = 2 * 4 * B * H * L * D

    return pl.pallas_call(
        _flash_attn_kernel,
        out_shape=jax.ShapeDtypeStruct((H, B, L, D), jnp.bfloat16),
        grid_spec=pltpu.PrefetchScalarGridSpec(
            num_scalar_prefetch=0,
            grid=grid,
            in_specs=[q_spec, k_spec, v_spec],
            out_specs=o_spec,
            scratch_shapes=[pltpu.VMEM((tq, 1), jnp.float32),    # running max
                            pltpu.VMEM((tq, 1), jnp.float32),    # running denom
                            pltpu.VMEM((tq, D), jnp.float32)]),  # output accumulator
        compiler_params=pltpu.CompilerParams(
            dimension_semantics=("parallel", "parallel", "parallel", "arbitrary"),
            vmem_limit_bytes=vmem_limit),
        cost_estimate=pl.CostEstimate(flops=int(flops),
                                      transcendentals=int(transcendentals),
                                      bytes_accessed=int(bytes_accessed)),
    )(qkv5, qkv5, qkv5)


# --------------------- output projection: (H, M, D) -> (M, dim), + bias -------------------

def _proj_matmul_kernel(o_ref, w_ref, b_ref, out_ref, acc_ref, *, heads_per_step, head_dim):
    D = head_dim

    @pl.when(pl.program_id(2) == 0)
    def _():
        acc_ref[...] = jnp.zeros_like(acc_ref)

    partial = jnp.dot(o_ref[0], w_ref[0:D, :], preferred_element_type=jnp.float32)
    for hh in range(1, heads_per_step):
        partial += jnp.dot(o_ref[hh], w_ref[hh * D:(hh + 1) * D, :],
                           preferred_element_type=jnp.float32)
    acc_ref[...] += partial

    @pl.when(pl.program_id(2) == pl.num_programs(2) - 1)
    def _():
        out_ref[...] = (acc_ref[...] + b_ref[...].astype(jnp.float32)).astype(out_ref.dtype)


def proj_linear_pallas(o_hmd, w_proj, b_proj, *, heads_per_step, tm, tn, out_dtype, vmem_limit):
    """o_hmd: (H, M, D) bf16 ('B H L D -> B L (H D)' realized by K-tiling over heads),
       w_proj: (dim, dim) bf16, b_proj: (1, dim) f32 -> (M, dim) out_dtype."""
    H, M, D = o_hmd.shape
    dim = H * D
    grid = (M // tm, dim // tn, H // heads_per_step)
    kernel = functools.partial(_proj_matmul_kernel, heads_per_step=heads_per_step, head_dim=D)
    return pl.pallas_call(
        kernel,
        out_shape=jax.ShapeDtypeStruct((M, dim), out_dtype),
        grid_spec=pltpu.PrefetchScalarGridSpec(
            num_scalar_prefetch=0,
            grid=grid,
            in_specs=[pl.BlockSpec((heads_per_step, tm, D), lambda i, j, k: (k, i, 0)),
                      pl.BlockSpec((heads_per_step * D, tn), lambda i, j, k: (k, j)),
                      pl.BlockSpec((1, tn), lambda i, j, k: (0, j))],
            out_specs=pl.BlockSpec((tm, tn), lambda i, j, k: (i, j)),
            scratch_shapes=[pltpu.VMEM((tm, tn), jnp.float32)]),
        compiler_params=pltpu.CompilerParams(
            dimension_semantics=("parallel", "parallel", "arbitrary"),
            vmem_limit_bytes=vmem_limit),
        cost_estimate=pl.CostEstimate(
            flops=int(2 * M * dim * dim),
            transcendentals=0,
            bytes_accessed=int(2 * M * dim + 2 * dim * dim + 4 * M * dim)),
    )(o_hmd, w_proj, b_proj)


# ------------------------------ parameter preparation -------------------------------------

def prepare_params(params, num_heads):
    """Fold the RoPE [even|odd] permutation into Wqkv q/k columns and the RMSNorm scales,
    fold 1/sqrt(D) into the q scale, and cast matmul weights to bf16 (f32 accum in-kernel)."""
    dim = params["w_qkv"].shape[0]
    H = num_heads
    D = dim // H
    perm = np.concatenate([np.arange(0, D, 2), np.arange(1, D, 2)])

    col_perm = np.arange(3 * dim)
    for slot in range(2):                      # permute q and k column blocks only
        for h in range(H):
            base = slot * dim + h * D
            col_perm[base:base + D] = base + perm

    return {
        "w_qkv": jnp.asarray(params["w_qkv"])[:, col_perm].astype(jnp.bfloat16),
        "w_proj": params["w_proj"].astype(jnp.bfloat16),
        "b_proj": params["b_proj"].reshape(1, dim).astype(jnp.float32),
        "q_scale": (params["q_scale"][perm] / math.sqrt(D)).reshape(1, D).astype(jnp.float32),
        "k_scale": params["k_scale"][perm].reshape(1, D).astype(jnp.float32),
    }


# ------------------------------------ forward pass ----------------------------------------

def self_attention_forward(x, pe, prepared, num_heads, out_dtype=None):
    B, L, dim = x.shape
    H = num_heads
    D = dim // H
    M = B * L
    out_dtype = out_dtype or x.dtype
    vmem_limit = _vmem_limit_bytes()

    assert dim % H == 0
    assert D % 128 == 0, f"head_dim={D} must be a multiple of 128 for this kernel"
    assert D % 2 == 0

    # Tile selection (blocks must be (16,128)-aligned for bf16 or span the full dim).
    tm = _pick_tile(M, (256, 128), "B*L")
    tk = _pick_tile(dim, (512, 256, 128), "dim")
    tn = _pick_tile(dim, (512, 256, 128), "dim")
    tq = _pick_tile(L, (512, 256, 128), "L")
    tkv = _pick_tile(L, (256, 128), "L")

    # Two heads per N-block (QKV) / per K-step (proj) when possible -> 256-wide MXU tiles.
    heads_per_blk = 2 if H % 2 == 0 else 1
    n_nblk = (3 * H) // heads_per_blk
    n_q_blocks = H // heads_per_blk

    # RoPE coefficients in the [even|odd] split layout, from pe (B,1,L,D//2,2,2).
    pe_f = pe.astype(jnp.float32)
    ca = jnp.concatenate([pe_f[:, 0, :, :, 0, 0], pe_f[:, 0, :, :, 1, 1]], axis=-1)
    cb = jnp.concatenate([pe_f[:, 0, :, :, 0, 1], pe_f[:, 0, :, :, 1, 0]], axis=-1)
    ca = ca.reshape(M, D)
    cb = cb.reshape(M, D)

    # Per-N-block norm scales: q blocks, then k blocks, then (unused) v blocks.
    scales = jnp.concatenate([
        jnp.broadcast_to(prepared["q_scale"][None], (n_q_blocks, 1, D)),
        jnp.broadcast_to(prepared["k_scale"][None], (n_q_blocks, 1, D)),
        jnp.ones((n_nblk - 2 * n_q_blocks, 1, D), jnp.float32),
    ], axis=0)

    # Fused QKV projection + Q/K RMSNorm + RoPE.  Output already in (3, H, B, L, D) layout.
    x_bf = x.reshape(M, dim).astype(jnp.bfloat16)
    qkv = qkv_norm_rope_linear_pallas(x_bf, prepared["w_qkv"], ca, cb, scales,
                                      num_heads=H, head_dim=D, heads_per_blk=heads_per_blk,
                                      tm=tm, tk=tk, vmem_limit=vmem_limit)
    qkv5 = qkv.reshape(3, H, B, L, D)

    # Flash attention (kv inner loop is pure MXU + online softmax).
    o = flash_attention_pallas(qkv5, tq=tq, tkv=tkv, vmem_limit=vmem_limit)   # (H,B,L,D) bf16

    # Output projection, reducing over heads (transpose-free), bias in the epilogue.
    out = proj_linear_pallas(o.reshape(H, M, D), prepared["w_proj"], prepared["b_proj"],
                             heads_per_step=heads_per_blk, tm=tm, tn=tn,
                             out_dtype=out_dtype, vmem_limit=vmem_limit)
    return out.reshape(B, L, dim)


# -------------------------------- pure-JAX reference --------------------------------------

def reference_forward(x, pe, params, num_heads):
    hp = jax.lax.Precision.HIGHEST
    B, L, dim = x.shape
    H = num_heads
    D = dim // H
    qkv = jnp.dot(x, params["w_qkv"], precision=hp)
    qkv = qkv.reshape(B, L, 3, H, D)
    q = jnp.transpose(qkv[:, :, 0], (0, 2, 1, 3))
    k = jnp.transpose(qkv[:, :, 1], (0, 2, 1, 3))
    v = jnp.transpose(qkv[:, :, 2], (0, 2, 1, 3))

    def rms(t, s):
        rr = jax.lax.rsqrt(jnp.mean(t.astype(jnp.float32) ** 2, -1, keepdims=True) + 1e-6)
        return t * rr * s

    q = rms(q, params["q_scale"])
    k = rms(k, params["k_scale"])

    pe_f = pe.astype(jnp.float32)

    def apply_rope(t):
        tr = t.reshape(B, H, L, D // 2, 1, 2)
        out = pe_f[..., 0] * tr[..., 0] + pe_f[..., 1] * tr[..., 1]
        return out.reshape(B, H, L, D)

    qr, kr = apply_rope(q), apply_rope(k)
    s = jnp.einsum("bhqd,bhkd->bhqk", qr, kr, precision=hp) / math.sqrt(D)
    p = jax.nn.softmax(s, axis=-1)
    o = jnp.einsum("bhqk,bhkd->bhqd", p, v, precision=hp)
    o = jnp.transpose(o, (0, 2, 1, 3)).reshape(B, L, dim)
    return jnp.dot(o, params["w_proj"], precision=hp) + params["b_proj"]


# ------------------------------------------ main ------------------------------------------

if __name__ == "__main__":
    B, L = 2, 256
    num_heads = 2
    dim = 256                       # head_dim = 128 (lane-aligned)
    D = dim // num_heads

    key = jax.random.PRNGKey(0)
    kx, kqkv, kproj, kb, kqs, kks = jax.random.split(key, 6)

    x = jax.random.normal(kx, (B, L, dim), jnp.float32)
    params = {
        "w_qkv": 0.02 * jax.random.normal(kqkv, (dim, 3 * dim), jnp.float32),
        "w_proj": 0.02 * jax.random.normal(kproj, (dim, dim), jnp.float32),
        "b_proj": 0.02 * jax.random.normal(kb, (dim,), jnp.float32),
        # RMSNorm scales (module init is ones; perturb to exercise the scale path).
        "q_scale": 1.0 + 0.1 * jax.random.normal(kqs, (D,), jnp.float32),
        "k_scale": 1.0 + 0.1 * jax.random.normal(kks, (D,), jnp.float32),
    }

    # pe built the same way Flux's EmbedND/rope does: (B, 1, L, D//2, 2, 2).
    pos = jnp.broadcast_to(jnp.arange(L, dtype=jnp.float32), (B, L))
    scale = jnp.arange(0, D, 2, dtype=jnp.float32) / D
    omega = 1.0 / (10000.0 ** scale)                               # (D//2,)
    ang = pos[..., None] * omega                                   # (B, L, D//2)
    pe = jnp.stack([jnp.cos(ang), -jnp.sin(ang),
                    jnp.sin(ang), jnp.cos(ang)], axis=-1).reshape(B, L, D // 2, 2, 2)
    pe = pe[:, None]                                               # (B, 1, L, D//2, 2, 2)

    prepared = prepare_params(params, num_heads)
    fwd = jax.jit(functools.partial(self_attention_forward, num_heads=num_heads))
    out = jax.block_until_ready(fwd(x, pe, prepared))

    ref = jax.block_until_ready(reference_forward(x, pe, params, num_heads))
    assert out.shape == (B, L, dim)
    out_np = np.asarray(out, dtype=np.float32)
    ref_np = np.asarray(ref, dtype=np.float32)
    err = float(np.max(np.abs(out_np - ref_np)))
    # Kernels feed the MXU bf16 operands (f32 accumulation / f32 softmax); the
    # reference is full f32, so allow bf16-level error relative to the output scale.
    tol = 5e-2 * float(np.max(np.abs(ref_np))) + 2e-3
    assert err < tol, f"mismatch vs reference: max abs err = {err:g} (tol {tol:g})"

    print("KERNEL_OK")
</pallas_src>

<mosaic_0001>
module attributes {stable_mosaic.version = 11 : i64} {
  func.func @_flash_attn_kernel(%arg0: i32, %arg1: i32, %arg2: i32, %arg3: i32, %arg4: memref<1x1x1x256x128xbf16, #tpu.memory_space<vmem>>, %arg5: memref<1x1x1x256x128xbf16, #tpu.memory_space<vmem>>, %arg6: memref<1x1x1x256x128xbf16, #tpu.memory_space<vmem>>, %arg7: memref<1x1x256x128xbf16, #tpu.memory_space<vmem>>, %arg8: memref<256x1xf32, #tpu.memory_space<vmem>>, %arg9: memref<256x1xf32, #tpu.memory_space<vmem>>, %arg10: memref<256x128xf32, #tpu.memory_space<vmem>>) attributes {dimension_semantics = [#tpu.dimension_semantics<parallel>, #tpu.dimension_semantics<parallel>, #tpu.dimension_semantics<parallel>, #tpu.dimension_semantics<arbitrary>], iteration_bounds = array<i64: 2, 2, 1, 1>, scalar_prefetch = 0 : i64, scratch_operands = 3 : i64, tpu.core_type = #tpu.core_type<tc>, window_params = [{transform_indices = @transform_0, window_bounds = array<i64: 1, 1, 1, 256, 128>}, {transform_indices = @transform_1, window_bounds = array<i64: 1, 1, 1, 256, 128>}, {transform_indices = @transform_2, window_bounds = array<i64: 1, 1, 1, 256, 128>}, {transform_indices = @transform_3, window_bounds = array<i64: 1, 1, 256, 128>}]} {
    %c0_i32 = arith.constant 0 : i32
    %0 = arith.cmpi eq, %arg3, %c0_i32 : i32
    %1 = arith.extui %0 : i1 to i32
    %c0_i32_0 = arith.constant 0 : i32
    %2 = arith.cmpi ne, %1, %c0_i32_0 : i32
    scf.if %2 {
      %cst_32 = arith.constant 0xFF800000 : f32
      %36 = vector.broadcast %cst_32 : f32 to vector<256x1xf32>
      %c0_33 = arith.constant 0 : index
      %c0_34 = arith.constant 0 : index
      %37 = vector.load %arg8[%c0_33, %c0_34] : memref<256x1xf32, #tpu.memory_space<vmem>>, vector<256x1xf32>
      tpu.vector_store %arg8[%c0_33, %c0_34], %36 {strides = array<i32>} : memref<256x1xf32, #tpu.memory_space<vmem>>, vector<256x1xf32>,
      %cst_35 = arith.constant 0.000000e+00 : f32
      %38 = vector.broadcast %cst_35 : f32 to vector<256x1xf32>
      %c0_36 = arith.constant 0 : index
      %c0_37 = arith.constant 0 : index
      %39 = vector.load %arg9[%c0_36, %c0_37] : memref<256x1xf32, #tpu.memory_space<vmem>>, vector<256x1xf32>
      tpu.vector_store %arg9[%c0_36, %c0_37], %38 {strides = array<i32>} : memref<256x1xf32, #tpu.memory_space<vmem>>, vector<256x1xf32>,
      %cst_38 = arith.constant 0.000000e+00 : f32
      %40 = vector.broadcast %cst_38 : f32 to vector<256x128xf32>
      %c0_39 = arith.constant 0 : index
      %c0_40 = arith.constant 0 : index
      %41 = vector.load %arg10[%c0_39, %c0_40] : memref<256x128xf32, #tpu.memory_space<vmem>>, vector<256x128xf32>
      tpu.vector_store %arg10[%c0_39, %c0_40], %40 {strides = array<i32>} : memref<256x128xf32, #tpu.memory_space<vmem>>, vector<256x128xf32>,
    } else {
    }
    %c0 = arith.constant 0 : index
    %c0_1 = arith.constant 0 : index
    %c0_2 = arith.constant 0 : index
    %c0_3 = arith.constant 0 : index
    %c0_4 = arith.constant 0 : index
    %3 = vector.load %arg4[%c0, %c0_1, %c0_2, %c0_3, %c0_4] : memref<1x1x1x256x128xbf16, #tpu.memory_space<vmem>>, vector<1x1x1x256x128xbf16>
    %4 = vector.shape_cast %3 : vector<1x1x1x256x128xbf16> to vector<256x128xbf16>
    %c0_5 = arith.constant 0 : index
    %c0_6 = arith.constant 0 : index
    %c0_7 = arith.constant 0 : index
    %c0_8 = arith.constant 0 : index
    %c0_9 = arith.constant 0 : index
    %5 = vector.load %arg5[%c0_5, %c0_6, %c0_7, %c0_8, %c0_9] : memref<1x1x1x256x128xbf16, #tpu.memory_space<vmem>>, vector<1x1x1x256x128xbf16>
    %6 = vector.shape_cast %5 : vector<1x1x1x256x128xbf16> to vector<256x128xbf16>
    %cst = arith.constant dense<0.000000e+00> : vector<256x256xf32>
    %7 = tpu.matmul %4, %6, %cst {dimension_numbers = #tpu.dot_dimension_numbers<[1], [1], [0], [0], [0, 0, 1, 0], [], []>} : vector<256x128xbf16>, vector<256x128xbf16>, vector<256x256xf32> -> vector<256x256xf32>
    %c0_10 = arith.constant 0 : index
    %c0_11 = arith.constant 0 : index
    %8 = vector.load %arg8[%c0_10, %c0_11] : memref<256x1xf32, #tpu.memory_space<vmem>>, vector<256x1xf32>
    %cst_12 = arith.constant dense<0xFF800000> : vector<256xf32>
    %9 = vector.multi_reduction <maximumf>, %7, %cst_12 [1] : vector<256x256xf32> to vector<256xf32>
    %10 = vector.shape_cast %9 : vector<256xf32> to vector<256x1xf32>
    %11 = arith.maximumf %8, %10 : vector<256x1xf32>
    %12 = arith.subf %8, %11 : vector<256x1xf32>
    %13 = math.exp %12 : vector<256x1xf32>
    %14 = vector.broadcast %11 : vector<256x1xf32> to vector<256x256xf32>
    %15 = arith.subf %7, %14 : vector<256x256xf32>
    %16 = math.exp %15 : vector<256x256xf32>
    %c0_13 = arith.constant 0 : index
    %c0_14 = arith.constant 0 : index
    %17 = vector.load %arg9[%c0_13, %c0_14] : memref<256x1xf32, #tpu.memory_space<vmem>>, vector<256x1xf32>
    %18 = arith.mulf %13, %17 : vector<256x1xf32>
    %cst_15 = arith.constant dense<0.000000e+00> : vector<256xf32>
    %19 = vector.multi_reduction <add>, %16, %cst_15 [1] : vector<256x256xf32> to vector<256xf32>
    %20 = vector.shape_cast %19 : vector<256xf32> to vector<256x1xf32>
    %21 = arith.addf %18, %20 : vector<256x1xf32>
    %c0_16 = arith.constant 0 : index
    %c0_17 = arith.constant 0 : index
    %22 = vector.load %arg9[%c0_16, %c0_17] : memref<256x1xf32, #tpu.memory_space<vmem>>, vector<256x1xf32>
    tpu.vector_store %arg9[%c0_16, %c0_17], %21 {strides = array<i32>} : memref<256x1xf32, #tpu.memory_space<vmem>>, vector<256x1xf32>,
    %c0_18 = arith.constant 0 : index
    %c0_19 = arith.constant 0 : index
    %23 = vector.load %arg10[%c0_18, %c0_19] : memref<256x128xf32, #tpu.memory_space<vmem>>, vector<256x128xf32>
    %24 = vector.broadcast %13 : vector<256x1xf32> to vector<256x128xf32>
    %25 = arith.mulf %24, %23 : vector<256x128xf32>
    %26 = arith.truncf %16 : vector<256x256xf32> to vector<256x256xbf16>
    %c0_20 = arith.constant 0 : index
    %c0_21 = arith.constant 0 : index
    %c0_22 = arith.constant 0 : index
    %c0_23 = arith.constant 0 : index
    %c0_24 = arith.constant 0 : index
    %27 = vector.load %arg6[%c0_20, %c0_21, %c0_22, %c0_23, %c0_24] : memref<1x1x1x256x128xbf16, #tpu.memory_space<vmem>>, vector<1x1x1x256x128xbf16>
    %28 = vector.shape_cast %27 : vector<1x1x1x256x128xbf16> to vector<256x128xbf16>
    %cst_25 = arith.constant dense<0.000000e+00> : vector<256x128xf32>
    %29 = tpu.matmul %26, %28, %cst_25 {dimension_numbers = #tpu.dot_dimension_numbers<[1], [0], [0], [1], [0, 0, 1, 1], [], []>} : vector<256x256xbf16>, vector<256x128xbf16>, vector<256x128xf32> -> vector<256x128xf32>
    %30 = arith.addf %25, %29 : vector<256x128xf32>
    %c0_26 = arith.constant 0 : index
    %c0_27 = arith.constant 0 : index
    %31 = vector.load %arg10[%c0_26, %c0_27] : memref<256x128xf32, #tpu.memory_space<vmem>>, vector<256x128xf32>
    tpu.vector_store %arg10[%c0_26, %c0_27], %30 {strides = array<i32>} : memref<256x128xf32, #tpu.memory_space<vmem>>, vector<256x128xf32>,
    %c0_28 = arith.constant 0 : index
    %c0_29 = arith.constant 0 : index
    %32 = vector.load %arg8[%c0_28, %c0_29] : memref<256x1xf32, #tpu.memory_space<vmem>>, vector<256x1xf32>
    tpu.vector_store %arg8[%c0_28, %c0_29], %11 {strides = array<i32>} : memref<256x1xf32, #tpu.memory_space<vmem>>, vector<256x1xf32>,
    %c0_i32_30 = arith.constant 0 : i32
    %33 = arith.cmpi eq, %arg3, %c0_i32_30 : i32
    %34 = arith.extui %33 : i1 to i32
    %c0_i32_31 = arith.constant 0 : i32
    %35 = arith.cmpi ne, %34, %c0_i32_31 : i32
    scf.if %35 {
      %c0_32 = arith.constant 0 : index
      %c0_33 = arith.constant 0 : index
      %36 = vector.load %arg10[%c0_32, %c0_33] : memref<256x128xf32, #tpu.memory_space<vmem>>, vector<256x128xf32>
      %c0_34 = arith.constant 0 : index
      %c0_35 = arith.constant 0 : index
      %37 = vector.load %arg9[%c0_34, %c0_35] : memref<256x1xf32, #tpu.memory_space<vmem>>, vector<256x1xf32>
      %38 = tpu.reciprocal %37 {approx = true} : vector<256x1xf32> -> vector<256x1xf32>
      %39 = vector.broadcast %38 : vector<256x1xf32> to vector<256x128xf32>
      %40 = arith.mulf %36, %39 : vector<256x128xf32>
      %41 = arith.truncf %40 : vector<256x128xf32> to vector<256x128xbf16>
      %c0_36 = arith.constant 0 : index
      %c0_37 = arith.constant 0 : index
      %c0_38 = arith.constant 0 : index
      %c0_39 = arith.constant 0 : index
      %42 = vector.load %arg7[%c0_36, %c0_37, %c0_38, %c0_39] : memref<1x1x256x128xbf16, #tpu.memory_space<vmem>>, vector<1x1x256x128xbf16>
      %43 = vector.shape_cast %42 : vector<1x1x256x128xbf16> to vector<256x128xbf16>
      %44 = vector.shape_cast %41 : vector<256x128xbf16> to vector<1x1x256x128xbf16>
      tpu.vector_store %arg7[%c0_36, %c0_37, %c0_38, %c0_39], %44 {strides = array<i32>} : memref<1x1x256x128xbf16, #tpu.memory_space<vmem>>, vector<1x1x256x128xbf16>,
    } else {
    }
    return
  }
  func.func @transform_0(%arg0: i32, %arg1: i32, %arg2: i32, %arg3: i32) -> (i32, i32, i32, i32, i32) {
    %c0_i32 = arith.constant 0 : i32
    %c0_i32_0 = arith.constant 0 : i32
    %c0_i32_1 = arith.constant 0 : i32
    return %c0_i32, %arg0, %arg1, %arg2, %c0_i32_0 : i32, i32, i32, i32, i32
  }
  func.func @transform_1(%arg0: i32, %arg1: i32, %arg2: i32, %arg3: i32) -> (i32, i32, i32, i32, i32) {
    %c1_i32 = arith.constant 1 : i32
    %c0_i32 = arith.constant 0 : i32
    %c0_i32_0 = arith.constant 0 : i32
    return %c1_i32, %arg0, %arg1, %arg3, %c0_i32 : i32, i32, i32, i32, i32
  }
  func.func @transform_2(%arg0: i32, %arg1: i32, %arg2: i32, %arg3: i32) -> (i32, i32, i32, i32, i32) {
    %c2_i32 = arith.constant 2 : i32
    %c0_i32 = arith.constant 0 : i32
    %c0_i32_0 = arith.constant 0 : i32
    return %c2_i32, %arg0, %arg1, %arg3, %c0_i32 : i32, i32, i32, i32, i32
  }
  func.func @transform_3(%arg0: i32, %arg1: i32, %arg2: i32, %arg3: i32) -> (i32, i32, i32, i32) {
    %c0_i32 = arith.constant 0 : i32
    %c0_i32_0 = arith.constant 0 : i32
    return %arg0, %arg1, %arg2, %c0_i32 : i32, i32, i32, i32
  }
}

module attributes {stable_mosaic.version = 11 : i64} {
  func.func @_qkv_norm_rope_kernel(%arg0: i32, %arg1: i32, %arg2: i32, %arg3: memref<256x256xbf16, #tpu.memory_space<vmem>>, %arg4: memref<256x256xbf16, #tpu.memory_space<vmem>>, %arg5: memref<256x128xf32, #tpu.memory_space<vmem>>, %arg6: memref<256x128xf32, #tpu.memory_space<vmem>>, %arg7: memref<1x1x128xf32, #tpu.memory_space<vmem>>, %arg8: memref<2x256x128xbf16, #tpu.memory_space<vmem>>, %arg9: memref<256x256xf32, #tpu.memory_space<vmem>>) attributes {dimension_semantics = [#tpu.dimension_semantics<parallel>, #tpu.dimension_semantics<parallel>, #tpu.dimension_semantics<arbitrary>], iteration_bounds = array<i64: 2, 3, 1>, scalar_prefetch = 0 : i64, scratch_operands = 1 : i64, tpu.core_type = #tpu.core_type<tc>, window_params = [{transform_indices = @transform_0, window_bounds = array<i64: 256, 256>}, {transform_indices = @transform_1, window_bounds = array<i64: 256, 256>}, {transform_indices = @transform_2, window_bounds = array<i64: 256, 128>}, {transform_indices = @transform_3, window_bounds = array<i64: 256, 128>}, {transform_indices = @transform_4, window_bounds = array<i64: 1, 1, 128>}, {transform_indices = @transform_5, window_bounds = array<i64: 2, 256, 128>}]} {
    %c0_i32 = arith.constant 0 : i32
    %0 = arith.cmpi eq, %arg2, %c0_i32 : i32
    %1 = arith.extui %0 : i1 to i32
    %c0_i32_0 = arith.constant 0 : i32
    %2 = arith.cmpi ne, %1, %c0_i32_0 : i32
    scf.if %2 {
      %cst_12 = arith.constant 0.000000e+00 : f32
      %18 = vector.broadcast %cst_12 : f32 to vector<256x256xf32>
      %c0_13 = arith.constant 0 : index
      %c0_14 = arith.constant 0 : index
      %19 = vector.load %arg9[%c0_13, %c0_14] : memref<256x256xf32, #tpu.memory_space<vmem>>, vector<256x256xf32>
      tpu.vector_store %arg9[%c0_13, %c0_14], %18 {strides = array<i32>} : memref<256x256xf32, #tpu.memory_space<vmem>>, vector<256x256xf32>,
    } else {
    }
    %c0 = arith.constant 0 : index
    %c0_1 = arith.constant 0 : index
    %3 = vector.load %arg9[%c0, %c0_1] : memref<256x256xf32, #tpu.memory_space<vmem>>, vector<256x256xf32>
    %c0_2 = arith.constant 0 : index
    %c0_3 = arith.constant 0 : index
    %4 = vector.load %arg3[%c0_2, %c0_3] : memref<256x256xbf16, #tpu.memory_space<vmem>>, vector<256x256xbf16>
    %c0_4 = arith.constant 0 : index
    %c0_5 = arith.constant 0 : index
    %5 = vector.load %arg4[%c0_4, %c0_5] : memref<256x256xbf16, #tpu.memory_space<vmem>>, vector<256x256xbf16>
    %cst = arith.constant dense<0.000000e+00> : vector<256x256xf32>
    %6 = tpu.matmul %4, %5, %cst {dimension_numbers = #tpu.dot_dimension_numbers<[1], [0], [0], [1], [0, 0, 1, 1], [], []>} : vector<256x256xbf16>, vector<256x256xbf16>, vector<256x256xf32> -> vector<256x256xf32>
    %7 = arith.addf %3, %6 : vector<256x256xf32>
    %c0_6 = arith.constant 0 : index
    %c0_7 = arith.constant 0 : index
    %8 = vector.load %arg9[%c0_6, %c0_7] : memref<256x256xf32, #tpu.memory_space<vmem>>, vector<256x256xf32>
    tpu.vector_store %arg9[%c0_6, %c0_7], %7 {strides = array<i32>} : memref<256x256xf32, #tpu.memory_space<vmem>>, vector<256x256xf32>,
    %c0_i32_8 = arith.constant 0 : i32
    %9 = arith.cmpi eq, %arg2, %c0_i32_8 : i32
    %c2_i32 = arith.constant 2 : i32
    %10 = arith.cmpi slt, %arg1, %c2_i32 : i32
    %11 = arith.andi %9, %10 : i1
    %12 = arith.extui %11 : i1 to i32
    %c0_i32_9 = arith.constant 0 : i32
    %13 = arith.cmpi ne, %12, %c0_i32_9 : i32
    scf.if %13 {
      %c0_12 = arith.constant 0 : index
      %c0_13 = arith.constant 0 : index
      %18 = vector.load %arg5[%c0_12, %c0_13] : memref<256x128xf32, #tpu.memory_space<vmem>>, vector<256x128xf32>
      %c0_14 = arith.constant 0 : index
      %c0_15 = arith.constant 0 : index
      %19 = vector.load %arg6[%c0_14, %c0_15] : memref<256x128xf32, #tpu.memory_space<vmem>>, vector<256x128xf32>
      %c0_16 = arith.constant 0 : index
      %c0_17 = arith.constant 0 : index
      %c0_18 = arith.constant 0 : index
      %20 = vector.load %arg7[%c0_16, %c0_17, %c0_18] : memref<1x1x128xf32, #tpu.memory_space<vmem>>, vector<1x1x128xf32>
      %21 = vector.shape_cast %20 : vector<1x1x128xf32> to vector<1x128xf32>
      %c0_19 = arith.constant 0 : index
      %c0_20 = arith.constant 0 : index
      %22 = vector.load %arg9[%c0_19, %c0_20] : memref<256x256xf32, #tpu.memory_space<vmem>>, vector<256x128xf32>
      %23 = arith.mulf %22, %22 : vector<256x128xf32>
      %cst_21 = arith.constant dense<0.000000e+00> : vector<256xf32>
      %24 = vector.multi_reduction <add>, %23, %cst_21 [1] : vector<256x128xf32> to vector<256xf32>
      %25 = vector.shape_cast %24 : vector<256xf32> to vector<256x1xf32>
      %cst_22 = arith.constant 1.280000e+02 : f32
      %26 = vector.broadcast %cst_22 : f32 to vector<256x1xf32>
      %27 = arith.divf %25, %26 : vector<256x1xf32>
      %cst_23 = arith.constant 9.99999997E-7 : f32
      %28 = vector.broadcast %cst_23 : f32 to vector<256x1xf32>
      %29 = arith.addf %27, %28 : vector<256x1xf32>
      %30 = math.rsqrt %29 : vector<256x1xf32>
      %31 = vector.broadcast %30 : vector<256x1xf32> to vector<256x128xf32>
      %32 = arith.mulf %22, %31 : vector<256x128xf32>
      %33 = vector.broadcast %21 : vector<1x128xf32> to vector<256x128xf32>
      %34 = arith.mulf %32, %33 : vector<256x128xf32>
      %35 = arith.mulf %18, %34 : vector<256x128xf32>
      %c64_i32 = arith.constant 64 : i32
      %36 = tpu.dynamic_rotate %34 by %c64_i32 dim 1 : vector<256x128xf32>, i32 -> vector<256x128xf32>
      %37 = arith.mulf %19, %36 : vector<256x128xf32>
      %38 = arith.addf %35, %37 : vector<256x128xf32>
      %39 = arith.truncf %38 : vector<256x128xf32> to vector<256x128xbf16>
      %c0_24 = arith.constant 0 : index
      %c0_25 = arith.constant 0 : index
      %c0_26 = arith.constant 0 : index
      %40 = vector.load %arg8[%c0_24, %c0_25, %c0_26] : memref<2x256x128xbf16, #tpu.memory_space<vmem>>, vector<1x256x128xbf16>
      %41 = vector.shape_cast %40 : vector<1x256x128xbf16> to vector<256x128xbf16>
      %42 = vector.shape_cast %39 : vector<256x128xbf16> to vector<1x256x128xbf16>
      tpu.vector_store %arg8[%c0_24, %c0_25, %c0_26], %42 {strides = array<i32>} : memref<2x256x128xbf16, #tpu.memory_space<vmem>>, vector<1x256x128xbf16>,
      %c0_27 = arith.constant 0 : index
      %c128 = arith.constant 128 : index
      %43 = vector.load %arg9[%c0_27, %c128] : memref<256x256xf32, #tpu.memory_space<vmem>>, vector<256x128xf32>
      %44 = arith.mulf %43, %43 : vector<256x128xf32>
      %cst_28 = arith.constant dense<0.000000e+00> : vector<256xf32>
      %45 = vector.multi_reduction <add>, %44, %cst_28 [1] : vector<256x128xf32> to vector<256xf32>
      %46 = vector.shape_cast %45 : vector<256xf32> to vector<256x1xf32>
      %cst_29 = arith.constant 1.280000e+02 : f32
      %47 = vector.broadcast %cst_29 : f32 to vector<256x1xf32>
      %48 = arith.divf %46, %47 : vector<256x1xf32>
      %cst_30 = arith.constant 9.99999997E-7 : f32
      %49 = vector.broadcast %cst_30 : f32 to vector<256x1xf32>
      %50 = arith.addf %48, %49 : vector<256x1xf32>
      %51 = math.rsqrt %50 : vector<256x1xf32>
      %52 = vector.broadcast %51 : vector<256x1xf32> to vector<256x128xf32>
      %53 = arith.mulf %43, %52 : vector<256x128xf32>
      %54 = vector.broadcast %21 : vector<1x128xf32> to vector<256x128xf32>
      %55 = arith.mulf %53, %54 : vector<256x128xf32>
      %56 = arith.mulf %18, %55 : vector<256x128xf32>
      %c64_i32_31 = arith.constant 64 : i32
      %57 = tpu.dynamic_rotate %55 by %c64_i32_31 dim 1 : vector<256x128xf32>, i32 -> vector<256x128xf32>
      %58 = arith.mulf %19, %57 : vector<256x128xf32>
      %59 = arith.addf %56, %58 : vector<256x128xf32>
      %60 = arith.truncf %59 : vector<256x128xf32> to vector<256x128xbf16>
      %c1 = arith.constant 1 : index
      %c0_32 = arith.constant 0 : index
      %c0_33 = arith.constant 0 : index
      %61 = vector.load %arg8[%c1, %c0_32, %c0_33] : memref<2x256x128xbf16, #tpu.memory_space<vmem>>, vector<1x256x128xbf16>
      %62 = vector.shape_cast %61 : vector<1x256x128xbf16> to vector<256x128xbf16>
      %63 = vector.shape_cast %60 : vector<256x128xbf16> to vector<1x256x128xbf16>
      tpu.vector_store %arg8[%c1, %c0_32, %c0_33], %63 {strides = array<i32>} : memref<2x256x128xbf16, #tpu.memory_space<vmem>>, vector<1x256x128xbf16>,
    } else {
    }
    %c2_i32_10 = arith.constant 2 : i32
    %14 = arith.cmpi sge, %arg1, %c2_i32_10 : i32
    %15 = arith.andi %9, %14 : i1
    %16 = arith.extui %15 : i1 to i32
    %c0_i32_11 = arith.constant 0 : i32
    %17 = arith.cmpi ne, %16, %c0_i32_11 : i32
    scf.if %17 {
      %c0_12 = arith.constant 0 : index
      %c0_13 = arith.constant 0 : index
      %18 = vector.load %arg9[%c0_12, %c0_13] : memref<256x256xf32, #tpu.memory_space<vmem>>, vector<256x128xf32>
      %19 = arith.truncf %18 : vector<256x128xf32> to vector<256x128xbf16>
      %c0_14 = arith.constant 0 : index
      %c0_15 = arith.constant 0 : index
      %c0_16 = arith.constant 0 : index
      %20 = vector.load %arg8[%c0_14, %c0_15, %c0_16] : memref<2x256x128xbf16, #tpu.memory_space<vmem>>, vector<1x256x128xbf16>
      %21 = vector.shape_cast %20 : vector<1x256x128xbf16> to vector<256x128xbf16>
      %22 = vector.shape_cast %19 : vector<256x128xbf16> to vector<1x256x128xbf16>
      tpu.vector_store %arg8[%c0_14, %c0_15, %c0_16], %22 {strides = array<i32>} : memref<2x256x128xbf16, #tpu.memory_space<vmem>>, vector<1x256x128xbf16>,
      %c0_17 = arith.constant 0 : index
      %c128 = arith.constant 128 : index
      %23 = vector.load %arg9[%c0_17, %c128] : memref<256x256xf32, #tpu.memory_space<vmem>>, vector<256x128xf32>
      %24 = arith.truncf %23 : vector<256x128xf32> to vector<256x128xbf16>
      %c1 = arith.constant 1 : index
      %c0_18 = arith.constant 0 : index
      %c0_19 = arith.constant 0 : index
      %25 = vector.load %arg8[%c1, %c0_18, %c0_19] : memref<2x256x128xbf16, #tpu.memory_space<vmem>>, vector<1x256x128xbf16>
      %26 = vector.shape_cast %25 : vector<1x256x128xbf16> to vector<256x128xbf16>
      %27 = vector.shape_cast %24 : vector<256x128xbf16> to vector<1x256x128xbf16>
      tpu.vector_store %arg8[%c1, %c0_18, %c0_19], %27 {strides = array<i32>} : memref<2x256x128xbf16, #tpu.memory_space<vmem>>, vector<1x256x128xbf16>,
    } else {
    }
    return
  }
  func.func @transform_0(%arg0: i32, %arg1: i32, %arg2: i32) -> (i32, i32) {
    %c0_i32 = arith.constant 0 : i32
    return %arg0, %arg2 : i32, i32
  }
  func.func @transform_1(%arg0: i32, %arg1: i32, %arg2: i32) -> (i32, i32) {
    %c0_i32 = arith.constant 0 : i32
    return %arg2, %arg1 : i32, i32
  }
  func.func @transform_2(%arg0: i32, %arg1: i32, %arg2: i32) -> (i32, i32) {
    %c0_i32 = arith.constant 0 : i32
    %c0_i32_0 = arith.constant 0 : i32
    return %arg0, %c0_i32 : i32, i32
  }
  func.func @transform_3(%arg0: i32, %arg1: i32, %arg2: i32) -> (i32, i32) {
    %c0_i32 = arith.constant 0 : i32
    %c0_i32_0 = arith.constant 0 : i32
    return %arg0, %c0_i32 : i32, i32
  }
  func.func @transform_4(%arg0: i32, %arg1: i32, %arg2: i32) -> (i32, i32, i32) {
    %c0_i32 = arith.constant 0 : i32
    %c0_i32_0 = arith.constant 0 : i32
    %c0_i32_1 = arith.constant 0 : i32
    return %arg1, %c0_i32, %c0_i32_0 : i32, i32, i32
  }
  func.func @transform_5(%arg0: i32, %arg1: i32, %arg2: i32) -> (i32, i32, i32) {
    %c0_i32 = arith.constant 0 : i32
    %c0_i32_0 = arith.constant 0 : i32
    return %arg1, %arg0, %c0_i32 : i32, i32, i32
  }
}

module attributes {stable_mosaic.version = 11 : i64} {
  func.func @_proj_matmul_kernel(%arg0: i32, %arg1: i32, %arg2: i32, %arg3: memref<2x256x128xbf16, #tpu.memory_space<vmem>>, %arg4: memref<256x256xbf16, #tpu.memory_space<vmem>>, %arg5: memref<1x256xf32, #tpu.memory_space<vmem>>, %arg6: memref<256x256xf32, #tpu.memory_space<vmem>>, %arg7: memref<256x256xf32, #tpu.memory_space<vmem>>) attributes {dimension_semantics = [#tpu.dimension_semantics<parallel>, #tpu.dimension_semantics<parallel>, #tpu.dimension_semantics<arbitrary>], iteration_bounds = array<i64: 2, 1, 1>, scalar_prefetch = 0 : i64, scratch_operands = 1 : i64, tpu.core_type = #tpu.core_type<tc>, window_params = [{transform_indices = @transform_0, window_bounds = array<i64: 2, 256, 128>}, {transform_indices = @transform_1, window_bounds = array<i64: 256, 256>}, {transform_indices = @transform_2, window_bounds = array<i64: 1, 256>}, {transform_indices = @transform_3, window_bounds = array<i64: 256, 256>}]} {
    %c0_i32 = arith.constant 0 : i32
    %0 = arith.cmpi eq, %arg2, %c0_i32 : i32
    %1 = arith.extui %0 : i1 to i32
    %c0_i32_0 = arith.constant 0 : i32
    %2 = arith.cmpi ne, %1, %c0_i32_0 : i32
    scf.if %2 {
      %cst_15 = arith.constant 0.000000e+00 : f32
      %18 = vector.broadcast %cst_15 : f32 to vector<256x256xf32>
      %c0_16 = arith.constant 0 : index
      %c0_17 = arith.constant 0 : index
      %19 = vector.load %arg7[%c0_16, %c0_17] : memref<256x256xf32, #tpu.memory_space<vmem>>, vector<256x256xf32>
      tpu.vector_store %arg7[%c0_16, %c0_17], %18 {strides = array<i32>} : memref<256x256xf32, #tpu.memory_space<vmem>>, vector<256x256xf32>,
    } else {
    }
    %c0 = arith.constant 0 : index
    %c0_1 = arith.constant 0 : index
    %c0_2 = arith.constant 0 : index
    %3 = vector.load %arg3[%c0, %c0_1, %c0_2] : memref<2x256x128xbf16, #tpu.memory_space<vmem>>, vector<1x256x128xbf16>
    %4 = vector.shape_cast %3 : vector<1x256x128xbf16> to vector<256x128xbf16>
    %c0_3 = arith.constant 0 : index
    %c0_4 = arith.constant 0 : index
    %5 = vector.load %arg4[%c0_3, %c0_4] : memref<256x256xbf16, #tpu.memory_space<vmem>>, vector<128x256xbf16>
    %cst = arith.constant dense<0.000000e+00> : vector<256x256xf32>
    %6 = tpu.matmul %4, %5, %cst {dimension_numbers = #tpu.dot_dimension_numbers<[1], [0], [0], [1], [0, 0, 1, 1], [], []>} : vector<256x128xbf16>, vector<128x256xbf16>, vector<256x256xf32> -> vector<256x256xf32>
    %c1 = arith.constant 1 : index
    %c0_5 = arith.constant 0 : index
    %c0_6 = arith.constant 0 : index
    %7 = vector.load %arg3[%c1, %c0_5, %c0_6] : memref<2x256x128xbf16, #tpu.memory_space<vmem>>, vector<1x256x128xbf16>
    %8 = vector.shape_cast %7 : vector<1x256x128xbf16> to vector<256x128xbf16>
    %c128 = arith.constant 128 : index
    %c0_7 = arith.constant 0 : index
    %9 = vector.load %arg4[%c128, %c0_7] : memref<256x256xbf16, #tpu.memory_space<vmem>>, vector<128x256xbf16>
    %cst_8 = arith.constant dense<0.000000e+00> : vector<256x256xf32>
    %10 = tpu.matmul %8, %9, %cst_8 {dimension_numbers = #tpu.dot_dimension_numbers<[1], [0], [0], [1], [0, 0, 1, 1], [], []>} : vector<256x128xbf16>, vector<128x256xbf16>, vector<256x256xf32> -> vector<256x256xf32>
    %11 = arith.addf %6, %10 : vector<256x256xf32>
    %c0_9 = arith.constant 0 : index
    %c0_10 = arith.constant 0 : index
    %12 = vector.load %arg7[%c0_9, %c0_10] : memref<256x256xf32, #tpu.memory_space<vmem>>, vector<256x256xf32>
    %13 = arith.addf %12, %11 : vector<256x256xf32>
    %c0_11 = arith.constant 0 : index
    %c0_12 = arith.constant 0 : index
    %14 = vector.load %arg7[%c0_11, %c0_12] : memref<256x256xf32, #tpu.memory_space<vmem>>, vector<256x256xf32>
    tpu.vector_store %arg7[%c0_11, %c0_12], %13 {strides = array<i32>} : memref<256x256xf32, #tpu.memory_space<vmem>>, vector<256x256xf32>,
    %c0_i32_13 = arith.constant 0 : i32
    %15 = arith.cmpi eq, %arg2, %c0_i32_13 : i32
    %16 = arith.extui %15 : i1 to i32
    %c0_i32_14 = arith.constant 0 : i32
    %17 = arith.cmpi ne, %16, %c0_i32_14 : i32
    scf.if %17 {
      %c0_15 = arith.constant 0 : index
      %c0_16 = arith.constant 0 : index
      %18 = vector.load %arg7[%c0_15, %c0_16] : memref<256x256xf32, #tpu.memory_space<vmem>>, vector<256x256xf32>
      %c0_17 = arith.constant 0 : index
      %c0_18 = arith.constant 0 : index
      %19 = vector.load %arg5[%c0_17, %c0_18] : memref<1x256xf32, #tpu.memory_space<vmem>>, vector<1x256xf32>
      %20 = vector.broadcast %19 : vector<1x256xf32> to vector<256x256xf32>
      %21 = arith.addf %18, %20 : vector<256x256xf32>
      %c0_19 = arith.constant 0 : index
      %c0_20 = arith.constant 0 : index
      %22 = vector.load %arg6[%c0_19, %c0_20] : memref<256x256xf32, #tpu.memory_space<vmem>>, vector<256x256xf32>
      tpu.vector_store %arg6[%c0_19, %c0_20], %21 {strides = array<i32>} : memref<256x256xf32, #tpu.memory_space<vmem>>, vector<256x256xf32>,
    } else {
    }
    return
  }
  func.func @transform_0(%arg0: i32, %arg1: i32, %arg2: i32) -> (i32, i32, i32) {
    %c0_i32 = arith.constant 0 : i32
    %c0_i32_0 = arith.constant 0 : i32
    return %arg2, %arg0, %c0_i32 : i32, i32, i32
  }
  func.func @transform_1(%arg0: i32, %arg1: i32, %arg2: i32) -> (i32, i32) {
    %c0_i32 = arith.constant 0 : i32
    return %arg2, %arg1 : i32, i32
  }
  func.func @transform_2(%arg0: i32, %arg1: i32, %arg2: i32) -> (i32, i32) {
    %c0_i32 = arith.constant 0 : i32
    %c0_i32_0 = arith.constant 0 : i32
    return %c0_i32, %arg1 : i32, i32
  }
  func.func @transform_3(%arg0: i32, %arg1: i32, %arg2: i32) -> (i32, i32) {
    %c0_i32 = arith.constant 0 : i32
    return %arg0, %arg1 : i32, i32
  }
}

</mosaic_0001>

<bundles_post_ra>
// kernel: self_attention_forward.4
= control target key start
LH: loop header
LB: loop body
LE: loop exit
PB: predicated region body
PF: predicated region fallthrough
CT: control target
= control target key end

     0   :  { %s5516_s0 = inlined_call_operand.hbm [shape: bf16[3,2,2,256,128], index: 0, kind: input, shape index: {}, may-alias: {0,1,2}]   ;;  %s5517_s1 = inlined_call_operand.hbm [shape: bf16[3,2,2,256,128], index: 1, kind: input, shape index: {}, may-alias: {0,1,2}]   ;;  %s5518_s2 = inlined_call_operand.hbm [shape: bf16[3,2,2,256,128], index: 2, kind: input, shape index: {}, may-alias: {0,1,2}]   ;;  %s5519_s3 = inlined_call_operand.hbm [shape: bf16[2,2,256,128], index: 3, kind: output, shape index: {}]  }
   0x1   :  { %5605 = sst [smem:[#allocation87_spill]] %s5517_s1 }
   0x2   :  { %8 = vsyncpa [#allocation6], 0 }
   0x3   :  { %10 = vsyncpa [#allocation6 + $0x1], 0 }
   0x4   :  { %11 = vsyncpa [#allocation9], 0 }
   0x5   :  { %13 = vsyncpa [#allocation9 + $0x1], 0 }
   0x6   :  { %14 = vsyncpa [#allocation7], 0 }
   0x7   :  { %16 = vsyncpa [#allocation7 + $0x1], 0  ;;  %s3997_s12 = smov 0   ;;  %s3999_s13 = smov 0  }
   0x8   :  { %s4001_s14 = smov 0   ;;  %s4003_s15 = smov 0  }
   0x9   :  { %s4005_s16 = smov 0   ;;  %s4007_s17 = smov 0  }
   0xa   :  { %s4009_s18 = smov 0   ;;  %s4011_s19 = smov 0  }
   0xb LB: > { %5606 = sst [smem:[#allocation15_spill]] %s3956_s17  ;;  %s4038_s20 = sadd.s32 4294967295, %s3964_s19   ;;  %s3964_s19 = sphi %s4011_s19, %s22_s19   ;;  %s3960_s18 = sphi %s4009_s18, %s5819_s18   ;;  %s3956_s17 = sphi %s4007_s17, %s5818_s17   ;;  %s3952_s16 = sphi %s4005_s16, %s5817_s16   ;;  %s3948_s15 = sphi %s4003_s15, %s5816_s15   ;;  %s3944_s14 = sphi %s4001_s14, %s5822_s14   ;;  %s3940_s13 = sphi %s3999_s13, %s5821_s13   ;;  %s3936_s12 = sphi %s3997_s12, %s5820_s12  }
   0xc   : > { %5607 = sst [smem:[#allocation16_spill]] %s3960_s18  ;;  %s2976_s21 = sadd.s32 4294967294, %s3964_s19  }
   0xd   : > { %s44_s22 = sadd.s32 1, %s3956_s17  ;;  %s48_s23 = sadd.s32 1, %s3960_s18 }
   0xe   : > { %p46_p0 = scmp.ge.s32.totalorder %s44_s22, 2  ;;  %s59_s24 = sadd.s32 1, %s3944_s14 }
   0xf   : > { %p66_p1 = scmp.ne.s32.totalorder %s3944_s14, %s3940_s13  ;;  %p67_p2 = scmp.eq.s32.totalorder %s3964_s19, 0 }
  0x10   : > { %s5824_s22 = smov (%p46_p0, %s44_s22), 0  ;;  %s5826_s23 = smov (!%p46_p0, %s48_s23), %s3960_s18 }
  0x11   : > { %5608 = sst [smem:[#allocation17_spill]] %s5824_s22  ;;  %s53_s25 = ssub.s32 %s3956_s17, %s5824_s22 }
  0x12   : > { %p4052_p3 = por %p67_p2, %p66_p1  ;;  %p50_p4 = scmp.ge.s32.totalorder %s5826_s23, 2 }
  0x13   : > { %p72_p5 = scmp.ne.s32.totalorder %s3940_s13, %s3936_s12  ;;  %p73_p6 = scmp.eq.s32.totalorder %s4038_s20, 0 }
  0x14   : > { %p160_p7 = scmp.eq.s32.totalorder %s4038_s20, 3  ;;  %s5828_s23 = smov (%p50_p4, %s5826_s23), 0 }
  0x15   : > { %5610 = sst [smem:[#allocation18_spill]] %s5828_s23  ;;  %p4062_p8 = por %p73_p6, %p72_p5 }
  0x16   : > { %p4066_p9 = por %p160_p7, %p66_p1  ;;  %s52_s29 = ssub.s32 %s3960_s18, %s5828_s23 }
  0x17   : > { %s5611_s27 = scalar_select %p4062_p8, 1, 0 }
  0x18   : > { %s5612_s28 = scalar_select %p4066_p9, 1, 0 }
  0x19   : > { %p166_p10 = scmp.eq.s32.totalorder %s2976_s21, 3  ;;  %s54_s30 = sor.u32 %s53_s25, %s52_s29 }
  0x1a   : > { %p57_p11 = scmp.eq.s32.totalorder %s54_s30, 0  ;;  %p3391_p13 = scmp.lt.s32.totalorder %s3964_s19, 4 }
  0x1b   : > { %p4072_p12 = por %p166_p10, %p72_p5  ;;  %s5520_s5 = sand.u32 1, %s3944_s14  }
  0x1c   : > { %s4079_s6 = scalar_select %p57_p11, %s3944_s14, %s59_s24  }
  0x1d   : > { %s5613_s4 = scalar_select %p4072_p12, 1, 0 }
  0x1e   : > { %5615 = sst [smem:[#allocation20_spill]] %s4079_s6  ;;  %s4083_s7 = sshll.u32 %s5520_s5, 7 }
  0x1f   : > { %5614 = sst [smem:[#allocation19_spill]] %s5613_s4  ;;  %s2980_s8 = sshll.u32 %s3956_s17, 5 }
  0x20   : > { %s2981_s9 = sshll.u32 %s3960_s18, 6  ;;  %p4089_p0 = pnand %p3391_p13, %p4052_p3 }
  0x21   : > { %s198_s11 = sadd.s32 %s2981_s9, %s2980_s8  ;;  %s211_s25 = sand.u32 1, %s3964_s19  }
  0x22   : > { %s4093_s21 = sshll.u32 %s198_s11, 6  ;;  %s5617_s1 = sld [smem:[#allocation87_spill]] }
  0x23   : > { %s215_s5 = scalar_lea.vmem [#allocation8], %s4083_s7  ;;  %s4105_s26 = scalar_lea.sflag [#allocation9], %s211_s25 }
  0x24   : > { %s227_s23 = sshll.u32 %s215_s5, 4  ;;  %p4110_p2 = pneg %p4089_p0  ;;  %s4103_s23 = int_to_ptr.vmem [resolvable:$true] %s227_s23 }
  0x28   : > { %s2869_s30 = scalar_lea.hbm %s5617_s1, %s4093_s21  ;;  %s3775_s29 = scalar_lea.hbm %s5617_s1, 24576 }
  0x29   : > { %s4101_s22 = scalar_lea.hbm %s2869_s30, 8192  ;;  %s3800_s8 = scalar_lea.hbm %s2869_s30, 10240 }
  0x2a   : > { %p3771_p1 = scmp.ne.s32.totalorder %s4101_s22, %s3800_s8  ;;  %p3776_p5 = scmp.lt.u32.totalorder %s4101_s22, %s5617_s1 }
  0x2b   : > { %p3777_p6 = scmp.lt.u32.totalorder %s3775_s29, %s3800_s8  ;;  %p3779_p10 = scmp.lt.u32.totalorder %s3800_s8, %s4101_s22 }
  0x2c   : > { %p3773_p3 = pnand %p4110_p2, %p3771_p1 }
  0x2d   : > { %p3778_p7 = por %p3777_p6, %p3776_p5 }
  0x2e   : > { %p3774_p4 = pneg %p3773_p3 }
  0x2f   : > { %p3780_p11 = por %p3779_p10, %p3778_p7 }
  0x31   : > { %p3781_p13 = pnand %p3780_p11, %p3774_p4 }
  0x33   : > { %3784 = shalt.err (!%p3781_p13)
}
  0x34   : > { %s3785_s25 = scalar_lea.vmem %s4103_s23, 2048  ;;  %s3966_s30 = smov [#allocation8]  }
  0x35   : > { %p3786_p1 = scmp.ne.s32.totalorder %s4103_s23, %s3785_s25  ;;  %s3790_s5 = sshll.u32 %s3966_s30, 4  ;;  %s3791_s5 = int_to_ptr.vmem [resolvable:$false] %s3790_s5 }
  0x36   : > { %s3792_s18 = scalar_lea.vmem %s3791_s5, 4096  ;;  %p3793_p9 = scmp.lt.s32.totalorder %s4103_s23, %s3791_s5 }
  0x37   : > { %p3788_p3 = pnand %p3786_p1, %p4110_p2  ;;  %p3794_p8 = scmp.lt.s32.totalorder %s3792_s18, %s3785_s25 }
  0x39   : > { %p3789_p12 = pneg %p3788_p3  ;;  %p3795_p5 = por %p3794_p8, %p3793_p9 }
  0x3b   : > { %p3796_p6 = pnand %p3795_p5, %p3789_p12 }
  0x3d   : > { %3799 = shalt.err (!%p3796_p6)
}
  0x3e   : > { %s5526_s8 = smov 64   ;;  %s5528_s11 = smov 4  }
  0x3f   : > { %3383 = dma.hbm_to_vmem [thread:$0]  (!%p4089_p0), %s4101_s22, 2048, %s4103_s23, %s4105_s26, %s5526_s8, %s5526_s8, %s5528_s11  }
  0x40   : > { %p2991_p8 = scmp.ge.s32.totalorder %s3964_s19, 1  ;;  %p261_p9 = scmp.lt.s32.totalorder %s3964_s19, 5 }
  0x41   : > { %s4147_s30 = scalar_lea.hbm %s5516_s0, %s4093_s21  ;;  %s190_s5 = scalar_lea.vmem [#allocation5], %s4083_s7 }
  0x42   : > { %p4139_p12 = pnand %p2991_p8, %p261_p9  ;;  %s201_s18 = sshll.u32 %s190_s5, 4  ;;  %s4150_s18 = int_to_ptr.vmem [resolvable:$true] %s201_s18 }
  0x43   : > { %s4156_s8 = scalar_lea.hbm %s5518_s2, %s4093_s21  ;;  %s5620_s11 = sand.u32 1, %s3944_s14  }
  0x44   : > { %s5619_s29 = scalar_select %p4139_p12, 1, 0 }
  0x45   : > { %s4160_s1 = scalar_lea.sflag [#allocation6], %s5620_s11  ;;  %s3801_s17 = scalar_lea.hbm %s4147_s30, 2048 }
  0x46   : > { %p3802_p4 = scmp.ne.s32.totalorder %s4147_s30, %s3801_s17  ;;  %s3806_s6 = scalar_lea.hbm %s5516_s0, 24576 }
  0x47   : > { %p3807_p11 = scmp.lt.u32.totalorder %s4147_s30, %s5516_s0  ;;  %p3808_p13 = scmp.lt.u32.totalorder %s3806_s6, %s3801_s17 }
  0x48   : > { %p3804_p7 = pnand %p3802_p4, %p4110_p2  ;;  %p3810_p3 = scmp.lt.u32.totalorder %s3801_s17, %s4147_s30 }
  0x49   : > { %p3809_p1 = por %p3808_p13, %p3807_p11 }
  0x4a   : > { %p3805_p10 = pneg %p3804_p7 }
  0x4b   : > { %p3811_p5 = por %p3810_p3, %p3809_p1 }
  0x4d   : > { %p3812_p6 = pnand %p3811_p5, %p3805_p10 }
  0x4f   : > { %3815 = shalt.err (!%p3812_p6)
}
  0x50   : > { %s3816_s21 = scalar_lea.vmem %s4150_s18, 2048  ;;  %s3969_s11 = smov [#allocation5]  }
  0x51   : > { %p3817_p8 = scmp.ne.s32.totalorder %s4150_s18, %s3816_s21  ;;  %s3821_s22 = sshll.u32 %s3969_s11, 4  ;;  %s3822_s22 = int_to_ptr.vmem [resolvable:$false] %s3821_s22 }
  0x52   : > { %s3823_s4 = scalar_lea.vmem %s3822_s22, 4096  ;;  %p3824_p7 = scmp.lt.s32.totalorder %s4150_s18, %s3822_s22 }
  0x53   : > { %p3819_p9 = pnand %p3817_p8, %p4110_p2  ;;  %p3825_p12 = scmp.lt.s32.totalorder %s3823_s4, %s3816_s21 }
  0x55   : > { %p3820_p4 = pneg %p3819_p9  ;;  %p3826_p11 = por %p3825_p12, %p3824_p7 }
  0x57   : > { %p3827_p13 = pnand %p3826_p11, %p3820_p4 }
  0x59   : > { %3830 = shalt.err (!%p3827_p13)
}
  0x5a   : > { %s5621_s17 = smov 4   ;;  %s5622_s6 = smov 64  }
  0x5b   : > { %3380 = dma.hbm_to_vmem [thread:$0]  (!%p4089_p0), %s4147_s30, 2048, %s4150_s18, %s4160_s1, %s5622_s6, %s5622_s6, %s5621_s17  }
  0x5c   : > { %s4188_s23 = scalar_lea.hbm %s4156_s8, 16384  ;;  %s241_s24 = scalar_lea.vmem [#allocation10], %s4083_s7 }
  0x5d   : > { %s253_s25 = sshll.u32 %s241_s24, 4  ;;  %s3861_s5 = scalar_lea.hbm %s4156_s8, 18432  ;;  %s4191_s25 = int_to_ptr.vmem [resolvable:$true] %s253_s25 }
  0x5e   : > { %p3832_p12 = scmp.ne.s32.totalorder %s4188_s23, %s3861_s5  ;;  %s3836_s22 = scalar_lea.hbm %s5518_s2, 24576 }
  0x5f   : > { %p3837_p3 = scmp.lt.u32.totalorder %s4188_s23, %s5518_s2  ;;  %p3838_p5 = scmp.lt.u32.totalorder %s3836_s22, %s3861_s5 }
  0x60   : > { %p3834_p10 = pnand %p3832_p12, %p4110_p2  ;;  %p3840_p8 = scmp.lt.u32.totalorder %s3861_s5, %s4188_s23 }
  0x61   : > { %p3839_p6 = por %p3838_p5, %p3837_p3 }
  0x62   : > { %p3835_p1 = pneg %p3834_p10 }
  0x63   : > { %p3841_p9 = por %p3840_p8, %p3839_p6 }
  0x65   : > { %p3842_p4 = pnand %p3841_p9, %p3835_p1 }
  0x67   : > { %3845 = shalt.err (!%p3842_p4)
}
  0x68   : > { %s3846_s7 = scalar_lea.vmem %s4191_s25, 2048  ;;  %s3970_s8 = smov [#allocation10]  }
  0x69   : > { %p3847_p7 = scmp.ne.s32.totalorder %s4191_s25, %s3846_s7  ;;  %s3851_s30 = sshll.u32 %s3970_s8, 4  ;;  %s3852_s30 = int_to_ptr.vmem [resolvable:$false] %s3851_s30 }
  0x6a   : > { %s3853_s18 = scalar_lea.vmem %s3852_s30, 4096  ;;  %p3854_p12 = scmp.lt.s32.totalorder %s4191_s25, %s3852_s30 }
  0x6b   : > { %p3849_p11 = pnand %p3847_p7, %p4110_p2  ;;  %p3855_p10 = scmp.lt.s32.totalorder %s3853_s18, %s3846_s7 }
  0x6d   : > { %p3850_p13 = pneg %p3849_p11  ;;  %p3856_p3 = por %p3855_p10, %p3854_p12 }
  0x6f   : > { %p3857_p5 = pnand %p3856_p3, %p3850_p13 }
  0x71   : > { %3860 = shalt.err (!%p3857_p5)
}
  0x72   : > { %3386 = dma.hbm_to_vmem [thread:$0]  (!%p4089_p0), %s4188_s23, 2048, %s4191_s25, %s4105_s26, %s5622_s6, %s5622_s6, %s5621_s17  }
  0x73   : > { %p5623_p2 = scmp.ne.s32.totalorder %s5619_s29, 0 }
  0x75   : > { %265 = sbr.rel (%p5623_p2) target bundleno = 1145 (0x479), region = 32 }
  0x7c   : > { %s4221_s9 = sand.u32 1, %s3940_s13   ;;  %p5624_p1 = scmp.ne.s32.totalorder %s5611_s27, 0 }
  0x7d   : > { %s4224_s24 = sshll.u32 %s4221_s9, 7  ;;  %s268_s10 = scalar_lea.sflag [#allocation6], %s4221_s9 }
  0x7e   : > { %s4228_s5 = scalar_lea.vmem [#allocation5], %s4224_s24 }
  0x7f   : > { %3923 = dma.done.wait (%p5624_p1), %s268_s10, 2048  }
  0x80   : > { %3925 = vsyncadd (%p5624_p1), %s268_s10, 4294965248  ;;  %s276_s26 = sand.u32 1, %s4038_s20   ;;  %s4236_s17 = scalar_lea.vmem [#allocation8], %s4224_s24 }
  0x81   : > { %s277_s29 = scalar_lea.sflag [#allocation9], %s276_s26 }
  0x82   : > { %3927 = dma.done.wait (%p5624_p1), %s277_s29, 4096  }
  0x83   : > { %3929 = vsyncadd (%p5624_p1), %s277_s29, 4294963200  ;;  %v3466_v0 = vld [vmem:[%s4236_s17 + $0x40] sm:$0xff]   ;;  %v3468_v2 = vld [vmem:[%s4236_s17 + $0x48] sm:$0xff]   ;;  %vm331_vm0 = vcmask 7168   ;;  %v3971_v32 = vmov -inf   ;;  %v3972_v50 = vmov 0  }
  0x84   : > { %v3467_v1 = vld [vmem:[%s4236_s17] sm:$0xff]   ;;  %3209 = vmatprep.subr.bf16.mxu0 %v3466_v0  ;;  %v3469_v3 = vld [vmem:[%s4236_s17 + $0x8] sm:$0xff]   ;;  %v3470_v4 = vld [vmem:[%s4236_s17 + $0x50] sm:$0xff]   ;;  %332 = vst.msk [vmem:[#allocation2] sm:$0xff] %vm331_vm0, %v3971_v32  ;;  %3464 = vset.pattern.permute.xlu0 %v3972_v50  ;;  %v3973_v58 = vmov 0.0   ;;  %s4531_s20 = scalar_lea.vmem [#allocation10], %s4224_s24 }
  0x85   : > { %3210 = vmatpush3.bf16.xpose.msra.mxu0 %v3467_v1  ;;  %v3471_v5 = vld [vmem:[%s4236_s17 + $0x10] sm:$0xff]   ;;  %v3472_v6 = vld [vmem:[%s4236_s17 + $0x58] sm:$0xff]   ;;  %v3482_v7 = vld [vmem:[%s4228_s5] sm:$0xff]   ;;  %333 = vst.msk [vmem:[#allocation2 + $0x8] sm:$0xff] %vm331_vm0, %v3971_v32  ;;  %3465 = vset.pattern.permute.xlu1 %v3972_v50  ;;  %s5405_s27 = scalar_lea.vmem [#allocation11], %s4224_s24  ;;  %s3077_s6 = sshll.u32 %s3948_s15, 5 }
  0x86   : > { %3211 = vmatprep.subr.bf16.mxu0 %v3468_v2  ;;  %3225 = vmatprep.mubr.bf16.mxu0 %v3482_v7  ;;  %v3473_v8 = vld [vmem:[%s4236_s17 + $0x18] sm:$0xff]   ;;  %v3474_v9 = vld [vmem:[%s4236_s17 + $0x60] sm:$0xff]   ;;  %v3476_v11 = vld [vmem:[%s4236_s17 + $0x68] sm:$0xff]   ;;  %334 = vst.msk [vmem:[#allocation2 + $0x10] sm:$0xff] %vm331_vm0, %v3971_v32  ;;  %s3078_s23 = sshll.u32 %s3952_s16, 6  ;;  %s2820_s21 = sshll.u32 %s5405_s27, 4  ;;  %s5461_s21 = int_to_ptr.vmem [resolvable:$true] %s2820_s21 }
  0x87   : > { %v3475_v10 = vld [vmem:[%s4236_s17 + $0x20] sm:$0xff]   ;;  %v3477_v12 = vld [vmem:[%s4236_s17 + $0x28] sm:$0xff]   ;;  %v3478_v13 = vld [vmem:[%s4236_s17 + $0x70] sm:$0xff]   ;;  %335 = vst.msk [vmem:[#allocation2 + $0x18] sm:$0xff] %vm331_vm0, %v3971_v32  ;;  %s2817_s25 = sadd.s32 %s3078_s23, %s3077_s6  ;;  %s2803_s4 = scalar_lea.sflag [#allocation7], %s4221_s9 }
  0x88   : > { %v3479_v14 = vld [vmem:[%s4236_s17 + $0x30] sm:$0xff]   ;;  %v3480_v15 = vld [vmem:[%s4236_s17 + $0x78] sm:$0xff]   ;;  %v3483_v17 = vld [vmem:[%s4228_s5 + $0x8] sm:$0xff]   ;;  %336 = vst.msk [vmem:[#allocation2 + $0x20] sm:$0xff] %vm331_vm0, %v3971_v32  ;;  %s3079_s15 = sshll.u32 %s2817_s25, 6  ;;  %s3862_s1 = scalar_lea.vmem %s5461_s21, 2048 }
  0x89   : > { %v3481_v16 = vld [vmem:[%s4236_s17 + $0x38] sm:$0xff]   ;;  %v3484_v18 = vld [vmem:[%s4228_s5 + $0x10] sm:$0xff]   ;;  %v3486_v20 = vld [vmem:[%s4228_s5 + $0x20] sm:$0xff]   ;;  %337 = vst.msk [vmem:[#allocation2 + $0x28] sm:$0xff] %vm331_vm0, %v3971_v32  ;;  %s5459_s22 = scalar_lea.hbm %s5519_s3, %s3079_s15  ;;  %p3863_p0 = scmp.ne.s32.totalorder %s5461_s21, %s3862_s1 }
  0x8a   : > { %v3485_v19 = vld [vmem:[%s4228_s5 + $0x18] sm:$0xff]   ;;  %v3487_v21 = vld [vmem:[%s4228_s5 + $0x28] sm:$0xff]   ;;  %v3488_v22 = vld [vmem:[%s4228_s5 + $0x30] sm:$0xff]   ;;  %338 = vst.msk [vmem:[#allocation2 + $0x30] sm:$0xff] %vm331_vm0, %v3971_v32  ;;  %p5812_p6 = scmp.ne.s32.totalorder %s5612_s28, 0  ;;  %s3974_s7 = smov [#allocation11]  }
  0x8b   : > { %v3489_v23 = vld [vmem:[%s4228_s5 + $0x38] sm:$0xff]   ;;  %v3490_v24 = vld [vmem:[%s4228_s5 + $0x40] sm:$0xff]   ;;  %v3491_v25 = vld [vmem:[%s4228_s5 + $0x48] sm:$0xff]   ;;  %339 = vst.msk [vmem:[#allocation2 + $0x38] sm:$0xff] %vm331_vm0, %v3971_v32  ;;  %s3866_s8 = sshll.u32 %s3974_s7, 4  ;;  %s3867_s8 = int_to_ptr.vmem [resolvable:$false] %s3866_s8 }
  0x8c   : > { %v3492_v26 = vld [vmem:[%s4228_s5 + $0x50] sm:$0xff]   ;;  %v3493_v27 = vld [vmem:[%s4228_s5 + $0x58] sm:$0xff]   ;;  %v3494_v28 = vld [vmem:[%s4228_s5 + $0x60] sm:$0xff]   ;;  %340 = vst.msk [vmem:[#allocation2 + $0x40] sm:$0xff] %vm331_vm0, %v3971_v32  ;;  %p3864_p8 = pnand %p3863_p0, %p5812_p6  ;;  %s3868_s30 = scalar_lea.vmem %s3867_s8, 4096 }
  0x8d   : > { %3212 = vmatpush3.bf16.xpose.msra.mxu0 %v3469_v3  ;;  %v3495_v29 = vld [vmem:[%s4228_s5 + $0x68] sm:$0xff]   ;;  %v3496_v30 = vld [vmem:[%s4228_s5 + $0x70] sm:$0xff]   ;;  %v3497_v31 = vld [vmem:[%s4228_s5 + $0x78] sm:$0xff]   ;;  %341 = vst.msk [vmem:[#allocation2 + $0x48] sm:$0xff] %vm331_vm0, %v3971_v32  ;;  %p3869_p4 = scmp.lt.s32.totalorder %s5461_s21, %s3867_s8  ;;  %p3870_p7 = scmp.lt.s32.totalorder %s3868_s30, %s3862_s1 }
  0x8e   : > { %3213 = vmatprep.subr.bf16.mxu0 %v3470_v4  ;;  %342 = vst.msk [vmem:[#allocation2 + $0x50] sm:$0xff] %vm331_vm0, %v3971_v32  ;;  %343 = vst.msk [vmem:[#allocation2 + $0x58] sm:$0xff] %vm331_vm0, %v3971_v32  ;;  %p3865_p9 = pneg %p3864_p8 }
  0x8f   : > { %344 = vst.msk [vmem:[#allocation2 + $0x60] sm:$0xff] %vm331_vm0, %v3971_v32  ;;  %345 = vst.msk [vmem:[#allocation2 + $0x68] sm:$0xff] %vm331_vm0, %v3971_v32  ;;  %p3871_p11 = por %p3870_p7, %p3869_p4 }
  0x90   : > { %346 = vst.msk [vmem:[#allocation2 + $0x70] sm:$0xff] %vm331_vm0, %v3971_v32  ;;  %347 = vst.msk [vmem:[#allocation2 + $0x78] sm:$0xff] %vm331_vm0, %v3971_v32 }
  0x91   : > { %348 = vst.msk [vmem:[#allocation2 + $0x80] sm:$0xff] %vm331_vm0, %v3971_v32  ;;  %349 = vst.msk [vmem:[#allocation2 + $0x88] sm:$0xff] %vm331_vm0, %v3971_v32  ;;  %p3872_p13 = pnand %p3871_p11, %p3865_p9 }
  0x92   : > { %350 = vst.msk [vmem:[#allocation2 + $0x90] sm:$0xff] %vm331_vm0, %v3971_v32  ;;  %351 = vst.msk [vmem:[#allocation2 + $0x98] sm:$0xff] %vm331_vm0, %v3971_v32 }
  0x93   : > { %352 = vst.msk [vmem:[#allocation2 + $0xa0] sm:$0xff] %vm331_vm0, %v3971_v32  ;;  %353 = vst.msk [vmem:[#allocation2 + $0xa8] sm:$0xff] %vm331_vm0, %v3971_v32 }
  0x94   : > { %354 = vst.msk [vmem:[#allocation2 + $0xb0] sm:$0xff] %vm331_vm0, %v3971_v32  ;;  %355 = vst.msk [vmem:[#allocation2 + $0xb8] sm:$0xff] %vm331_vm0, %v3971_v32 }
  0x95   : > { %3214 = vmatpush3.bf16.xpose.msra.mxu0 %v3471_v5  ;;  %356 = vst.msk [vmem:[#allocation2 + $0xc0] sm:$0xff] %vm331_vm0, %v3971_v32  ;;  %357 = vst.msk [vmem:[#allocation2 + $0xc8] sm:$0xff] %vm331_vm0, %v3971_v32 }
  0x96   : > { %3215 = vmatprep.subr.bf16.mxu0 %v3472_v6  ;;  %358 = vst.msk [vmem:[#allocation2 + $0xd0] sm:$0xff] %vm331_vm0, %v3971_v32  ;;  %359 = vst.msk [vmem:[#allocation2 + $0xd8] sm:$0xff] %vm331_vm0, %v3971_v32 }
  0x97   : > { %360 = vst.msk [vmem:[#allocation2 + $0xe0] sm:$0xff] %vm331_vm0, %v3971_v32  ;;  %361 = vst.msk [vmem:[#allocation2 + $0xe8] sm:$0xff] %vm331_vm0, %v3971_v32 }
  0x98   : > { %362 = vst.msk [vmem:[#allocation2 + $0xf0] sm:$0xff] %vm331_vm0, %v3971_v32  ;;  %363 = vst.msk [vmem:[#allocation2 + $0xf8] sm:$0xff] %vm331_vm0, %v3971_v32 }
  0x99   : > { %365 = vst.msk [vmem:[#allocation3 + $0x8] sm:$0xff] %vm331_vm0, %v3973_v58  ;;  %364 = vst.msk [vmem:[#allocation3] sm:$0xff] %vm331_vm0, %v3973_v58 }
  0x9a   : > { %366 = vst.msk [vmem:[#allocation3 + $0x10] sm:$0xff] %vm331_vm0, %v3973_v58  ;;  %367 = vst.msk [vmem:[#allocation3 + $0x18] sm:$0xff] %vm331_vm0, %v3973_v58 }
  0x9b   : > { %368 = vst.msk [vmem:[#allocation3 + $0x20] sm:$0xff] %vm331_vm0, %v3973_v58  ;;  %369 = vst.msk [vmem:[#allocation3 + $0x28] sm:$0xff] %vm331_vm0, %v3973_v58 }
  0x9c   : > { %370 = vst.msk [vmem:[#allocation3 + $0x30] sm:$0xff] %vm331_vm0, %v3973_v58  ;;  %371 = vst.msk [vmem:[#allocation3 + $0x38] sm:$0xff] %vm331_vm0, %v3973_v58 }
  0x9d   : > { %3216 = vmatpush3.bf16.xpose.msra.mxu0 %v3473_v8  ;;  %372 = vst.msk [vmem:[#allocation3 + $0x40] sm:$0xff] %vm331_vm0, %v3973_v58  ;;  %373 = vst.msk [vmem:[#allocation3 + $0x48] sm:$0xff] %vm331_vm0, %v3973_v58 }
  0x9e   : > { %3217 = vmatprep.subr.bf16.mxu0 %v3474_v9  ;;  %374 = vst.msk [vmem:[#allocation3 + $0x50] sm:$0xff] %vm331_vm0, %v3973_v58  ;;  %375 = vst.msk [vmem:[#allocation3 + $0x58] sm:$0xff] %vm331_vm0, %v3973_v58 }
  0x9f   : > { %376 = vst.msk [vmem:[#allocation3 + $0x60] sm:$0xff] %vm331_vm0, %v3973_v58  ;;  %377 = vst.msk [vmem:[#allocation3 + $0x68] sm:$0xff] %vm331_vm0, %v3973_v58 }
  0xa0   : > { %378 = vst.msk [vmem:[#allocation3 + $0x70] sm:$0xff] %vm331_vm0, %v3973_v58  ;;  %379 = vst.msk [vmem:[#allocation3 + $0x78] sm:$0xff] %vm331_vm0, %v3973_v58 }
  0xa1   : > { %380 = vst.msk [vmem:[#allocation3 + $0x80] sm:$0xff] %vm331_vm0, %v3973_v58  ;;  %381 = vst.msk [vmem:[#allocation3 + $0x88] sm:$0xff] %vm331_vm0, %v3973_v58 }
  0xa2   : > { %382 = vst.msk [vmem:[#allocation3 + $0x90] sm:$0xff] %vm331_vm0, %v3973_v58  ;;  %383 = vst.msk [vmem:[#allocation3 + $0x98] sm:$0xff] %vm331_vm0, %v3973_v58 }
  0xa3   : > { %384 = vst.msk [vmem:[#allocation3 + $0xa0] sm:$0xff] %vm331_vm0, %v3973_v58  ;;  %385 = vst.msk [vmem:[#allocation3 + $0xa8] sm:$0xff] %vm331_vm0, %v3973_v58 }
  0xa4   : > { %386 = vst.msk [vmem:[#allocation3 + $0xb0] sm:$0xff] %vm331_vm0, %v3973_v58  ;;  %387 = vst.msk [vmem:[#allocation3 + $0xb8] sm:$0xff] %vm331_vm0, %v3973_v58 }
  0xa5   : > { %3218 = vmatpush3.bf16.xpose.msra.mxu0 %v3475_v10  ;;  %388 = vst.msk [vmem:[#allocation3 + $0xc0] sm:$0xff] %vm331_vm0, %v3973_v58  ;;  %389 = vst.msk [vmem:[#allocation3 + $0xc8] sm:$0xff] %vm331_vm0, %v3973_v58 }
  0xa6   : > { %3219 = vmatprep.subr.bf16.mxu0 %v3476_v11  ;;  %390 = vst.msk [vmem:[#allocation3 + $0xd0] sm:$0xff] %vm331_vm0, %v3973_v58  ;;  %391 = vst.msk [vmem:[#allocation3 + $0xd8] sm:$0xff] %vm331_vm0, %v3973_v58 }
  0xa7   : > { %392 = vst.msk [vmem:[#allocation3 + $0xe0] sm:$0xff] %vm331_vm0, %v3973_v58  ;;  %393 = vst.msk [vmem:[#allocation3 + $0xe8] sm:$0xff] %vm331_vm0, %v3973_v58 }
  0xa8   : > { %394 = vst.msk [vmem:[#allocation3 + $0xf0] sm:$0xff] %vm331_vm0, %v3973_v58  ;;  %395 = vst.msk [vmem:[#allocation3 + $0xf8] sm:$0xff] %vm331_vm0, %v3973_v58 }
  0xad   : > { %3220 = vmatpush3.bf16.xpose.msra.mxu0 %v3477_v12 }
  0xae   : > { %3221 = vmatprep.subr.bf16.mxu0 %v3478_v13 }
  0xb5   : > { %3222 = vmatpush3.bf16.xpose.msra.mxu0 %v3479_v14 }
  0xb6   : > { %3223 = vmatprep.subr.bf16.mxu0 %v3480_v15 }
  0xbd   : > { %3224 = vmatpush3.bf16.xpose.msra.mxu0 %v3481_v16 }
  0xc4   : > { %3226 = vmatmul.mubr.bf16.vlgmr.msra.gmra.mrb[0].mxu0 %v3482_v7 }
  0xc5   : > { %3227 = vmatprep.mubr.bf16.mxu0 %v3483_v17 }
  0xcc   : > { %3228 = vmatmul.mubr.bf16.gmra.mrb[4].mxu0 %v3483_v17 }
  0xcd   : > { %3229 = vmatprep.mubr.bf16.mxu0 %v3484_v18 }
  0xd4   : > { %3230 = vmatmul.mubr.bf16.gmra.mrb[8].mxu0 %v3484_v18 }
  0xd5   : > { %3231 = vmatprep.mubr.bf16.mxu0 %v3485_v19 }
  0xdc   : > { %3232 = vmatmul.mubr.bf16.gmra.mrb[12].mxu0 %v3485_v19 }
  0xdd   : > { %3233 = vmatprep.mubr.bf16.mxu0 %v3486_v20 }
  0xe4   : > { %3234 = vmatmul.mubr.bf16.gmra.mrb[16].mxu0 %v3486_v20 }
  0xe5   : > { %3235 = vmatprep.mubr.bf16.mxu0 %v3487_v21 }
  0xec   : > { %3236 = vmatmul.mubr.bf16.gmra.mrb[20].mxu0 %v3487_v21 }
  0xed   : > { %3237 = vmatprep.mubr.bf16.mxu0 %v3488_v22 }
  0xf4   : > { %3238 = vmatmul.mubr.bf16.gmra.mrb[24].mxu0 %v3488_v22 }
  0xf5   : > { %3239 = vmatprep.mubr.bf16.mxu0 %v3489_v23 }
  0xfc   : > { %3240 = vmatmul.mubr.bf16.gmra.mrb[28].mxu0 %v3489_v23 }
  0xfd   : > { %3241 = vmatprep.mubr.bf16.mxu0 %v3490_v24 }
 0x104   : > { %3242 = vmatmul.mubr.bf16.gmra.mrb[32].mxu0 %v3490_v24 }
 0x105   : > { %3243 = vmatprep.mubr.bf16.mxu0 %v3491_v25 }
 0x10c   : > { %3244 = vmatmul.mubr.bf16.gmra.mrb[36].mxu0 %v3491_v25 }
 0x10d   : > { %3245 = vmatprep.mubr.bf16.mxu0 %v3492_v26 }
 0x114   : > { %3246 = vmatmul.mubr.bf16.gmra.mrb[40].mxu0 %v3492_v26 }
 0x115   : > { %3247 = vmatprep.mubr.bf16.mxu0 %v3493_v27 }
 0x11c   : > { %3248 = vmatmul.mubr.bf16.gmra.mrb[44].mxu0 %v3493_v27 }
 0x11d   : > { %3249 = vmatprep.mubr.bf16.mxu0 %v3494_v28 }
 0x124   : > { %3250 = vmatmul.mubr.bf16.gmra.mrb[48].mxu0 %v3494_v28 }
 0x125   : > { %3251 = vmatprep.mubr.bf16.mxu0 %v3495_v29 }
 0x12c   : > { %3252 = vmatmul.mubr.bf16.gmra.mrb[52].mxu0 %v3495_v29 }
 0x12d   : > { %3253 = vmatprep.mubr.bf16.mxu0 %v3496_v30 }
 0x134   : > { %3254 = vmatmul.mubr.bf16.gmra.mrb[56].mxu0 %v3496_v30 }
 0x135   : > { %3255 = vmatprep.mubr.bf16.mxu0 %v3497_v31 }
 0x13c   : > { %3256 = vmatmul.mubr.bf16.gmra.mrb[60].mxu0 %v3497_v31 }
 0x197   : > { %v4306_v33 = vpop.f32.mrb[0].mxu0 }
 0x198   : > { %v4308_v34 = vpop.f32.mrb[1].mxu0 }
 0x199   : > { %v4310_v35 = vpop.f32.mrb[2].mxu0  ;;  %v909_v36 = vmax.f32 %v4306_v33, %v4308_v34 }
 0x19a   : > { %v4314_v37 = vpop.f32.mrb[3].mxu0 }
 0x19b   : > { %910 = vmax.xlane.f32.xlu0 %v909_v36  ;;  %v912_v38 = vmax.f32 %v4310_v35, %v4314_v37 }
 0x19f   : > { %913 = vmax.xlane.f32.xlu0 %v912_v38  ;;  %v4318_v39 = vpop.f32.mrb[4].mxu0 }
 0x1a0   : > { %v4320_v40 = vpop.f32.mrb[5].mxu0 }
 0x1a1   : > { %v4322_v41 = vpop.f32.mrb[6].mxu0  ;;  %v915_v42 = vmax.f32 %v4318_v39, %v4320_v40 }
 0x1a2   : > { %v4326_v43 = vpop.f32.mrb[7].mxu0 }
 0x1a3   : > { %916 = vmax.xlane.f32.xlu1 %v915_v42  ;;  %v918_v44 = vmax.f32 %v4322_v41, %v4326_v43 }
 0x1a7   : > { %919 = vmax.xlane.f32.xlu1 %v918_v44  ;;  %v4330_v45 = vpop.f32.mrb[8].mxu0 }
 0x1a8   : > { %v4332_v46 = vpop.f32.mrb[9].mxu0 }
 0x1a9   : > { %v4334_v47 = vpop.f32.mrb[10].mxu0  ;;  %v921_v48 = vmax.f32 %v4330_v45, %v4332_v46 }
 0x1aa   : > { %5625 = vst [vmem:[#allocation21_spill] sm:$0xff] %v4334_v47  ;;  %v4338_v49 = vpop.f32.mrb[11].mxu0 }
 0x1ab   : > { %5626 = vst [vmem:[#allocation22_spill] sm:$0xff] %v4338_v49  ;;  %922 = vmax.xlane.f32.xlu0 %v921_v48  ;;  %v924_v51 = vmax.f32 %v4334_v47, %v4338_v49 }
 0x1ad   : > { %925 = vmax.xlane.f32.xlu1 %v924_v51 }
 0x1af   : > { %v4342_v52 = vpop.f32.mrb[12].mxu0 }
 0x1b0   : > { %5627 = vst [vmem:[#allocation23_spill] sm:$0xff] %v4342_v52  ;;  %v4344_v53 = vpop.f32.mrb[13].mxu0 }
 0x1b1   : > { %5628 = vst [vmem:[#allocation24_spill] sm:$0xff] %v4344_v53  ;;  %v4346_v54 = vpop.f32.mrb[14].mxu0  ;;  %v927_v55 = vmax.f32 %v4342_v52, %v4344_v53  ;;  %v4791_v53 = vld [vmem:[#allocation2 + $0xc8] sm:$0xff]  ;;  %v4805_v52 = vld [vmem:[#allocation2 + $0xd0] sm:$0xff] }
 0x1b2   : > { %5629 = vst [vmem:[#allocation25_spill] sm:$0xff] %v4346_v54  ;;  %v4350_v56 = vpop.f32.mrb[15].mxu0  ;;  %5684 = vst [vmem:[#allocation80_spill] sm:$0xff] %v4791_v53 }
 0x1b3   : > { %5630 = vst [vmem:[#allocation26_spill] sm:$0xff] %v4350_v56  ;;  %928 = vmax.xlane.f32.xlu0 %v927_v55  ;;  %v930_v57 = vmax.f32 %v4346_v54, %v4350_v56  ;;  %5687 = vst [vmem:[#allocation83_spill] sm:$0xff] %v4805_v52 }
 0x1b5   : > { %931 = vmax.xlane.f32.xlu1 %v930_v57 }
 0x1b7   : > { %v4386_v59 = vpop.f32.mrb[16].mxu0 }
 0x1b8   : > { %5631 = vst [vmem:[#allocation27_spill] sm:$0xff] %v4386_v59  ;;  %v4388_v60 = vpop.f32.mrb[17].mxu0 }
 0x1b9   : > { %5632 = vst [vmem:[#allocation28_spill] sm:$0xff] %v4388_v60  ;;  %v4390_v61 = vpop.f32.mrb[18].mxu0  ;;  %v933_v62 = vmax.f32 %v4386_v59, %v4388_v60  ;;  %v4771_v60 = vld [vmem:[#allocation2 + $0xb8] sm:$0xff] }
 0x1ba   : > { %5633 = vst [vmem:[#allocation29_spill] sm:$0xff] %v4390_v61  ;;  %v4394_v63 = vpop.f32.mrb[19].mxu0  ;;  %5680 = vst [vmem:[#allocation76_spill] sm:$0xff] %v4771_v60 }
 0x1bb   : > { %5634 = vst [vmem:[#allocation30_spill] sm:$0xff] %v4394_v63  ;;  %934 = vmax.xlane.f32.xlu0 %v933_v62  ;;  %v936_v0 = vmax.f32 %v4390_v61, %v4394_v63 }
 0x1bd   : > { %937 = vmax.xlane.f32.xlu1 %v936_v0 }
 0x1bf   : > { %v4398_v1 = vpop.f32.mrb[20].mxu0 }
 0x1c0   : > { %5635 = vst [vmem:[#allocation31_spill] sm:$0xff] %v4398_v1  ;;  %v4400_v2 = vpop.f32.mrb[21].mxu0 }
 0x1c1   : > { %5636 = vst [vmem:[#allocation32_spill] sm:$0xff] %v4400_v2  ;;  %v4402_v3 = vpop.f32.mrb[22].mxu0  ;;  %v939_v4 = vmax.f32 %v4398_v1, %v4400_v2  ;;  %v4751_v2 = vld [vmem:[#allocation2 + $0xa8] sm:$0xff] }
 0x1c2   : > { %5637 = vst [vmem:[#allocation33_spill] sm:$0xff] %v4402_v3  ;;  %v4406_v5 = vpop.f32.mrb[23].mxu0 }
 0x1c3   : > { %5638 = vst [vmem:[#allocation34_spill] sm:$0xff] %v4406_v5  ;;  %940 = vmax.xlane.f32.xlu0 %v939_v4  ;;  %v942_v6 = vmax.f32 %v4402_v3, %v4406_v5 }
 0x1c5   : > { %943 = vmax.xlane.f32.xlu1 %v942_v6 }
 0x1c7   : > { %v4410_v7 = vpop.f32.mrb[24].mxu0 }
 0x1c8   : > { %5639 = vst [vmem:[#allocation35_spill] sm:$0xff] %v4410_v7  ;;  %v4412_v8 = vpop.f32.mrb[25].mxu0 }
 0x1c9   : > { %5640 = vst [vmem:[#allocation36_spill] sm:$0xff] %v4412_v8  ;;  %v4414_v9 = vpop.f32.mrb[26].mxu0  ;;  %v945_v10 = vmax.f32 %v4410_v7, %v4412_v8  ;;  %v4731_v8 = vld [vmem:[#allocation2 + $0x98] sm:$0xff] }
 0x1ca   : > { %5641 = vst [vmem:[#allocation37_spill] sm:$0xff] %v4414_v9  ;;  %v4418_v11 = vpop.f32.mrb[27].mxu0 }
 0x1cb   : > { %5642 = vst [vmem:[#allocation38_spill] sm:$0xff] %v4418_v11  ;;  %946 = vmax.xlane.f32.xlu0 %v945_v10  ;;  %v948_v12 = vmax.f32 %v4414_v9, %v4418_v11 }
 0x1cd   : > { %949 = vmax.xlane.f32.xlu1 %v948_v12 }
 0x1cf   : > { %v4422_v13 = vpop.f32.mrb[28].mxu0 }
 0x1d0   : > { %5643 = vst [vmem:[#allocation39_spill] sm:$0xff] %v4422_v13  ;;  %v4424_v14 = vpop.f32.mrb[29].mxu0 }
 0x1d1   : > { %5644 = vst [vmem:[#allocation40_spill] sm:$0xff] %v4424_v14  ;;  %v4426_v15 = vpop.f32.mrb[30].mxu0  ;;  %v951_v16 = vmax.f32 %v4422_v13, %v4424_v14  ;;  %v4711_v14 = vld [vmem:[#allocation2 + $0x88] sm:$0xff] }
 0x1d2   : > { %5645 = vst [vmem:[#allocation41_spill] sm:$0xff] %v4426_v15  ;;  %v4430_v17 = vpop.f32.mrb[31].mxu0 }
 0x1d3   : > { %5646 = vst [vmem:[#allocation42_spill] sm:$0xff] %v4430_v17  ;;  %952 = vmax.xlane.f32.xlu0 %v951_v16  ;;  %v954_v18 = vmax.f32 %v4426_v15, %v4430_v17 }
 0x1d5   : > { %955 = vmax.xlane.f32.xlu1 %v954_v18 }
 0x1d7   : > { %v4434_v19 = vpop.f32.mrb[32].mxu0 }
 0x1d8   : > { %5647 = vst [vmem:[#allocation43_spill] sm:$0xff] %v4434_v19  ;;  %v4436_v20 = vpop.f32.mrb[33].mxu0 }
 0x1d9   : > { %5648 = vst [vmem:[#allocation44_spill] sm:$0xff] %v4436_v20  ;;  %v4438_v21 = vpop.f32.mrb[34].mxu0  ;;  %v957_v22 = vmax.f32 %v4434_v19, %v4436_v20  ;;  %v4691_v20 = vld [vmem:[#allocation2 + $0x78] sm:$0xff] }
 0x1da   : > { %5649 = vst [vmem:[#allocation45_spill] sm:$0xff] %v4438_v21  ;;  %v4442_v23 = vpop.f32.mrb[35].mxu0 }
 0x1db   : > { %5650 = vst [vmem:[#allocation46_spill] sm:$0xff] %v4442_v23  ;;  %958 = vmax.xlane.f32.xlu0 %v957_v22  ;;  %v960_v24 = vmax.f32 %v4438_v21, %v4442_v23 }
 0x1dd   : > { %961 = vmax.xlane.f32.xlu1 %v960_v24 }
 0x1df   : > { %v4446_v25 = vpop.f32.mrb[36].mxu0 }
 0x1e0   : > { %5651 = vst [vmem:[#allocation47_spill] sm:$0xff] %v4446_v25  ;;  %v4448_v26 = vpop.f32.mrb[37].mxu0 }
 0x1e1   : > { %5652 = vst [vmem:[#allocation48_spill] sm:$0xff] %v4448_v26  ;;  %v4450_v27 = vpop.f32.mrb[38].mxu0  ;;  %v963_v28 = vmax.f32 %v4446_v25, %v4448_v26  ;;  %v4671_v26 = vld [vmem:[#allocation2 + $0x68] sm:$0xff] }
 0x1e2   : > { %5653 = vst [vmem:[#allocation49_spill] sm:$0xff] %v4450_v27  ;;  %v4454_v29 = vpop.f32.mrb[39].mxu0 }
 0x1e3   : > { %5654 = vst [vmem:[#allocation50_spill] sm:$0xff] %v4454_v29  ;;  %964 = vmax.xlane.f32.xlu0 %v963_v28  ;;  %v966_v30 = vmax.f32 %v4450_v27, %v4454_v29 }
 0x1e5   : > { %967 = vmax.xlane.f32.xlu1 %v966_v30 }
 0x1e7   : > { %v4458_v31 = vpop.f32.mrb[40].mxu0 }
 0x1e8   : > { %5655 = vst [vmem:[#allocation51_spill] sm:$0xff] %v4458_v31  ;;  %v4460_v32 = vpop.f32.mrb[41].mxu0 }
 0x1e9   : > { %5656 = vst [vmem:[#allocation52_spill] sm:$0xff] %v4460_v32  ;;  %v4462_v36 = vpop.f32.mrb[42].mxu0  ;;  %v969_v38 = vmax.f32 %v4458_v31, %v4460_v32  ;;  %v4651_v32 = vld [vmem:[#allocation2 + $0x58] sm:$0xff] }
 0x1ea   : > { %5657 = vst [vmem:[#allocation53_spill] sm:$0xff] %v4462_v36  ;;  %v4466_v42 = vpop.f32.mrb[43].mxu0 }
 0x1eb   : > { %5658 = vst [vmem:[#allocation54_spill] sm:$0xff] %v4466_v42  ;;  %970 = vmax.xlane.f32.xlu0 %v969_v38  ;;  %v972_v44 = vmax.f32 %v4462_v36, %v4466_v42 }
 0x1ed   : > { %973 = vmax.xlane.f32.xlu1 %v972_v44 }
 0x1ef   : > { %v4470_v48 = vpop.f32.mrb[44].mxu0 }
 0x1f0   : > { %5659 = vst [vmem:[#allocation55_spill] sm:$0xff] %v4470_v48  ;;  %v4472_v50 = vpop.f32.mrb[45].mxu0 }
 0x1f1   : > { %5660 = vst [vmem:[#allocation56_spill] sm:$0xff] %v4472_v50  ;;  %v4474_v51 = vpop.f32.mrb[46].mxu0  ;;  %v975_v55 = vmax.f32 %v4470_v48, %v4472_v50  ;;  %v4608_v50 = vld [vmem:[#allocation2 + $0x30] sm:$0xff] }
 0x1f2   : > { %5661 = vst [vmem:[#allocation57_spill] sm:$0xff] %v4474_v51  ;;  %v4478_v57 = vpop.f32.mrb[47].mxu0 }
 0x1f3   : > { %5662 = vst [vmem:[#allocation58_spill] sm:$0xff] %v4478_v57  ;;  %976 = vmax.xlane.f32.xlu0 %v975_v55  ;;  %v978_v58 = vmax.f32 %v4474_v51, %v4478_v57  ;;  %v3511_v57 = vld [vmem:[%s4531_s20 + $0x30] sm:$0xff]  }
 0x1f5   : > { %979 = vmax.xlane.f32.xlu1 %v978_v58 }
 0x1f7   : > { %v4482_v62 = vpop.f32.mrb[48].mxu0 }
 0x1f8   : > { %5663 = vst [vmem:[#allocation59_spill] sm:$0xff] %v4482_v62  ;;  %v4484_v0 = vpop.f32.mrb[49].mxu0 }
 0x1f9   : > { %5664 = vst [vmem:[#allocation60_spill] sm:$0xff] %v4484_v0  ;;  %v4486_v4 = vpop.f32.mrb[50].mxu0  ;;  %v981_v6 = vmax.f32 %v4482_v62, %v4484_v0  ;;  %v4580_v0 = vld [vmem:[#allocation2 + $0x20] sm:$0xff] }
 0x1fa   : > { %5665 = vst [vmem:[#allocation61_spill] sm:$0xff] %v4486_v4  ;;  %v4490_v10 = vpop.f32.mrb[51].mxu0 }
 0x1fb   : > { %5666 = vst [vmem:[#allocation62_spill] sm:$0xff] %v4490_v10  ;;  %982 = vmax.xlane.f32.xlu0 %v981_v6  ;;  %v984_v12 = vmax.f32 %v4486_v4, %v4490_v10  ;;  %v4568_v10 = vld [vmem:[#allocation2 + $0x18] sm:$0xff]  ;;  %v3509_v4 = vld [vmem:[%s4531_s20 + $0x28] sm:$0xff]  }
 0x1fd   : > { %985 = vmax.xlane.f32.xlu1 %v984_v12 }
 0x1ff   : > { %v4494_v16 = vpop.f32.mrb[52].mxu0 }
 0x200   : > { %5667 = vst [vmem:[#allocation63_spill] sm:$0xff] %v4494_v16  ;;  %v4496_v18 = vpop.f32.mrb[53].mxu0 }
 0x201   : > { %5668 = vst [vmem:[#allocation64_spill] sm:$0xff] %v4496_v18  ;;  %v4498_v22 = vpop.f32.mrb[54].mxu0  ;;  %v987_v24 = vmax.f32 %v4494_v16, %v4496_v18  ;;  %v3507_v16 = vld [vmem:[%s4531_s20 + $0x20] sm:$0xff]  }
 0x202   : > { %5669 = vst [vmem:[#allocation65_spill] sm:$0xff] %v4498_v22  ;;  %v4502_v28 = vpop.f32.mrb[55].mxu0 }
 0x203   : > { %5670 = vst [vmem:[#allocation66_spill] sm:$0xff] %v4502_v28  ;;  %988 = vmax.xlane.f32.xlu0 %v987_v24  ;;  %v990_v30 = vmax.f32 %v4498_v22, %v4502_v28 }
 0x205   : > { %991 = vmax.xlane.f32.xlu1 %v990_v30 }
 0x207   : > { %v4506_v38 = vpop.f32.mrb[56].mxu0 }
 0x208   : > { %5671 = vst [vmem:[#allocation67_spill] sm:$0xff] %v4506_v38  ;;  %v4508_v44 = vpop.f32.mrb[57].mxu0 }
 0x209   : > { %5672 = vst [vmem:[#allocation68_spill] sm:$0xff] %v4508_v44  ;;  %v4510_v55 = vpop.f32.mrb[58].mxu0  ;;  %v993_v58 = vmax.f32 %v4506_v38, %v4508_v44  ;;  %v3505_v38 = vld [vmem:[%s4531_s20 + $0x18] sm:$0xff]  }
 0x20a   : > { %5673 = vst [vmem:[#allocation69_spill] sm:$0xff] %v4510_v55  ;;  %v4514_v6 = vpop.f32.mrb[59].mxu0 }
 0x20b   : > { %5674 = vst [vmem:[#allocation70_spill] sm:$0xff] %v4514_v6  ;;  %994 = vmax.xlane.f32.xlu0 %v993_v58  ;;  %v996_v12 = vmax.f32 %v4510_v55, %v4514_v6  ;;  %v3498_v58 = vld [vmem:[%s4531_s20 + $0x40] sm:$0xff]   ;;  %v3501_v6 = vld [vmem:[%s4531_s20 + $0x8] sm:$0xff]  }
 0x20c   : > { %3257 = vmatprep.subr.bf16.mxu1 %v3498_v58  ;;  %v3506_v58 = vld [vmem:[%s4531_s20 + $0x60] sm:$0xff]  }
 0x20d   : > { %997 = vmax.xlane.f32.xlu1 %v996_v12  ;;  %v3499_v12 = vld [vmem:[%s4531_s20] sm:$0xff]  }
 0x20e   : > { %3258 = vmatpush3.bf16.msra.mxu1 %v3499_v12 }
 0x20f   : > { %v4518_v24 = vpop.f32.mrb[60].mxu0 }
 0x210   : > { %5675 = vst [vmem:[#allocation71_spill] sm:$0xff] %v4518_v24  ;;  %v4520_v30 = vpop.f32.mrb[61].mxu0 }
 0x211   : > { %5676 = vst [vmem:[#allocation72_spill] sm:$0xff] %v4520_v30  ;;  %v4522_v28 = vpop.f32.mrb[62].mxu0  ;;  %v999_v22 = vmax.f32 %v4518_v24, %v4520_v30  ;;  %v3500_v30 = vld [vmem:[%s4531_s20 + $0x48] sm:$0xff]   ;;  %v4536_v24 = vld [vmem:[#allocation2] sm:$0xff] }
 0x212   : > { %5677 = vst [vmem:[#allocation73_spill] sm:$0xff] %v4522_v28  ;;  %v4526_v18 = vpop.f32.mrb[63].mxu0  ;;  %3259 = vmatprep.subr.bf16.mxu1 %v3500_v30  ;;  %v3504_v30 = vld [vmem:[%s4531_s20 + $0x58] sm:$0xff]  }
 0x213   : > { %5678 = vst [vmem:[#allocation74_spill] sm:$0xff] %v4526_v18  ;;  %v1002_v44 = vmax.f32 %v4522_v28, %v4526_v18  ;;  %1000 = vmax.xlane.f32.xlu0 %v999_v22  ;;  %3260 = vmatpush3.bf16.msra.mxu1 %v3501_v6  ;;  %v3502_v22 = vld [vmem:[%s4531_s20 + $0x50] sm:$0xff]   ;;  %v4540_v18 = vld [vmem:[#allocation2 + $0x8] sm:$0xff] }
 0x214   : > { %v3503_v28 = vld [vmem:[%s4531_s20 + $0x10] sm:$0xff]   ;;  %3261 = vmatprep.subr.bf16.mxu1 %v3502_v22  ;;  %v3508_v22 = vld [vmem:[%s4531_s20 + $0x68] sm:$0xff]  }
 0x215   : > { %1003 = vmax.xlane.f32.xlu1 %v1002_v44 }
 0x217   : > { %3262 = vmatpush3.bf16.msra.mxu1 %v3503_v28 }
 0x218   : > { %3263 = vmatprep.subr.bf16.mxu1 %v3504_v30  ;;  %v4587_v30 = vld [vmem:[#allocation2 + $0x28] sm:$0xff] }
 0x21b   : > { %3264 = vmatpush3.bf16.msra.mxu1 %v3505_v38 }
 0x21c   : > { %3265 = vmatprep.subr.bf16.mxu1 %v3506_v58 }
 0x21f   : > { %3266 = vmatpush3.bf16.msra.mxu1 %v3507_v16 }
 0x220   : > { %3267 = vmatprep.subr.bf16.mxu1 %v3508_v22 }
 0x223   : > { %3268 = vmatpush3.bf16.msra.mxu1 %v3509_v4  ;;  %v3512_v4 = vld [vmem:[%s4531_s20 + $0x78] sm:$0xff]  }
 0x228   : > { %v911_v44 = vpop.xlane.xlu0 %910 }
 0x229   : > { %v4544_v55 = vmax.f32 %v4536_v24, %v911_v44  ;;  %v4556_v44 = vld [vmem:[#allocation2 + $0x10] sm:$0xff] }
 0x22b   : > { %2319 = vst.msk [vmem:[#allocation2] sm:$0xff] %vm331_vm0, %v4544_v55  ;;  %1135 = vperm.xlu0 %3464, %v4544_v55  }
 0x22c   : > { %v914_v6 = vpop.xlane.xlu0 %913 }
 0x22d   : > { %v4553_v12 = vmax.f32 %v4540_v18, %v914_v6 }
 0x22f   : > { %2320 = vst.msk [vmem:[#allocation2 + $0x8] sm:$0xff] %vm331_vm0, %v4553_v12  ;;  %1140 = vperm.xlu1 %3465, %v4553_v12  }
 0x230   : > { %v917_v28 = vpop.xlane.xlu1 %916 }
 0x231   : > { %v4565_v6 = vmax.f32 %v4556_v44, %v917_v28 }
 0x233   : > { %2321 = vst.msk [vmem:[#allocation2 + $0x10] sm:$0xff] %vm331_vm0, %v4565_v6  ;;  %1145 = vperm.xlu1 %3465, %v4565_v6  }
 0x234   : > { %v920_v38 = vpop.xlane.xlu1 %919 }
 0x235   : > { %v4577_v28 = vmax.f32 %v4568_v10, %v920_v38  ;;  %v3510_v38 = vld [vmem:[%s4531_s20 + $0x70] sm:$0xff]  }
 0x236   : > { %3269 = vmatprep.subr.bf16.mxu1 %v3510_v38  ;;  %v3513_v38 = vld [vmem:[%s4531_s20 + $0x38] sm:$0xff]  }
 0x237   : > { %2322 = vst.msk [vmem:[#allocation2 + $0x18] sm:$0xff] %vm331_vm0, %v4577_v28  ;;  %1150 = vperm.xlu1 %3465, %v4577_v28   ;;  %3270 = vmatpush3.bf16.msra.mxu1 %v3511_v57 }
 0x238   : > { %v923_v16 = vpop.xlane.xlu0 %922  ;;  %3271 = vmatprep.subr.bf16.mxu1 %v3512_v4 }
 0x239   : > { %v4591_v62 = vmax.f32 %v4580_v0, %v923_v16  ;;  %v4631_v16 = vld [vmem:[#allocation2 + $0x48] sm:$0xff] }
 0x23a   : > { %v926_v22 = vpop.xlane.xlu1 %925 }
 0x23b   : > { %2323 = vst.msk [vmem:[#allocation2 + $0x20] sm:$0xff] %vm331_vm0, %v4591_v62  ;;  %v4599_v51 = vmax.f32 %v4587_v30, %v926_v22  ;;  %1155 = vperm.xlu1 %3465, %v4591_v62   ;;  %3272 = vmatpush3.bf16.msra.mxu1 %v3513_v38  ;;  %v4611_v22 = vld [vmem:[#allocation2 + $0x38] sm:$0xff] }
 0x23d   : > { %2324 = vst.msk [vmem:[#allocation2 + $0x28] sm:$0xff] %vm331_vm0, %v4599_v51 }
 0x23f   : > { %1160 = vperm.xlu1 %3465, %v4599_v51  }
 0x240   : > { %v929_v58 = vpop.xlane.xlu0 %928 }
 0x241   : > { %v4614_v48 = vmax.f32 %v4608_v50, %v929_v58  ;;  %v4628_v58 = vld [vmem:[#allocation2 + $0x40] sm:$0xff] }
 0x242   : > { %v932_v57 = vpop.xlane.xlu1 %931 }
 0x243   : > { %2325 = vst.msk [vmem:[#allocation2 + $0x30] sm:$0xff] %vm331_vm0, %v4614_v48  ;;  %v4621_v42 = vmax.f32 %v4611_v22, %v932_v57  ;;  %1165 = vperm.xlu1 %3465, %v4614_v48  }
 0x245   : > { %2326 = vst.msk [vmem:[#allocation2 + $0x38] sm:$0xff] %vm331_vm0, %v4621_v42 }
 0x247   : > { %1170 = vperm.xlu1 %3465, %v4621_v42  }
 0x248   : > { %v935_v38 = vpop.xlane.xlu0 %934 }
 0x249   : > { %v4634_v36 = vmax.f32 %v4628_v58, %v935_v38  ;;  %v4649_v38 = vld [vmem:[#allocation2 + $0x50] sm:$0xff] }
 0x24a   : > { %v938_v57 = vpop.xlane.xlu1 %937 }
 0x24b   : > { %2327 = vst.msk [vmem:[#allocation2 + $0x40] sm:$0xff] %vm331_vm0, %v4634_v36  ;;  %v4641_v4 = vmax.f32 %v4631_v16, %v938_v57  ;;  %1175 = vperm.xlu1 %3465, %v4634_v36  }
 0x24d   : > { %2328 = vst.msk [vmem:[#allocation2 + $0x48] sm:$0xff] %vm331_vm0, %v4641_v4  ;;  %1180 = vperm.xlu0 %3464, %v4641_v4  }
 0x250   : > { %v941_v29 = vpop.xlane.xlu0 %940 }
 0x251   : > { %v4654_v27 = vmax.f32 %v4649_v38, %v941_v29  ;;  %v4669_v29 = vld [vmem:[#allocation2 + $0x60] sm:$0xff] }
 0x252   : > { %v944_v57 = vpop.xlane.xlu1 %943 }
 0x253   : > { %2329 = vst.msk [vmem:[#allocation2 + $0x50] sm:$0xff] %vm331_vm0, %v4654_v27  ;;  %v4661_v31 = vmax.f32 %v4651_v32, %v944_v57  ;;  %1185 = vperm.xlu1 %3465, %v4654_v27  }
 0x255   : > { %2330 = vst.msk [vmem:[#allocation2 + $0x58] sm:$0xff] %vm331_vm0, %v4661_v31  ;;  %1190 = vperm.xlu0 %3464, %v4661_v31  }
 0x258   : > { %v947_v23 = vpop.xlane.xlu0 %946 }
 0x259   : > { %v4674_v21 = vmax.f32 %v4669_v29, %v947_v23  ;;  %v4689_v23 = vld [vmem:[#allocation2 + $0x70] sm:$0xff] }
 0x25a   : > { %v950_v57 = vpop.xlane.xlu1 %949 }
 0x25b   : > { %2331 = vst.msk [vmem:[#allocation2 + $0x60] sm:$0xff] %vm331_vm0, %v4674_v21  ;;  %v4681_v25 = vmax.f32 %v4671_v26, %v950_v57  ;;  %1195 = vperm.xlu1 %3465, %v4674_v21  }
 0x25d   : > { %2332 = vst.msk [vmem:[#allocation2 + $0x68] sm:$0xff] %vm331_vm0, %v4681_v25  ;;  %1200 = vperm.xlu0 %3464, %v4681_v25  }
 0x260   : > { %v953_v17 = vpop.xlane.xlu0 %952 }
 0x261   : > { %v4694_v15 = vmax.f32 %v4689_v23, %v953_v17  ;;  %v4709_v17 = vld [vmem:[#allocation2 + $0x80] sm:$0xff] }
 0x262   : > { %v956_v57 = vpop.xlane.xlu1 %955 }
 0x263   : > { %2333 = vst.msk [vmem:[#allocation2 + $0x70] sm:$0xff] %vm331_vm0, %v4694_v15  ;;  %v4701_v19 = vmax.f32 %v4691_v20, %v956_v57  ;;  %1205 = vperm.xlu1 %3465, %v4694_v15  }
 0x265   : > { %2334 = vst.msk [vmem:[#allocation2 + $0x78] sm:$0xff] %vm331_vm0, %v4701_v19  ;;  %1210 = vperm.xlu0 %3464, %v4701_v19  }
 0x268   : > { %v959_v11 = vpop.xlane.xlu0 %958 }
 0x269   : > { %v4714_v9 = vmax.f32 %v4709_v17, %v959_v11  ;;  %v4729_v11 = vld [vmem:[#allocation2 + $0x90] sm:$0xff] }
 0x26a   : > { %v962_v57 = vpop.xlane.xlu1 %961 }
 0x26b   : > { %2335 = vst.msk [vmem:[#allocation2 + $0x80] sm:$0xff] %vm331_vm0, %v4714_v9  ;;  %v4721_v13 = vmax.f32 %v4711_v14, %v962_v57  ;;  %1215 = vperm.xlu1 %3465, %v4714_v9  }
 0x26d   : > { %2336 = vst.msk [vmem:[#allocation2 + $0x88] sm:$0xff] %vm331_vm0, %v4721_v13  ;;  %1220 = vperm.xlu0 %3464, %v4721_v13  }
 0x270   : > { %v965_v5 = vpop.xlane.xlu0 %964 }
 0x271   : > { %v4734_v3 = vmax.f32 %v4729_v11, %v965_v5  ;;  %v4749_v5 = vld [vmem:[#allocation2 + $0xa0] sm:$0xff] }
 0x272   : > { %v968_v57 = vpop.xlane.xlu1 %967 }
 0x273   : > { %2337 = vst.msk [vmem:[#allocation2 + $0x90] sm:$0xff] %vm331_vm0, %v4734_v3  ;;  %v4741_v7 = vmax.f32 %v4731_v8, %v968_v57  ;;  %1225 = vperm.xlu1 %3465, %v4734_v3  }
 0x275   : > { %2338 = vst.msk [vmem:[#allocation2 + $0x98] sm:$0xff] %vm331_vm0, %v4741_v7  ;;  %1230 = vperm.xlu0 %3464, %v4741_v7  }
 0x278   : > { %v971_v63 = vpop.xlane.xlu0 %970 }
 0x279   : > { %v4754_v61 = vmax.f32 %v4749_v5, %v971_v63  ;;  %v4769_v63 = vld [vmem:[#allocation2 + $0xb0] sm:$0xff] }
 0x27a   : > { %v974_v57 = vpop.xlane.xlu1 %973  ;;  %5679 = vst [vmem:[#allocation75_spill] sm:$0xff] %v4769_v63 }
 0x27b   : > { %2339 = vst.msk [vmem:[#allocation2 + $0xa0] sm:$0xff] %vm331_vm0, %v4754_v61  ;;  %v4761_v1 = vmax.f32 %v4751_v2, %v974_v57  ;;  %1235 = vperm.xlu1 %3465, %v4754_v61  }
 0x27d   : > { %2340 = vst.msk [vmem:[#allocation2 + $0xa8] sm:$0xff] %vm331_vm0, %v4761_v1  ;;  %1240 = vperm.xlu0 %3464, %v4761_v1  }
 0x280   : > { %v977_v56 = vpop.xlane.xlu0 %976 }
 0x281   : > { %v4774_v54 = vmax.f32 %v4769_v63, %v977_v56  ;;  %v4789_v56 = vld [vmem:[#allocation2 + $0xc0] sm:$0xff] }
 0x282   : > { %v980_v57 = vpop.xlane.xlu1 %979  ;;  %5683 = vst [vmem:[#allocation79_spill] sm:$0xff] %v4789_v56 }
 0x283   : > { %5681 = vst [vmem:[#allocation77_spill] sm:$0xff] %v4774_v54  ;;  %2341 = vst.msk [vmem:[#allocation2 + $0xb0] sm:$0xff] %vm331_vm0, %v4774_v54  ;;  %v4781_v59 = vmax.f32 %v4771_v60, %v980_v57  ;;  %1245 = vperm.xlu1 %3465, %v4774_v54   ;;  %v4807_v60 = vld [vmem:[#allocation2 + $0xd8] sm:$0xff] }
 0x284   : > { %5688 = vst [vmem:[#allocation84_spill] sm:$0xff] %v4807_v60 }
 0x285   : > { %5682 = vst [vmem:[#allocation78_spill] sm:$0xff] %v4781_v59  ;;  %2342 = vst.msk [vmem:[#allocation2 + $0xb8] sm:$0xff] %vm331_vm0, %v4781_v59  ;;  %1250 = vperm.xlu0 %3464, %v4781_v59  }
 0x288   : > { %v983_v49 = vpop.xlane.xlu0 %982 }
 0x289   : > { %v4794_v47 = vmax.f32 %v4789_v56, %v983_v49 }
 0x28a   : > { %v986_v57 = vpop.xlane.xlu1 %985 }
 0x28b   : > { %5685 = vst [vmem:[#allocation81_spill] sm:$0xff] %v4794_v47  ;;  %2343 = vst.msk [vmem:[#allocation2 + $0xc0] sm:$0xff] %vm331_vm0, %v4794_v47  ;;  %v4799_v54 = vmax.f32 %v4791_v53, %v986_v57  ;;  %1255 = vperm.xlu1 %3465, %v4794_v47   ;;  %v4821_v53 = vld [vmem:[#allocation2 + $0xe0] sm:$0xff]  ;;  %v4826_v47 = vld [vmem:[#allocation2 + $0xe8] sm:$0xff] }
 0x28d   : > { %5686 = vst [vmem:[#allocation82_spill] sm:$0xff] %v4799_v54  ;;  %2344 = vst.msk [vmem:[#allocation2 + $0xc8] sm:$0xff] %vm331_vm0, %v4799_v54  ;;  %1260 = vperm.xlu0 %3464, %v4799_v54  }
 0x290   : > { %v989_v59 = vpop.xlane.xlu0 %988 }
 0x291   : > { %v4810_v49 = vmax.f32 %v4805_v52, %v989_v59  ;;  %v5691_v59 = vsub.f32 %v4540_v18, %v4553_v12  ;;  %v5693_v18 = vsub.f32 %v4556_v44, %v4565_v6  ;;  %v4854_v44 = vld [vmem:[#allocation2 + $0xf8] sm:$0xff] }
 0x292   : > { %v992_v56 = vpop.xlane.xlu1 %991 }
 0x293   : > { %5689 = vst [vmem:[#allocation85_spill] sm:$0xff] %v4810_v49  ;;  %2345 = vst.msk [vmem:[#allocation2 + $0xd0] sm:$0xff] %vm331_vm0, %v4810_v49  ;;  %v4815_v57 = vmax.f32 %v4807_v60, %v992_v56  ;;  %1265 = vperm.xlu1 %3465, %v4810_v49   ;;  %v1071_v52 = vmul.f32 1.442695, %v5691_v59  ;;  %v5692_v56 = vsub.f32 %v4536_v24, %v4544_v55  ;;  %v1073_v12 = vmul.f32 1.442695, %v5693_v18 }
 0x294   : > { %v4849_v24 = vld [vmem:[#allocation2 + $0xf0] sm:$0xff] }
 0x295   : > { %5690 = vst [vmem:[#allocation86_spill] sm:$0xff] %v4815_v57  ;;  %2346 = vst.msk [vmem:[#allocation2 + $0xd8] sm:$0xff] %vm331_vm0, %v4815_v57  ;;  %1270 = vperm.xlu0 %3464, %v4815_v57   ;;  %v1069_v60 = vmul.f32 1.442695, %v5692_v56  ;;  %3514 = vpow2.f32 %v1071_v52  ;;  %v5695_v52 = vsub.f32 %v4580_v0, %v4591_v62  ;;  %v5698_v0 = vsub.f32 %v4611_v22, %v4621_v42 }
 0x297   : > { %3516 = vpow2.f32 %v1069_v60  ;;  %v5696_v60 = vsub.f32 %v4587_v30, %v4599_v51  ;;  %v5699_v51 = vsub.f32 %v4628_v58, %v4634_v36  ;;  %v5701_v36 = vsub.f32 %v4649_v38, %v4654_v27 }
 0x298   : > { %v995_v54 = vpop.xlane.xlu0 %994  ;;  %3518 = vpow2.f32 %v1073_v12  ;;  %v1083_v12 = vmul.f32 1.442695, %v5698_v0  ;;  %v5704_v27 = vsub.f32 %v4671_v26, %v4681_v25  ;;  %v5707_v0 = vsub.f32 %v4709_v17, %v4714_v9 }
 0x299   : > { %v4829_v63 = vmax.f32 %v4821_v53, %v995_v54  ;;  %v5694_v54 = vsub.f32 %v4568_v10, %v4577_v28  ;;  %v1079_v56 = vmul.f32 1.442695, %v5696_v60  ;;  %v5697_v28 = vsub.f32 %v4608_v50, %v4614_v48 }
 0x29a   : > { %v998_v49 = vpop.xlane.xlu1 %997  ;;  %v1085_v30 = vmul.f32 1.442695, %v5699_v51  ;;  %v1089_v22 = vmul.f32 1.442695, %v5701_v36  ;;  %v1095_v38 = vmul.f32 1.442695, %v5704_v27 }
 0x29b   : > { %2347 = vst.msk [vmem:[#allocation2 + $0xe0] sm:$0xff] %vm331_vm0, %v4829_v63  ;;  %v4837_v57 = vmax.f32 %v4826_v47, %v998_v49  ;;  %1275 = vperm.xlu1 %3465, %v4829_v63   ;;  %v1075_v55 = vmul.f32 1.442695, %v5694_v54  ;;  %v1077_v49 = vmul.f32 1.442695, %v5695_v52  ;;  %v5700_v54 = vsub.f32 %v4631_v16, %v4641_v4 }
 0x29c   : > { %v1081_v18 = vmul.f32 1.442695, %v5697_v28 }
 0x29d   : > { %2348 = vst.msk [vmem:[#allocation2 + $0xe8] sm:$0xff] %vm331_vm0, %v4837_v57  ;;  %1280 = vperm.xlu0 %3464, %v4837_v57   ;;  %3520 = vpow2.f32 %v1075_v55  ;;  %v1087_v42 = vmul.f32 1.442695, %v5700_v54  ;;  %v5702_v55 = vsub.f32 %v4651_v32, %v4661_v31 }
 0x29e   : > { %3522 = vpow2.f32 %v1077_v49  ;;  %v5703_v49 = vsub.f32 %v4669_v29, %v4674_v21  ;;  %v5705_v21 = vsub.f32 %v4689_v23, %v4694_v15 }
 0x29f   : > { %v4882_v50 = vpop.eup %3514  ;;  %3524 = vpow2.f32 %v1079_v56  ;;  %v1091_v52 = vmul.f32 1.442695, %v5702_v55 }
 0x2a0   : > { %v1001_v59 = vpop.xlane.xlu0 %1000  ;;  %3526 = vpow2.f32 %v1081_v18  ;;  %v1093_v16 = vmul.f32 1.442695, %v5703_v49  ;;  %v1097_v29 = vmul.f32 1.442695, %v5705_v21 }
 0x2a1   : > { %v4857_v6 = vmax.f32 %v4849_v24, %v1001_v59  ;;  %v4891_v58 = vpop.eup %3516  ;;  %3528 = vpow2.f32 %v1083_v12  ;;  %v1101_v12 = vmul.f32 1.442695, %v5707_v0  ;;  %v5717_v0 = vld [vmem:[#allocation79_spill] sm:$0xff] }
 0x2a2   : > { %v1004_v10 = vpop.xlane.xlu1 %1003  ;;  %3530 = vpow2.f32 %v1085_v30  ;;  %v4900_v4 = vpop.eup %3518 }
 0x2a3   : > { %2349 = vst.msk [vmem:[#allocation2 + $0xf0] sm:$0xff] %vm331_vm0, %v4857_v6  ;;  %v4868_v62 = vmax.f32 %v4854_v44, %v1004_v10  ;;  %1285 = vperm.xlu1 %3465, %v4857_v6   ;;  %3532 = vpow2.f32 %v1087_v42 }
 0x2a4   : > { %3534 = vpow2.f32 %v1089_v22 }
 0x2a5   : > { %2350 = vst.msk [vmem:[#allocation2 + $0xf8] sm:$0xff] %vm331_vm0, %v4868_v62  ;;  %1290 = vperm.xlu0 %3464, %v4868_v62   ;;  %3536 = vpow2.f32 %v1091_v52 }
 0x2a6   : > { %3538 = vpow2.f32 %v1093_v16 }
 0x2a7   : > { %1749 = vperm.xlu1 %3465, %v4882_v50   ;;  %v4908_v32 = vpop.eup %3520  ;;  %3540 = vpow2.f32 %v1095_v38 }
 0x2a8   : > { %v4914_v25 = vpop.eup %3522 }
 0x2a9   : > { %1744 = vperm.xlu0 %3464, %v4891_v58   ;;  %v4922_v15 = vpop.eup %3524 }
 0x2aa   : > { %v1136_v59 = vpop.permute.xlu0 %1135  ;;  %v4924_v23 = vpop.eup %3526 }
 0x2ab   : > { %v1293_v60 = vsub.f32 %v4306_v33, %v1136_v59  ;;  %v1294_v31 = vsub.f32 %v4308_v34, %v1136_v59  ;;  %1754 = vperm.xlu1 %3465, %v4900_v4   ;;  %v5706_v33 = vsub.f32 %v4691_v20, %v4701_v19  ;;  %v4930_v51 = vpop.eup %3528  ;;  %v5711_v59 = vsub.f32 %v4749_v5, %v4754_v61 }
 0x2ac   : > { %v4935_v54 = vpop.eup %3530 }
 0x2ad   : > { %v1357_v56 = vmul.f32 1.442695, %v1293_v60  ;;  %v1359_v10 = vmul.f32 1.442695, %v1294_v31  ;;  %1759 = vperm.xlu0 %3464, %v4908_v32   ;;  %v1099_v34 = vmul.f32 1.442695, %v5706_v33  ;;  %v4940_v17 = vpop.eup %3532 }
 0x2ae   : > { %v1141_v26 = vpop.permute.xlu1 %1140  ;;  %v4942_v36 = vpop.eup %3534 }
 0x2af   : > { %3542 = vpow2.f32 %v1357_v56  ;;  %v1295_v28 = vsub.f32 %v4310_v35, %v1141_v26  ;;  %v1296_v18 = vsub.f32 %v4314_v37, %v1141_v26  ;;  %1764 = vperm.xlu1 %3465, %v4914_v25   ;;  %v5708_v35 = vsub.f32 %v4711_v14, %v4721_v13  ;;  %v4948_v52 = vpop.eup %3536  ;;  %v5713_v26 = vld [vmem:[#allocation75_spill] sm:$0xff] }
 0x2b0   : > { %3544 = vpow2.f32 %v1359_v10  ;;  %v5709_v13 = vsub.f32 %v4729_v11, %v4734_v3  ;;  %v4953_v16 = vpop.eup %3538 }
 0x2b1   : > { %3546 = vpow2.f32 %v1097_v29  ;;  %v1361_v19 = vmul.f32 1.442695, %v1295_v28  ;;  %v1363_v20 = vmul.f32 1.442695, %v1296_v18  ;;  %1769 = vperm.xlu0 %3464, %v4922_v15   ;;  %v1103_v37 = vmul.f32 1.442695, %v5708_v35  ;;  %v4958_v11 = vpop.eup %3540 }
 0x2b2   : > { %3548 = vpow2.f32 %v1099_v34  ;;  %v1146_v30 = vpop.permute.xlu1 %1145  ;;  %v1105_v14 = vmul.f32 1.442695, %v5709_v13  ;;  %v5714_v28 = vld [vmem:[#allocation77_spill] sm:$0xff] }
 0x2b3   : > { %3550 = vpow2.f32 %v1361_v19  ;;  %v1297_v42 = vsub.f32 %v4318_v39, %v1146_v30  ;;  %v1298_v9 = vsub.f32 %v4320_v40, %v1146_v30  ;;  %1774 = vperm.xlu1 %3465, %v4924_v23   ;;  %v5710_v39 = vsub.f32 %v4731_v8, %v4741_v7 }
 0x2b4   : > { %3552 = vpow2.f32 %v1363_v20  ;;  %v1109_v7 = vmul.f32 1.442695, %v5711_v59 }
 0x2b5   : > { %3554 = vpow2.f32 %v1101_v12  ;;  %v1365_v22 = vmul.f32 1.442695, %v1297_v42  ;;  %v1367_v55 = vmul.f32 1.442695, %v1298_v9  ;;  %1779 = vperm.xlu0 %3464, %v4930_v51   ;;  %v1107_v40 = vmul.f32 1.442695, %v5710_v39 }
 0x2b6   : > { %3556 = vpow2.f32 %v1103_v37  ;;  %v1151_v49 = vpop.permute.xlu1 %1150  ;;  %v5718_v37 = vld [vmem:[#allocation21_spill] sm:$0xff]  ;;  %v5719_v42 = vld [vmem:[#allocation22_spill] sm:$0xff]  ;;  %v5720_v39 = vld [vmem:[#allocation76_spill] sm:$0xff] }
 0x2b7   : > { %3558 = vpow2.f32 %v1365_v22  ;;  %v1299_v27 = vsub.f32 %v4322_v41, %v1151_v49  ;;  %v1300_v3 = vsub.f32 %v4326_v43, %v1151_v49  ;;  %1784 = vperm.xlu1 %3465, %v4935_v54   ;;  %v5712_v41 = vsub.f32 %v4751_v2, %v4761_v1 }
 0x2b8   : > { %3560 = vpow2.f32 %v1367_v55 }
 0x2b9   : > { %v3543_v38 = vpop.eup %3542  ;;  %3562 = vpow2.f32 %v1105_v14  ;;  %v1369_v8 = vmul.f32 1.442695, %v1299_v27  ;;  %v1371_v60 = vmul.f32 1.442695, %v1300_v3  ;;  %1789 = vperm.xlu0 %3464, %v4940_v17   ;;  %v1111_v43 = vmul.f32 1.442695, %v5712_v41 }
 0x2ba   : > { %v3545_v31 = vpop.eup %3544  ;;  %3564 = vpow2.f32 %v1107_v40  ;;  %v1156_v21 = vpop.permute.xlu1 %1155  ;;  %v5721_v40 = vld [vmem:[#allocation78_spill] sm:$0xff]  ;;  %v5725_v41 = vld [vmem:[#allocation85_spill] sm:$0xff] }
 0x2bb   : > { %v4967_v29 = vpop.eup %3546  ;;  %3566 = vpow2.f32 %v1369_v8  ;;  %v1301_v56 = vsub.f32 %v4330_v45, %v1156_v21  ;;  %v1302_v10 = vsub.f32 %v4332_v46, %v1156_v21  ;;  %1794 = vperm.xlu1 %3465, %v4942_v36   ;;  %v4972_v61 = vadd.f32 %v3545_v31, %v3543_v38  ;;  %v5716_v46 = vld [vmem:[#allocation81_spill] sm:$0xff]  ;;  %v5723_v3 = vld [vmem:[#allocation82_spill] sm:$0xff] }
 0x2bc   : > { %v4974_v5 = vpop.eup %3548  ;;  %3568 = vpow2.f32 %v1371_v60  ;;  %v5715_v45 = vsub.f32 %v5713_v26, %v5714_v28  ;;  %v1061_v12 = vsub.f32 %v5717_v0, %v5716_v46  ;;  %v5722_v49 = vsub.f32 %v5720_v39, %v5721_v40  ;;  %v5731_v39 = vld [vmem:[#allocation25_spill] sm:$0xff] }
 0x2bd   : > { %v3551_v33 = vpop.eup %3550  ;;  %3570 = vpow2.f32 %v1109_v7  ;;  %v1373_v34 = vmul.f32 1.442695, %v1301_v56  ;;  %v1375_v1 = vmul.f32 1.442695, %v1302_v10  ;;  %1799 = vperm.xlu0 %3464, %v4948_v52  }
 0x2be   : > { %v3553_v2 = vpop.eup %3552  ;;  %3572 = vpow2.f32 %v1111_v43  ;;  %v1113_v18 = vmul.f32 1.442695, %v5715_v45  ;;  %v1161_v19 = vpop.permute.xlu1 %1160  ;;  %v1934_v20 = vpack.c.bf16 %v3551_v33, %v3543_v38  ;;  %v1115_v27 = vmul.f32 1.442695, %v5722_v49  ;;  %v5724_v38 = vld [vmem:[#allocation80_spill] sm:$0xff]  ;;  %v5726_v43 = vld [vmem:[#allocation83_spill] sm:$0xff] }
 0x2bf   : > { %v4982_v35 = vpop.eup %3554  ;;  %3574 = vpow2.f32 %v1373_v34  ;;  %v1303_v30 = vsub.f32 %v5718_v37, %v1161_v19  ;;  %v1304_v9 = vsub.f32 %v5719_v42, %v1161_v19  ;;  %1804 = vperm.xlu1 %3465, %v4953_v16   ;;  %v1935_v13 = vpack.c.bf16 %v3553_v2, %v3545_v31  ;;  %v5730_v37 = vld [vmem:[#allocation84_spill] sm:$0xff]  ;;  %v5732_v49 = vld [vmem:[#allocation26_spill] sm:$0xff] }
 0x2c0   : > { %v4987_v14 = vpop.eup %3556  ;;  %3576 = vpow2.f32 %v1375_v1  ;;  %v4989_v22 = vadd.f32 %v3553_v2, %v3551_v33  ;;  %v1062_v59 = vsub.f32 %v5724_v38, %v5723_v3  ;;  %v1117_v31 = vmul.f32 1.442695, %v1061_v12  ;;  %v5727_v33 = vld [vmem:[#allocation23_spill] sm:$0xff]  ;;  %v5728_v1 = vld [vmem:[#allocation24_spill] sm:$0xff] }
 0x2c1   : > { %v3559_v55 = vpop.eup %3558  ;;  %v1377_v7 = vmul.f32 1.442695, %v1303_v30  ;;  %v1379_v8 = vmul.f32 1.442695, %v1304_v9  ;;  %2126 = vmatprep.mubr.bf16.mxu1 %v1935_v13  ;;  %1809 = vperm.xlu0 %3464, %v4958_v11   ;;  %3578 = vpow2.f32 %v1113_v18  ;;  %v1063_v21 = vsub.f32 %v5726_v43, %v5725_v41 }
 0x2c2   : > { %v3561_v60 = vpop.eup %3560  ;;  %2127 = vmatmul.mubr.bf16.vlgmr.msra.gmra.mrb[0].mxu1 %v1934_v20  ;;  %v1166_v56 = vpop.permute.xlu1 %1165  ;;  %v1119_v18 = vmul.f32 1.442695, %v1062_v59  ;;  %v5729_v20 = vld [vmem:[#allocation86_spill] sm:$0xff]  ;;  %v1065_v43 = vsub.f32 %v4821_v53, %v4829_v63 }
 0x2c3   : > { %v4999_v10 = vpop.eup %3562  ;;  %3580 = vpow2.f32 %v1377_v7  ;;  %v1305_v34 = vsub.f32 %v5727_v33, %v1166_v56  ;;  %v1306_v2 = vsub.f32 %v5728_v1, %v1166_v56  ;;  %1814 = vperm.xlu1 %3465, %v4967_v29   ;;  %v5004_v26 = vadd.f32 %v3561_v60, %v3559_v55  ;;  %v5734_v33 = vld [vmem:[#allocation28_spill] sm:$0xff] }
 0x2c4   : > { %v5006_v28 = vpop.eup %3564  ;;  %3582 = vpow2.f32 %v1379_v8  ;;  %v1121_v19 = vmul.f32 1.442695, %v1063_v21  ;;  %v1064_v30 = vsub.f32 %v5730_v37, %v5729_v20  ;;  %v5733_v21 = vld [vmem:[#allocation27_spill] sm:$0xff] }
 0x2c5   : > { %v3567_v45 = vpop.eup %3566  ;;  %3584 = vpow2.f32 %v1115_v27  ;;  %v1381_v46 = vmul.f32 1.442695, %v1305_v34  ;;  %v1383_v0 = vmul.f32 1.442695, %v1306_v2  ;;  %1819 = vperm.xlu0 %3464, %v4974_v5  }
 0x2c6   : > { %v3569_v12 = vpop.eup %3568  ;;  %3586 = vpow2.f32 %v1117_v31  ;;  %v1171_v42 = vpop.permute.xlu1 %1170  ;;  %v1936_v9 = vpack.c.bf16 %v3567_v45, %v3559_v55  ;;  %v1123_v41 = vmul.f32 1.442695, %v1064_v30  ;;  %v1125_v30 = vmul.f32 1.442695, %v1065_v43  ;;  %v5740_v43 = vld [vmem:[#allocation32_spill] sm:$0xff] }
 0x2c7   : > { %v5011_v13 = vpop.eup %3570  ;;  %3588 = vpow2.f32 %v1381_v46  ;;  %v1307_v40 = vsub.f32 %v5731_v39, %v1171_v42  ;;  %v1308_v27 = vsub.f32 %v5732_v49, %v1171_v42  ;;  %1824 = vperm.xlu1 %3465, %v4982_v35   ;;  %v1937_v3 = vpack.c.bf16 %v3569_v12, %v3561_v60 }
 0x2c8   : > { %v5016_v38 = vpop.eup %3572  ;;  %3590 = vpow2.f32 %v1383_v0  ;;  %v5018_v59 = vadd.f32 %v3569_v12, %v3567_v45  ;;  %v1066_v45 = vsub.f32 %v4826_v47, %v4837_v57  ;;  %v5735_v0 = vld [vmem:[#allocation29_spill] sm:$0xff]  ;;  %v1067_v42 = vsub.f32 %v4849_v24, %v4857_v6 }
 0x2c9   : > { %v3575_v7 = vpop.eup %3574  ;;  %3592 = vpow2.f32 %v1119_v18  ;;  %v1385_v8 = vmul.f32 1.442695, %v1307_v40  ;;  %v1387_v31 = vmul.f32 1.442695, %v1308_v27  ;;  %2134 = vmatprep.mubr.bf16.mxu1 %v1937_v3  ;;  %1829 = vperm.xlu0 %3464, %v4987_v14  }
 0x2ca   : > { %v3577_v55 = vpop.eup %3576  ;;  %3594 = vpow2.f32 %v1121_v19  ;;  %2135 = vmatmul.mubr.bf16.gmra.mrb[4].mxu1 %v1936_v9  ;;  %v1176_v60 = vpop.permute.xlu1 %1175  ;;  %v5736_v19 = vld [vmem:[#allocation30_spill] sm:$0xff]  ;;  %v1127_v27 = vmul.f32 1.442695, %v1066_v45  ;;  %v1129_v6 = vmul.f32 1.442695, %v1067_v42 }
 0x2cb   : > { %3596 = vpow2.f32 %v1385_v8  ;;  %v1309_v56 = vsub.f32 %v5733_v21, %v1176_v60  ;;  %v1310_v34 = vsub.f32 %v5734_v33, %v1176_v60  ;;  %1834 = vperm.xlu1 %3465, %v4999_v10   ;;  %v5026_v1 = vadd.f32 %v3577_v55, %v3575_v7  ;;  %v5028_v2 = vpop.eup %3578 }
 0x2cc   : > { %3598 = vpow2.f32 %v1387_v31  ;;  %v1181_v18 = vpop.permute.xlu0 %1180 }
 0x2cd   : > { %v3581_v46 = vpop.eup %3580  ;;  %v1389_v53 = vmul.f32 1.442695, %v1309_v56  ;;  %v1391_v63 = vmul.f32 1.442695, %v1310_v34  ;;  %v1311_v12 = vsub.f32 %v5735_v0, %v1181_v18  ;;  %v1312_v20 = vsub.f32 %v5736_v19, %v1181_v18  ;;  %1839 = vperm.xlu0 %3464, %v5006_v28  }
 0x2ce   : > { %v3583_v37 = vpop.eup %3582  ;;  %3600 = vpow2.f32 %v1123_v41  ;;  %v1938_v9 = vpack.c.bf16 %v3581_v46, %v3575_v7 }
 0x2cf   : > { %v5037_v39 = vpop.eup %3584  ;;  %3602 = vpow2.f32 %v1389_v53  ;;  %v1393_v47 = vmul.f32 1.442695, %v1311_v12  ;;  %v1395_v57 = vmul.f32 1.442695, %v1312_v20  ;;  %1844 = vperm.xlu1 %3465, %v5011_v13   ;;  %v1939_v40 = vpack.c.bf16 %v3583_v37, %v3577_v55  ;;  %v5739_v55 = vld [vmem:[#allocation31_spill] sm:$0xff] }
 0x2d0   : > { %5737 = vst [vmem:[#allocation75_spill] sm:$0xff] %v5037_v39  ;;  %v5040_v49 = vpop.eup %3586  ;;  %3604 = vpow2.f32 %v1391_v63  ;;  %v5042_v3 = vadd.f32 %v3583_v37, %v3581_v46  ;;  %v5742_v46 = vld [vmem:[#allocation33_spill] sm:$0xff]  ;;  %v5743_v63 = vld [vmem:[#allocation34_spill] sm:$0xff] }
 0x2d1   : > { %v3589_v8 = vpop.eup %3588  ;;  %3606 = vpow2.f32 %v1393_v47  ;;  %2142 = vmatprep.mubr.bf16.mxu1 %v1939_v40  ;;  %1849 = vperm.xlu0 %3464, %v5016_v38  }
 0x2d2   : > { %v3591_v24 = vpop.eup %3590  ;;  %3608 = vpow2.f32 %v1395_v57  ;;  %2143 = vmatmul.mubr.bf16.gmra.mrb[8].mxu1 %v1938_v9  ;;  %v1186_v7 = vpop.permute.xlu1 %1185 }
 0x2d3   : > { %v5045_v31 = vpop.eup %3592  ;;  %3610 = vpow2.f32 %v1125_v30  ;;  %v1313_v41 = vsub.f32 %v5739_v55, %v1186_v7  ;;  %v1314_v60 = vsub.f32 %v5740_v43, %v1186_v7  ;;  %1854 = vperm.xlu1 %3465, %v5028_v2   ;;  %v5050_v21 = vadd.f32 %v3591_v24, %v3589_v8  ;;  %v5746_v7 = vld [vmem:[#allocation36_spill] sm:$0xff] }
 0x2d4   : > { %5738 = vst [vmem:[#allocation77_spill] sm:$0xff] %v5045_v31  ;;  %v5052_v56 = vpop.eup %3594  ;;  %3612 = vpow2.f32 %v1127_v27  ;;  %v1191_v33 = vpop.permute.xlu0 %1190 }
 0x2d5   : > { %5741 = vst [vmem:[#allocation81_spill] sm:$0xff] %v5052_v56  ;;  %v3597_v34 = vpop.eup %3596  ;;  %v1397_v45 = vmul.f32 1.442695, %v1313_v41  ;;  %v1399_v18 = vmul.f32 1.442695, %v1314_v60  ;;  %v1315_v53 = vsub.f32 %v5742_v46, %v1191_v33  ;;  %v1316_v0 = vsub.f32 %v5743_v63, %v1191_v33  ;;  %1859 = vperm.xlu0 %3464, %v5037_v39  }
 0x2d6   : > { %v3599_v12 = vpop.eup %3598  ;;  %3614 = vpow2.f32 %v1129_v6  ;;  %v1940_v19 = vpack.c.bf16 %v3597_v34, %v3589_v8  ;;  %v5745_v8 = vld [vmem:[#allocation35_spill] sm:$0xff] }
 0x2d7   : > { %3616 = vpow2.f32 %v1397_v45  ;;  %v1401_v20 = vmul.f32 1.442695, %v1315_v53  ;;  %v1403_v37 = vmul.f32 1.442695, %v1316_v0  ;;  %1864 = vperm.xlu1 %3465, %v5040_v49   ;;  %v1941_v30 = vpack.c.bf16 %v3599_v12, %v3591_v24  ;;  %v5749_v53 = vld [vmem:[#allocation38_spill] sm:$0xff] }
 0x2d8   : > { %v5058_v42 = vpop.eup %3600  ;;  %3618 = vpow2.f32 %v1399_v18  ;;  %v5060_v9 = vadd.f32 %v3599_v12, %v3597_v34  ;;  %v5748_v18 = vld [vmem:[#allocation37_spill] sm:$0xff] }
 0x2d9   : > { %5744 = vst [vmem:[#allocation79_spill] sm:$0xff] %v5058_v42  ;;  %v3603_v47 = vpop.eup %3602  ;;  %3620 = vpow2.f32 %v1401_v20  ;;  %2150 = vmatprep.mubr.bf16.mxu1 %v1941_v30  ;;  %1869 = vperm.xlu0 %3464, %v5045_v31  }
 0x2da   : > { %v3605_v57 = vpop.eup %3604  ;;  %3622 = vpow2.f32 %v1403_v37  ;;  %2151 = vmatmul.mubr.bf16.gmra.mrb[12].mxu1 %v1940_v19  ;;  %v1196_v40 = vpop.permute.xlu1 %1195 }
 0x2db   : > { %v3607_v27 = vpop.eup %3606  ;;  %v1317_v6 = vsub.f32 %v5745_v8, %v1196_v40  ;;  %v1318_v55 = vsub.f32 %v5746_v7, %v1196_v40  ;;  %1874 = vperm.xlu1 %3465, %v5052_v56   ;;  %v5066_v24 = vadd.f32 %v3605_v57, %v3603_v47  ;;  %v5753_v7 = vld [vmem:[#allocation40_spill] sm:$0xff] }
 0x2dc   : > { %v3609_v41 = vpop.eup %3608  ;;  %v1201_v43 = vpop.permute.xlu0 %1200  ;;  %v1942_v60 = vpack.c.bf16 %v3607_v27, %v3603_v47 }
 0x2dd   : > { %v5068_v33 = vpop.eup %3610  ;;  %v1405_v34 = vmul.f32 1.442695, %v1317_v6  ;;  %v1407_v45 = vmul.f32 1.442695, %v1318_v55  ;;  %v1319_v46 = vsub.f32 %v5748_v18, %v1201_v43  ;;  %v1320_v63 = vsub.f32 %v5749_v53, %v1201_v43  ;;  %1879 = vperm.xlu0 %3464, %v5058_v42   ;;  %v5754_v53 = vld [vmem:[#allocation41_spill] sm:$0xff] }
 0x2de   : > { %5747 = vst [vmem:[#allocation21_spill] sm:$0xff] %v5068_v33  ;;  %v5073_v0 = vpop.eup %3612  ;;  %v1943_v12 = vpack.c.bf16 %v3609_v41, %v3605_v57  ;;  %v5075_v19 = vadd.f32 %v3609_v41, %v3607_v27  ;;  %v5752_v27 = vld [vmem:[#allocation39_spill] sm:$0xff] }
 0x2df   : > { %5750 = vst [vmem:[#allocation22_spill] sm:$0xff] %v5073_v0  ;;  %3624 = vpow2.f32 %v1405_v34  ;;  %v1409_v20 = vmul.f32 1.442695, %v1319_v46  ;;  %v1411_v37 = vmul.f32 1.442695, %v1320_v63  ;;  %1884 = vperm.xlu1 %3465, %v5068_v33  }
 0x2e0   : > { %v5078_v30 = vpop.eup %3614  ;;  %3626 = vpow2.f32 %v1407_v45  ;;  %2158 = vmatprep.mubr.bf16.mxu1 %v1943_v12  ;;  %v5755_v12 = vld [vmem:[#allocation42_spill] sm:$0xff] }
 0x2e1   : > { %5751 = vst [vmem:[#allocation76_spill] sm:$0xff] %v5078_v30  ;;  %v3617_v47 = vpop.eup %3616  ;;  %3628 = vpow2.f32 %v1409_v20  ;;  %1889 = vperm.xlu0 %3464, %v5073_v0  }
 0x2e2   : > { %v3619_v40 = vpop.eup %3618  ;;  %3630 = vpow2.f32 %v1411_v37  ;;  %2159 = vmatmul.mubr.bf16.gmra.mrb[16].mxu1 %v1942_v60  ;;  %v1206_v8 = vpop.permute.xlu1 %1205 }
 0x2e3   : > { %v3621_v57 = vpop.eup %3620  ;;  %v1321_v6 = vsub.f32 %v5752_v27, %v1206_v8  ;;  %v1322_v55 = vsub.f32 %v5753_v7, %v1206_v8  ;;  %1894 = vperm.xlu1 %3465, %v5078_v30   ;;  %v5084_v41 = vadd.f32 %v3619_v40, %v3617_v47 }
 0x2e4   : > { %v3623_v43 = vpop.eup %3622  ;;  %v1211_v34 = vpop.permute.xlu0 %1210  ;;  %v1944_v45 = vpack.c.bf16 %v3621_v57, %v3617_v47 }
 0x2e5   : > { %v1413_v18 = vmul.f32 1.442695, %v1321_v6  ;;  %v1415_v46 = vmul.f32 1.442695, %v1322_v55  ;;  %v1323_v63 = vsub.f32 %v5754_v53, %v1211_v34  ;;  %v1324_v20 = vsub.f32 %v5755_v12, %v1211_v34  ;;  %v5756_v55 = vld [vmem:[#allocation43_spill] sm:$0xff]  ;;  %v5757_v53 = vld [vmem:[#allocation44_spill] sm:$0xff] }
 0x2e6   : > { %v1945_v60 = vpack.c.bf16 %v3623_v43, %v3619_v40  ;;  %v5088_v37 = vadd.f32 %v3623_v43, %v3621_v57 }
 0x2e7   : > { %3632 = vpow2.f32 %v1413_v18  ;;  %v1417_v27 = vmul.f32 1.442695, %v1323_v63  ;;  %v1419_v48 = vmul.f32 1.442695, %v1324_v20  ;;  %v5759_v20 = vld [vmem:[#allocation46_spill] sm:$0xff] }
 0x2e8   : > { %3634 = vpow2.f32 %v1415_v46  ;;  %2166 = vmatprep.mubr.bf16.mxu1 %v1945_v60  ;;  %v5758_v46 = vld [vmem:[#allocation45_spill] sm:$0xff] }
 0x2e9   : > { %v3625_v8 = vpop.eup %3624  ;;  %3636 = vpow2.f32 %v1417_v27 }
 0x2ea   : > { %v3627_v7 = vpop.eup %3626  ;;  %3638 = vpow2.f32 %v1419_v48  ;;  %2167 = vmatmul.mubr.bf16.gmra.mrb[20].mxu1 %v1944_v45  ;;  %v1216_v47 = vpop.permute.xlu1 %1215 }
 0x2eb   : > { %v3629_v6 = vpop.eup %3628  ;;  %v1325_v0 = vsub.f32 %v5756_v55, %v1216_v47  ;;  %v1326_v30 = vsub.f32 %v5757_v53, %v1216_v47  ;;  %v5092_v34 = vadd.f32 %v3627_v7, %v3625_v8 }
 0x2ec   : > { %v3631_v40 = vpop.eup %3630  ;;  %v1221_v57 = vpop.permute.xlu0 %1220  ;;  %v1946_v43 = vpack.c.bf16 %v3629_v6, %v3625_v8 }
 0x2ed   : > { %v1421_v18 = vmul.f32 1.442695, %v1325_v0  ;;  %v1423_v63 = vmul.f32 1.442695, %v1326_v30  ;;  %v1327_v12 = vsub.f32 %v5758_v46, %v1221_v57  ;;  %v1328_v60 = vsub.f32 %v5759_v20, %v1221_v57  ;;  %v5760_v30 = vld [vmem:[#allocation47_spill] sm:$0xff]  ;;  %v5761_v46 = vld [vmem:[#allocation48_spill] sm:$0xff] }
 0x2ee   : > { %v1947_v27 = vpack.c.bf16 %v3631_v40, %v3627_v7  ;;  %v5096_v48 = vadd.f32 %v3631_v40, %v3629_v6 }
 0x2ef   : > { %3640 = vpow2.f32 %v1421_v18  ;;  %v1425_v45 = vmul.f32 1.442695, %v1327_v12  ;;  %v1427_v42 = vmul.f32 1.442695, %v1328_v60  ;;  %v5763_v60 = vld [vmem:[#allocation50_spill] sm:$0xff] }
 0x2f0   : > { %3642 = vpow2.f32 %v1423_v63  ;;  %2174 = vmatprep.mubr.bf16.mxu1 %v1947_v27  ;;  %v5762_v63 = vld [vmem:[#allocation49_spill] sm:$0xff] }
 0x2f1   : > { %v3633_v47 = vpop.eup %3632  ;;  %3644 = vpow2.f32 %v1425_v45 }
 0x2f2   : > { %v3635_v55 = vpop.eup %3634  ;;  %3646 = vpow2.f32 %v1427_v42  ;;  %2175 = vmatmul.mubr.bf16.gmra.mrb[24].mxu1 %v1946_v43  ;;  %v1226_v8 = vpop.permute.xlu1 %1225 }
 0x2f3   : > { %v3637_v0 = vpop.eup %3636  ;;  %v1329_v53 = vsub.f32 %v5760_v30, %v1226_v8  ;;  %v1330_v33 = vsub.f32 %v5761_v46, %v1226_v8  ;;  %v5100_v57 = vadd.f32 %v3635_v55, %v3633_v47 }
 0x2f4   : > { %v3639_v7 = vpop.eup %3638  ;;  %v1231_v6 = vpop.permute.xlu0 %1230  ;;  %v1948_v40 = vpack.c.bf16 %v3637_v0, %v3633_v47 }
 0x2f5   : > { %v1429_v18 = vmul.f32 1.442695, %v1329_v53  ;;  %v1431_v12 = vmul.f32 1.442695, %v1330_v33  ;;  %v1331_v20 = vsub.f32 %v5762_v63, %v1231_v6  ;;  %v1332_v27 = vsub.f32 %v5763_v60, %v1231_v6  ;;  %v5764_v33 = vld [vmem:[#allocation51_spill] sm:$0xff]  ;;  %v5765_v63 = vld [vmem:[#allocation52_spill] sm:$0xff] }
 0x2f6   : > { %v1949_v45 = vpack.c.bf16 %v3639_v7, %v3635_v55  ;;  %v5104_v42 = vadd.f32 %v3639_v7, %v3637_v0 }
 0x2f7   : > { %3648 = vpow2.f32 %v1429_v18  ;;  %v1433_v43 = vmul.f32 1.442695, %v1331_v20  ;;  %v1435_v31 = vmul.f32 1.442695, %v1332_v27  ;;  %v5767_v27 = vld [vmem:[#allocation54_spill] sm:$0xff] }
 0x2f8   : > { %3650 = vpow2.f32 %v1431_v12  ;;  %2182 = vmatprep.mubr.bf16.mxu1 %v1949_v45  ;;  %v5766_v12 = vld [vmem:[#allocation53_spill] sm:$0xff] }
 0x2f9   : > { %v3641_v8 = vpop.eup %3640  ;;  %3652 = vpow2.f32 %v1433_v43 }
 0x2fa   : > { %v3643_v30 = vpop.eup %3642  ;;  %3654 = vpow2.f32 %v1435_v31  ;;  %2183 = vmatmul.mubr.bf16.gmra.mrb[28].mxu1 %v1948_v40  ;;  %v1236_v47 = vpop.permute.xlu1 %1235 }
 0x2fb   : > { %v3645_v53 = vpop.eup %3644  ;;  %v1333_v46 = vsub.f32 %v5764_v33, %v1236_v47  ;;  %v1334_v56 = vsub.f32 %v5765_v63, %v1236_v47  ;;  %v5108_v6 = vadd.f32 %v3643_v30, %v3641_v8 }
 0x2fc   : > { %v3647_v55 = vpop.eup %3646  ;;  %v1241_v0 = vpop.permute.xlu0 %1240  ;;  %v1950_v7 = vpack.c.bf16 %v3645_v53, %v3641_v8 }
 0x2fd   : > { %v1437_v18 = vmul.f32 1.442695, %v1333_v46  ;;  %v1439_v20 = vmul.f32 1.442695, %v1334_v56  ;;  %v1335_v60 = vsub.f32 %v5766_v12, %v1241_v0  ;;  %v1336_v45 = vsub.f32 %v5767_v27, %v1241_v0  ;;  %v5768_v46 = vld [vmem:[#allocation55_spill] sm:$0xff]  ;;  %v5769_v0 = vld [vmem:[#allocation56_spill] sm:$0xff] }
 0x2fe   : > { %v1951_v43 = vpack.c.bf16 %v3647_v55, %v3643_v30  ;;  %v5112_v31 = vadd.f32 %v3647_v55, %v3645_v53 }
 0x2ff   : > { %3656 = vpow2.f32 %v1437_v18  ;;  %v1441_v40 = vmul.f32 1.442695, %v1335_v60  ;;  %v1443_v39 = vmul.f32 1.442695, %v1336_v45  ;;  %v5770_v60 = vld [vmem:[#allocation57_spill] sm:$0xff]  ;;  %v5771_v45 = vld [vmem:[#allocation58_spill] sm:$0xff] }
 0x300   : > { %3658 = vpow2.f32 %v1439_v20  ;;  %2190 = vmatprep.mubr.bf16.mxu1 %v1951_v43  ;;  %1553 = vadd.xlane.f32.xlu0 %v4989_v22 }
 0x301   : > { %v3649_v47 = vpop.eup %3648  ;;  %3660 = vpow2.f32 %v1441_v40 }
 0x302   : > { %v3651_v33 = vpop.eup %3650  ;;  %3662 = vpow2.f32 %v1443_v39  ;;  %2191 = vmatmul.mubr.bf16.gmra.mrb[32].mxu1 %v1950_v7  ;;  %v1246_v56 = vpop.permute.xlu1 %1245 }
 0x303   : > { %v3653_v8 = vpop.eup %3652  ;;  %v1337_v63 = vsub.f32 %v5768_v46, %v1246_v56  ;;  %v1338_v30 = vsub.f32 %v5769_v0, %v1246_v56  ;;  %v5117_v53 = vadd.f32 %v3651_v33, %v3649_v47  ;;  %v5772_v0 = vld [vmem:[#allocation59_spill] sm:$0xff] }
 0x304   : > { %v3655_v55 = vpop.eup %3654  ;;  %v1251_v18 = vpop.permute.xlu0 %1250  ;;  %1556 = vadd.xlane.f32.xlu0 %v5004_v26  ;;  %v1952_v20 = vpack.c.bf16 %v3653_v8, %v3649_v47 }
 0x305   : > { %v1445_v12 = vmul.f32 1.442695, %v1337_v63  ;;  %v1447_v22 = vmul.f32 1.442695, %v1338_v30  ;;  %v1339_v27 = vsub.f32 %v5770_v60, %v1251_v18  ;;  %v1340_v39 = vsub.f32 %v5771_v45, %v1251_v18  ;;  %v5774_v60 = vld [vmem:[#allocation61_spill] sm:$0xff] }
 0x306   : > { %v1953_v7 = vpack.c.bf16 %v3655_v55, %v3651_v33  ;;  %v5122_v43 = vadd.f32 %v3655_v55, %v3653_v8  ;;  %v5773_v8 = vld [vmem:[#allocation60_spill] sm:$0xff] }
 0x307   : > { %3664 = vpow2.f32 %v1445_v12  ;;  %v1449_v40 = vmul.f32 1.442695, %v1339_v27  ;;  %v1451_v46 = vmul.f32 1.442695, %v1340_v39  ;;  %1550 = vadd.xlane.f32.xlu1 %v4972_v61 }
 0x308   : > { %3666 = vpow2.f32 %v1447_v22  ;;  %2198 = vmatprep.mubr.bf16.mxu1 %v1953_v7  ;;  %1562 = vadd.xlane.f32.xlu0 %v5026_v1 }
 0x309   : > { %v3657_v26 = vpop.eup %3656  ;;  %3668 = vpow2.f32 %v1449_v40 }
 0x30a   : > { %v3659_v47 = vpop.eup %3658  ;;  %3670 = vpow2.f32 %v1451_v46  ;;  %2199 = vmatmul.mubr.bf16.gmra.mrb[36].mxu1 %v1952_v20  ;;  %v1256_v56 = vpop.permute.xlu1 %1255  ;;  %v5775_v20 = vld [vmem:[#allocation62_spill] sm:$0xff] }
 0x30b   : > { %v3661_v63 = vpop.eup %3660  ;;  %v1341_v33 = vsub.f32 %v5772_v0, %v1256_v56  ;;  %v1342_v30 = vsub.f32 %v5773_v8, %v1256_v56  ;;  %1559 = vadd.xlane.f32.xlu1 %v5018_v59  ;;  %v5129_v55 = vadd.f32 %v3659_v47, %v3657_v26  ;;  %v5776_v0 = vld [vmem:[#allocation63_spill] sm:$0xff] }
 0x30c   : > { %v3663_v61 = vpop.eup %3662  ;;  %v1261_v18 = vpop.permute.xlu0 %1260  ;;  %1568 = vadd.xlane.f32.xlu0 %v5050_v21  ;;  %v1954_v1 = vpack.c.bf16 %v3661_v63, %v3657_v26 }
 0x30d   : > { %v1453_v12 = vmul.f32 1.442695, %v1341_v33  ;;  %v1455_v22 = vmul.f32 1.442695, %v1342_v30  ;;  %v1343_v27 = vsub.f32 %v5774_v60, %v1261_v18  ;;  %v1344_v45 = vsub.f32 %v5775_v20, %v1261_v18 }
 0x30e   : > { %v1955_v39 = vpack.c.bf16 %v3663_v61, %v3659_v47  ;;  %v5134_v7 = vadd.f32 %v3663_v61, %v3661_v63  ;;  %v5777_v63 = vld [vmem:[#allocation64_spill] sm:$0xff] }
 0x30f   : > { %3672 = vpow2.f32 %v1453_v12  ;;  %v1457_v40 = vmul.f32 1.442695, %v1343_v27  ;;  %v1459_v46 = vmul.f32 1.442695, %v1344_v45  ;;  %1565 = vadd.xlane.f32.xlu1 %v5042_v3  ;;  %v5778_v12 = vld [vmem:[#allocation65_spill] sm:$0xff] }
 0x310   : > { %3674 = vpow2.f32 %v1455_v22  ;;  %2206 = vmatprep.mubr.bf16.mxu1 %v1955_v39  ;;  %1574 = vadd.xlane.f32.xlu0 %v5066_v24 }
 0x311   : > { %v3665_v59 = vpop.eup %3664  ;;  %3676 = vpow2.f32 %v1457_v40 }
 0x312   : > { %v3667_v21 = vpop.eup %3666  ;;  %3678 = vpow2.f32 %v1459_v46  ;;  %2207 = vmatmul.mubr.bf16.gmra.mrb[40].mxu1 %v1954_v1  ;;  %v1266_v26 = vpop.permute.xlu1 %1265  ;;  %v5779_v1 = vld [vmem:[#allocation66_spill] sm:$0xff] }
 0x313   : > { %v3669_v56 = vpop.eup %3668  ;;  %v1345_v47 = vsub.f32 %v5776_v0, %v1266_v26  ;;  %v1346_v33 = vsub.f32 %v5777_v63, %v1266_v26  ;;  %1571 = vadd.xlane.f32.xlu1 %v5060_v9  ;;  %v5141_v8 = vadd.f32 %v3667_v21, %v3665_v59  ;;  %v5781_v26 = vld [vmem:[#allocation68_spill] sm:$0xff] }
 0x314   : > { %v3671_v3 = vpop.eup %3670  ;;  %v1271_v30 = vpop.permute.xlu0 %1270  ;;  %1580 = vadd.xlane.f32.xlu0 %v5084_v41  ;;  %v1956_v24 = vpack.c.bf16 %v3669_v56, %v3665_v59  ;;  %v5780_v59 = vld [vmem:[#allocation67_spill] sm:$0xff] }
 0x315   : > { %v1461_v61 = vmul.f32 1.442695, %v1345_v47  ;;  %v1463_v18 = vmul.f32 1.442695, %v1346_v33  ;;  %v1347_v22 = vsub.f32 %v5778_v12, %v1271_v30  ;;  %v1348_v60 = vsub.f32 %v5779_v1, %v1271_v30 }
 0x316   : > { %v1957_v27 = vpack.c.bf16 %v3671_v3, %v3667_v21  ;;  %v5146_v20 = vadd.f32 %v3671_v3, %v3669_v56  ;;  %v5782_v3 = vld [vmem:[#allocation69_spill] sm:$0xff] }
 0x317   : > { %3680 = vpow2.f32 %v1461_v61  ;;  %v1465_v45 = vmul.f32 1.442695, %v1347_v22  ;;  %v1467_v39 = vmul.f32 1.442695, %v1348_v60  ;;  %1577 = vadd.xlane.f32.xlu1 %v5075_v19  ;;  %v5783_v61 = vld [vmem:[#allocation70_spill] sm:$0xff] }
 0x318   : > { %3682 = vpow2.f32 %v1463_v18  ;;  %2214 = vmatprep.mubr.bf16.mxu1 %v1957_v27  ;;  %1586 = vadd.xlane.f32.xlu0 %v5092_v34 }
 0x319   : > { %v3673_v9 = vpop.eup %3672  ;;  %3684 = vpow2.f32 %v1465_v45  ;;  %v5784_v45 = vld [vmem:[#allocation71_spill] sm:$0xff] }
 0x31a   : > { %v3675_v41 = vpop.eup %3674  ;;  %3686 = vpow2.f32 %v1467_v39  ;;  %2215 = vmatmul.mubr.bf16.gmra.mrb[44].mxu1 %v1956_v24  ;;  %v1276_v40 = vpop.permute.xlu1 %1275 }
 0x31b   : > { %v3677_v46 = vpop.eup %3676  ;;  %v1349_v21 = vsub.f32 %v5780_v59, %v1276_v40  ;;  %v1350_v56 = vsub.f32 %v5781_v26, %v1276_v40  ;;  %1583 = vadd.xlane.f32.xlu1 %v5088_v37  ;;  %v1621_v0 = vadd.f32 %v3675_v41, %v3673_v9  ;;  %v5786_v26 = vld [vmem:[#allocation73_spill] sm:$0xff] }
 0x31c   : > { %v3679_v47 = vpop.eup %3678  ;;  %v1281_v19 = vpop.permute.xlu0 %1280  ;;  %1592 = vadd.xlane.f32.xlu0 %v5100_v57  ;;  %v1958_v63 = vpack.c.bf16 %v3677_v46, %v3673_v9  ;;  %v5785_v9 = vld [vmem:[#allocation72_spill] sm:$0xff] }
 0x31d   : > { %v1469_v34 = vmul.f32 1.442695, %v1349_v21  ;;  %v1471_v33 = vmul.f32 1.442695, %v1350_v56  ;;  %v1351_v30 = vsub.f32 %v5782_v3, %v1281_v19  ;;  %v1352_v24 = vsub.f32 %v5783_v61, %v1281_v19 }
 0x31e   : > { %v1959_v18 = vpack.c.bf16 %v3679_v47, %v3675_v41  ;;  %v5156_v12 = vadd.f32 %v3679_v47, %v3677_v46  ;;  %v5787_v47 = vld [vmem:[#allocation74_spill] sm:$0xff] }
 0x31f   : > { %3688 = vpow2.f32 %v1469_v34  ;;  %v1473_v22 = vmul.f32 1.442695, %v1351_v30  ;;  %v1475_v1 = vmul.f32 1.442695, %v1352_v24  ;;  %1589 = vadd.xlane.f32.xlu1 %v5096_v48 }
 0x320   : > { %3690 = vpow2.f32 %v1471_v33  ;;  %2222 = vmatprep.mubr.bf16.mxu1 %v1959_v18  ;;  %1598 = vadd.xlane.f32.xlu0 %v5108_v6 }
 0x321   : > { %v3681_v37 = vpop.eup %3680  ;;  %3692 = vpow2.f32 %v1473_v22 }
 0x322   : > { %v3683_v57 = vpop.eup %3682  ;;  %3694 = vpow2.f32 %v1475_v1  ;;  %2223 = vmatmul.mubr.bf16.gmra.mrb[48].mxu1 %v1958_v63  ;;  %v1286_v60 = vpop.permute.xlu1 %1285 }
 0x323   : > { %v3685_v27 = vpop.eup %3684  ;;  %v1353_v39 = vsub.f32 %v5784_v45, %v1286_v60  ;;  %v1354_v41 = vsub.f32 %v5785_v9, %v1286_v60  ;;  %1595 = vadd.xlane.f32.xlu1 %v5104_v42  ;;  %v1627_v40 = vadd.f32 %v3683_v57, %v3681_v37 }
 0x324   : > { %v3687_v46 = vpop.eup %3686  ;;  %v1291_v48 = vpop.permute.xlu0 %1290  ;;  %1604 = vadd.xlane.f32.xlu0 %v5117_v53  ;;  %v1960_v59 = vpack.c.bf16 %v3685_v27, %v3681_v37 }
 0x325   : > { %v1477_v6 = vmul.f32 1.442695, %v1353_v39  ;;  %v1479_v21 = vmul.f32 1.442695, %v1354_v41  ;;  %v1355_v56 = vsub.f32 %v5786_v26, %v1291_v48  ;;  %v1356_v19 = vsub.f32 %v5787_v47, %v1291_v48 }
 0x326   : > { %v1961_v63 = vpack.c.bf16 %v3687_v46, %v3683_v57  ;;  %v1630_v34 = vadd.f32 %v3687_v46, %v3685_v27  ;;  %v5174_v39 = vpop.permute.xlu1 %1749  ;;  %v5788_v41 = vsub.f32 %v4854_v44, %v4868_v62 }
 0x327   : > { %3696 = vpow2.f32 %v1477_v6  ;;  %v1481_v33 = vmul.f32 1.442695, %v1355_v56  ;;  %v1483_v3 = vmul.f32 1.442695, %v1356_v19  ;;  %1601 = vadd.xlane.f32.xlu1 %v5112_v31 }
 0x328   : > { %3698 = vpow2.f32 %v1479_v21  ;;  %2230 = vmatprep.mubr.bf16.mxu1 %v1961_v63  ;;  %1610 = vadd.xlane.f32.xlu0 %v5129_v55  ;;  %v5172_v27 = vpop.permute.xlu0 %1744 }
 0x329   : > { %v3689_v42 = vpop.eup %3688  ;;  %3700 = vpow2.f32 %v1481_v33 }
 0x32a   : > { %v3691_v53 = vpop.eup %3690  ;;  %3702 = vpow2.f32 %v1483_v3  ;;  %2231 = vmatmul.mubr.bf16.gmra.mrb[52].mxu1 %v1960_v59 }
 0x32b   : > { %v3693_v30 = vpop.eup %3692  ;;  %1607 = vadd.xlane.f32.xlu1 %v5122_v43  ;;  %v1633_v61 = vadd.f32 %v3691_v53, %v3689_v42 }
 0x32c   : > { %v3695_v24 = vpop.eup %3694  ;;  %1616 = vadd.xlane.f32.xlu0 %v5141_v8  ;;  %v1962_v18 = vpack.c.bf16 %v3693_v30, %v3689_v42 }
 0x32d   : > { %v1963_v22 = vpack.c.bf16 %v3695_v24, %v3691_v53  ;;  %v1636_v1 = vadd.f32 %v3695_v24, %v3693_v30 }
 0x32f   : > { %2238 = vmatprep.mubr.bf16.mxu1 %v1963_v22  ;;  %1613 = vadd.xlane.f32.xlu1 %v5134_v7  ;;  %v5177_v7 = vpop.permute.xlu0 %1759 }
 0x330   : > { %1622 = vadd.xlane.f32.xlu0 %v1621_v0  ;;  %v5179_v0 = vpop.permute.xlu1 %1754 }
 0x331   : > { %v3697_v31 = vpop.eup %3696 }
 0x332   : > { %v3699_v55 = vpop.eup %3698  ;;  %2239 = vmatmul.mubr.bf16.gmra.mrb[56].mxu1 %v1962_v18 }
 0x333   : > { %v3701_v37 = vpop.eup %3700  ;;  %1619 = vadd.xlane.f32.xlu1 %v5146_v20  ;;  %v1639_v57 = vadd.f32 %v3699_v55, %v3697_v31  ;;  %v5181_v20 = vpop.permute.xlu0 %1769 }
 0x334   : > { %v3703_v60 = vpop.eup %3702  ;;  %1628 = vadd.xlane.f32.xlu0 %v1627_v40  ;;  %v1964_v43 = vpack.c.bf16 %v3701_v37, %v3697_v31  ;;  %v5183_v9 = vpop.permute.xlu1 %1764  ;;  %v1131_v40 = vmul.f32 1.442695, %v5788_v41  ;;  %v1486_v31 = vld [vmem:[#allocation3 + $0x8] sm:$0xff]  ;;  %v1485_v41 = vld [vmem:[#allocation3] sm:$0xff] }
 0x335   : > { %v1965_v8 = vpack.c.bf16 %v3703_v60, %v3699_v55  ;;  %v1642_v45 = vadd.f32 %v3703_v60, %v3701_v37  ;;  %v1518_v37 = vmul.f32 %v4882_v50, %v1486_v31  ;;  %v1487_v60 = vld [vmem:[#allocation3 + $0x10] sm:$0xff]  ;;  %v1488_v31 = vld [vmem:[#allocation3 + $0x18] sm:$0xff] }
 0x336   : > { %3704 = vpow2.f32 %v1131_v40 }
 0x337   : > { %2246 = vmatprep.mubr.bf16.mxu1 %v1965_v8  ;;  %1625 = vadd.xlane.f32.xlu1 %v5156_v12  ;;  %v5188_v12 = vpop.permute.xlu0 %1779 }
 0x338   : > { %1634 = vadd.xlane.f32.xlu0 %v1633_v61  ;;  %v5190_v46 = vpop.permute.xlu1 %1774 }
 0x33a   : > { %2247 = vmatmul.mubr.bf16.gmra.mrb[60].mxu1 %v1964_v43 }
 0x33b   : > { %1631 = vadd.xlane.f32.xlu1 %v1630_v34  ;;  %v5192_v48 = vpop.permute.xlu0 %1789 }
 0x33c   : > { %1640 = vadd.xlane.f32.xlu0 %v1639_v57  ;;  %v5194_v59 = vpop.permute.xlu1 %1784 }
 0x33f   : > { %1637 = vadd.xlane.f32.xlu1 %v1636_v1  ;;  %v5199_v21 = vpop.permute.xlu0 %1799 }
 0x340   : > { %v5196_v6 = vpop.eup %3704  ;;  %v5201_v26 = vpop.permute.xlu1 %1794 }
 0x343   : > { %1643 = vadd.xlane.f32.xlu1 %v1642_v45  ;;  %v5203_v44 = vpop.permute.xlu0 %1809  ;;  %v1519_v45 = vmul.f32 %v4900_v4, %v1487_v60  ;;  %v1902_v4 = vmul.f32 0.0, %v5172_v27 }
 0x344   : > { %v5205_v62 = vpop.permute.xlu1 %1804 }
 0x347   : > { %v5207_v56 = vpop.permute.xlu0 %1819 }
 0x348   : > { %v5209_v47 = vpop.permute.xlu1 %1814 }
 0x34b   : > { %v5211_v19 = vpop.permute.xlu0 %1829 }
 0x34c   : > { %v5213_v63 = vpop.permute.xlu1 %1824 }
 0x34f   : > { %v5215_v34 = vpop.permute.xlu0 %1839 }
 0x350   : > { %v5217_v33 = vpop.permute.xlu1 %1834 }
 0x352   : > { %1899 = vperm.xlu0 %3464, %v5196_v6  }
 0x353   : > { %v5219_v3 = vpop.permute.xlu0 %1849 }
 0x354   : > { %v5221_v42 = vpop.permute.xlu1 %1844 }
 0x357   : > { %v5223_v53 = vpop.permute.xlu0 %1859 }
 0x358   : > { %5789 = vst [vmem:[#allocation78_spill] sm:$0xff] %v5223_v53  ;;  %v5225_v30 = vpop.permute.xlu1 %1854 }
 0x35b   : > { %v5227_v61 = vpop.permute.xlu0 %1869 }
 0x35c   : > { %5790 = vst [vmem:[#allocation82_spill] sm:$0xff] %v5227_v61  ;;  %v5229_v24 = vpop.permute.xlu1 %1864 }
 0x35d   : > { %5791 = vst [vmem:[#allocation80_spill] sm:$0xff] %v5229_v24 }
 0x35f   : > { %v5231_v18 = vpop.permute.xlu0 %1879 }
 0x360   : > { %5792 = vst [vmem:[#allocation85_spill] sm:$0xff] %v5231_v18  ;;  %v5233_v22 = vpop.permute.xlu1 %1874  ;;  %v1489_v18 = vld [vmem:[#allocation3 + $0x20] sm:$0xff] }
 0x361   : > { %5793 = vst [vmem:[#allocation83_spill] sm:$0xff] %v5233_v22  ;;  %v1521_v50 = vmul.f32 %v4914_v25, %v1489_v18 }
 0x363   : > { %v5235_v1 = vpop.permute.xlu0 %1889 }
 0x364   : > { %5794 = vst [vmem:[#allocation23_spill] sm:$0xff] %v5235_v1  ;;  %v5237_v55 = vpop.permute.xlu1 %1884  ;;  %v1517_v1 = vmul.f32 %v4891_v58, %v1485_v41  ;;  %v1520_v58 = vmul.f32 %v4908_v32, %v1488_v31 }
 0x365   : > { %5795 = vst [vmem:[#allocation24_spill] sm:$0xff] %v5237_v55 }
 0x368   : > { %v5240_v8 = vpop.permute.xlu1 %1894 }
 0x369   : > { %5796 = vst [vmem:[#allocation86_spill] sm:$0xff] %v5240_v8  ;;  %v1491_v8 = vld [vmem:[#allocation3 + $0x30] sm:$0xff] }
 0x38d   : > { %v1554_v57 = vpop.xlane.xlu0 %1553 }
 0x38e   : > { %v1646_v43 = vadd.f32 %v1554_v57, %v1518_v37 }
 0x390   : > { %1679 = vst.msk [vmem:[#allocation3 + $0x8] sm:$0xff] %vm331_vm0, %v1646_v43 }
 0x391   : > { %v1557_v40 = vpop.xlane.xlu0 %1556 }
 0x392   : > { %v1647_v22 = vadd.f32 %v1557_v40, %v1519_v45 }
 0x394   : > { %1680 = vst.msk [vmem:[#allocation3 + $0x10] sm:$0xff] %vm331_vm0, %v1647_v22  ;;  %v1551_v55 = vpop.xlane.xlu1 %1550  ;;  %v1523_v22 = vmul.f32 %v4924_v23, %v1491_v8  ;;  %v1492_v8 = vld [vmem:[#allocation3 + $0x38] sm:$0xff] }
 0x395   : > { %v3273_v61 = vpop.f32.mrb[0].mxu1  ;;  %v1645_v37 = vadd.f32 %v1551_v55, %v1517_v1  ;;  %v1563_v57 = vpop.xlane.xlu0 %1562  ;;  %v1490_v1 = vld [vmem:[#allocation3 + $0x28] sm:$0xff]  ;;  %v1903_v55 = vmul.f32 0.0, %v5174_v39 }
 0x396   : > { %v3274_v24 = vpop.f32.mrb[1].mxu1  ;;  %v1649_v43 = vadd.f32 %v1563_v57, %v1521_v50  ;;  %v1493_v57 = vld [vmem:[#allocation3 + $0x40] sm:$0xff]  ;;  %v1522_v32 = vmul.f32 %v4922_v15, %v1490_v1 }
 0x397   : > { %v2387_v60 = vld [vmem:[#allocation3 + $0x8] sm:$0xff]  ;;  %1678 = vst.msk [vmem:[#allocation3] sm:$0xff] %vm331_vm0, %v1645_v37  ;;  %v3275_v45 = vadd.f32 %v3274_v24, %v3273_v61  ;;  %v3276_v40 = vpop.f32.mrb[2].mxu1  ;;  %v1525_v23 = vmul.f32 %v4935_v54, %v1493_v57 }
 0x398   : > { %3706 = vrcp.f32 %v2387_v60  ;;  %1682 = vst.msk [vmem:[#allocation3 + $0x20] sm:$0xff] %vm331_vm0, %v1649_v43  ;;  %v3277_v25 = vpop.f32.mrb[3].mxu1  ;;  %v1560_v18 = vpop.xlane.xlu1 %1559  ;;  %v1495_v60 = vld [vmem:[#allocation3 + $0x50] sm:$0xff] }
 0x399   : > { %v3278_v41 = vadd.f32 %v3277_v25, %v3276_v40  ;;  %v1648_v50 = vadd.f32 %v1560_v18, %v1520_v58  ;;  %v1569_v27 = vpop.xlane.xlu0 %1568  ;;  %v5253_v53 = vadd.f32 %v3275_v45, %v1902_v4  ;;  %v1904_v58 = vmul.f32 0.0, %v5179_v0 }
 0x39a   : > { %v1651_v61 = vadd.f32 %v1569_v27, %v1523_v22  ;;  %v1524_v22 = vmul.f32 %v4930_v51, %v1492_v8 }
 0x39b   : > { %1681 = vst.msk [vmem:[#allocation3 + $0x18] sm:$0xff] %vm331_vm0, %v1648_v50  ;;  %v5257_v24 = vadd.f32 %v3278_v41, %v1903_v55  ;;  %v2388_v25 = vld [vmem:[#allocation3 + $0x10] sm:$0xff]  ;;  %v1527_v55 = vmul.f32 %v4942_v36, %v1495_v60  ;;  %v1494_v41 = vld [vmem:[#allocation3 + $0x48] sm:$0xff]  ;;  %v1905_v50 = vmul.f32 0.0, %v5177_v7 }
 0x39c   : > { %1684 = vst.msk [vmem:[#allocation3 + $0x30] sm:$0xff] %vm331_vm0, %v1651_v61  ;;  %v1566_v31 = vpop.xlane.xlu1 %1565  ;;  %v1497_v61 = vld [vmem:[#allocation3 + $0x60] sm:$0xff]  ;;  %v1526_v36 = vmul.f32 %v4940_v17, %v1494_v41 }
 0x39d   : > { %v3279_v39 = vpop.f32.mrb[4].mxu1  ;;  %v1650_v37 = vadd.f32 %v1566_v31, %v1522_v32  ;;  %v1575_v43 = vpop.xlane.xlu0 %1574 }
 0x39e   : > { %v2386_v40 = vld [vmem:[#allocation3] sm:$0xff]  ;;  %v3280_v4 = vpop.f32.mrb[5].mxu1  ;;  %v1653_v45 = vadd.f32 %v1575_v43, %v1525_v23  ;;  %v1496_v43 = vld [vmem:[#allocation3 + $0x58] sm:$0xff] }
 0x39f   : > { %3708 = vrcp.f32 %v2386_v40  ;;  %1683 = vst.msk [vmem:[#allocation3 + $0x28] sm:$0xff] %vm331_vm0, %v1650_v37  ;;  %v3281_v15 = vadd.f32 %v3280_v4, %v3279_v39  ;;  %v3282_v18 = vpop.f32.mrb[6].mxu1  ;;  %v2390_v51 = vld [vmem:[#allocation3 + $0x20] sm:$0xff]  ;;  %v1529_v37 = vmul.f32 %v4953_v16, %v1497_v61 }
 0x3a0   : > { %1686 = vst.msk [vmem:[#allocation3 + $0x40] sm:$0xff] %vm331_vm0, %v1653_v45  ;;  %v3283_v54 = vpop.f32.mrb[7].mxu1  ;;  %v1572_v1 = vpop.xlane.xlu1 %1571  ;;  %3710 = vrcp.f32 %v2388_v25  ;;  %v1499_v45 = vld [vmem:[#allocation3 + $0x70] sm:$0xff] }
 0x3a1   : > { %v3284_v27 = vadd.f32 %v3283_v54, %v3282_v18  ;;  %v1652_v57 = vadd.f32 %v1572_v1, %v1524_v22  ;;  %v1581_v0 = vpop.xlane.xlu0 %1580  ;;  %v5267_v32 = vadd.f32 %v3281_v15, %v1904_v58  ;;  %v1906_v18 = vmul.f32 0.0, %v5183_v9 }
 0x3a2   : > { %v3707_v31 = vpop.eup %3706  ;;  %v2389_v23 = vld [vmem:[#allocation3 + $0x18] sm:$0xff]  ;;  %v1655_v39 = vadd.f32 %v1581_v0, %v1527_v55  ;;  %v1528_v1 = vmul.f32 %v4948_v52, %v1496_v43  ;;  %v1531_v41 = vmul.f32 %v4967_v29, %v1499_v45 }
 0x3a3   : > { %3712 = vrcp.f32 %v2389_v23  ;;  %1685 = vst.msk [vmem:[#allocation3 + $0x38] sm:$0xff] %vm331_vm0, %v1652_v57  ;;  %2457 = vperm.xlu0 %3464, %v3707_v31   ;;  %v5271_v8 = vadd.f32 %v3284_v27, %v1905_v50  ;;  %v2392_v22 = vld [vmem:[#allocation3 + $0x30] sm:$0xff]  ;;  %v1498_v50 = vld [vmem:[#allocation3 + $0x68] sm:$0xff]  ;;  %v1907_v57 = vmul.f32 0.0, %v5181_v20  ;;  %v1501_v31 = vld [vmem:[#allocation3 + $0x80] sm:$0xff] }
 0x3a4   : > { %1688 = vst.msk [vmem:[#allocation3 + $0x50] sm:$0xff] %vm331_vm0, %v1655_v39  ;;  %v1578_v7 = vpop.xlane.xlu1 %1577  ;;  %3714 = vrcp.f32 %v2390_v51  ;;  %v1530_v29 = vmul.f32 %v4958_v11, %v1498_v50  ;;  %v1500_v43 = vld [vmem:[#allocation3 + $0x78] sm:$0xff]  ;;  %v1908_v11 = vmul.f32 0.0, %v5190_v46  ;;  %v1502_v50 = vld [vmem:[#allocation3 + $0x88] sm:$0xff] }
 0x3a5   : > { %v3285_v60 = vpop.f32.mrb[8].mxu1  ;;  %v1654_v40 = vadd.f32 %v1578_v7, %v1526_v36  ;;  %v1587_v4 = vpop.xlane.xlu0 %1586 }
 0x3a6   : > { %v2391_v58 = vld [vmem:[#allocation3 + $0x28] sm:$0xff]  ;;  %v3286_v25 = vpop.f32.mrb[9].mxu1  ;;  %v1657_v15 = vadd.f32 %v1587_v4, %v1529_v37  ;;  %v1533_v37 = vmul.f32 %v4982_v35, %v1501_v31 }
 0x3a7   : > { %3716 = vrcp.f32 %v2391_v58  ;;  %1687 = vst.msk [vmem:[#allocation3 + $0x48] sm:$0xff] %vm331_vm0, %v1654_v40  ;;  %v3287_v17 = vadd.f32 %v3286_v25, %v3285_v60  ;;  %v3288_v54 = vpop.f32.mrb[10].mxu1  ;;  %v2394_v52 = vld [vmem:[#allocation3 + $0x40] sm:$0xff]  ;;  %v1503_v58 = vld [vmem:[#allocation3 + $0x90] sm:$0xff] }
 0x3a8   : > { %1690 = vst.msk [vmem:[#allocation3 + $0x60] sm:$0xff] %vm331_vm0, %v1657_v15  ;;  %v3289_v16 = vpop.f32.mrb[11].mxu1  ;;  %v1584_v55 = vpop.xlane.xlu1 %1583  ;;  %3718 = vrcp.f32 %v2392_v22 }
 0x3a9   : > { %v3709_v27 = vpop.eup %3708  ;;  %v3290_v0 = vadd.f32 %v3289_v16, %v3288_v54  ;;  %v1656_v9 = vadd.f32 %v1584_v55, %v1528_v1  ;;  %v1593_v61 = vpop.xlane.xlu0 %1592  ;;  %v5281_v23 = vadd.f32 %v3287_v17, %v1906_v18  ;;  %v1532_v54 = vmul.f32 %v4974_v5, %v1500_v43 }
 0x3aa   : > { %v2393_v39 = vld [vmem:[#allocation3 + $0x38] sm:$0xff]  ;;  %v1659_v51 = vadd.f32 %v1593_v61, %v1531_v41  ;;  %2452 = vperm.xlu1 %3465, %v3709_v27   ;;  %v3711_v7 = vpop.eup %3710  ;;  %v1535_v41 = vmul.f32 %v4999_v10, %v1503_v58  ;;  %v1505_v61 = vld [vmem:[#allocation3 + $0xa0] sm:$0xff]  ;;  %v1534_v10 = vmul.f32 %v4987_v14, %v1502_v50  ;;  %v1910_v14 = vmul.f32 0.0, %v5194_v59 }
 0x3ab   : > { %3720 = vrcp.f32 %v2393_v39  ;;  %1689 = vst.msk [vmem:[#allocation3 + $0x58] sm:$0xff] %vm331_vm0, %v1656_v9  ;;  %v5285_v36 = vadd.f32 %v3290_v0, %v1907_v57  ;;  %v2396_v22 = vld [vmem:[#allocation3 + $0x50] sm:$0xff]  ;;  %v1909_v57 = vmul.f32 0.0, %v5188_v12 }
 0x3ac   : > { %1692 = vst.msk [vmem:[#allocation3 + $0x70] sm:$0xff] %vm331_vm0, %v1659_v51  ;;  %v1590_v20 = vpop.xlane.xlu1 %1589  ;;  %3722 = vrcp.f32 %v2394_v52 }
 0x3ad   : > { %v3713_v60 = vpop.eup %3712  ;;  %v3291_v40 = vpop.f32.mrb[12].mxu1  ;;  %v1658_v4 = vadd.f32 %v1590_v20, %v1530_v29  ;;  %v1504_v20 = vld [vmem:[#allocation3 + $0x98] sm:$0xff] }
 0x3ae   : > { %v1599_v45 = vpop.xlane.xlu0 %1598  ;;  %v2395_v25 = vld [vmem:[#allocation3 + $0x48] sm:$0xff]  ;;  %v3292_v15 = vpop.f32.mrb[13].mxu1  ;;  %2467 = vperm.xlu0 %3464, %v3713_v60   ;;  %2462 = vperm.xlu1 %3465, %v3711_v7   ;;  %v1537_v7 = vmul.f32 %v5011_v13, %v1505_v61 }
 0x3af   : > { %v1661_v18 = vadd.f32 %v1599_v45, %v1533_v37  ;;  %3724 = vrcp.f32 %v2395_v25  ;;  %1691 = vst.msk [vmem:[#allocation3 + $0x68] sm:$0xff] %vm331_vm0, %v1658_v4  ;;  %v3293_v17 = vadd.f32 %v3292_v15, %v3291_v40  ;;  %v3294_v35 = vpop.f32.mrb[14].mxu1  ;;  %v3715_v1 = vpop.eup %3714  ;;  %v2398_v51 = vld [vmem:[#allocation3 + $0x60] sm:$0xff]  ;;  %v1507_v4 = vld [vmem:[#allocation3 + $0xb0] sm:$0xff] }
 0x3b0   : > { %v3295_v16 = vpop.f32.mrb[15].mxu1  ;;  %v1596_v55 = vpop.xlane.xlu1 %1595  ;;  %3726 = vrcp.f32 %v2396_v22 }
 0x3b1   : > { %1694 = vst.msk [vmem:[#allocation3 + $0x80] sm:$0xff] %vm331_vm0, %v1661_v18  ;;  %v3717_v27 = vpop.eup %3716  ;;  %v3296_v46 = vadd.f32 %v3295_v16, %v3294_v35  ;;  %v1660_v0 = vadd.f32 %v1596_v55, %v1532_v54  ;;  %v5295_v31 = vadd.f32 %v3293_v17, %v1908_v11  ;;  %v1536_v11 = vmul.f32 %v5006_v28, %v1504_v20 }
 0x3b2   : > { %v1605_v9 = vpop.xlane.xlu0 %1604  ;;  %v2397_v39 = vld [vmem:[#allocation3 + $0x58] sm:$0xff]  ;;  %2477 = vperm.xlu0 %3464, %v3717_v27   ;;  %2472 = vperm.xlu1 %3465, %v3715_v1   ;;  %v3719_v12 = vpop.eup %3718  ;;  %v1539_v54 = vmul.f32 %v5028_v2, %v1507_v4  ;;  %v1506_v1 = vld [vmem:[#allocation3 + $0xa8] sm:$0xff]  ;;  %v1911_v55 = vmul.f32 0.0, %v5192_v48  ;;  %v1509_v27 = vld [vmem:[#allocation3 + $0xc0] sm:$0xff] }
 0x3b3   : > { %v1663_v5 = vadd.f32 %v1605_v9, %v1535_v41  ;;  %3728 = vrcp.f32 %v2397_v39  ;;  %1693 = vst.msk [vmem:[#allocation3 + $0x78] sm:$0xff] %vm331_vm0, %v1660_v0  ;;  %v5299_v52 = vadd.f32 %v3296_v46, %v1909_v57  ;;  %v2400_v15 = vld [vmem:[#allocation3 + $0x70] sm:$0xff]  ;;  %v1538_v2 = vmul.f32 %v5016_v38, %v1506_v1 }
 0x3b4   : > { %v1602_v29 = vpop.xlane.xlu1 %1601  ;;  %3730 = vrcp.f32 %v2398_v51  ;;  %v1541_v39 = vmul.f32 %v5040_v49, %v1509_v27  ;;  %v1912_v38 = vmul.f32 0.0, %v5201_v26  ;;  %v5797_v4 = vld [vmem:[#allocation75_spill] sm:$0xff] }
 0x3b5   : > { %1696 = vst.msk [vmem:[#allocation3 + $0x90] sm:$0xff] %vm331_vm0, %v1663_v5  ;;  %v3721_v37 = vpop.eup %3720  ;;  %v3297_v43 = vpop.f32.mrb[16].mxu1  ;;  %v1662_v60 = vadd.f32 %v1602_v29, %v1534_v10  ;;  %v1508_v5 = vld [vmem:[#allocation3 + $0xb8] sm:$0xff] }
 0x3b6   : > { %v1611_v40 = vpop.xlane.xlu0 %1610  ;;  %v2399_v45 = vld [vmem:[#allocation3 + $0x68] sm:$0xff]  ;;  %v3298_v58 = vpop.f32.mrb[17].mxu1  ;;  %2487 = vperm.xlu0 %3464, %v3721_v37   ;;  %2482 = vperm.xlu1 %3465, %v3719_v12  }
 0x3b7   : > { %v1665_v25 = vadd.f32 %v1611_v40, %v1537_v7  ;;  %3732 = vrcp.f32 %v2399_v45  ;;  %1695 = vst.msk [vmem:[#allocation3 + $0x88] sm:$0xff] %vm331_vm0, %v1662_v60  ;;  %v3299_v18 = vadd.f32 %v3298_v58, %v3297_v43  ;;  %v3300_v13 = vpop.f32.mrb[18].mxu1  ;;  %v3723_v22 = vpop.eup %3722  ;;  %v1511_v7 = vld [vmem:[#allocation3 + $0xd0] sm:$0xff]  ;;  %v1540_v45 = vmul.f32 %v5797_v4, %v1508_v5 }
 0x3b8   : > { %v3301_v17 = vpop.f32.mrb[19].mxu1  ;;  %v1608_v35 = vpop.xlane.xlu1 %1607  ;;  %3734 = vrcp.f32 %v2400_v15  ;;  %v2402_v0 = vld [vmem:[#allocation3 + $0x80] sm:$0xff] }
 0x3b9   : > { %1698 = vst.msk [vmem:[#allocation3 + $0xa0] sm:$0xff] %vm331_vm0, %v1665_v25  ;;  %v3725_v16 = vpop.eup %3724  ;;  %v3302_v59 = vadd.f32 %v3301_v17, %v3300_v13  ;;  %v1664_v41 = vadd.f32 %v1608_v35, %v1536_v11  ;;  %v5309_v57 = vadd.f32 %v3299_v18, %v1910_v14  ;;  %v5798_v15 = vld [vmem:[#allocation81_spill] sm:$0xff]  ;;  %v1510_v13 = vld [vmem:[#allocation3 + $0xc8] sm:$0xff] }
 0x3ba   : > { %v1617_v50 = vpop.xlane.xlu0 %1616  ;;  %v2401_v46 = vld [vmem:[#allocation3 + $0x78] sm:$0xff]  ;;  %2497 = vperm.xlu0 %3464, %v3725_v16   ;;  %2492 = vperm.xlu1 %3465, %v3723_v22   ;;  %v3727_v48 = vpop.eup %3726  ;;  %v1543_v18 = vmul.f32 %v5798_v15, %v1511_v7  ;;  %v1913_v22 = vmul.f32 0.0, %v5199_v21  ;;  %v1914_v7 = vmul.f32 0.0, %v5205_v62  ;;  %v1915_v15 = vmul.f32 0.0, %v5203_v44 }
 0x3bb   : > { %v1667_v28 = vadd.f32 %v1617_v50, %v1539_v54  ;;  %3736 = vrcp.f32 %v2401_v46  ;;  %1697 = vst.msk [vmem:[#allocation3 + $0x98] sm:$0xff] %vm331_vm0, %v1664_v41  ;;  %v5313_v9 = vadd.f32 %v3302_v59, %v1911_v55  ;;  %v1513_v54 = vld [vmem:[#allocation3 + $0xe0] sm:$0xff] }
 0x3bc   : > { %v1614_v61 = vpop.xlane.xlu1 %1613  ;;  %3738 = vrcp.f32 %v2402_v0  ;;  %v2404_v60 = vld [vmem:[#allocation3 + $0x90] sm:$0xff]  ;;  %v5799_v41 = vld [vmem:[#allocation77_spill] sm:$0xff] }
 0x3bd   : > { %1700 = vst.msk [vmem:[#allocation3 + $0xb0] sm:$0xff] %vm331_vm0, %v1667_v28  ;;  %v3729_v51 = vpop.eup %3728  ;;  %v3303_v10 = vpop.f32.mrb[20].mxu1  ;;  %v1666_v12 = vadd.f32 %v1614_v61, %v1538_v2  ;;  %v1542_v50 = vmul.f32 %v5799_v41, %v1510_v13  ;;  %v5800_v28 = vld [vmem:[#allocation21_spill] sm:$0xff]  ;;  %v1512_v2 = vld [vmem:[#allocation3 + $0xd8] sm:$0xff] }
 0x3be   : > { %v1623_v29 = vpop.xlane.xlu0 %1622  ;;  %v2403_v20 = vld [vmem:[#allocation3 + $0x88] sm:$0xff]  ;;  %v3304_v37 = vpop.f32.mrb[21].mxu1  ;;  %2507 = vperm.xlu0 %3464, %v3729_v51   ;;  %2502 = vperm.xlu1 %3465, %v3727_v48   ;;  %v1545_v0 = vmul.f32 %v5800_v28, %v1513_v54  ;;  %v1515_v51 = vld [vmem:[#allocation3 + $0xf0] sm:$0xff] }
 0x3bf   : > { %v1669_v43 = vadd.f32 %v1623_v29, %v1541_v39  ;;  %3740 = vrcp.f32 %v2403_v20  ;;  %1699 = vst.msk [vmem:[#allocation3 + $0xa8] sm:$0xff] %vm331_vm0, %v1666_v12  ;;  %v3305_v40 = vadd.f32 %v3304_v37, %v3303_v10  ;;  %v3306_v49 = vpop.f32.mrb[22].mxu1  ;;  %v3731_v58 = vpop.eup %3730 }
 0x3c0   : > { %v3307_v25 = vpop.f32.mrb[23].mxu1  ;;  %v1620_v14 = vpop.xlane.xlu1 %1619  ;;  %3742 = vrcp.f32 %v2404_v60  ;;  %v2406_v59 = vld [vmem:[#allocation3 + $0xa0] sm:$0xff] }
 0x3c1   : > { %1702 = vst.msk [vmem:[#allocation3 + $0xc0] sm:$0xff] %vm331_vm0, %v1669_v43  ;;  %v3733_v11 = vpop.eup %3732  ;;  %v3308_v26 = vadd.f32 %v3307_v25, %v3306_v49  ;;  %v1668_v17 = vadd.f32 %v1620_v14, %v1540_v45  ;;  %v5323_v1 = vadd.f32 %v3305_v40, %v1912_v38  ;;  %v5801_v38 = vld [vmem:[#allocation79_spill] sm:$0xff]  ;;  %v5802_v45 = vld [vmem:[#allocation76_spill] sm:$0xff]  ;;  %v1514_v25 = vld [vmem:[#allocation3 + $0xe8] sm:$0xff] }
 0x3c2   : > { %v1629_v35 = vpop.xlane.xlu0 %1628  ;;  %v2405_v16 = vld [vmem:[#allocation3 + $0x98] sm:$0xff]  ;;  %2517 = vperm.xlu0 %3464, %v3733_v11   ;;  %2512 = vperm.xlu1 %3465, %v3731_v58   ;;  %v3735_v21 = vpop.eup %3734  ;;  %v1544_v60 = vmul.f32 %v5801_v38, %v1512_v2  ;;  %v1547_v58 = vmul.f32 %v5802_v45, %v1515_v51 }
 0x3c3   : > { %v1671_v55 = vadd.f32 %v1629_v35, %v1543_v18  ;;  %3744 = vrcp.f32 %v2405_v16  ;;  %1701 = vst.msk [vmem:[#allocation3 + $0xb8] sm:$0xff] %vm331_vm0, %v1668_v17  ;;  %v5327_v27 = vadd.f32 %v3308_v26, %v1913_v22  ;;  %v5803_v35 = vld [vmem:[#allocation22_spill] sm:$0xff] }
 0x3c4   : > { %v1626_v46 = vpop.xlane.xlu1 %1625  ;;  %3746 = vrcp.f32 %v2406_v59  ;;  %v2408_v20 = vld [vmem:[#allocation3 + $0xb0] sm:$0xff]  ;;  %v1546_v54 = vmul.f32 %v5803_v35, %v1514_v25  ;;  %v1516_v59 = vld [vmem:[#allocation3 + $0xf8] sm:$0xff] }
 0x3c5   : > { %1704 = vst.msk [vmem:[#allocation3 + $0xd0] sm:$0xff] %vm331_vm0, %v1671_v55  ;;  %v3737_v48 = vpop.eup %3736  ;;  %v3309_v61 = vpop.f32.mrb[24].mxu1  ;;  %v1670_v39 = vadd.f32 %v1626_v46, %v1542_v50 }
 0x3c6   : > { %v1635_v5 = vpop.xlane.xlu0 %1634  ;;  %v2407_v10 = vld [vmem:[#allocation3 + $0xa8] sm:$0xff]  ;;  %v3310_v12 = vpop.f32.mrb[25].mxu1  ;;  %2527 = vperm.xlu0 %3464, %v3737_v48   ;;  %2522 = vperm.xlu1 %3465, %v3735_v21  }
 0x3c7   : > { %v1673_v29 = vadd.f32 %v1635_v5, %v1545_v0  ;;  %3748 = vrcp.f32 %v2407_v10  ;;  %1703 = vst.msk [vmem:[#allocation3 + $0xc8] sm:$0xff] %vm331_vm0, %v1670_v39  ;;  %v3311_v37 = vadd.f32 %v3310_v12, %v3309_v61  ;;  %v3312_v43 = vpop.f32.mrb[26].mxu1  ;;  %v3739_v40 = vpop.eup %3738  ;;  %v1916_v0 = vmul.f32 0.0, %v5209_v47 }
 0x3c8   : > { %v3313_v49 = vpop.f32.mrb[27].mxu1  ;;  %v1632_v4 = vpop.xlane.xlu1 %1631  ;;  %3750 = vrcp.f32 %v2408_v20  ;;  %v2410_v17 = vld [vmem:[#allocation3 + $0xc0] sm:$0xff]  ;;  %v1548_v39 = vmul.f32 %v5196_v6, %v1516_v59 }
 0x3c9   : > { %1706 = vst.msk [vmem:[#allocation3 + $0xe0] sm:$0xff] %vm331_vm0, %v1673_v29  ;;  %v3741_v14 = vpop.eup %3740  ;;  %v3314_v62 = vadd.f32 %v3313_v49, %v3312_v43  ;;  %v1672_v18 = vadd.f32 %v1632_v4, %v1544_v60  ;;  %v5337_v11 = vadd.f32 %v3311_v37, %v1914_v7  ;;  %v1917_v29 = vmul.f32 0.0, %v5207_v56 }
 0x3ca   : > { %v1641_v13 = vpop.xlane.xlu0 %1640  ;;  %v2409_v22 = vld [vmem:[#allocation3 + $0xb8] sm:$0xff]  ;;  %2537 = vperm.xlu0 %3464, %v3741_v14   ;;  %2532 = vperm.xlu1 %3465, %v3739_v40   ;;  %v3743_v55 = vpop.eup %3742  ;;  %v1918_v4 = vmul.f32 0.0, %v5213_v63 }
 0x3cb   : > { %v1675_v26 = vadd.f32 %v1641_v13, %v1547_v58  ;;  %3752 = vrcp.f32 %v2409_v22  ;;  %1705 = vst.msk [vmem:[#allocation3 + $0xd8] sm:$0xff] %vm331_vm0, %v1672_v18  ;;  %v5341_v16 = vadd.f32 %v3314_v62, %v1915_v15  ;;  %v1919_v18 = vmul.f32 0.0, %v5211_v19 }
 0x3cc   : > { %v1638_v44 = vpop.xlane.xlu1 %1637  ;;  %3754 = vrcp.f32 %v2410_v17  ;;  %v2412_v2 = vld [vmem:[#allocation3 + $0xd0] sm:$0xff] }
 0x3cd   : > { %1708 = vst.msk [vmem:[#allocation3 + $0xf0] sm:$0xff] %vm331_vm0, %v1675_v26  ;;  %v3745_v41 = vpop.eup %3744  ;;  %v3315_v50 = vpop.f32.mrb[28].mxu1  ;;  %v1674_v21 = vadd.f32 %v1638_v44, %v1546_v54  ;;  %v1920_v44 = vmul.f32 0.0, %v5217_v33  ;;  %v1922_v33 = vmul.f32 0.0, %v5221_v42 }
 0x3ce   : > { %v2411_v46 = vld [vmem:[#allocation3 + $0xc8] sm:$0xff]  ;;  %v3316_v28 = vpop.f32.mrb[29].mxu1  ;;  %2547 = vperm.xlu0 %3464, %v3745_v41   ;;  %2542 = vperm.xlu1 %3465, %v3743_v55   ;;  %v3747_v5 = vpop.eup %3746 }
 0x3cf   : > { %3756 = vrcp.f32 %v2411_v46  ;;  %1707 = vst.msk [vmem:[#allocation3 + $0xe8] sm:$0xff] %vm331_vm0, %v1674_v21  ;;  %v3317_v48 = vadd.f32 %v3316_v28, %v3315_v50  ;;  %v3318_v61 = vpop.f32.mrb[30].mxu1  ;;  %v1921_v46 = vmul.f32 0.0, %v5215_v34  ;;  %v1923_v34 = vmul.f32 0.0, %v5219_v3 }
 0x3d0   : > { %v3319_v51 = vpop.f32.mrb[31].mxu1  ;;  %v1644_v10 = vpop.xlane.xlu1 %1643  ;;  %3758 = vrcp.f32 %v2412_v2  ;;  %v2414_v43 = vld [vmem:[#allocation3 + $0xe0] sm:$0xff] }
 0x3d1   : > { %v3749_v12 = vpop.eup %3748  ;;  %v3320_v7 = vadd.f32 %v3319_v51, %v3318_v61  ;;  %v1676_v20 = vadd.f32 %v1644_v10, %v1548_v39  ;;  %v5348_v37 = vadd.f32 %v3317_v48, %v1916_v0 }
 0x3d2   : > { %v2413_v47 = vld [vmem:[#allocation3 + $0xd8] sm:$0xff]  ;;  %2557 = vperm.xlu0 %3464, %v3749_v12   ;;  %2552 = vperm.xlu1 %3465, %v3747_v5   ;;  %v3751_v6 = vpop.eup %3750 }
 0x3d3   : > { %3760 = vrcp.f32 %v2413_v47  ;;  %1709 = vst.msk [vmem:[#allocation3 + $0xf8] sm:$0xff] %vm331_vm0, %v1676_v20  ;;  %v5351_v38 = vadd.f32 %v3320_v7, %v1917_v29 }
 0x3d4   : > { %3762 = vrcp.f32 %v2414_v43  ;;  %v2416_v45 = vld [vmem:[#allocation3 + $0xf0] sm:$0xff] }
 0x3d5   : > { %v3753_v60 = vpop.eup %3752  ;;  %v3321_v40 = vpop.f32.mrb[32].mxu1 }
 0x3d6   : > { %v2415_v49 = vld [vmem:[#allocation3 + $0xe8] sm:$0xff]  ;;  %v3322_v56 = vpop.f32.mrb[33].mxu1  ;;  %2567 = vperm.xlu0 %3464, %v3753_v60   ;;  %2562 = vperm.xlu1 %3465, %v3751_v6   ;;  %v3755_v14 = vpop.eup %3754  ;;  %v1924_v6 = vmul.f32 0.0, %v5225_v30 }
 0x3d7   : > { %3764 = vrcp.f32 %v2415_v49  ;;  %v3323_v58 = vadd.f32 %v3322_v56, %v3321_v40  ;;  %v3324_v25 = vpop.f32.mrb[34].mxu1  ;;  %v5804_v56 = vld [vmem:[#allocation78_spill] sm:$0xff] }
 0x3d8   : > { %v3325_v15 = vpop.f32.mrb[35].mxu1  ;;  %3766 = vrcp.f32 %v2416_v45 }
 0x3d9   : > { %v3757_v62 = vpop.eup %3756  ;;  %v3326_v13 = vadd.f32 %v3325_v15, %v3324_v25  ;;  %v5355_v22 = vadd.f32 %v3323_v58, %v1918_v4  ;;  %v1925_v4 = vmul.f32 0.0, %v5804_v56 }
 0x3da   : > { %v2417_v26 = vld [vmem:[#allocation3 + $0xf8] sm:$0xff]  ;;  %2577 = vperm.xlu0 %3464, %v3757_v62   ;;  %2572 = vperm.xlu1 %3465, %v3755_v14   ;;  %v3759_v63 = vpop.eup %3758 }
 0x3db   : > { %3768 = vrcp.f32 %v2417_v26  ;;  %v5357_v17 = vadd.f32 %v3326_v13, %v1919_v18  ;;  %v5805_v14 = vld [vmem:[#allocation80_spill] sm:$0xff]  ;;  %v5806_v26 = vld [vmem:[#allocation82_spill] sm:$0xff] }
 0x3dc   : > { %v1926_v15 = vmul.f32 0.0, %v5805_v14 }
 0x3dd   : > { %v3761_v35 = vpop.eup %3760  ;;  %v3327_v54 = vpop.f32.mrb[36].mxu1 }
 0x3de   : > { %v3328_v55 = vpop.f32.mrb[37].mxu1  ;;  %2587 = vperm.xlu0 %3464, %v3761_v35   ;;  %2582 = vperm.xlu1 %3465, %v3759_v63   ;;  %v3763_v41 = vpop.eup %3762  ;;  %v1927_v63 = vmul.f32 0.0, %v5806_v26 }
 0x3df   : > { %v3329_v59 = vadd.f32 %v3328_v55, %v3327_v54  ;;  %v3330_v19 = vpop.f32.mrb[38].mxu1 }
 0x3e0   : > { %v3331_v50 = vpop.f32.mrb[39].mxu1 }
 0x3e1   : > { %v3765_v21 = vpop.eup %3764  ;;  %v3332_v28 = vadd.f32 %v3331_v50, %v3330_v19  ;;  %v5361_v0 = vadd.f32 %v3329_v59, %v1920_v44  ;;  %v5807_v59 = vld [vmem:[#allocation83_spill] sm:$0xff] }
 0x3e2   : > { %2597 = vperm.xlu0 %3464, %v3765_v21   ;;  %2592 = vperm.xlu1 %3465, %v3763_v41   ;;  %v3767_v48 = vpop.eup %3766  ;;  %v1928_v19 = vmul.f32 0.0, %v5807_v59 }
 0x3e3   : > { %v5363_v2 = vadd.f32 %v3332_v28, %v1921_v46  ;;  %v5808_v46 = vld [vmem:[#allocation85_spill] sm:$0xff] }
 0x3e4   : > { %v1929_v28 = vmul.f32 0.0, %v5808_v46 }
 0x3e5   : > { %v3769_v61 = vpop.eup %3768  ;;  %v3333_v39 = vpop.f32.mrb[40].mxu1 }
 0x3e6   : > { %v3334_v5 = vpop.f32.mrb[41].mxu1  ;;  %2607 = vperm.xlu0 %3464, %v3769_v61   ;;  %2602 = vperm.xlu1 %3465, %v3767_v48  }
 0x3e7   : > { %v3335_v51 = vadd.f32 %v3334_v5, %v3333_v39  ;;  %v3336_v10 = vpop.f32.mrb[42].mxu1 }
 0x3e8   : > { %v3337_v12 = vpop.f32.mrb[43].mxu1 }
 0x3e9   : > { %v3338_v29 = vadd.f32 %v3337_v12, %v3336_v10  ;;  %v5367_v7 = vadd.f32 %v3335_v51, %v1922_v33  ;;  %v5809_v51 = vld [vmem:[#allocation24_spill] sm:$0xff] }
 0x3ea   : > { %v1930_v10 = vmul.f32 0.0, %v5809_v51 }
 0x3eb   : > { %v5369_v20 = vadd.f32 %v3338_v29, %v1923_v34 }
 0x3ed   : > { %v3339_v47 = vpop.f32.mrb[44].mxu1 }
 0x3ee   : > { %v3340_v43 = vpop.f32.mrb[45].mxu1 }
 0x3ef   : > { %v3341_v60 = vadd.f32 %v3340_v43, %v3339_v47  ;;  %v3342_v40 = vpop.f32.mrb[46].mxu1  ;;  %v5810_v47 = vld [vmem:[#allocation23_spill] sm:$0xff] }
 0x3f0   : > { %v3343_v49 = vpop.f32.mrb[47].mxu1  ;;  %v1931_v43 = vmul.f32 0.0, %v5810_v47 }
 0x3f1   : > { %v3344_v42 = vadd.f32 %v3343_v49, %v3342_v40  ;;  %v5373_v45 = vadd.f32 %v3341_v60, %v1924_v6 }
 0x3f3   : > { %v5375_v58 = vadd.f32 %v3344_v42, %v1925_v4  ;;  %v5811_v4 = vld [vmem:[#allocation86_spill] sm:$0xff] }
 0x3f4   : > { %v1932_v42 = vmul.f32 0.0, %v5811_v4 }
 0x3f5   : > { %v3345_v3 = vpop.f32.mrb[48].mxu1 }
 0x3f6   : > { %v3346_v25 = vpop.f32.mrb[49].mxu1 }
 0x3f7   : > { %v3347_v62 = vadd.f32 %v3346_v25, %v3345_v3  ;;  %v3348_v18 = vpop.f32.mrb[50].mxu1 }
 0x3f8   : > { %v3349_v13 = vpop.f32.mrb[51].mxu1 }
 0x3f9   : > { %v3350_v30 = vadd.f32 %v3349_v13, %v3348_v18  ;;  %v5379_v35 = vadd.f32 %v3347_v62, %v1926_v15  ;;  %v5400_v18 = vpop.permute.xlu0 %1899 }
 0x3fb   : > { %v5381_v54 = vadd.f32 %v3350_v30, %v1927_v63 }
 0x3fd   : > { %v3351_v55 = vpop.f32.mrb[52].mxu1 }
 0x3fe   : > { %v3352_v44 = vpop.f32.mrb[53].mxu1 }
 0x3ff   : > { %v3353_v41 = vadd.f32 %v3352_v44, %v3351_v55  ;;  %v3354_v50 = vpop.f32.mrb[54].mxu1 }
 0x400   : > { %v3355_v21 = vpop.f32.mrb[55].mxu1 }
 0x401   : > { %v3356_v48 = vadd.f32 %v3355_v21, %v3354_v50  ;;  %v5385_v61 = vadd.f32 %v3353_v41, %v1928_v19 }
 0x403   : > { %v5387_v39 = vadd.f32 %v3356_v48, %v1929_v28 }
 0x405   : > { %v3357_v5 = vpop.f32.mrb[56].mxu1 }
 0x406   : > { %v3358_v33 = vpop.f32.mrb[57].mxu1 }
 0x407   : > { %v3359_v12 = vadd.f32 %v3358_v33, %v3357_v5  ;;  %v3360_v34 = vpop.f32.mrb[58].mxu1 }
 0x408   : > { %v3361_v29 = vpop.f32.mrb[59].mxu1 }
 0x409   : > { %v3362_v6 = vadd.f32 %v3361_v29, %v3360_v34  ;;  %v5391_v60 = vadd.f32 %v3359_v12, %v1930_v10 }
 0x40b   : > { %v5393_v40 = vadd.f32 %v3362_v6, %v1931_v43 }
 0x40d   : > { %v3363_v49 = vpop.f32.mrb[60].mxu1 }
 0x40e   : > { %v3364_v56 = vpop.f32.mrb[61].mxu1 }
 0x40f   : > { %v3365_v3 = vadd.f32 %v3364_v56, %v3363_v49  ;;  %v3366_v25 = vpop.f32.mrb[62].mxu1 }
 0x410   : > { %v3367_v14 = vpop.f32.mrb[63].mxu1 }
 0x411   : > { %v5396_v15 = vadd.f32 %v3367_v14, %v3366_v25  ;;  %v5398_v62 = vadd.f32 %v3365_v3, %v1932_v42 }
 0x422   : > { %v2458_v13 = vpop.permute.xlu0 %2457 }
 0x423   : > { %v2611_v63 = vmul.f32 %v2458_v13, %v5257_v24 }
 0x429   : > { %v2453_v26 = vpop.permute.xlu1 %2452 }
 0x42a   : > { %v2610_v30 = vmul.f32 %v2453_v26, %v5253_v53 }
 0x42c   : > { %v3117_v55 = vpack.c.bf16 %v2611_v63, %v2610_v30 }
 0x42d   : > { %v2468_v44 = vpop.permute.xlu0 %2467  ;;  %v2463_v59 = vpop.permute.xlu1 %2462 }
 0x42e   : > { %3118 = vst [vmem:[%s5405_s27] sm:$0xff] %v3117_v55   ;;  %v2613_v19 = vmul.f32 %v2468_v44, %v5271_v8  ;;  %v2612_v41 = vmul.f32 %v2463_v59, %v5267_v32 }
 0x430   : > { %v3122_v50 = vpack.c.bf16 %v2613_v19, %v2612_v41 }
 0x431   : > { %v2478_v21 = vpop.permute.xlu0 %2477  ;;  %v2473_v46 = vpop.permute.xlu1 %2472 }
 0x432   : > { %3194 = vst [vmem:[%s5405_s27 + $0x8] sm:$0xff] %v3122_v50   ;;  %v2615_v53 = vmul.f32 %v2478_v21, %v5285_v36  ;;  %v2614_v24 = vmul.f32 %v2473_v46, %v5281_v23 }
 0x434   : > { %v3127_v28 = vpack.c.bf16 %v2615_v53, %v2614_v24 }
 0x435   : > { %v2488_v48 = vpop.permute.xlu0 %2487  ;;  %v2483_v5 = vpop.permute.xlu1 %2482 }
 0x436   : > { %3195 = vst [vmem:[%s5405_s27 + $0x10] sm:$0xff] %v3127_v28   ;;  %v2617_v33 = vmul.f32 %v2488_v48, %v5299_v52  ;;  %v2616_v8 = vmul.f32 %v2483_v5, %v5295_v31 }
 0x438   : > { %v3132_v32 = vpack.c.bf16 %v2617_v33, %v2616_v8 }
 0x439   : > { %v2498_v51 = vpop.permute.xlu0 %2497  ;;  %v2493_v10 = vpop.permute.xlu1 %2492 }
 0x43a   : > { %3196 = vst [vmem:[%s5405_s27 + $0x18] sm:$0xff] %v3132_v32   ;;  %v2619_v12 = vmul.f32 %v2498_v51, %v5313_v9  ;;  %v2618_v36 = vmul.f32 %v2493_v10, %v5309_v57 }
 0x43c   : > { %v3137_v23 = vpack.c.bf16 %v2619_v12, %v2618_v36 }
 0x43d   : > { %v2508_v34 = vpop.permute.xlu0 %2507  ;;  %v2503_v29 = vpop.permute.xlu1 %2502 }
 0x43e   : > { %3197 = vst [vmem:[%s5405_s27 + $0x20] sm:$0xff] %v3137_v23   ;;  %v2621_v47 = vmul.f32 %v2508_v34, %v5327_v27  ;;  %v2620_v52 = vmul.f32 %v2503_v29, %v5323_v1 }
 0x440   : > { %v3142_v31 = vpack.c.bf16 %v2621_v47, %v2620_v52 }
 0x441   : > { %v2518_v43 = vpop.permute.xlu0 %2517  ;;  %v2513_v6 = vpop.permute.xlu1 %2512 }
 0x442   : > { %3198 = vst [vmem:[%s5405_s27 + $0x28] sm:$0xff] %v3142_v31   ;;  %v2623_v49 = vmul.f32 %v2518_v43, %v5341_v16  ;;  %v2622_v9 = vmul.f32 %v2513_v6, %v5337_v11 }
 0x444   : > { %v3147_v57 = vpack.c.bf16 %v2623_v49, %v2622_v9 }
 0x445   : > { %v2528_v56 = vpop.permute.xlu0 %2527  ;;  %v2523_v4 = vpop.permute.xlu1 %2522 }
 0x446   : > { %3199 = vst [vmem:[%s5405_s27 + $0x30] sm:$0xff] %v3147_v57   ;;  %v2625_v42 = vmul.f32 %v2528_v56, %v5351_v38  ;;  %v2624_v27 = vmul.f32 %v2523_v4, %v5348_v37 }
 0x448   : > { %v3152_v1 = vpack.c.bf16 %v2625_v42, %v2624_v27 }
 0x449   : > { %v2538_v3 = vpop.permute.xlu0 %2537  ;;  %v2533_v25 = vpop.permute.xlu1 %2532 }
 0x44a   : > { %3200 = vst [vmem:[%s5405_s27 + $0x38] sm:$0xff] %v3152_v1   ;;  %v2627_v14 = vmul.f32 %v2538_v3, %v5357_v17  ;;  %v2626_v16 = vmul.f32 %v2533_v25, %v5355_v22 }
 0x44c   : > { %v3157_v11 = vpack.c.bf16 %v2627_v14, %v2626_v16 }
 0x44d   : > { %v2548_v13 = vpop.permute.xlu0 %2547  ;;  %v2543_v26 = vpop.permute.xlu1 %2542 }
 0x44e   : > { %3201 = vst [vmem:[%s5405_s27 + $0x40] sm:$0xff] %v3157_v11   ;;  %v2629_v63 = vmul.f32 %v2548_v13, %v5363_v2  ;;  %v2628_v38 = vmul.f32 %v2543_v26, %v5361_v0 }
 0x450   : > { %v3162_v37 = vpack.c.bf16 %v2629_v63, %v2628_v38 }
 0x451   : > { %v2558_v30 = vpop.permute.xlu0 %2557  ;;  %v2553_v55 = vpop.permute.xlu1 %2552 }
 0x452   : > { %3202 = vst [vmem:[%s5405_s27 + $0x48] sm:$0xff] %v3162_v37   ;;  %v2631_v44 = vmul.f32 %v2558_v30, %v5369_v20  ;;  %v2630_v17 = vmul.f32 %v2553_v55, %v5367_v7 }
 0x454   : > { %v3167_v22 = vpack.c.bf16 %v2631_v44, %v2630_v17 }
 0x455   : > { %v2568_v59 = vpop.permute.xlu0 %2567  ;;  %v2563_v19 = vpop.permute.xlu1 %2562 }
 0x456   : > { %3203 = vst [vmem:[%s5405_s27 + $0x50] sm:$0xff] %v3167_v22   ;;  %v2633_v2 = vmul.f32 %v2568_v59, %v5375_v58  ;;  %v2632_v0 = vmul.f32 %v2563_v19, %v5373_v45 }
 0x458   : > { %v3172_v41 = vpack.c.bf16 %v2633_v2, %v2632_v0 }
 0x459   : > { %v2578_v50 = vpop.permute.xlu0 %2577  ;;  %v2573_v21 = vpop.permute.xlu1 %2572 }
 0x45a   : > { %3204 = vst [vmem:[%s5405_s27 + $0x58] sm:$0xff] %v3172_v41   ;;  %v2635_v20 = vmul.f32 %v2578_v50, %v5381_v54  ;;  %v2634_v7 = vmul.f32 %v2573_v21, %v5379_v35  ;;  %v1933_v54 = vmul.f32 0.0, %v5400_v18 }
 0x45c   : > { %v3177_v46 = vpack.c.bf16 %v2635_v20, %v2634_v7 }
 0x45d   : > { %v2588_v53 = vpop.permute.xlu0 %2587  ;;  %v2583_v24 = vpop.permute.xlu1 %2582 }
 0x45e   : > { %3205 = vst [vmem:[%s5405_s27 + $0x60] sm:$0xff] %v3177_v46   ;;  %v2637_v28 = vmul.f32 %v2588_v53, %v5387_v39  ;;  %v2636_v58 = vmul.f32 %v2583_v24, %v5385_v61  ;;  %v2286_v61 = vadd.f32 %v5396_v15, %v1933_v54 }
 0x460   : > { %v3182_v45 = vpack.c.bf16 %v2637_v28, %v2636_v58 }
 0x461   : > { %v2598_v48 = vpop.permute.xlu0 %2597  ;;  %v2593_v5 = vpop.permute.xlu1 %2592 }
 0x462   : > { %3206 = vst [vmem:[%s5405_s27 + $0x68] sm:$0xff] %v3182_v45   ;;  %v2639_v35 = vmul.f32 %v2598_v48, %v5393_v40  ;;  %v2638_v33 = vmul.f32 %v2593_v5, %v5391_v60 }
 0x464   : > { %v3187_v8 = vpack.c.bf16 %v2639_v35, %v2638_v33 }
 0x465   : > { %v2608_v39 = vpop.permute.xlu0 %2607  ;;  %v2603_v32 = vpop.permute.xlu1 %2602 }
 0x466   : > { %3207 = vst [vmem:[%s5405_s27 + $0x70] sm:$0xff] %v3187_v8   ;;  %v2641_v51 = vmul.f32 %v2608_v39, %v2286_v61  ;;  %v2640_v10 = vmul.f32 %v2603_v32, %v5398_v62 }
 0x468   : > { %v3192_v60 = vpack.c.bf16 %v2641_v51, %v2640_v10 }
 0x46a   : > { %3208 = vst [vmem:[%s5405_s27 + $0x78] sm:$0xff] %v3192_v60  }
 0x46b   : > { %3875 = shalt.err (!%p3872_p13)
}
 0x46c   : > { %s3876_s18 = scalar_lea.hbm %s5459_s22, 2048  ;;  %s3880_s5 = scalar_lea.hbm %s5519_s3, 8192 }
 0x46d   : > { %p3877_p12 = scmp.ne.s32.totalorder %s5459_s22, %s3876_s18  ;;  %p3881_p5 = scmp.lt.u32.totalorder %s5459_s22, %s5519_s3 }
 0x46e   : > { %p3882_p2 = scmp.lt.u32.totalorder %s3880_s5, %s3876_s18  ;;  %p3884_p0 = scmp.lt.u32.totalorder %s3876_s18, %s5459_s22 }
 0x46f   : > { %p3878_p10 = pnand %p3877_p12, %p5812_p6 }
 0x470   : > { %p3883_p1 = por %p3882_p2, %p3881_p5 }
 0x471   : > { %p3879_p3 = pneg %p3878_p10 }
 0x472   : > { %p3885_p8 = por %p3884_p0, %p3883_p1 }
 0x474   : > { %p3886_p9 = pnand %p3885_p8, %p3879_p3 }
 0x476   : > { %3889 = shalt.err (!%p3886_p9)
}
 0x477   : > { %s3975_s17 = smov 64   ;;  %s3976_s20 = smov 4  }
 0x478   : > { %3375 = dma.vmem_to_hbm [thread:$0]  (%p5812_p6), %s5461_s21, 2048, %s5459_s22, %s2803_s4, %s3975_s17, %s3975_s17, %s3976_s20  }
 0x479 PF: > { %s5813_s27 = sld [smem:[#allocation19_spill]]  ;;  %p3392_p4 = scmp.ge.s32.totalorder %s3964_s19, 2 }
 0x47a   : > { %s2835_s6 = sand.u32 1, %s3936_s12  }
 0x47b   : > { %s2836_s23 = scalar_lea.sflag [#allocation7], %s2835_s6 }
 0x47f   : > { %p5814_p7 = scmp.ne.s32.totalorder %s5813_s27, 0 }
 0x481   : > { %p3388_p11 = pnand %p3392_p4, %p5814_p7 }
 0x483   : > { %3931 = dma.done.wait (!%p3388_p11), %s2836_s23, 2048  }
 0x484   : > { %3933 = vsyncadd (!%p3388_p11), %s2836_s23, 4294965248  ;;  %s22_s19 = sadd.s32 1, %s3964_s19   ;;  %s5815_s25 = sld [smem:[#allocation20_spill]] }
 0x485   : > { %p19_p13 = scmp.ge.s32.totalorder %s22_s19, 6   ;;  %s5816_s15 = sld [smem:[#allocation15_spill]] }
 0x486   : > { %s5817_s16 = sld [smem:[#allocation16_spill]]  ;;  %s5818_s17 = sld [smem:[#allocation17_spill]] }
 0x487   : > { %s5819_s18 = sld [smem:[#allocation18_spill]]  ;;  %s5820_s12 = smov %s3940_s13 }
 0x488   : > { %s5821_s13 = smov %s3944_s14  ;;  %21 = sbr.rel (!%p19_p13) target bundleno = 11 (0xb), region = 109 }
 0x48a   : > { %s5822_s14 = smov %s5815_s25 }
 0x48f   :  { %2841 = vsyncpa [#allocation6], 1 }
 0x490   :  { %2843 = vsyncpa [#allocation6 + $0x1], 1 }
 0x491   :  { %2844 = vsyncpa [#allocation9], 1 }
 0x492   :  { %2846 = vsyncpa [#allocation9 + $0x1], 1 }
 0x493   :  { %2847 = vsyncpa [#allocation7], 1 }
 0x494   :  { %2849 = vsyncpa [#allocation7 + $0x1], 1 }

// kernel: self_attention_forward.5
= control target key start
LH: loop header
LB: loop body
LE: loop exit
PB: predicated region body
PF: predicated region fallthrough
CT: control target
= control target key end

     0   :  { %8 = vsyncpa [#allocation4], 0  ;;  %s2697_s0 = inlined_call_operand.hbm [shape: bf16[2,512,128], index: 0, kind: input, shape index: {}]   ;;  %s2698_s1 = inlined_call_operand.hbm [shape: bf16[256,256], index: 1, kind: input, shape index: {}]   ;;  %s2699_s2 = inlined_call_operand.hbm [shape: f32[1,256], index: 2, kind: input, shape index: {}]   ;;  %s2700_s3 = inlined_call_operand.hbm [shape: f32[512,256], index: 3, kind: output, shape index: {}]  }
   0x1   :  { %10 = vsyncpa [#allocation4 + $0x1], 0 }
   0x2   :  { %11 = vsyncpa [#allocation7], 0 }
   0x3   :  { %12 = vsyncpa [#allocation5], 0 }
   0x4   :  { %14 = vsyncpa [#allocation5 + $0x1], 0  ;;  %s2270_s12 = smov 0   ;;  %s2272_s13 = smov 0  }
   0x5   :  { %s2274_s14 = smov 0   ;;  %s2276_s15 = smov 0  }
   0x6   :  { %s2278_s16 = smov 0   ;;  %s2280_s17 = smov 0  }
   0x7 LB: > { %s1731_s18 = sadd.s32 4294967295, %s2234_s17   ;;  %s1732_s19 = sadd.s32 4294967294, %s2234_s17   ;;  %s2234_s17 = sphi %s2280_s17, %s20_s17   ;;  %s2230_s16 = sphi %s2278_s16, %s2727_s16   ;;  %s2226_s15 = sphi %s2276_s15, %s2726_s15   ;;  %s2222_s14 = sphi %s2274_s14, %s2725_s14   ;;  %s2218_s13 = sphi %s2272_s13, %s2724_s13   ;;  %s2214_s12 = sphi %s2270_s12, %s2723_s12  }
   0x8   : > { %s39_s20 = sadd.s32 1, %s2230_s16  ;;  %s48_s21 = sadd.s32 1, %s2222_s14 }
   0x9   : > { %p41_p0 = scmp.ge.s32.totalorder %s39_s20, 2  ;;  %p55_p1 = scmp.ne.s32.totalorder %s2222_s14, %s2218_s13 }
   0xa   : > { %p56_p2 = scmp.eq.s32.totalorder %s2234_s17, 0  ;;  %p61_p3 = scmp.ne.s32.totalorder %s2218_s13, %s2214_s12 }
   0xb   : > { %s2729_s20 = smov (%p41_p0, %s39_s20), 0  ;;  %p2315_p5 = scmp.eq.s32.totalorder %s1731_s18, 0 }
   0xc   : > { %2708 = sst [smem:[#allocation16_spill]] %s2729_s20  ;;  %p2311_p4 = por %p56_p2, %p55_p1 }
   0xd   : > { %s2710_s23 = scalar_select %p2315_p5, 1, 0 }
   0xe   : > { %s2709_s22 = scalar_select %p2311_p4, 1, 0 }
   0xf   : > { %s44_s24 = ssub.s32 %s2230_s16, %s2729_s20  ;;  %p141_p6 = scmp.eq.s32.totalorder %s1731_s18, 1 }
  0x10   : > { %p46_p7 = scmp.eq.s32.totalorder %s44_s24, 0  ;;  %p2323_p8 = por %p2315_p5, %p61_p3 }
  0x11   : > { %p2327_p9 = por %p141_p6, %p55_p1  ;;  %p147_p10 = scmp.eq.s32.totalorder %s1732_s19, 1 }
  0x12   : > { %s2711_s25 = scalar_select %p2323_p8, 1, 0 }
  0x13   : > { %s2712_s26 = scalar_select %p2327_p9, 1, 0 }
  0x14   : > { %s2332_s27 = scalar_select %p46_p7, %s2222_s14, %s48_s21  }
  0x15   : > { %p2334_p11 = por %p147_p10, %p61_p3  ;;  %p1733_p12 = scmp.ge.s32.totalorder %s2234_s17, 1 }
  0x16   : > { %p154_p13 = scmp.lt.s32.totalorder %s2234_s17, 3  ;;  %s2236_s30 = smov [#allocation6]  }
  0x17   : > { %s2713_s28 = scalar_select %p2334_p11, 1, 0 }
  0x18   : > { %p2340_p0 = pnand %p1733_p12, %p154_p13  ;;  %s172_s4 = sshll.u32 %s2236_s30, 4  ;;  %s173_s4 = int_to_ptr.vmem [resolvable:$true] %s172_s4 }
  0x19   : > { %s2237_s5 = smov [#allocation8]   ;;  %s2092_s10 = scalar_lea.hbm %s2698_s1, 4096 }
  0x1a   : > { %s2714_s29 = scalar_select %p2340_p0, 1, 0 }
  0x1b   : > { %p1935_p1 = pneg %p2340_p0  ;;  %s189_s6 = sshll.u32 %s2237_s5, 4  ;;  %s2352_s6 = int_to_ptr.vmem [resolvable:$true] %s189_s6 }
  0x1c   : > { %p2093_p3 = scmp.ne.s32.totalorder %s2698_s1, %s2092_s10  ;;  %p2099_p12 = scmp.lt.u32.totalorder %s2092_s10, %s2698_s1 }
  0x1d   : > { %p2348_p2 = pnand %p1935_p1, %p2315_p5 }
  0x1f   : > { %p2094_p6 = pneg %p2348_p2 }
  0x21   : > { %p2095_p7 = pnand %p2094_p6, %p2093_p3 }
  0x23   : > { %p2096_p10 = pneg %p2095_p7 }
  0x25   : > { %p2101_p13 = pnand %p2099_p12, %p2096_p10 }
  0x27   : > { %2104 = shalt.err (!%p2101_p13)
}
  0x28   : > { %s2105_s24 = scalar_lea.vmem %s173_s4, 4096  ;;  %p2113_p5 = scmp.lt.s32.totalorder %s173_s4, %s173_s4 }
  0x29   : > { %p2106_p1 = scmp.ne.s32.totalorder %s173_s4, %s2105_s24  ;;  %p2114_p8 = scmp.lt.s32.totalorder %s2105_s24, %s2105_s24 }
  0x2b   : > { %p2108_p11 = pnand %p2106_p1, %p2094_p6  ;;  %p2115_p0 = por %p2114_p8, %p2113_p5 }
  0x2d   : > { %p2109_p9 = pneg %p2108_p11 }
  0x2f   : > { %p2116_p4 = pnand %p2115_p0, %p2109_p9 }
  0x31   : > { %2119 = shalt.err (!%p2116_p4)
}
  0x32   : > { %s2238_s30 = smov 128   ;;  %s2239_s5 = smov 8  }
  0x33   : > { %1938 = dma.hbm_to_vmem [thread:$0]  (!%p2348_p2), %s2698_s1, 4096, %s173_s4, [#allocation7], %s2238_s30, %s2238_s30, %s2239_s5  }
  0x34   : > { %s2120_s18 = scalar_lea.hbm %s2699_s2, 32 }
  0x35   : > { %p2121_p11 = scmp.ne.s32.totalorder %s2699_s2, %s2120_s18  ;;  %p2127_p8 = scmp.lt.u32.totalorder %s2120_s18, %s2699_s2 }
  0x37   : > { %p2123_p4 = pnand %p2121_p11, %p2094_p6 }
  0x39   : > { %p2124_p5 = pneg %p2123_p4 }
  0x3b   : > { %p2129_p9 = pnand %p2127_p8, %p2124_p5 }
  0x3d   : > { %2132 = shalt.err (!%p2129_p9)
}
  0x3e   : > { %s2133_s4 = scalar_lea.vmem %s2352_s6, 32  ;;  %p2141_p10 = scmp.lt.s32.totalorder %s2352_s6, %s2352_s6 }
  0x3f   : > { %p2134_p0 = scmp.ne.s32.totalorder %s2352_s6, %s2133_s4  ;;  %p2142_p12 = scmp.lt.s32.totalorder %s2133_s4, %s2133_s4 }
  0x41   : > { %p2136_p3 = pnand %p2134_p0, %p2094_p6  ;;  %p2143_p13 = por %p2142_p12, %p2141_p10 }
  0x43   : > { %p2137_p7 = pneg %p2136_p3 }
  0x45   : > { %p2144_p1 = pnand %p2143_p13, %p2137_p7 }
  0x47   : > { %2147 = shalt.err (!%p2144_p1)
}
  0x48   : > { %1941 = dma.hbm_to_vmem [thread:$0]  (!%p2348_p2), %s2699_s2, 32, %s2352_s6, [#allocation7]  }
  0x49   : > { %p1736_p11 = scmp.ge.s32.totalorder %s2234_s17, 2 }
  0x4b   : > { %196 = sbr.rel (%p1736_p11) target bundleno = 97 (0x61), region = 24 }
  0x52   : > { %s200_s5 = sand.u32 1, %s2222_s14   ;;  %s1849_s8 = sshll.u32 %s2230_s16, 11 }
  0x53   : > { %s1737_s7 = sshll.u32 %s200_s5, 8  ;;  %s213_s6 = scalar_lea.hbm %s2697_s0, %s1849_s8 }
  0x54   : > { %p2716_p2 = scmp.ne.s32.totalorder %s2709_s22, 0  ;;  %s204_s18 = scalar_lea.vmem [#allocation3], %s1737_s7 }
  0x55   : > { %s226_s19 = sshll.u32 %s204_s18, 4  ;;  %s2240_s24 = smov 4096   ;;  %s227_s19 = int_to_ptr.vmem [resolvable:$true] %s226_s19 }
  0x56   : > { %s1920_s11 = scalar_select %p2716_p2, [#allocation0], [#allocation12] }
  0x57   : > { %1921 = sst [smem:[#allocation11]] (%p2716_p2), %s2240_s24  ;;  %s2241_s4 = smov 2048  }
  0x58   : > { %s218_s21 = sld [smem:[%s1920_s11]]   ;;  %s2242_s20 = smov 32  }
  0x59   : > { %1922 = sst [smem:[#allocation11 + $0x1]] (%p2716_p2), %s2241_s4  ;;  %s2243_s30 = smov 64  }
  0x5a   : > { %1923 = sst [smem:[#allocation11 + $0x2]] (%p2716_p2), %s2242_s20  ;;  %s2244_s7 = smov 4  }
  0x5b   : > { %1924 = sst [smem:[#allocation11 + $0x3]] (%p2716_p2), %s2243_s30  ;;  %s201_s10 = scalar_lea.sflag [#allocation4], %s200_s5 }
  0x5c   : > { %1925 = sst [smem:[#allocation11 + $0x4]] (%p2716_p2), %s2243_s30  ;;  %s2245_s11 = smov [#allocation10]  }
  0x5d   : > { %1926 = sst [smem:[#allocation11 + $0x5]] (%p2716_p2), %s2244_s7 }
  0x5e   : > { %s1740_s8 = sshll.u32 %s218_s21, 26 }
  0x5f   : > { %s1741_s9 = sadd.s32 134217728, %s1740_s8 }
  0x60   : > { %1927 = dma.general (%p2716_p2), %s213_s6, 4096, %s227_s19, %s201_s10, %s2245_s11, [#allocation11], %s1741_s9, 0  }
  0x61 PF: > { %p2717_p6 = scmp.ne.s32.totalorder %s2714_s29, 0 }
  0x62   : > { %s2428_s18 = sand.u32 (!%p2717_p6), 1, %s2218_s13   ;;  %p2718_p4 = scmp.ne.s32.totalorder (!%p2717_p6), %s2711_s25, 0 }
  0x63   : > { %251 = sbr.rel (%p2717_p6) target bundleno = 498 (0x1f2), region = 32  ;;  %s1743_s24 = sshll.u32 (!%p2717_p6), %s2428_s18, 8 }
  0x64   : > { %s254_s21 = scalar_lea.sflag (!%p2717_p6), [#allocation4], %s2428_s18  ;;  %s2432_s4 = scalar_lea.vmem (!%p2717_p6), [#allocation3], %s1743_s24 }
  0x6a   : > { %2201 = dma.done.wait (%p2718_p4), %s254_s21, 4096  }
  0x6b   : > { %2203 = vsyncadd (%p2718_p4), %s254_s21, 4294963200  ;;  %p2719_p5 = scmp.ne.s32.totalorder %s2710_s23, 0 }
  0x6d   : > { %2205 = dma.done.wait (%p2719_p5), [#allocation7], 4128  }
  0x6e   : > { %2207 = vsyncadd (%p2719_p5), [#allocation7], 4294963168  ;;  %v2246_v0 = vmov 0   ;;  %v2012_v1 = vld [vmem:[#allocation6 + $0x84] ss:$8 sps:$4 sm:$0xff]   ;;  %v2064_v37 = vld [vmem:[%s2432_s4 + $0x90] sm:$0xff]  }
  0x6f   : > { %669 = vmatprep.mubr.bf16.mxu1 %v2246_v0  ;;  %1038 = vmatprep.mubr.bf16.mxu0 %v2246_v0  ;;  %v2014_v2 = vld [vmem:[#allocation6 + $0x4] ss:$8 sps:$4 sm:$0xff]   ;;  %v2016_v3 = vld [vmem:[#allocation6 + $0x80] ss:$8 sps:$4 sm:$0xff]   ;;  %v2018_v5 = vld [vmem:[#allocation6 + $0x94] ss:$8 sps:$4 sm:$0xff]  }
  0x70   : > { %637 = vmatprep.subr.bf16.mxu1 %v2012_v1  ;;  %v2017_v4 = vld [vmem:[#allocation6] ss:$8 sps:$4 sm:$0xff]   ;;  %1006 = vmatprep.subr.bf16.mxu0 %v2014_v2  ;;  %v2020_v6 = vld [vmem:[#allocation6 + $0x14] ss:$8 sps:$4 sm:$0xff]   ;;  %v2022_v7 = vld [vmem:[#allocation6 + $0x90] ss:$8 sps:$4 sm:$0xff]   ;;  %v1460_v2 = vlaneseq }
  0x71   : > { %638 = vmatpush1.bf16.msra.mxu1 %v2016_v3  ;;  %1007 = vmatpush1.bf16.msra.mxu0 %v2017_v4  ;;  %v2023_v8 = vld [vmem:[#allocation6 + $0x10] ss:$8 sps:$4 sm:$0xff]   ;;  %v2024_v9 = vld [vmem:[#allocation6 + $0xa4] ss:$8 sps:$4 sm:$0xff]   ;;  %v2028_v11 = vld [vmem:[#allocation6 + $0xa0] ss:$8 sps:$4 sm:$0xff]  }
  0x72   : > { %639 = vmatprep.subr.bf16.mxu1 %v2018_v5  ;;  %1008 = vmatprep.subr.bf16.mxu0 %v2020_v6  ;;  %v2026_v10 = vld [vmem:[#allocation6 + $0x24] ss:$8 sps:$4 sm:$0xff]   ;;  %v2029_v12 = vld [vmem:[#allocation6 + $0x20] ss:$8 sps:$4 sm:$0xff]   ;;  %v2030_v13 = vld [vmem:[#allocation6 + $0xb4] ss:$8 sps:$4 sm:$0xff]  }
  0x73   : > { %v2032_v14 = vld [vmem:[#allocation6 + $0x34] ss:$8 sps:$4 sm:$0xff]   ;;  %v2034_v15 = vld [vmem:[#allocation6 + $0xb0] ss:$8 sps:$4 sm:$0xff]   ;;  %v2036_v17 = vld [vmem:[#allocation6 + $0xc4] ss:$8 sps:$4 sm:$0xff]  }
  0x74   : > { %v2035_v16 = vld [vmem:[#allocation6 + $0x30] ss:$8 sps:$4 sm:$0xff]   ;;  %v2038_v18 = vld [vmem:[#allocation6 + $0x44] ss:$8 sps:$4 sm:$0xff]   ;;  %v2040_v19 = vld [vmem:[#allocation6 + $0xc0] ss:$8 sps:$4 sm:$0xff]  }
  0x75   : > { %640 = vmatpush1.bf16.msra.mxu1 %v2022_v7  ;;  %1009 = vmatpush1.bf16.msra.mxu0 %v2023_v8  ;;  %v2041_v20 = vld [vmem:[#allocation6 + $0x40] ss:$8 sps:$4 sm:$0xff]   ;;  %v2042_v21 = vld [vmem:[#allocation6 + $0xd4] ss:$8 sps:$4 sm:$0xff]   ;;  %v2046_v23 = vld [vmem:[#allocation6 + $0xd0] ss:$8 sps:$4 sm:$0xff]  }
  0x76   : > { %641 = vmatprep.subr.bf16.mxu1 %v2024_v9  ;;  %1010 = vmatprep.subr.bf16.mxu0 %v2026_v10  ;;  %v2044_v22 = vld [vmem:[#allocation6 + $0x54] ss:$8 sps:$4 sm:$0xff]   ;;  %v2047_v24 = vld [vmem:[#allocation6 + $0x50] ss:$8 sps:$4 sm:$0xff]   ;;  %v2048_v25 = vld [vmem:[#allocation6 + $0xe4] ss:$8 sps:$4 sm:$0xff]  }
  0x77   : > { %v2050_v26 = vld [vmem:[#allocation6 + $0x64] ss:$8 sps:$4 sm:$0xff]   ;;  %v2052_v27 = vld [vmem:[#allocation6 + $0xe0] ss:$8 sps:$4 sm:$0xff]   ;;  %v2054_v29 = vld [vmem:[#allocation6 + $0xf4] ss:$8 sps:$4 sm:$0xff]  }
  0x78   : > { %v2053_v28 = vld [vmem:[#allocation6 + $0x60] ss:$8 sps:$4 sm:$0xff]   ;;  %v2056_v30 = vld [vmem:[#allocation6 + $0x74] ss:$8 sps:$4 sm:$0xff]   ;;  %v2058_v31 = vld [vmem:[#allocation6 + $0xf0] ss:$8 sps:$4 sm:$0xff]  }
  0x79   : > { %642 = vmatpush1.bf16.msra.mxu1 %v2028_v11  ;;  %1011 = vmatpush1.bf16.msra.mxu0 %v2029_v12  ;;  %v2059_v32 = vld [vmem:[#allocation6 + $0x70] ss:$8 sps:$4 sm:$0xff]   ;;  %v2060_v33 = vld [vmem:[%s2432_s4 + $0x80] sm:$0xff]   ;;  %v2062_v35 = vld [vmem:[%s2432_s4 + $0x88] sm:$0xff]   ;;  %v1461_v3 = vshrl.u32 %v1460_v2, 7  ;;  %s1746_s22 = sshll.u32 %s2428_s18, 9 }
  0x7a   : > { %643 = vmatprep.subr.bf16.mxu1 %v2030_v13  ;;  %1012 = vmatprep.subr.bf16.mxu0 %v2032_v14  ;;  %v2061_v34 = vld [vmem:[%s2432_s4] sm:$0xff]   ;;  %v2063_v36 = vld [vmem:[%s2432_s4 + $0x8] sm:$0xff]   ;;  %v2065_v38 = vld [vmem:[%s2432_s4 + $0x10] sm:$0xff]   ;;  %s2513_s23 = scalar_lea.vmem [#allocation9], %s1746_s22  ;;  %s1851_s25 = sshll.u32 %s2226_s15, 13 }
  0x7b   : > { %v2066_v39 = vld [vmem:[%s2432_s4 + $0x98] sm:$0xff]   ;;  %v2068_v41 = vld [vmem:[%s2432_s4 + $0xa0] sm:$0xff]   ;;  %v2070_v43 = vld [vmem:[%s2432_s4 + $0xa8] sm:$0xff]   ;;  %v1462_v4 = vsub.s32 0, %v1461_v3  ;;  %v1466_v6 = vsub.s32 1, %v1461_v3  ;;  %s1615_s29 = sshll.u32 %s2513_s23, 4  ;;  %s2642_s19 = scalar_lea.hbm %s2700_s3, %s1851_s25  ;;  %s2644_s29 = int_to_ptr.vmem [resolvable:$true] %s1615_s29 }
  0x7c   : > { %v2067_v40 = vld [vmem:[%s2432_s4 + $0x18] sm:$0xff]   ;;  %v2069_v42 = vld [vmem:[%s2432_s4 + $0x20] sm:$0xff]   ;;  %v2071_v44 = vld [vmem:[%s2432_s4 + $0x28] sm:$0xff]   ;;  %s1599_s15 = scalar_lea.sflag [#allocation5], %s2428_s18  ;;  %s2148_s20 = scalar_lea.vmem %s2644_s29, 8192 }
  0x7d   : > { %644 = vmatpush1.bf16.msra.mxu1 %v2034_v15  ;;  %1013 = vmatpush1.bf16.msra.mxu0 %v2035_v16  ;;  %v2072_v45 = vld [vmem:[%s2432_s4 + $0xb0] sm:$0xff]   ;;  %v2074_v47 = vld [vmem:[%s2432_s4 + $0xb8] sm:$0xff]   ;;  %v2076_v49 = vld [vmem:[%s2432_s4 + $0xc0] sm:$0xff]   ;;  %p2149_p8 = scmp.ne.s32.totalorder %s2644_s29, %s2148_s20  ;;  %p2720_p9 = scmp.ne.s32.totalorder %s2712_s26, 0 }
  0x7e   : > { %645 = vmatprep.subr.bf16.mxu1 %v2036_v17  ;;  %1014 = vmatprep.subr.bf16.mxu0 %v2038_v18  ;;  %v2073_v46 = vld [vmem:[%s2432_s4 + $0x30] sm:$0xff]   ;;  %v2075_v48 = vld [vmem:[%s2432_s4 + $0x38] sm:$0xff]   ;;  %v2077_v50 = vld [vmem:[%s2432_s4 + $0x40] sm:$0xff]   ;;  %s2247_s30 = smov [#allocation9]  }
  0x7f   : > { %v2078_v51 = vld [vmem:[%s2432_s4 + $0xc8] sm:$0xff]   ;;  %v2080_v53 = vld [vmem:[%s2432_s4 + $0xd0] sm:$0xff]   ;;  %v2082_v55 = vld [vmem:[%s2432_s4 + $0xd8] sm:$0xff]   ;;  %p2150_p0 = pnand %p2149_p8, %p2720_p9  ;;  %s2152_s8 = sshll.u32 %s2247_s30, 4  ;;  %s2153_s8 = int_to_ptr.vmem [resolvable:$false] %s2152_s8 }
  0x80   : > { %v2079_v52 = vld [vmem:[%s2432_s4 + $0x48] sm:$0xff]   ;;  %v2081_v54 = vld [vmem:[%s2432_s4 + $0x50] sm:$0xff]   ;;  %v2083_v56 = vld [vmem:[%s2432_s4 + $0x58] sm:$0xff]   ;;  %s2154_s7 = scalar_lea.vmem %s2153_s8, 16384  ;;  %p2155_p7 = scmp.lt.s32.totalorder %s2644_s29, %s2153_s8 }
  0x81   : > { %646 = vmatpush1.bf16.msra.mxu1 %v2040_v19  ;;  %1015 = vmatpush1.bf16.msra.mxu0 %v2041_v20  ;;  %v2084_v57 = vld [vmem:[%s2432_s4 + $0xe0] sm:$0xff]   ;;  %v2086_v59 = vld [vmem:[%s2432_s4 + $0xe8] sm:$0xff]   ;;  %v2088_v61 = vld [vmem:[%s2432_s4 + $0xf0] sm:$0xff]   ;;  %p2151_p3 = pneg %p2150_p0  ;;  %p2156_p10 = scmp.lt.s32.totalorder %s2154_s7, %s2148_s20 }
  0x82   : > { %647 = vmatprep.subr.bf16.mxu1 %v2042_v21  ;;  %1016 = vmatprep.subr.bf16.mxu0 %v2044_v22  ;;  %v2085_v58 = vld [vmem:[%s2432_s4 + $0x60] sm:$0xff]   ;;  %v2087_v60 = vld [vmem:[%s2432_s4 + $0x68] sm:$0xff]   ;;  %v2089_v62 = vld [vmem:[%s2432_s4 + $0x70] sm:$0xff]  }
  0x83   : > { %v2090_v63 = vld [vmem:[%s2432_s4 + $0xf8] sm:$0xff]   ;;  %v1458_v5 = vld [vmem:[#allocation8] sm:$0x3]  ;;  %p2157_p12 = por %p2156_p10, %p2155_p7 }
  0x84   : > { %v2091_v1 = vld [vmem:[%s2432_s4 + $0x78] sm:$0xff]   ;;  %v2507_v7 = vrot.slane %v1458_v5, %v1462_v4  ;;  %v2509_v10 = vrot.slane %v1458_v5, %v1466_v6 }
  0x85   : > { %648 = vmatpush1.bf16.msra.mxu1 %v2046_v23  ;;  %1017 = vmatpush1.bf16.msra.mxu0 %v2047_v24  ;;  %p2158_p13 = pnand %p2157_p12, %p2151_p3 }
  0x86   : > { %649 = vmatprep.subr.bf16.mxu1 %v2048_v25  ;;  %1018 = vmatprep.subr.bf16.mxu0 %v2050_v26 }
  0x89   : > { %650 = vmatpush1.bf16.msra.mxu1 %v2052_v27  ;;  %1019 = vmatpush1.bf16.msra.mxu0 %v2053_v28 }
  0x8a   : > { %651 = vmatprep.subr.bf16.mxu1 %v2054_v29  ;;  %1020 = vmatprep.subr.bf16.mxu0 %v2056_v30 }
  0x8d   : > { %652 = vmatpush1.bf16.msra.mxu1 %v2058_v31  ;;  %1021 = vmatpush1.bf16.msra.mxu0 %v2059_v32 }
  0x90   : > { %670 = vmatmul.mubr.bf16.vlgmr.msra.gmra.mrb[0].mxu1 %v2060_v33  ;;  %1039 = vmatmul.mubr.bf16.vlgmr.msra.gmra.mrb[0].mxu0 %v2061_v34 }
  0x91   : > { %679 = vmatprep.mubr.bf16.mxu1 %v2246_v0  ;;  %1048 = vmatprep.mubr.bf16.mxu0 %v2246_v0 }
  0x98   : > { %680 = vmatmul.mubr.bf16.gmra.mrb[4].mxu1 %v2062_v35  ;;  %1049 = vmatmul.mubr.bf16.gmra.mrb[4].mxu0 %v2063_v36 }
  0x99   : > { %689 = vmatprep.mubr.bf16.mxu1 %v2246_v0  ;;  %1058 = vmatprep.mubr.bf16.mxu0 %v2246_v0 }
  0xa0   : > { %690 = vmatmul.mubr.bf16.gmra.mrb[8].mxu1 %v2064_v37  ;;  %1059 = vmatmul.mubr.bf16.gmra.mrb[8].mxu0 %v2065_v38 }
  0xa1   : > { %699 = vmatprep.mubr.bf16.mxu1 %v2246_v0  ;;  %1068 = vmatprep.mubr.bf16.mxu0 %v2246_v0 }
  0xa8   : > { %700 = vmatmul.mubr.bf16.gmra.mrb[12].mxu1 %v2066_v39  ;;  %1069 = vmatmul.mubr.bf16.gmra.mrb[12].mxu0 %v2067_v40 }
  0xa9   : > { %709 = vmatprep.mubr.bf16.mxu1 %v2246_v0  ;;  %1078 = vmatprep.mubr.bf16.mxu0 %v2246_v0 }
  0xb0   : > { %710 = vmatmul.mubr.bf16.gmra.mrb[16].mxu1 %v2068_v41  ;;  %1079 = vmatmul.mubr.bf16.gmra.mrb[16].mxu0 %v2069_v42 }
  0xb1   : > { %719 = vmatprep.mubr.bf16.mxu1 %v2246_v0  ;;  %1088 = vmatprep.mubr.bf16.mxu0 %v2246_v0 }
  0xb8   : > { %720 = vmatmul.mubr.bf16.gmra.mrb[20].mxu1 %v2070_v43  ;;  %1089 = vmatmul.mubr.bf16.gmra.mrb[20].mxu0 %v2071_v44 }
  0xb9   : > { %729 = vmatprep.mubr.bf16.mxu1 %v2246_v0  ;;  %1098 = vmatprep.mubr.bf16.mxu0 %v2246_v0 }
  0xc0   : > { %730 = vmatmul.mubr.bf16.gmra.mrb[24].mxu1 %v2072_v45  ;;  %1099 = vmatmul.mubr.bf16.gmra.mrb[24].mxu0 %v2073_v46 }
  0xc1   : > { %739 = vmatprep.mubr.bf16.mxu1 %v2246_v0  ;;  %1108 = vmatprep.mubr.bf16.mxu0 %v2246_v0 }
  0xc8   : > { %740 = vmatmul.mubr.bf16.gmra.mrb[28].mxu1 %v2074_v47  ;;  %1109 = vmatmul.mubr.bf16.gmra.mrb[28].mxu0 %v2075_v48 }
  0xc9   : > { %749 = vmatprep.mubr.bf16.mxu1 %v2246_v0  ;;  %1118 = vmatprep.mubr.bf16.mxu0 %v2246_v0 }
  0xd0   : > { %750 = vmatmul.mubr.bf16.gmra.mrb[32].mxu1 %v2076_v49  ;;  %1119 = vmatmul.mubr.bf16.gmra.mrb[32].mxu0 %v2077_v50 }
  0xd1   : > { %759 = vmatprep.mubr.bf16.mxu1 %v2246_v0  ;;  %1128 = vmatprep.mubr.bf16.mxu0 %v2246_v0 }
  0xd8   : > { %760 = vmatmul.mubr.bf16.gmra.mrb[36].mxu1 %v2078_v51  ;;  %1129 = vmatmul.mubr.bf16.gmra.mrb[36].mxu0 %v2079_v52 }
  0xd9   : > { %769 = vmatprep.mubr.bf16.mxu1 %v2246_v0  ;;  %1138 = vmatprep.mubr.bf16.mxu0 %v2246_v0 }
  0xe0   : > { %770 = vmatmul.mubr.bf16.gmra.mrb[40].mxu1 %v2080_v53  ;;  %1139 = vmatmul.mubr.bf16.gmra.mrb[40].mxu0 %v2081_v54 }
  0xe1   : > { %779 = vmatprep.mubr.bf16.mxu1 %v2246_v0  ;;  %1148 = vmatprep.mubr.bf16.mxu0 %v2246_v0 }
  0xe8   : > { %780 = vmatmul.mubr.bf16.gmra.mrb[44].mxu1 %v2082_v55  ;;  %1149 = vmatmul.mubr.bf16.gmra.mrb[44].mxu0 %v2083_v56 }
  0xe9   : > { %789 = vmatprep.mubr.bf16.mxu1 %v2246_v0  ;;  %1158 = vmatprep.mubr.bf16.mxu0 %v2246_v0 }
  0xf0   : > { %790 = vmatmul.mubr.bf16.gmra.mrb[48].mxu1 %v2084_v57  ;;  %1159 = vmatmul.mubr.bf16.gmra.mrb[48].mxu0 %v2085_v58 }
  0xf1   : > { %799 = vmatprep.mubr.bf16.mxu1 %v2246_v0  ;;  %1168 = vmatprep.mubr.bf16.mxu0 %v2246_v0 }
  0xf8   : > { %800 = vmatmul.mubr.bf16.gmra.mrb[52].mxu1 %v2086_v59  ;;  %1169 = vmatmul.mubr.bf16.gmra.mrb[52].mxu0 %v2087_v60 }
  0xf9   : > { %809 = vmatprep.mubr.bf16.mxu1 %v2246_v0  ;;  %1178 = vmatprep.mubr.bf16.mxu0 %v2246_v0 }
 0x100   : > { %810 = vmatmul.mubr.bf16.gmra.mrb[56].mxu1 %v2088_v61  ;;  %1179 = vmatmul.mubr.bf16.gmra.mrb[56].mxu0 %v2089_v62 }
 0x101   : > { %819 = vmatprep.mubr.bf16.mxu1 %v2246_v0  ;;  %1188 = vmatprep.mubr.bf16.mxu0 %v2246_v0 }
 0x108   : > { %820 = vmatmul.mubr.bf16.gmra.mrb[60].mxu1 %v2090_v63  ;;  %1189 = vmatmul.mubr.bf16.gmra.mrb[60].mxu0 %v2091_v1 }
 0x163   : > { %v671_v8 = vpop.f32.mrb[0].mxu1  ;;  %v1040_v9 = vpop.f32.mrb[0].mxu0 }
 0x164   : > { %v1041_v11 = vadd.f32 %v1040_v9, %v671_v8  ;;  %v673_v12 = vpop.f32.mrb[1].mxu1  ;;  %v1042_v13 = vpop.f32.mrb[1].mxu0 }
 0x165   : > { %v1043_v0 = vadd.f32 %v1042_v13, %v673_v12  ;;  %v675_v14 = vpop.f32.mrb[2].mxu1  ;;  %v1044_v15 = vpop.f32.mrb[2].mxu0 }
 0x166   : > { %v1470_v16 = vadd.f32 %v2507_v7, %v1041_v11  ;;  %v1045_v17 = vadd.f32 %v1044_v15, %v675_v14  ;;  %v677_v18 = vpop.f32.mrb[3].mxu1  ;;  %v1046_v19 = vpop.f32.mrb[3].mxu0 }
 0x167   : > { %v1471_v20 = vadd.f32 %v2509_v10, %v1043_v0  ;;  %v1047_v21 = vadd.f32 %v1046_v19, %v677_v18 }
 0x168   : > { %1534 = vst [vmem:[%s2513_s23] sm:$0xff] %v1470_v16  ;;  %v1472_v22 = vadd.f32 %v2507_v7, %v1045_v17 }
 0x169   : > { %1535 = vst [vmem:[%s2513_s23 + $0x8] sm:$0xff] %v1471_v20  ;;  %v1473_v23 = vadd.f32 %v2509_v10, %v1047_v21 }
 0x16a   : > { %1536 = vst [vmem:[%s2513_s23 + $0x10] sm:$0xff] %v1472_v22 }
 0x16b   : > { %1537 = vst [vmem:[%s2513_s23 + $0x18] sm:$0xff] %v1473_v23  ;;  %v681_v24 = vpop.f32.mrb[4].mxu1  ;;  %v1050_v25 = vpop.f32.mrb[4].mxu0 }
 0x16c   : > { %v1051_v26 = vadd.f32 %v1050_v25, %v681_v24  ;;  %v683_v27 = vpop.f32.mrb[5].mxu1  ;;  %v1052_v28 = vpop.f32.mrb[5].mxu0 }
 0x16d   : > { %v1053_v29 = vadd.f32 %v1052_v28, %v683_v27  ;;  %v685_v30 = vpop.f32.mrb[6].mxu1  ;;  %v1054_v31 = vpop.f32.mrb[6].mxu0 }
 0x16e   : > { %v1474_v32 = vadd.f32 %v2507_v7, %v1051_v26  ;;  %v1055_v33 = vadd.f32 %v1054_v31, %v685_v30  ;;  %v687_v34 = vpop.f32.mrb[7].mxu1  ;;  %v1056_v35 = vpop.f32.mrb[7].mxu0 }
 0x16f   : > { %v1475_v36 = vadd.f32 %v2509_v10, %v1053_v29  ;;  %v1057_v37 = vadd.f32 %v1056_v35, %v687_v34 }
 0x170   : > { %1538 = vst [vmem:[%s2513_s23 + $0x20] sm:$0xff] %v1474_v32  ;;  %v1476_v38 = vadd.f32 %v2507_v7, %v1055_v33 }
 0x171   : > { %1539 = vst [vmem:[%s2513_s23 + $0x28] sm:$0xff] %v1475_v36  ;;  %v1477_v39 = vadd.f32 %v2509_v10, %v1057_v37 }
 0x172   : > { %1540 = vst [vmem:[%s2513_s23 + $0x30] sm:$0xff] %v1476_v38 }
 0x173   : > { %1541 = vst [vmem:[%s2513_s23 + $0x38] sm:$0xff] %v1477_v39  ;;  %v691_v40 = vpop.f32.mrb[8].mxu1  ;;  %v1060_v41 = vpop.f32.mrb[8].mxu0 }
 0x174   : > { %v1061_v42 = vadd.f32 %v1060_v41, %v691_v40  ;;  %v693_v43 = vpop.f32.mrb[9].mxu1  ;;  %v1062_v44 = vpop.f32.mrb[9].mxu0 }
 0x175   : > { %v1063_v45 = vadd.f32 %v1062_v44, %v693_v43  ;;  %v695_v46 = vpop.f32.mrb[10].mxu1  ;;  %v1064_v47 = vpop.f32.mrb[10].mxu0 }
 0x176   : > { %v1478_v48 = vadd.f32 %v2507_v7, %v1061_v42  ;;  %v1065_v49 = vadd.f32 %v1064_v47, %v695_v46  ;;  %v697_v50 = vpop.f32.mrb[11].mxu1  ;;  %v1066_v51 = vpop.f32.mrb[11].mxu0 }
 0x177   : > { %v1479_v52 = vadd.f32 %v2509_v10, %v1063_v45  ;;  %v1067_v53 = vadd.f32 %v1066_v51, %v697_v50 }
 0x178   : > { %1542 = vst [vmem:[%s2513_s23 + $0x40] sm:$0xff] %v1478_v48  ;;  %v1480_v54 = vadd.f32 %v2507_v7, %v1065_v49 }
 0x179   : > { %1543 = vst [vmem:[%s2513_s23 + $0x48] sm:$0xff] %v1479_v52  ;;  %v1481_v55 = vadd.f32 %v2509_v10, %v1067_v53 }
 0x17a   : > { %1544 = vst [vmem:[%s2513_s23 + $0x50] sm:$0xff] %v1480_v54 }
 0x17b   : > { %1545 = vst [vmem:[%s2513_s23 + $0x58] sm:$0xff] %v1481_v55  ;;  %v701_v56 = vpop.f32.mrb[12].mxu1  ;;  %v1070_v57 = vpop.f32.mrb[12].mxu0 }
 0x17c   : > { %v1071_v58 = vadd.f32 %v1070_v57, %v701_v56  ;;  %v703_v59 = vpop.f32.mrb[13].mxu1  ;;  %v1072_v60 = vpop.f32.mrb[13].mxu0 }
 0x17d   : > { %v1073_v61 = vadd.f32 %v1072_v60, %v703_v59  ;;  %v705_v62 = vpop.f32.mrb[14].mxu1  ;;  %v1074_v63 = vpop.f32.mrb[14].mxu0 }
 0x17e   : > { %v1482_v1 = vadd.f32 %v2507_v7, %v1071_v58  ;;  %v1075_v2 = vadd.f32 %v1074_v63, %v705_v62  ;;  %v707_v3 = vpop.f32.mrb[15].mxu1  ;;  %v1076_v4 = vpop.f32.mrb[15].mxu0 }
 0x17f   : > { %v1483_v5 = vadd.f32 %v2509_v10, %v1073_v61  ;;  %v1077_v6 = vadd.f32 %v1076_v4, %v707_v3 }
 0x180   : > { %1546 = vst [vmem:[%s2513_s23 + $0x60] sm:$0xff] %v1482_v1  ;;  %v1484_v8 = vadd.f32 %v2507_v7, %v1075_v2 }
 0x181   : > { %1547 = vst [vmem:[%s2513_s23 + $0x68] sm:$0xff] %v1483_v5  ;;  %v1485_v9 = vadd.f32 %v2509_v10, %v1077_v6 }
 0x182   : > { %1548 = vst [vmem:[%s2513_s23 + $0x70] sm:$0xff] %v1484_v8 }
 0x183   : > { %1549 = vst [vmem:[%s2513_s23 + $0x78] sm:$0xff] %v1485_v9  ;;  %v711_v11 = vpop.f32.mrb[16].mxu1  ;;  %v1080_v12 = vpop.f32.mrb[16].mxu0 }
 0x184   : > { %v1081_v13 = vadd.f32 %v1080_v12, %v711_v11  ;;  %v713_v0 = vpop.f32.mrb[17].mxu1  ;;  %v1082_v14 = vpop.f32.mrb[17].mxu0 }
 0x185   : > { %v1083_v15 = vadd.f32 %v1082_v14, %v713_v0  ;;  %v715_v16 = vpop.f32.mrb[18].mxu1  ;;  %v1084_v17 = vpop.f32.mrb[18].mxu0 }
 0x186   : > { %v1486_v18 = vadd.f32 %v2507_v7, %v1081_v13  ;;  %v1085_v19 = vadd.f32 %v1084_v17, %v715_v16  ;;  %v717_v20 = vpop.f32.mrb[19].mxu1  ;;  %v1086_v21 = vpop.f32.mrb[19].mxu0 }
 0x187   : > { %v1487_v22 = vadd.f32 %v2509_v10, %v1083_v15  ;;  %v1087_v23 = vadd.f32 %v1086_v21, %v717_v20 }
 0x188   : > { %1550 = vst [vmem:[%s2513_s23 + $0x80] sm:$0xff] %v1486_v18  ;;  %v1488_v24 = vadd.f32 %v2507_v7, %v1085_v19 }
 0x189   : > { %1551 = vst [vmem:[%s2513_s23 + $0x88] sm:$0xff] %v1487_v22  ;;  %v1489_v25 = vadd.f32 %v2509_v10, %v1087_v23 }
 0x18a   : > { %1552 = vst [vmem:[%s2513_s23 + $0x90] sm:$0xff] %v1488_v24 }
 0x18b   : > { %1553 = vst [vmem:[%s2513_s23 + $0x98] sm:$0xff] %v1489_v25  ;;  %v721_v26 = vpop.f32.mrb[20].mxu1  ;;  %v1090_v27 = vpop.f32.mrb[20].mxu0 }
 0x18c   : > { %v1091_v28 = vadd.f32 %v1090_v27, %v721_v26  ;;  %v723_v29 = vpop.f32.mrb[21].mxu1  ;;  %v1092_v30 = vpop.f32.mrb[21].mxu0 }
 0x18d   : > { %v1093_v31 = vadd.f32 %v1092_v30, %v723_v29  ;;  %v725_v32 = vpop.f32.mrb[22].mxu1  ;;  %v1094_v33 = vpop.f32.mrb[22].mxu0 }
 0x18e   : > { %v1490_v34 = vadd.f32 %v2507_v7, %v1091_v28  ;;  %v1095_v35 = vadd.f32 %v1094_v33, %v725_v32  ;;  %v727_v36 = vpop.f32.mrb[23].mxu1  ;;  %v1096_v37 = vpop.f32.mrb[23].mxu0 }
 0x18f   : > { %v1491_v38 = vadd.f32 %v2509_v10, %v1093_v31  ;;  %v1097_v39 = vadd.f32 %v1096_v37, %v727_v36 }
 0x190   : > { %1554 = vst [vmem:[%s2513_s23 + $0xa0] sm:$0xff] %v1490_v34  ;;  %v1492_v40 = vadd.f32 %v2507_v7, %v1095_v35 }
 0x191   : > { %1555 = vst [vmem:[%s2513_s23 + $0xa8] sm:$0xff] %v1491_v38  ;;  %v1493_v41 = vadd.f32 %v2509_v10, %v1097_v39 }
 0x192   : > { %1556 = vst [vmem:[%s2513_s23 + $0xb0] sm:$0xff] %v1492_v40 }
 0x193   : > { %1557 = vst [vmem:[%s2513_s23 + $0xb8] sm:$0xff] %v1493_v41  ;;  %v731_v42 = vpop.f32.mrb[24].mxu1  ;;  %v1100_v43 = vpop.f32.mrb[24].mxu0 }
 0x194   : > { %v1101_v44 = vadd.f32 %v1100_v43, %v731_v42  ;;  %v733_v45 = vpop.f32.mrb[25].mxu1  ;;  %v1102_v46 = vpop.f32.mrb[25].mxu0 }
 0x195   : > { %v1103_v47 = vadd.f32 %v1102_v46, %v733_v45  ;;  %v735_v48 = vpop.f32.mrb[26].mxu1  ;;  %v1104_v49 = vpop.f32.mrb[26].mxu0 }
 0x196   : > { %v1494_v50 = vadd.f32 %v2507_v7, %v1101_v44  ;;  %v1105_v51 = vadd.f32 %v1104_v49, %v735_v48  ;;  %v737_v52 = vpop.f32.mrb[27].mxu1  ;;  %v1106_v53 = vpop.f32.mrb[27].mxu0 }
 0x197   : > { %v1495_v54 = vadd.f32 %v2509_v10, %v1103_v47  ;;  %v1107_v55 = vadd.f32 %v1106_v53, %v737_v52 }
 0x198   : > { %1558 = vst [vmem:[%s2513_s23 + $0xc0] sm:$0xff] %v1494_v50  ;;  %v1496_v56 = vadd.f32 %v2507_v7, %v1105_v51 }
 0x199   : > { %1559 = vst [vmem:[%s2513_s23 + $0xc8] sm:$0xff] %v1495_v54  ;;  %v1497_v57 = vadd.f32 %v2509_v10, %v1107_v55 }
 0x19a   : > { %1560 = vst [vmem:[%s2513_s23 + $0xd0] sm:$0xff] %v1496_v56 }
 0x19b   : > { %1561 = vst [vmem:[%s2513_s23 + $0xd8] sm:$0xff] %v1497_v57  ;;  %v741_v58 = vpop.f32.mrb[28].mxu1  ;;  %v1110_v59 = vpop.f32.mrb[28].mxu0 }
 0x19c   : > { %v1111_v60 = vadd.f32 %v1110_v59, %v741_v58  ;;  %v743_v61 = vpop.f32.mrb[29].mxu1  ;;  %v1112_v62 = vpop.f32.mrb[29].mxu0 }
 0x19d   : > { %v1113_v63 = vadd.f32 %v1112_v62, %v743_v61  ;;  %v745_v1 = vpop.f32.mrb[30].mxu1  ;;  %v1114_v2 = vpop.f32.mrb[30].mxu0 }
 0x19e   : > { %v1498_v3 = vadd.f32 %v2507_v7, %v1111_v60  ;;  %v1115_v4 = vadd.f32 %v1114_v2, %v745_v1  ;;  %v747_v5 = vpop.f32.mrb[31].mxu1  ;;  %v1116_v6 = vpop.f32.mrb[31].mxu0 }
 0x19f   : > { %v1499_v8 = vadd.f32 %v2509_v10, %v1113_v63  ;;  %v1117_v9 = vadd.f32 %v1116_v6, %v747_v5 }
 0x1a0   : > { %1562 = vst [vmem:[%s2513_s23 + $0xe0] sm:$0xff] %v1498_v3  ;;  %v1500_v11 = vadd.f32 %v2507_v7, %v1115_v4 }
 0x1a1   : > { %1563 = vst [vmem:[%s2513_s23 + $0xe8] sm:$0xff] %v1499_v8  ;;  %v1501_v12 = vadd.f32 %v2509_v10, %v1117_v9 }
 0x1a2   : > { %1564 = vst [vmem:[%s2513_s23 + $0xf0] sm:$0xff] %v1500_v11 }
 0x1a3   : > { %1565 = vst [vmem:[%s2513_s23 + $0xf8] sm:$0xff] %v1501_v12  ;;  %v751_v13 = vpop.f32.mrb[32].mxu1  ;;  %v1120_v0 = vpop.f32.mrb[32].mxu0 }
 0x1a4   : > { %v1121_v14 = vadd.f32 %v1120_v0, %v751_v13  ;;  %v753_v15 = vpop.f32.mrb[33].mxu1  ;;  %v1122_v16 = vpop.f32.mrb[33].mxu0 }
 0x1a5   : > { %v1123_v17 = vadd.f32 %v1122_v16, %v753_v15  ;;  %v755_v18 = vpop.f32.mrb[34].mxu1  ;;  %v1124_v19 = vpop.f32.mrb[34].mxu0 }
 0x1a6   : > { %v1502_v20 = vadd.f32 %v2507_v7, %v1121_v14  ;;  %v1125_v21 = vadd.f32 %v1124_v19, %v755_v18  ;;  %v757_v22 = vpop.f32.mrb[35].mxu1  ;;  %v1126_v23 = vpop.f32.mrb[35].mxu0 }
 0x1a7   : > { %v1503_v24 = vadd.f32 %v2509_v10, %v1123_v17  ;;  %v1127_v25 = vadd.f32 %v1126_v23, %v757_v22 }
 0x1a8   : > { %1566 = vst [vmem:[%s2513_s23 + $0x100] sm:$0xff] %v1502_v20  ;;  %v1504_v26 = vadd.f32 %v2507_v7, %v1125_v21 }
 0x1a9   : > { %1567 = vst [vmem:[%s2513_s23 + $0x108] sm:$0xff] %v1503_v24  ;;  %v1505_v27 = vadd.f32 %v2509_v10, %v1127_v25 }
 0x1aa   : > { %1568 = vst [vmem:[%s2513_s23 + $0x110] sm:$0xff] %v1504_v26 }
 0x1ab   : > { %1569 = vst [vmem:[%s2513_s23 + $0x118] sm:$0xff] %v1505_v27  ;;  %v761_v28 = vpop.f32.mrb[36].mxu1  ;;  %v1130_v29 = vpop.f32.mrb[36].mxu0 }
 0x1ac   : > { %v1131_v30 = vadd.f32 %v1130_v29, %v761_v28  ;;  %v763_v31 = vpop.f32.mrb[37].mxu1  ;;  %v1132_v32 = vpop.f32.mrb[37].mxu0 }
 0x1ad   : > { %v1133_v33 = vadd.f32 %v1132_v32, %v763_v31  ;;  %v765_v34 = vpop.f32.mrb[38].mxu1  ;;  %v1134_v35 = vpop.f32.mrb[38].mxu0 }
 0x1ae   : > { %v1506_v36 = vadd.f32 %v2507_v7, %v1131_v30  ;;  %v1135_v37 = vadd.f32 %v1134_v35, %v765_v34  ;;  %v767_v38 = vpop.f32.mrb[39].mxu1  ;;  %v1136_v39 = vpop.f32.mrb[39].mxu0 }
 0x1af   : > { %v1507_v40 = vadd.f32 %v2509_v10, %v1133_v33  ;;  %v1137_v41 = vadd.f32 %v1136_v39, %v767_v38 }
 0x1b0   : > { %1570 = vst [vmem:[%s2513_s23 + $0x120] sm:$0xff] %v1506_v36  ;;  %v1508_v42 = vadd.f32 %v2507_v7, %v1135_v37 }
 0x1b1   : > { %1571 = vst [vmem:[%s2513_s23 + $0x128] sm:$0xff] %v1507_v40  ;;  %v1509_v43 = vadd.f32 %v2509_v10, %v1137_v41 }
 0x1b2   : > { %1572 = vst [vmem:[%s2513_s23 + $0x130] sm:$0xff] %v1508_v42 }
 0x1b3   : > { %1573 = vst [vmem:[%s2513_s23 + $0x138] sm:$0xff] %v1509_v43  ;;  %v771_v44 = vpop.f32.mrb[40].mxu1  ;;  %v1140_v45 = vpop.f32.mrb[40].mxu0 }
 0x1b4   : > { %v1141_v46 = vadd.f32 %v1140_v45, %v771_v44  ;;  %v773_v47 = vpop.f32.mrb[41].mxu1  ;;  %v1142_v48 = vpop.f32.mrb[41].mxu0 }
 0x1b5   : > { %v1143_v49 = vadd.f32 %v1142_v48, %v773_v47  ;;  %v775_v50 = vpop.f32.mrb[42].mxu1  ;;  %v1144_v51 = vpop.f32.mrb[42].mxu0 }
 0x1b6   : > { %v1510_v52 = vadd.f32 %v2507_v7, %v1141_v46  ;;  %v1145_v53 = vadd.f32 %v1144_v51, %v775_v50  ;;  %v777_v54 = vpop.f32.mrb[43].mxu1  ;;  %v1146_v55 = vpop.f32.mrb[43].mxu0 }
 0x1b7   : > { %v1511_v56 = vadd.f32 %v2509_v10, %v1143_v49  ;;  %v1147_v57 = vadd.f32 %v1146_v55, %v777_v54 }
 0x1b8   : > { %1574 = vst [vmem:[%s2513_s23 + $0x140] sm:$0xff] %v1510_v52  ;;  %v1512_v58 = vadd.f32 %v2507_v7, %v1145_v53 }
 0x1b9   : > { %1575 = vst [vmem:[%s2513_s23 + $0x148] sm:$0xff] %v1511_v56  ;;  %v1513_v59 = vadd.f32 %v2509_v10, %v1147_v57 }
 0x1ba   : > { %1576 = vst [vmem:[%s2513_s23 + $0x150] sm:$0xff] %v1512_v58 }
 0x1bb   : > { %1577 = vst [vmem:[%s2513_s23 + $0x158] sm:$0xff] %v1513_v59  ;;  %v781_v60 = vpop.f32.mrb[44].mxu1  ;;  %v1150_v61 = vpop.f32.mrb[44].mxu0 }
 0x1bc   : > { %v1151_v62 = vadd.f32 %v1150_v61, %v781_v60  ;;  %v783_v63 = vpop.f32.mrb[45].mxu1  ;;  %v1152_v1 = vpop.f32.mrb[45].mxu0 }
 0x1bd   : > { %v1153_v2 = vadd.f32 %v1152_v1, %v783_v63  ;;  %v785_v3 = vpop.f32.mrb[46].mxu1  ;;  %v1154_v4 = vpop.f32.mrb[46].mxu0 }
 0x1be   : > { %v1514_v5 = vadd.f32 %v2507_v7, %v1151_v62  ;;  %v1155_v6 = vadd.f32 %v1154_v4, %v785_v3  ;;  %v787_v8 = vpop.f32.mrb[47].mxu1  ;;  %v1156_v9 = vpop.f32.mrb[47].mxu0 }
 0x1bf   : > { %v1515_v11 = vadd.f32 %v2509_v10, %v1153_v2  ;;  %v1157_v12 = vadd.f32 %v1156_v9, %v787_v8 }
 0x1c0   : > { %1578 = vst [vmem:[%s2513_s23 + $0x160] sm:$0xff] %v1514_v5  ;;  %v1516_v13 = vadd.f32 %v2507_v7, %v1155_v6 }
 0x1c1   : > { %1579 = vst [vmem:[%s2513_s23 + $0x168] sm:$0xff] %v1515_v11  ;;  %v1517_v0 = vadd.f32 %v2509_v10, %v1157_v12 }
 0x1c2   : > { %1580 = vst [vmem:[%s2513_s23 + $0x170] sm:$0xff] %v1516_v13 }
 0x1c3   : > { %1581 = vst [vmem:[%s2513_s23 + $0x178] sm:$0xff] %v1517_v0  ;;  %v791_v14 = vpop.f32.mrb[48].mxu1  ;;  %v1160_v15 = vpop.f32.mrb[48].mxu0 }
 0x1c4   : > { %v1161_v16 = vadd.f32 %v1160_v15, %v791_v14  ;;  %v793_v17 = vpop.f32.mrb[49].mxu1  ;;  %v1162_v18 = vpop.f32.mrb[49].mxu0 }
 0x1c5   : > { %v1163_v19 = vadd.f32 %v1162_v18, %v793_v17  ;;  %v795_v20 = vpop.f32.mrb[50].mxu1  ;;  %v1164_v21 = vpop.f32.mrb[50].mxu0 }
 0x1c6   : > { %v1518_v22 = vadd.f32 %v2507_v7, %v1161_v16  ;;  %v1165_v23 = vadd.f32 %v1164_v21, %v795_v20  ;;  %v797_v24 = vpop.f32.mrb[51].mxu1  ;;  %v1166_v25 = vpop.f32.mrb[51].mxu0 }
 0x1c7   : > { %v1519_v26 = vadd.f32 %v2509_v10, %v1163_v19  ;;  %v1167_v27 = vadd.f32 %v1166_v25, %v797_v24 }
 0x1c8   : > { %1582 = vst [vmem:[%s2513_s23 + $0x180] sm:$0xff] %v1518_v22  ;;  %v1520_v28 = vadd.f32 %v2507_v7, %v1165_v23 }
 0x1c9   : > { %1583 = vst [vmem:[%s2513_s23 + $0x188] sm:$0xff] %v1519_v26  ;;  %v1521_v29 = vadd.f32 %v2509_v10, %v1167_v27 }
 0x1ca   : > { %1584 = vst [vmem:[%s2513_s23 + $0x190] sm:$0xff] %v1520_v28 }
 0x1cb   : > { %1585 = vst [vmem:[%s2513_s23 + $0x198] sm:$0xff] %v1521_v29  ;;  %v801_v30 = vpop.f32.mrb[52].mxu1  ;;  %v1170_v31 = vpop.f32.mrb[52].mxu0 }
 0x1cc   : > { %v1171_v32 = vadd.f32 %v1170_v31, %v801_v30  ;;  %v803_v33 = vpop.f32.mrb[53].mxu1  ;;  %v1172_v34 = vpop.f32.mrb[53].mxu0 }
 0x1cd   : > { %v1173_v35 = vadd.f32 %v1172_v34, %v803_v33  ;;  %v805_v36 = vpop.f32.mrb[54].mxu1  ;;  %v1174_v37 = vpop.f32.mrb[54].mxu0 }
 0x1ce   : > { %v1522_v38 = vadd.f32 %v2507_v7, %v1171_v32  ;;  %v1175_v39 = vadd.f32 %v1174_v37, %v805_v36  ;;  %v807_v40 = vpop.f32.mrb[55].mxu1  ;;  %v1176_v41 = vpop.f32.mrb[55].mxu0 }
 0x1cf   : > { %v1523_v42 = vadd.f32 %v2509_v10, %v1173_v35  ;;  %v1177_v43 = vadd.f32 %v1176_v41, %v807_v40 }
 0x1d0   : > { %1586 = vst [vmem:[%s2513_s23 + $0x1a0] sm:$0xff] %v1522_v38  ;;  %v1524_v44 = vadd.f32 %v2507_v7, %v1175_v39 }
 0x1d1   : > { %1587 = vst [vmem:[%s2513_s23 + $0x1a8] sm:$0xff] %v1523_v42  ;;  %v1525_v45 = vadd.f32 %v2509_v10, %v1177_v43 }
 0x1d2   : > { %1588 = vst [vmem:[%s2513_s23 + $0x1b0] sm:$0xff] %v1524_v44 }
 0x1d3   : > { %1589 = vst [vmem:[%s2513_s23 + $0x1b8] sm:$0xff] %v1525_v45  ;;  %v811_v46 = vpop.f32.mrb[56].mxu1  ;;  %v1180_v47 = vpop.f32.mrb[56].mxu0 }
 0x1d4   : > { %v1181_v48 = vadd.f32 %v1180_v47, %v811_v46  ;;  %v813_v49 = vpop.f32.mrb[57].mxu1  ;;  %v1182_v50 = vpop.f32.mrb[57].mxu0 }
 0x1d5   : > { %v1183_v51 = vadd.f32 %v1182_v50, %v813_v49  ;;  %v815_v52 = vpop.f32.mrb[58].mxu1  ;;  %v1184_v53 = vpop.f32.mrb[58].mxu0 }
 0x1d6   : > { %v1526_v54 = vadd.f32 %v2507_v7, %v1181_v48  ;;  %v1185_v55 = vadd.f32 %v1184_v53, %v815_v52  ;;  %v817_v56 = vpop.f32.mrb[59].mxu1  ;;  %v1186_v57 = vpop.f32.mrb[59].mxu0 }
 0x1d7   : > { %v1527_v58 = vadd.f32 %v2509_v10, %v1183_v51  ;;  %v1187_v59 = vadd.f32 %v1186_v57, %v817_v56 }
 0x1d8   : > { %1590 = vst [vmem:[%s2513_s23 + $0x1c0] sm:$0xff] %v1526_v54  ;;  %v1528_v60 = vadd.f32 %v2507_v7, %v1185_v55 }
 0x1d9   : > { %1591 = vst [vmem:[%s2513_s23 + $0x1c8] sm:$0xff] %v1527_v58  ;;  %v1529_v61 = vadd.f32 %v2509_v10, %v1187_v59 }
 0x1da   : > { %1592 = vst [vmem:[%s2513_s23 + $0x1d0] sm:$0xff] %v1528_v60 }
 0x1db   : > { %1593 = vst [vmem:[%s2513_s23 + $0x1d8] sm:$0xff] %v1529_v61  ;;  %v821_v62 = vpop.f32.mrb[60].mxu1  ;;  %v1190_v63 = vpop.f32.mrb[60].mxu0 }
 0x1dc   : > { %v1191_v1 = vadd.f32 %v1190_v63, %v821_v62  ;;  %v823_v2 = vpop.f32.mrb[61].mxu1  ;;  %v1192_v3 = vpop.f32.mrb[61].mxu0 }
 0x1dd   : > { %v1193_v4 = vadd.f32 %v1192_v3, %v823_v2  ;;  %v825_v5 = vpop.f32.mrb[62].mxu1  ;;  %v1194_v6 = vpop.f32.mrb[62].mxu0 }
 0x1de   : > { %v1530_v8 = vadd.f32 %v2507_v7, %v1191_v1  ;;  %v1195_v9 = vadd.f32 %v1194_v6, %v825_v5  ;;  %v827_v11 = vpop.f32.mrb[63].mxu1  ;;  %v1196_v12 = vpop.f32.mrb[63].mxu0 }
 0x1df   : > { %v1531_v13 = vadd.f32 %v2509_v10, %v1193_v4  ;;  %v1197_v0 = vadd.f32 %v1196_v12, %v827_v11 }
 0x1e0   : > { %1594 = vst [vmem:[%s2513_s23 + $0x1e0] sm:$0xff] %v1530_v8  ;;  %v1532_v14 = vadd.f32 %v2507_v7, %v1195_v9 }
 0x1e1   : > { %1595 = vst [vmem:[%s2513_s23 + $0x1e8] sm:$0xff] %v1531_v13  ;;  %v1533_v15 = vadd.f32 %v2509_v10, %v1197_v0 }
 0x1e2   : > { %1596 = vst [vmem:[%s2513_s23 + $0x1f0] sm:$0xff] %v1532_v14 }
 0x1e3   : > { %1597 = vst [vmem:[%s2513_s23 + $0x1f8] sm:$0xff] %v1533_v15 }
 0x1e4   : > { %2161 = shalt.err (!%p2158_p13)
}
 0x1e5   : > { %s2162_s9 = scalar_lea.hbm %s2642_s19, 8192  ;;  %s2166_s24 = scalar_lea.hbm %s2700_s3, 16384 }
 0x1e6   : > { %p2163_p1 = scmp.ne.s32.totalorder %s2642_s19, %s2162_s9  ;;  %p2167_p4 = scmp.lt.u32.totalorder %s2642_s19, %s2700_s3 }
 0x1e7   : > { %p2168_p5 = scmp.lt.u32.totalorder %s2166_s24, %s2162_s9  ;;  %p2170_p0 = scmp.lt.u32.totalorder %s2162_s9, %s2642_s19 }
 0x1e8   : > { %p2164_p2 = pnand %p2163_p1, %p2720_p9 }
 0x1e9   : > { %p2169_p8 = por %p2168_p5, %p2167_p4 }
 0x1ea   : > { %p2165_p6 = pneg %p2164_p2 }
 0x1eb   : > { %p2171_p3 = por %p2170_p0, %p2169_p8 }
 0x1ed   : > { %p2172_p7 = pnand %p2171_p3, %p2165_p6 }
 0x1ef   : > { %2175 = shalt.err (!%p2172_p7)
}
 0x1f0   : > { %s2248_s22 = smov 256   ;;  %s2249_s23 = smov 16  }
 0x1f1   : > { %1933 = dma.vmem_to_hbm [thread:$0]  (%p2720_p9), %s2644_s29, 8192, %s2642_s19, %s1599_s15, %s2248_s22, %s2248_s22, %s2249_s23  }
 0x1f2 PF: > { %s1630_s25 = sand.u32 1, %s2214_s12   ;;  %p2721_p10 = scmp.ne.s32.totalorder %s2713_s28, 0 }
 0x1f3   : > { %s1631_s5 = scalar_lea.sflag [#allocation5], %s1630_s25 }
 0x1f4   : > { %p1943_p12 = pnand %p1736_p11, %p2721_p10 }
 0x1f6   : > { %2209 = dma.done.wait (!%p1943_p12), %s1631_s5, 8192  }
 0x1f7   : > { %2211 = vsyncadd (!%p1943_p12), %s1631_s5, 4294959104  ;;  %s20_s17 = sadd.s32 1, %s2234_s17   ;;  %s2722_s26 = sld [smem:[#allocation16_spill]] }
 0x1f8   : > { %p17_p13 = scmp.ge.s32.totalorder %s20_s17, 4   ;;  %s2723_s12 = smov %s2218_s13 }
 0x1f9   : > { %s2724_s13 = smov %s2222_s14  ;;  %s2725_s14 = smov %s2332_s27 }
 0x1fa   : > { %s2726_s15 = smov %s2230_s16  ;;  %19 = sbr.rel (!%p17_p13) target bundleno = 7 (0x7), region = 101 }
 0x1fd   : > { %s2727_s16 = smov %s2722_s26 }
 0x201   :  { %1636 = vsyncpa [#allocation4], 1 }
 0x202   :  { %1638 = vsyncpa [#allocation4 + $0x1], 1 }
 0x203   :  { %1639 = vsyncpa [#allocation7], 1 }
 0x204   :  { %1640 = vsyncpa [#allocation5], 1 }
 0x205   :  { %1642 = vsyncpa [#allocation5 + $0x1], 1 }

// kernel: self_attention_forward.3
= control target key start
LH: loop header
LB: loop body
LE: loop exit
PB: predicated region body
PF: predicated region fallthrough
CT: control target
= control target key end

     0   :  { %s6343_s0 = inlined_call_operand.hbm [shape: bf16[512,256], index: 0, kind: input, shape index: {}]   ;;  %s6344_s1 = inlined_call_operand.hbm [shape: bf16[256,768], index: 1, kind: input, shape index: {}]   ;;  %s6345_s2 = inlined_call_operand.hbm [shape: f32[512,128], index: 2, kind: input, shape index: {}]   ;;  %s6346_s3 = inlined_call_operand.hbm [shape: f32[512,128], index: 3, kind: input, shape index: {}]   ;;  %s6347_s4 = inlined_call_operand.hbm [shape: f32[3,1,128], index: 4, kind: input, shape index: {}]   ;;  %s6348_s5 = inlined_call_operand.hbm [shape: bf16[6,512,128], index: 5, kind: output, shape index: {}]  }
   0x1   :  { %6424 = sst [smem:[#allocation77_spill]] %s6344_s1 }
   0x2   :  { %6425 = sst [smem:[#allocation78_spill]] %s6346_s3 }
   0x3   :  { %6426 = sst [smem:[#allocation79_spill]] %s6348_s5 }
   0x4   :  { %10 = vsyncpa [#allocation4], 0 }
   0x5   :  { %12 = vsyncpa [#allocation4 + $0x1], 0 }
   0x6   :  { %13 = vsyncpa [#allocation7], 0 }
   0x7   :  { %15 = vsyncpa [#allocation7 + $0x1], 0 }
   0x8   :  { %16 = vsyncpa [#allocation10], 0 }
   0x9   :  { %18 = vsyncpa [#allocation10 + $0x1], 0 }
   0xa   :  { %19 = vsyncpa [#allocation5], 0 }
   0xb   :  { %21 = vsyncpa [#allocation5 + $0x1], 0  ;;  %s4756_s18 = smov 0   ;;  %s4758_s19 = smov 0  }
   0xc   :  { %s4760_s20 = smov 0   ;;  %s4762_s21 = smov 0  }
   0xd   :  { %s4764_s22 = smov 0   ;;  %s4766_s23 = smov 0  }
   0xe   :  { %s4768_s24 = smov 0   ;;  %s4770_s25 = smov 0  }
   0xf   :  { %s4772_s26 = smov 0   ;;  %s4774_s27 = smov 0  }
  0x10   :  { %s4776_s28 = smov 0   ;;  %s4778_s29 = smov 0  }
  0x11   :  { %s4780_s30 = smov 0   ;;  %s4782_s6 = smov 0  }
  0x12 LB: > { %6427 = sst [smem:[#allocation21_spill]] %s4656_s18  ;;  %s4825_s7 = sadd.s32 4294967295, %s4708_s6   ;;  %s4708_s6 = sphi %s4782_s6, %s27_s6   ;;  %s4704_s30 = sphi %s4780_s30, %s6581_s30   ;;  %s4700_s29 = sphi %s4778_s29, %s6592_s29   ;;  %s4696_s28 = sphi %s4776_s28, %s6591_s28   ;;  %s4692_s27 = sphi %s4774_s27, %s6590_s27   ;;  %s4688_s26 = sphi %s4772_s26, %s6589_s26   ;;  %s4684_s25 = sphi %s4770_s25, %s6588_s25   ;;  %s4680_s24 = sphi %s4768_s24, %s6587_s24   ;;  %s4676_s23 = sphi %s4766_s23, %s6586_s23   ;;  %s4672_s22 = sphi %s4764_s22, %s6585_s22   ;;  %s4668_s21 = sphi %s4762_s21, %s6576_s21   ;;  %s4664_s20 = sphi %s4760_s20, %s6575_s20   ;;  %s4660_s19 = sphi %s4758_s19, %s6584_s19   ;;  %s4656_s18 = sphi %s4756_s18, %s6583_s18  }
  0x13   : > { %6428 = sst [smem:[#allocation22_spill]] %s4664_s20  ;;  %s42_s8 = sadd.s32 1, %s4700_s29 }
  0x14   : > { %6429 = sst [smem:[#allocation23_spill]] %s4672_s22  ;;  %p4828_p0 = scmp.ge.s32.totalorder %s42_s8, 3 }
  0x15   : > { %6430 = sst [smem:[#allocation24_spill]] %s4692_s27  ;;  %p6354_p1 = scmp.eq.s32.totalorder %s4708_s6, 0 }
  0x16   : > { %6431 = sst [smem:[#allocation25_spill]] %s4696_s28  ;;  %p6353_p2 = scmp.eq.s32.totalorder %s4825_s7, 0 }
  0x17   : > { %6432 = sst [smem:[#allocation26_spill]] %s4704_s30  ;;  %s83_s10 = sadd.s32 1, %s4676_s23 }
  0x18   : > { %6433 = sst [smem:[#allocation27_spill]] %s4708_s6  ;;  %s6594_s8 = smov (%p4828_p0, %s42_s8), 0 }
  0x19   : > { %6435 = sst [smem:[#allocation28_spill]] %s6594_s8  ;;  %p90_p3 = scmp.ne.s32.totalorder %s4676_s23, %s4672_s22 }
  0x1a   : > { %p96_p4 = scmp.ne.s32.totalorder %s4672_s22, %s4668_s21  ;;  %s4844_s11 = ssub.s32 %s4700_s29, %s6594_s8 }
  0x1b   : > { %p81_p6 = scmp.eq.s32.totalorder %s4844_s11, 0  ;;  %p92_p7 = por %p90_p3, %p6354_p1 }
  0x1c   : > { %p4852_p8 = por %p96_p4, %p6353_p2  ;;  %p6352_p9 = scmp.lt.s32.totalorder %s4708_s6, 6 }
  0x1d   : > { %s4857_s13 = scalar_select %p81_p6, %s4676_s23, %s83_s10  }
  0x1e   : > { %s6436_s12 = scalar_select %p4852_p8, 1, 0 }
  0x1f   : > { %6438 = sst [smem:[#allocation30_spill]] %s4857_s13  ;;  %s6355_s14 = sand.u32 1, %s4708_s6  }
  0x20   : > { %6437 = sst [smem:[#allocation29_spill]] %s6436_s12  ;;  %s6351_s15 = sand.u32 1, %s4676_s23  }
  0x21   : > { %s3184_s16 = sshll.u32 %s6351_s15, 8  ;;  %s3468_s17 = sshll.u32 %s4700_s29, 7 }
  0x22   : > { %s6439_s1 = sld [smem:[#allocation77_spill]]  ;;  %s254_s28 = scalar_lea.vmem [#allocation6], %s3184_s16 }
  0x23   : > { %s264_s27 = sshll.u32 %s254_s28, 4  ;;  %p4872_p10 = pnand %p6352_p9, %p92_p7  ;;  %s4876_s27 = int_to_ptr.vmem [resolvable:$true] %s264_s27 }
  0x24   : > { %s4881_s8 = scalar_lea.sflag [#allocation7], %s6355_s14 }
  0x25   : > { %s6440_s10 = scalar_select %p4872_p10, 1, 0 }
  0x26   : > { %p6369_p13 = pneg %p4872_p10 }
  0x28   : > { %s4868_s5 = scalar_lea.hbm %s6439_s1, %s3468_s17  ;;  %s4429_s21 = scalar_lea.hbm %s6439_s1, 12288 }
  0x29   : > { %s4424_s17 = scalar_lea.hbm %s4868_s5, 4096  ;;  %p4430_p6 = scmp.lt.u32.totalorder %s4868_s5, %s6439_s1 }
  0x2a   : > { %p4425_p12 = scmp.ne.s32.totalorder %s4868_s5, %s4424_s17  ;;  %p4431_p7 = scmp.lt.u32.totalorder %s4429_s21, %s4424_s17 }
  0x2b   : > { %p4433_p5 = scmp.lt.u32.totalorder %s4424_s17, %s4868_s5 }
  0x2c   : > { %p4427_p3 = pnand %p6369_p13, %p4425_p12  ;;  %p4432_p9 = por %p4431_p7, %p4430_p6 }
  0x2e   : > { %p4428_p4 = pneg %p4427_p3  ;;  %p4434_p2 = por %p4433_p5, %p4432_p9 }
  0x30   : > { %p4435_p1 = pnand %p4434_p2, %p4428_p4 }
  0x32   : > { %4438 = shalt.err (!%p4435_p1)
}
  0x33   : > { %s4439_s14 = scalar_lea.vmem %s4876_s27, 4096  ;;  %s4710_s28 = smov [#allocation6]  }
  0x34   : > { %p4440_p12 = scmp.ne.s32.totalorder %s4876_s27, %s4439_s14  ;;  %s4444_s16 = sshll.u32 %s4710_s28, 4  ;;  %s4445_s16 = int_to_ptr.vmem [resolvable:$false] %s4444_s16 }
  0x35   : > { %s4446_s13 = scalar_lea.vmem %s4445_s16, 8192  ;;  %p4447_p8 = scmp.lt.s32.totalorder %s4876_s27, %s4445_s16 }
  0x36   : > { %p4442_p3 = pnand %p4440_p12, %p6369_p13  ;;  %p4448_p6 = scmp.lt.s32.totalorder %s4446_s13, %s4439_s14 }
  0x38   : > { %p4443_p11 = pneg %p4442_p3  ;;  %p4449_p7 = por %p4448_p6, %p4447_p8 }
  0x3a   : > { %p4450_p5 = pnand %p4449_p7, %p4443_p11 }
  0x3c   : > { %4453 = shalt.err (!%p4450_p5)
}
  0x3d   : > { %s4711_s15 = smov 384   ;;  %s6357_s14 = smov 128  }
  0x3e   : > { %s6359_s17 = smov 8   ;;  %p331_p1 = scmp.lt.s32.totalorder %s4708_s6, 7 }
  0x3f   : > { %4040 = dma.hbm_to_vmem [thread:$0]  (!%p4872_p10), %s4868_s5, 4096, %s4876_s27, %s4881_s8, %s4711_s15, %s6357_s14, %s6359_s17  }
  0x40   : > { %p6441_p2 = scmp.ge.s32.totalorder %s4708_s6, 1  ;;  %s3177_s28 = sadd.s32 4294967294, %s4708_s6  }
  0x41   : > { %s46_s16 = sadd.s32 1, %s4704_s30  ;;  %s55_s13 = sadd.s32 1, %s4688_s26 }
  0x42   : > { %p4914_p8 = pnand %p6441_p2, %p331_p1  ;;  %s6596_s16 = smov (!%p4828_p0, %s46_s16), %s4704_s30 }
  0x43   : > { %p62_p9 = scmp.ne.s32.totalorder %s4688_s26, %s4684_s25  ;;  %p48_p11 = scmp.ge.s32.totalorder %s6596_s16, 2 }
  0x44   : > { %s6442_s21 = scalar_select %p4914_p8, 1, 0 }
  0x45   : > { %p68_p4 = scmp.ne.s32.totalorder %s4684_s25, %s4680_s24  ;;  %p6443_p12 = scmp.eq.s32.totalorder %s4708_s6, 0 }
  0x46   : > { %s189_s27 = sadd.s32 1, %s4664_s20  ;;  %s6598_s16 = smov (%p48_p11, %s6596_s16), 0 }
  0x47   : > { %p4930_p3 = por %p6443_p12, %p62_p9  ;;  %6445 = sst [smem:[#allocation31_spill]] %s6598_s16 }
  0x48   : > { %p6446_p6 = scmp.eq.s32.totalorder %s4825_s7, 0  ;;  %p199_p7 = scmp.ne.s32.totalorder %s4664_s20, %s4660_s19 }
  0x49   : > { %s50_s24 = ssub.s32 %s4704_s30, %s6598_s16  ;;  %p205_p5 = scmp.ne.s32.totalorder %s4660_s19, %s4656_s18 }
  0x4a   : > { %p4939_p0 = por %p6446_p6, %p68_p4  ;;  %p53_p1 = scmp.eq.s32.totalorder %s50_s24, 0 }
  0x4b   : > { %s186_s15 = sor.u32 %s4844_s11, %s50_s24  ;;  %p6448_p9 = scmp.eq.s32.totalorder %s4825_s7, 5 }
  0x4c   : > { %s6447_s9 = scalar_select %p4939_p0, 1, 0 }
  0x4d   : > { %p187_p2 = scmp.eq.s32.totalorder %s186_s15, 0  ;;  %p4952_p12 = por %p6448_p9, %p199_p7 }
  0x4e   : > { %s4957_s17 = scalar_select %p53_p1, %s4688_s26, %s55_s13  }
  0x4f   : > { %s6449_s14 = scalar_select %p4952_p12, 1, 0 }
  0x50   : > { %6451 = sst [smem:[#allocation33_spill]] %s4957_s17  ;;  %p206_p11 = scmp.eq.s32.totalorder %s3177_s28, 5 }
  0x51   : > { %6450 = sst [smem:[#allocation32_spill]] %s6449_s14  ;;  %s6365_s12 = sand.u32 1, %s4688_s26  }
  0x52   : > { %s4960_s1 = scalar_select %p187_p2, %s4664_s20, %s189_s27  }
  0x53   : > { %s4965_s22 = sshll.u32 %s6365_s12, 8  ;;  %s4968_s16 = sshll.u32 %s4704_s30, 12 }
  0x54   : > { %6452 = sst [smem:[#allocation34_spill]] %s4960_s1  ;;  %p4970_p4 = por %p206_p11, %p205_p5 }
  0x55   : > { %p6455_p6 = scmp.lt.s32.totalorder %s4708_s6, 6  ;;  %s6457_s3 = sld [smem:[#allocation78_spill]] }
  0x56   : > { %s6453_s11 = scalar_select %p4970_p4, 1, 0 }
  0x57   : > { %p4978_p7 = pnand %p6455_p6, %p4930_p3  ;;  %s299_s15 = scalar_lea.vmem [#allocation9], %s4965_s22 }
  0x58   : > { %6454 = sst [smem:[#allocation35_spill]] %s6453_s11  ;;  %s306_s12 = sshll.u32 %s299_s15, 4  ;;  %s4989_s12 = int_to_ptr.vmem [resolvable:$true] %s306_s12 }
  0x59   : > { %s6458_s5 = sand.u32 1, %s4708_s6   ;;  %p4999_p5 = pneg %p4978_p7 }
  0x5a   : > { %s4993_s30 = scalar_lea.sflag [#allocation10], %s6458_s5 }
  0x5b   : > { %s4986_s24 = scalar_lea.hbm %s6457_s3, %s4968_s16  ;;  %s4459_s15 = scalar_lea.hbm %s6457_s3, 8192 }
  0x5c   : > { %s4454_s17 = scalar_lea.hbm %s4986_s24, 4096  ;;  %p4460_p9 = scmp.lt.u32.totalorder %s4986_s24, %s6457_s3 }
  0x5d   : > { %p4455_p3 = scmp.ne.s32.totalorder %s4986_s24, %s4454_s17  ;;  %p4461_p11 = scmp.lt.u32.totalorder %s4459_s15, %s4454_s17 }
  0x5e   : > { %p4463_p13 = scmp.lt.u32.totalorder %s4454_s17, %s4986_s24 }
  0x5f   : > { %p4457_p1 = pnand %p4999_p5, %p4455_p3  ;;  %p4462_p6 = por %p4461_p11, %p4460_p9 }
  0x61   : > { %p4458_p2 = pneg %p4457_p1  ;;  %p4464_p4 = por %p4463_p13, %p4462_p6 }
  0x63   : > { %p4465_p12 = pnand %p4464_p4, %p4458_p2 }
  0x65   : > { %4468 = shalt.err (!%p4465_p12)
}
  0x66   : > { %s4469_s5 = scalar_lea.vmem %s4989_s12, 4096  ;;  %s4714_s27 = smov [#allocation9]  }
  0x67   : > { %p4470_p3 = scmp.ne.s32.totalorder %s4989_s12, %s4469_s5  ;;  %s4474_s28 = sshll.u32 %s4714_s27, 4  ;;  %s4475_s28 = int_to_ptr.vmem [resolvable:$false] %s4474_s28 }
  0x68   : > { %s4476_s20 = scalar_lea.vmem %s4475_s28, 8192  ;;  %p4477_p8 = scmp.lt.s32.totalorder %s4989_s12, %s4475_s28 }
  0x69   : > { %p4472_p1 = pnand %p4470_p3, %p4999_p5  ;;  %p4478_p10 = scmp.lt.s32.totalorder %s4476_s20, %s4469_s5 }
  0x6b   : > { %p4473_p0 = pneg %p4472_p1  ;;  %p4479_p9 = por %p4478_p10, %p4477_p8 }
  0x6d   : > { %p4480_p11 = pnand %p4479_p9, %p4473_p0 }
  0x6f   : > { %4483 = shalt.err (!%p4480_p11)
}
  0x70   : > { %s6460_s17 = smov 8   ;;  %s6461_s11 = smov 128  }
  0x71   : > { %4046 = dma.hbm_to_vmem [thread:$0]  (!%p4978_p7), %s4986_s24, 4096, %s4989_s12, %s4993_s30, %s6461_s11, %s6461_s11, %s6460_s17  }
  0x72   : > { %s5030_s5 = scalar_lea.hbm %s6343_s0, %s4968_s16  ;;  %s230_s28 = scalar_lea.vmem [#allocation3], %s4965_s22 }
  0x73   : > { %s240_s20 = sshll.u32 %s230_s28, 4  ;;  %s6462_s3 = sand.u32 1, %s4688_s26   ;;  %s5033_s20 = int_to_ptr.vmem [resolvable:$true] %s240_s20 }
  0x74   : > { %s5037_s18 = scalar_lea.sflag [#allocation4], %s6462_s3  ;;  %s4484_s6 = scalar_lea.hbm %s5030_s5, 4096 }
  0x75   : > { %p4485_p10 = scmp.ne.s32.totalorder %s5030_s5, %s4484_s6  ;;  %s4489_s15 = scalar_lea.hbm %s6343_s0, 8192 }
  0x76   : > { %p4490_p0 = scmp.lt.u32.totalorder %s5030_s5, %s6343_s0  ;;  %p4491_p12 = scmp.lt.u32.totalorder %s4489_s15, %s4484_s6 }
  0x77   : > { %p4487_p13 = pnand %p4485_p10, %p4999_p5  ;;  %p4493_p2 = scmp.lt.u32.totalorder %s4484_s6, %s5030_s5 }
  0x78   : > { %p4492_p4 = por %p4491_p12, %p4490_p0 }
  0x79   : > { %p4488_p8 = pneg %p4487_p13 }
  0x7a   : > { %p4494_p6 = por %p4493_p2, %p4492_p4 }
  0x7c   : > { %p4495_p3 = pnand %p4494_p6, %p4488_p8 }
  0x7e   : > { %4498 = shalt.err (!%p4495_p3)
}
  0x7f   : > { %s4499_s3 = scalar_lea.vmem %s5033_s20, 4096  ;;  %s4715_s28 = smov [#allocation3]  }
  0x80   : > { %p4500_p1 = scmp.ne.s32.totalorder %s5033_s20, %s4499_s3  ;;  %s4504_s12 = sshll.u32 %s4715_s28, 4  ;;  %s4505_s12 = int_to_ptr.vmem [resolvable:$false] %s4504_s12 }
  0x81   : > { %s4506_s14 = scalar_lea.vmem %s4505_s12, 8192  ;;  %p4507_p10 = scmp.lt.s32.totalorder %s5033_s20, %s4505_s12 }
  0x82   : > { %p4502_p9 = pnand %p4500_p1, %p4999_p5  ;;  %p4508_p13 = scmp.lt.s32.totalorder %s4506_s14, %s4499_s3 }
  0x84   : > { %p4503_p11 = pneg %p4502_p9  ;;  %p4509_p0 = por %p4508_p13, %p4507_p10 }
  0x86   : > { %p4510_p12 = pnand %p4509_p0, %p4503_p11 }
  0x88   : > { %4513 = shalt.err (!%p4510_p12)
}
  0x89   : > { %4037 = dma.hbm_to_vmem [thread:$0]  (!%p4978_p7), %s5030_s5, 4096, %s5033_s20, %s5037_s18, %s6461_s11, %s6461_s11, %s6460_s17  }
  0x8a   : > { %s5068_s15 = scalar_lea.hbm %s6345_s2, %s4968_s16  ;;  %s278_s27 = scalar_lea.vmem [#allocation8], %s4965_s22 }
  0x8b   : > { %s285_s3 = sshll.u32 %s278_s27, 4  ;;  %s4514_s28 = scalar_lea.hbm %s5068_s15, 4096  ;;  %s5071_s3 = int_to_ptr.vmem [resolvable:$true] %s285_s3 }
  0x8c   : > { %p4515_p8 = scmp.ne.s32.totalorder %s5068_s15, %s4514_s28  ;;  %s4519_s5 = scalar_lea.hbm %s6345_s2, 8192 }
  0x8d   : > { %p4520_p6 = scmp.lt.u32.totalorder %s5068_s15, %s6345_s2  ;;  %p4521_p3 = scmp.lt.u32.totalorder %s4519_s5, %s4514_s28 }
  0x8e   : > { %p4517_p4 = pnand %p4515_p8, %p4999_p5  ;;  %p4523_p9 = scmp.lt.u32.totalorder %s4514_s28, %s5068_s15 }
  0x8f   : > { %p4522_p1 = por %p4521_p3, %p4520_p6 }
  0x90   : > { %p4518_p2 = pneg %p4517_p4 }
  0x91   : > { %p4524_p11 = por %p4523_p9, %p4522_p1 }
  0x93   : > { %p4525_p10 = pnand %p4524_p11, %p4518_p2 }
  0x95   : > { %4528 = shalt.err (!%p4525_p10)
}
  0x96   : > { %s4529_s22 = scalar_lea.vmem %s5071_s3, 4096  ;;  %s4716_s14 = smov [#allocation8]  }
  0x97   : > { %p4530_p13 = scmp.ne.s32.totalorder %s5071_s3, %s4529_s22  ;;  %s4534_s6 = sshll.u32 %s4716_s14, 4  ;;  %s4535_s6 = int_to_ptr.vmem [resolvable:$false] %s4534_s6 }
  0x98   : > { %s4536_s24 = scalar_lea.vmem %s4535_s6, 8192  ;;  %p4537_p8 = scmp.lt.s32.totalorder %s5071_s3, %s4535_s6 }
  0x99   : > { %p4532_p0 = pnand %p4530_p13, %p4999_p5  ;;  %p4538_p4 = scmp.lt.s32.totalorder %s4536_s24, %s4529_s22 }
  0x9b   : > { %p4533_p12 = pneg %p4532_p0  ;;  %p4539_p6 = por %p4538_p4, %p4537_p8 }
  0x9d   : > { %p4540_p3 = pnand %p4539_p6, %p4533_p12 }
  0x9f   : > { %4543 = shalt.err (!%p4540_p3)
}
  0xa0   : > { %4043 = dma.hbm_to_vmem [thread:$0]  (!%p4978_p7), %s5068_s15, 4096, %s5071_s3, %s4881_s8, %s6461_s11, %s6461_s11, %s6460_s17  }
  0xa1   : > { %s3193_s1 = sshll.u32 %s4700_s29, 4  ;;  %s6463_s27 = sand.u32 1, %s4676_s23  }
  0xa2   : > { %s319_s28 = scalar_lea.vmem [#allocation11], %s6463_s27  ;;  %s324_s20 = scalar_lea.hbm %s6347_s4, %s3193_s1 }
  0xa3   : > { %s326_s12 = sshll.u32 %s319_s28, 4  ;;  %s4544_s13 = scalar_lea.hbm %s324_s20, 16  ;;  %s327_s12 = int_to_ptr.vmem [resolvable:$true] %s326_s12 }
  0xa4   : > { %p4545_p5 = scmp.ne.s32.totalorder %s324_s20, %s4544_s13  ;;  %p6464_p2 = scmp.ne.s32.totalorder %s6440_s10, 0 }
  0xa5   : > { %s4549_s14 = scalar_lea.hbm %s6347_s4, 48  ;;  %p4550_p7 = scmp.lt.u32.totalorder %s324_s20, %s6347_s4 }
  0xa6   : > { %p6465_p1 = pneg %p6464_p2  ;;  %p4551_p10 = scmp.lt.u32.totalorder %s4549_s14, %s4544_s13 }
  0xa7   : > { %p4553_p0 = scmp.lt.u32.totalorder %s4544_s13, %s324_s20 }
  0xa8   : > { %p4547_p9 = pnand %p4545_p5, %p6465_p1  ;;  %p4552_p13 = por %p4551_p10, %p4550_p7 }
  0xaa   : > { %p4548_p11 = pneg %p4547_p9  ;;  %p4554_p12 = por %p4553_p0, %p4552_p13 }
  0xac   : > { %p4555_p8 = pnand %p4554_p12, %p4548_p11 }
  0xae   : > { %4558 = shalt.err (!%p4555_p8)
}
  0xaf   : > { %s4559_s11 = scalar_lea.vmem %s327_s12, 16  ;;  %p6466_p6 = pmov %p6465_p1 }
  0xb0   : > { %p4560_p4 = scmp.ne.s32.totalorder %s327_s12, %s4559_s11  ;;  %s4717_s15 = smov [#allocation11]  }
  0xb1   : > { %s4564_s3 = sshll.u32 %s4717_s15, 4  ;;  %s4565_s3 = int_to_ptr.vmem [resolvable:$false] %s4564_s3 }
  0xb2   : > { %p4562_p3 = pnand %p4560_p4, %p6466_p6  ;;  %s4566_s6 = scalar_lea.vmem %s4565_s3, 32 }
  0xb3   : > { %p4567_p1 = scmp.lt.s32.totalorder %s327_s12, %s4565_s3  ;;  %p4568_p9 = scmp.lt.s32.totalorder %s4566_s6, %s4559_s11 }
  0xb4   : > { %p4563_p5 = pneg %p4562_p3 }
  0xb5   : > { %p4569_p7 = por %p4568_p9, %p4567_p1 }
  0xb7   : > { %p4570_p10 = pnand %p4569_p7, %p4563_p5 }
  0xb9   : > { %4573 = shalt.err (!%p4570_p10)
}
  0xba   : > { %4049 = dma.hbm_to_vmem [thread:$0]  (!%p6464_p2), %s324_s20, 16, %s327_s12, %s4993_s30  }
  0xbb   : > { %p6467_p11 = scmp.ne.s32.totalorder %s6442_s21, 0 }
  0xbc   : > { %s337_s24 = sand.u32 (!%p6467_p11), 1, %s4684_s25   ;;  %p6468_p13 = scmp.ne.s32.totalorder (!%p6467_p11), %s6447_s9, 0 }
  0xbd   : > { %335 = sbr.rel (%p6467_p11) target bundleno = 1210 (0x4ba), region = 40  ;;  %s3195_s1 = sshll.u32 (!%p6467_p11), %s337_s24, 8 }
  0xbe   : > { %s338_s27 = scalar_lea.sflag (!%p6467_p11), [#allocation4], %s337_s24  ;;  %s5122_s28 = scalar_lea.vmem (!%p6467_p11), [#allocation3], %s3195_s1 }
  0xc4   : > { %4631 = dma.done.wait (%p6468_p13), %s338_s27, 4096  }
  0xc5   : > { %4633 = vsyncadd (%p6468_p13), %s338_s27, 4294963200  ;;  %s6469_s18 = sld [smem:[#allocation23_spill]]  ;;  %s6470_s10 = sld [smem:[#allocation29_spill]] }
  0xc6   : > { %s346_s5 = sand.u32 1, %s4825_s7  }
  0xc7   : > { %s347_s21 = scalar_lea.sflag [#allocation7], %s346_s5 }
  0xcb   : > { %s348_s30 = sand.u32 1, %s6469_s18   ;;  %p6471_p2 = scmp.ne.s32.totalorder %s6470_s10, 0 }
  0xcc   : > { %s3196_s12 = sshll.u32 %s348_s30, 8 }
  0xcd   : > { %s5130_s20 = scalar_lea.vmem [#allocation6], %s3196_s12 }
  0xce   : > { %4635 = dma.done.wait (%p6471_p2), %s347_s21, 4096  }
  0xcf   : > { %4637 = vsyncadd (%p6471_p2), %s347_s21, 4294963200  ;;  %s5136_s13 = scalar_lea.vmem [#allocation8], %s3195_s1 }
  0xd0   : > { %4639 = dma.done.wait (%p6468_p13), %s347_s21, 4096  }
  0xd1   : > { %4641 = vsyncadd (%p6468_p13), %s347_s21, 4294963200  ;;  %s365_s7 = scalar_lea.sflag [#allocation10], %s346_s5  ;;  %s5142_s16 = scalar_lea.vmem [#allocation9], %s3195_s1 }
  0xd2   : > { %4643 = dma.done.wait (%p6468_p13), %s365_s7, 4096  }
  0xd3   : > { %4645 = vsyncadd (%p6468_p13), %s365_s7, 4294963200  ;;  %s5148_s22 = scalar_lea.vmem [#allocation11], %s348_s30 }
  0xd4   : > { %4647 = dma.done.wait (%p6471_p2), %s365_s7, 16  }
  0xd5   : > { %4649 = vsyncadd (%p6471_p2), %s365_s7, 4294967280  ;;  %s419_s14 = sand.u32 1, %s4660_s19   ;;  %v4180_v0 = vld [vmem:[%s5130_s20 + $0x4] ss:$8 sps:$4 sm:$0xff]   ;;  %v4182_v1 = vld [vmem:[%s5130_s20] ss:$8 sps:$4 sm:$0xff]  }
  0xd6   : > { %s5157_s9 = sshll.u32 %s419_s14, 8  ;;  %946 = vmatprep.subr.bf16.mxu0 %v4180_v0  ;;  %3984 = vmatprep.subr.bf16.mxu1 %v4180_v0  ;;  %v4183_v2 = vld [vmem:[%s5130_s20 + $0x14] ss:$8 sps:$4 sm:$0xff]   ;;  %v4185_v3 = vld [vmem:[%s5130_s20 + $0x10] ss:$8 sps:$4 sm:$0xff]   ;;  %s6472_s8 = sld [smem:[#allocation24_spill]] }
  0xd7   : > { %947 = vmatpush1.bf16.msra.mxu0 %v4182_v1  ;;  %4000 = vmatpush1.bf16.msra.mxu1 %v4182_v1  ;;  %v4186_v4 = vld [vmem:[%s5130_s20 + $0x24] ss:$8 sps:$4 sm:$0xff]   ;;  %v4188_v5 = vld [vmem:[%s5130_s20 + $0x20] ss:$8 sps:$4 sm:$0xff]   ;;  %v4189_v6 = vld [vmem:[%s5130_s20 + $0x34] ss:$8 sps:$4 sm:$0xff]  }
  0xd8   : > { %948 = vmatprep.subr.bf16.mxu0 %v4183_v2  ;;  %3985 = vmatprep.subr.bf16.mxu1 %v4183_v2  ;;  %v4191_v7 = vld [vmem:[%s5130_s20 + $0x30] ss:$8 sps:$4 sm:$0xff]   ;;  %v4192_v8 = vld [vmem:[%s5130_s20 + $0x44] ss:$8 sps:$4 sm:$0xff]   ;;  %v4194_v9 = vld [vmem:[%s5130_s20 + $0x40] ss:$8 sps:$4 sm:$0xff]  }
  0xd9   : > { %v4195_v10 = vld [vmem:[%s5130_s20 + $0x54] ss:$8 sps:$4 sm:$0xff]   ;;  %v4197_v11 = vld [vmem:[%s5130_s20 + $0x50] ss:$8 sps:$4 sm:$0xff]   ;;  %v4198_v12 = vld [vmem:[%s5130_s20 + $0x64] ss:$8 sps:$4 sm:$0xff]  }
  0xda   : > { %v4230_v13 = vld [vmem:[%s5122_s28 + $0x4] ss:$8 sps:$4 sm:$0xff]   ;;  %v4200_v14 = vld [vmem:[%s5130_s20 + $0x60] ss:$8 sps:$4 sm:$0xff]   ;;  %v4201_v16 = vld [vmem:[%s5130_s20 + $0x74] ss:$8 sps:$4 sm:$0xff]  }
  0xdb   : > { %949 = vmatpush1.bf16.msra.mxu0 %v4185_v3  ;;  %4001 = vmatpush1.bf16.msra.mxu1 %v4185_v3  ;;  %v4233_v15 = vld [vmem:[%s5122_s28 + $0x84] ss:$8 sps:$4 sm:$0xff]   ;;  %v4203_v17 = vld [vmem:[%s5130_s20 + $0x70] ss:$8 sps:$4 sm:$0xff]   ;;  %v4206_v19 = vld [vmem:[%s5130_s20 + $0x80] ss:$8 sps:$4 sm:$0xff]  }
  0xdc   : > { %950 = vmatprep.subr.bf16.mxu0 %v4186_v4  ;;  %3986 = vmatprep.subr.bf16.mxu1 %v4186_v4  ;;  %v4204_v18 = vld [vmem:[%s5130_s20 + $0x84] ss:$8 sps:$4 sm:$0xff]   ;;  %v4207_v20 = vld [vmem:[%s5130_s20 + $0x94] ss:$8 sps:$4 sm:$0xff]   ;;  %v4209_v21 = vld [vmem:[%s5130_s20 + $0x90] ss:$8 sps:$4 sm:$0xff]  }
  0xdd   : > { %978 = vmatprep.mubr.bf16.mxu0 %v4230_v13  ;;  %1058 = vmatprep.mubr.bf16.mxu1 %v4233_v15  ;;  %v4210_v22 = vld [vmem:[%s5130_s20 + $0xa4] ss:$8 sps:$4 sm:$0xff]   ;;  %v4212_v23 = vld [vmem:[%s5130_s20 + $0xa0] ss:$8 sps:$4 sm:$0xff]   ;;  %v4213_v24 = vld [vmem:[%s5130_s20 + $0xb4] ss:$8 sps:$4 sm:$0xff]  }
  0xde   : > { %v4215_v25 = vld [vmem:[%s5130_s20 + $0xb0] ss:$8 sps:$4 sm:$0xff]   ;;  %v4216_v26 = vld [vmem:[%s5130_s20 + $0xc4] ss:$8 sps:$4 sm:$0xff]   ;;  %v4218_v27 = vld [vmem:[%s5130_s20 + $0xc0] ss:$8 sps:$4 sm:$0xff]  }
  0xdf   : > { %951 = vmatpush1.bf16.msra.mxu0 %v4188_v5  ;;  %4002 = vmatpush1.bf16.msra.mxu1 %v4188_v5  ;;  %v4219_v28 = vld [vmem:[%s5130_s20 + $0xd4] ss:$8 sps:$4 sm:$0xff]   ;;  %v4221_v29 = vld [vmem:[%s5130_s20 + $0xd0] ss:$8 sps:$4 sm:$0xff]   ;;  %v4222_v30 = vld [vmem:[%s5130_s20 + $0xe4] ss:$8 sps:$4 sm:$0xff]  }
  0xe0   : > { %952 = vmatprep.subr.bf16.mxu0 %v4189_v6  ;;  %3987 = vmatprep.subr.bf16.mxu1 %v4189_v6  ;;  %v4224_v31 = vld [vmem:[%s5130_s20 + $0xe0] ss:$8 sps:$4 sm:$0xff]   ;;  %v4225_v32 = vld [vmem:[%s5130_s20 + $0xf4] ss:$8 sps:$4 sm:$0xff]   ;;  %v4227_v33 = vld [vmem:[%s5130_s20 + $0xf0] ss:$8 sps:$4 sm:$0xff]  }
  0xe1   : > { %v4228_v34 = vld [vmem:[%s5122_s28] ss:$8 sps:$4 sm:$0xff]   ;;  %v4234_v36 = vld [vmem:[%s5122_s28 + $0x14] ss:$8 sps:$4 sm:$0xff]   ;;  %v4238_v38 = vld [vmem:[%s5122_s28 + $0x10] ss:$8 sps:$4 sm:$0xff]  }
  0xe2   : > { %v4231_v35 = vld [vmem:[%s5122_s28 + $0x80] ss:$8 sps:$4 sm:$0xff]   ;;  %v4236_v37 = vld [vmem:[%s5122_s28 + $0x94] ss:$8 sps:$4 sm:$0xff]   ;;  %v4239_v39 = vld [vmem:[%s5122_s28 + $0x90] ss:$8 sps:$4 sm:$0xff]  }
  0xe3   : > { %953 = vmatpush1.bf16.msra.mxu0 %v4191_v7  ;;  %4003 = vmatpush1.bf16.msra.mxu1 %v4191_v7  ;;  %v4240_v40 = vld [vmem:[%s5122_s28 + $0x24] ss:$8 sps:$4 sm:$0xff]   ;;  %v4244_v42 = vld [vmem:[%s5122_s28 + $0x20] ss:$8 sps:$4 sm:$0xff]   ;;  %v4246_v44 = vld [vmem:[%s5122_s28 + $0x34] ss:$8 sps:$4 sm:$0xff]  }
  0xe4   : > { %954 = vmatprep.subr.bf16.mxu0 %v4192_v8  ;;  %3988 = vmatprep.subr.bf16.mxu1 %v4192_v8  ;;  %v4242_v41 = vld [vmem:[%s5122_s28 + $0xa4] ss:$8 sps:$4 sm:$0xff]   ;;  %v4245_v43 = vld [vmem:[%s5122_s28 + $0xa0] ss:$8 sps:$4 sm:$0xff]   ;;  %v4248_v45 = vld [vmem:[%s5122_s28 + $0xb4] ss:$8 sps:$4 sm:$0xff]  }
  0xe5   : > { %v4250_v46 = vld [vmem:[%s5122_s28 + $0x30] ss:$8 sps:$4 sm:$0xff]   ;;  %v4252_v48 = vld [vmem:[%s5122_s28 + $0x44] ss:$8 sps:$4 sm:$0xff]   ;;  %v4256_v50 = vld [vmem:[%s5122_s28 + $0x40] ss:$8 sps:$4 sm:$0xff]  }
  0xe6   : > { %v4251_v47 = vld [vmem:[%s5122_s28 + $0xb0] ss:$8 sps:$4 sm:$0xff]   ;;  %v4254_v49 = vld [vmem:[%s5122_s28 + $0xc4] ss:$8 sps:$4 sm:$0xff]   ;;  %v4257_v51 = vld [vmem:[%s5122_s28 + $0xc0] ss:$8 sps:$4 sm:$0xff]  }
  0xe7   : > { %955 = vmatpush1.bf16.msra.mxu0 %v4194_v9  ;;  %4004 = vmatpush1.bf16.msra.mxu1 %v4194_v9  ;;  %v4258_v52 = vld [vmem:[%s5122_s28 + $0x54] ss:$8 sps:$4 sm:$0xff]   ;;  %v4262_v54 = vld [vmem:[%s5122_s28 + $0x50] ss:$8 sps:$4 sm:$0xff]   ;;  %v4264_v56 = vld [vmem:[%s5122_s28 + $0x64] ss:$8 sps:$4 sm:$0xff]  }
  0xe8   : > { %956 = vmatprep.subr.bf16.mxu0 %v4195_v10  ;;  %3989 = vmatprep.subr.bf16.mxu1 %v4195_v10  ;;  %v4260_v53 = vld [vmem:[%s5122_s28 + $0xd4] ss:$8 sps:$4 sm:$0xff]   ;;  %v4263_v55 = vld [vmem:[%s5122_s28 + $0xd0] ss:$8 sps:$4 sm:$0xff]   ;;  %v4266_v57 = vld [vmem:[%s5122_s28 + $0xe4] ss:$8 sps:$4 sm:$0xff]  }
  0xe9   : > { %v4268_v58 = vld [vmem:[%s5122_s28 + $0x60] ss:$8 sps:$4 sm:$0xff]   ;;  %v4270_v60 = vld [vmem:[%s5122_s28 + $0x74] ss:$8 sps:$4 sm:$0xff]   ;;  %v4274_v62 = vld [vmem:[%s5122_s28 + $0x70] ss:$8 sps:$4 sm:$0xff]  }
  0xea   : > { %v4269_v59 = vld [vmem:[%s5122_s28 + $0xe0] ss:$8 sps:$4 sm:$0xff]   ;;  %v4272_v61 = vld [vmem:[%s5122_s28 + $0xf4] ss:$8 sps:$4 sm:$0xff]   ;;  %v4275_v63 = vld [vmem:[%s5122_s28 + $0xf0] ss:$8 sps:$4 sm:$0xff]  }
  0xeb   : > { %957 = vmatpush1.bf16.msra.mxu0 %v4197_v11  ;;  %4005 = vmatpush1.bf16.msra.mxu1 %v4197_v11  ;;  %p1267_p0 = scmp.lt.s32.totalorder %s6472_s8, 2  ;;  %s5225_s17 = scalar_lea.vmem [#allocation12], %s5157_s9 }
  0xec   : > { %958 = vmatprep.subr.bf16.mxu0 %v4198_v12  ;;  %3990 = vmatprep.subr.bf16.mxu1 %v4198_v12 }
  0xef   : > { %959 = vmatpush1.bf16.msra.mxu0 %v4200_v14  ;;  %4006 = vmatpush1.bf16.msra.mxu1 %v4200_v14 }
  0xf0   : > { %960 = vmatprep.subr.bf16.mxu0 %v4201_v16  ;;  %3991 = vmatprep.subr.bf16.mxu1 %v4201_v16 }
  0xf3   : > { %961 = vmatpush1.bf16.msra.mxu0 %v4203_v17  ;;  %4007 = vmatpush1.bf16.msra.mxu1 %v4203_v17 }
  0xf4   : > { %962 = vmatprep.subr.bf16.mxu0 %v4204_v18  ;;  %3992 = vmatprep.subr.bf16.mxu1 %v4204_v18 }
  0xf7   : > { %963 = vmatpush1.bf16.msra.mxu0 %v4206_v19  ;;  %4008 = vmatpush1.bf16.msra.mxu1 %v4206_v19 }
  0xf8   : > { %964 = vmatprep.subr.bf16.mxu0 %v4207_v20  ;;  %3993 = vmatprep.subr.bf16.mxu1 %v4207_v20 }
  0xfb   : > { %965 = vmatpush1.bf16.msra.mxu0 %v4209_v21  ;;  %4009 = vmatpush1.bf16.msra.mxu1 %v4209_v21 }
  0xfc   : > { %966 = vmatprep.subr.bf16.mxu0 %v4210_v22  ;;  %3994 = vmatprep.subr.bf16.mxu1 %v4210_v22 }
  0xff   : > { %967 = vmatpush1.bf16.msra.mxu0 %v4212_v23  ;;  %4010 = vmatpush1.bf16.msra.mxu1 %v4212_v23 }
 0x100   : > { %968 = vmatprep.subr.bf16.mxu0 %v4213_v24  ;;  %3995 = vmatprep.subr.bf16.mxu1 %v4213_v24 }
 0x103   : > { %969 = vmatpush1.bf16.msra.mxu0 %v4215_v25  ;;  %4011 = vmatpush1.bf16.msra.mxu1 %v4215_v25 }
 0x104   : > { %970 = vmatprep.subr.bf16.mxu0 %v4216_v26  ;;  %3996 = vmatprep.subr.bf16.mxu1 %v4216_v26 }
 0x107   : > { %971 = vmatpush1.bf16.msra.mxu0 %v4218_v27  ;;  %4012 = vmatpush1.bf16.msra.mxu1 %v4218_v27 }
 0x108   : > { %972 = vmatprep.subr.bf16.mxu0 %v4219_v28  ;;  %3997 = vmatprep.subr.bf16.mxu1 %v4219_v28 }
 0x10b   : > { %973 = vmatpush1.bf16.msra.mxu0 %v4221_v29  ;;  %4013 = vmatpush1.bf16.msra.mxu1 %v4221_v29 }
 0x10c   : > { %974 = vmatprep.subr.bf16.mxu0 %v4222_v30  ;;  %3998 = vmatprep.subr.bf16.mxu1 %v4222_v30 }
 0x10f   : > { %975 = vmatpush1.bf16.msra.mxu0 %v4224_v31  ;;  %4014 = vmatpush1.bf16.msra.mxu1 %v4224_v31 }
 0x110   : > { %976 = vmatprep.subr.bf16.mxu0 %v4225_v32  ;;  %3999 = vmatprep.subr.bf16.mxu1 %v4225_v32 }
 0x113   : > { %977 = vmatpush1.bf16.msra.mxu0 %v4227_v33  ;;  %4015 = vmatpush1.bf16.msra.mxu1 %v4227_v33 }
 0x116   : > { %979 = vmatmul.mubr.bf16.vlgmr.msra.gmra.mrb[0].mxu0 %v4228_v34  ;;  %1059 = vmatmul.mubr.bf16.vlgmr.msra.gmra.mrb[0].mxu1 %v4231_v35 }
 0x117   : > { %988 = vmatprep.mubr.bf16.mxu0 %v4234_v36  ;;  %1068 = vmatprep.mubr.bf16.mxu1 %v4236_v37 }
 0x11e   : > { %989 = vmatmul.mubr.bf16.gmra.mrb[4].mxu0 %v4238_v38  ;;  %1069 = vmatmul.mubr.bf16.gmra.mrb[4].mxu1 %v4239_v39 }
 0x11f   : > { %998 = vmatprep.mubr.bf16.mxu0 %v4240_v40  ;;  %1078 = vmatprep.mubr.bf16.mxu1 %v4242_v41 }
 0x126   : > { %999 = vmatmul.mubr.bf16.gmra.mrb[8].mxu0 %v4244_v42  ;;  %1079 = vmatmul.mubr.bf16.gmra.mrb[8].mxu1 %v4245_v43 }
 0x127   : > { %1008 = vmatprep.mubr.bf16.mxu0 %v4246_v44  ;;  %1088 = vmatprep.mubr.bf16.mxu1 %v4248_v45 }
 0x12e   : > { %1009 = vmatmul.mubr.bf16.gmra.mrb[12].mxu0 %v4250_v46  ;;  %1089 = vmatmul.mubr.bf16.gmra.mrb[12].mxu1 %v4251_v47 }
 0x12f   : > { %1018 = vmatprep.mubr.bf16.mxu0 %v4252_v48  ;;  %1098 = vmatprep.mubr.bf16.mxu1 %v4254_v49 }
 0x136   : > { %1019 = vmatmul.mubr.bf16.gmra.mrb[16].mxu0 %v4256_v50  ;;  %1099 = vmatmul.mubr.bf16.gmra.mrb[16].mxu1 %v4257_v51 }
 0x137   : > { %1028 = vmatprep.mubr.bf16.mxu0 %v4258_v52  ;;  %1108 = vmatprep.mubr.bf16.mxu1 %v4260_v53 }
 0x13e   : > { %1029 = vmatmul.mubr.bf16.gmra.mrb[20].mxu0 %v4262_v54  ;;  %1109 = vmatmul.mubr.bf16.gmra.mrb[20].mxu1 %v4263_v55 }
 0x13f   : > { %1038 = vmatprep.mubr.bf16.mxu0 %v4264_v56  ;;  %1118 = vmatprep.mubr.bf16.mxu1 %v4266_v57 }
 0x146   : > { %1039 = vmatmul.mubr.bf16.gmra.mrb[24].mxu0 %v4268_v58  ;;  %1119 = vmatmul.mubr.bf16.gmra.mrb[24].mxu1 %v4269_v59 }
 0x147   : > { %1048 = vmatprep.mubr.bf16.mxu0 %v4270_v60  ;;  %1128 = vmatprep.mubr.bf16.mxu1 %v4272_v61 }
 0x14e   : > { %1049 = vmatmul.mubr.bf16.gmra.mrb[28].mxu0 %v4274_v62  ;;  %1129 = vmatmul.mubr.bf16.gmra.mrb[28].mxu1 %v4275_v63 }
 0x1e9   : > { %v980_v0 = vpop.f32.mrb[0].mxu0  ;;  %v1060_v1 = vpop.f32.mrb[0].mxu1 }
 0x1ea   : > { %v982_v2 = vpop.f32.mrb[1].mxu0  ;;  %v1062_v3 = vpop.f32.mrb[1].mxu1  ;;  %1203 = vst [vmem:[#allocation2] sm:$0xff] %v980_v0  ;;  %1235 = vst [vmem:[#allocation2 + $0x100] sm:$0xff] %v1060_v1 }
 0x1eb   : > { %v984_v4 = vpop.f32.mrb[2].mxu0  ;;  %v1064_v5 = vpop.f32.mrb[2].mxu1  ;;  %1204 = vst [vmem:[#allocation2 + $0x8] sm:$0xff] %v982_v2  ;;  %1236 = vst [vmem:[#allocation2 + $0x108] sm:$0xff] %v1062_v3 }
 0x1ec   : > { %v986_v6 = vpop.f32.mrb[3].mxu0  ;;  %v1066_v7 = vpop.f32.mrb[3].mxu1  ;;  %1205 = vst [vmem:[#allocation2 + $0x10] sm:$0xff] %v984_v4  ;;  %1237 = vst [vmem:[#allocation2 + $0x110] sm:$0xff] %v1064_v5 }
 0x1ed   : > { %1206 = vst [vmem:[#allocation2 + $0x18] sm:$0xff] %v986_v6  ;;  %1238 = vst [vmem:[#allocation2 + $0x118] sm:$0xff] %v1066_v7 }
 0x1f1   : > { %v990_v8 = vpop.f32.mrb[4].mxu0  ;;  %v1070_v9 = vpop.f32.mrb[4].mxu1 }
 0x1f2   : > { %v992_v10 = vpop.f32.mrb[5].mxu0  ;;  %v1072_v11 = vpop.f32.mrb[5].mxu1  ;;  %1207 = vst [vmem:[#allocation2 + $0x20] sm:$0xff] %v990_v8  ;;  %1239 = vst [vmem:[#allocation2 + $0x120] sm:$0xff] %v1070_v9 }
 0x1f3   : > { %v994_v12 = vpop.f32.mrb[6].mxu0  ;;  %v1074_v13 = vpop.f32.mrb[6].mxu1  ;;  %1208 = vst [vmem:[#allocation2 + $0x28] sm:$0xff] %v992_v10  ;;  %1240 = vst [vmem:[#allocation2 + $0x128] sm:$0xff] %v1072_v11 }
 0x1f4   : > { %v996_v14 = vpop.f32.mrb[7].mxu0  ;;  %v1076_v15 = vpop.f32.mrb[7].mxu1  ;;  %1209 = vst [vmem:[#allocation2 + $0x30] sm:$0xff] %v994_v12  ;;  %1241 = vst [vmem:[#allocation2 + $0x130] sm:$0xff] %v1074_v13 }
 0x1f5   : > { %1210 = vst [vmem:[#allocation2 + $0x38] sm:$0xff] %v996_v14  ;;  %1242 = vst [vmem:[#allocation2 + $0x138] sm:$0xff] %v1076_v15 }
 0x1f9   : > { %v1000_v16 = vpop.f32.mrb[8].mxu0  ;;  %v1080_v17 = vpop.f32.mrb[8].mxu1 }
 0x1fa   : > { %v1002_v18 = vpop.f32.mrb[9].mxu0  ;;  %v1082_v19 = vpop.f32.mrb[9].mxu1  ;;  %1211 = vst [vmem:[#allocation2 + $0x40] sm:$0xff] %v1000_v16  ;;  %1243 = vst [vmem:[#allocation2 + $0x140] sm:$0xff] %v1080_v17 }
 0x1fb   : > { %v1004_v20 = vpop.f32.mrb[10].mxu0  ;;  %v1084_v21 = vpop.f32.mrb[10].mxu1  ;;  %1212 = vst [vmem:[#allocation2 + $0x48] sm:$0xff] %v1002_v18  ;;  %1244 = vst [vmem:[#allocation2 + $0x148] sm:$0xff] %v1082_v19 }
 0x1fc   : > { %v1006_v22 = vpop.f32.mrb[11].mxu0  ;;  %v1086_v23 = vpop.f32.mrb[11].mxu1  ;;  %1213 = vst [vmem:[#allocation2 + $0x50] sm:$0xff] %v1004_v20  ;;  %1245 = vst [vmem:[#allocation2 + $0x150] sm:$0xff] %v1084_v21 }
 0x1fd   : > { %1214 = vst [vmem:[#allocation2 + $0x58] sm:$0xff] %v1006_v22  ;;  %1246 = vst [vmem:[#allocation2 + $0x158] sm:$0xff] %v1086_v23 }
 0x201   : > { %v1010_v24 = vpop.f32.mrb[12].mxu0  ;;  %v1090_v25 = vpop.f32.mrb[12].mxu1 }
 0x202   : > { %v1012_v26 = vpop.f32.mrb[13].mxu0  ;;  %v1092_v27 = vpop.f32.mrb[13].mxu1  ;;  %1215 = vst [vmem:[#allocation2 + $0x60] sm:$0xff] %v1010_v24  ;;  %1247 = vst [vmem:[#allocation2 + $0x160] sm:$0xff] %v1090_v25 }
 0x203   : > { %v1014_v28 = vpop.f32.mrb[14].mxu0  ;;  %v1094_v29 = vpop.f32.mrb[14].mxu1  ;;  %1216 = vst [vmem:[#allocation2 + $0x68] sm:$0xff] %v1012_v26  ;;  %1248 = vst [vmem:[#allocation2 + $0x168] sm:$0xff] %v1092_v27 }
 0x204   : > { %v1016_v30 = vpop.f32.mrb[15].mxu0  ;;  %v1096_v31 = vpop.f32.mrb[15].mxu1  ;;  %1217 = vst [vmem:[#allocation2 + $0x70] sm:$0xff] %v1014_v28  ;;  %1249 = vst [vmem:[#allocation2 + $0x170] sm:$0xff] %v1094_v29 }
 0x205   : > { %1218 = vst [vmem:[#allocation2 + $0x78] sm:$0xff] %v1016_v30  ;;  %1250 = vst [vmem:[#allocation2 + $0x178] sm:$0xff] %v1096_v31 }
 0x209   : > { %v1020_v32 = vpop.f32.mrb[16].mxu0  ;;  %v1100_v33 = vpop.f32.mrb[16].mxu1 }
 0x20a   : > { %v1022_v34 = vpop.f32.mrb[17].mxu0  ;;  %v1102_v35 = vpop.f32.mrb[17].mxu1  ;;  %1219 = vst [vmem:[#allocation2 + $0x80] sm:$0xff] %v1020_v32  ;;  %1251 = vst [vmem:[#allocation2 + $0x180] sm:$0xff] %v1100_v33 }
 0x20b   : > { %v1024_v36 = vpop.f32.mrb[18].mxu0  ;;  %v1104_v37 = vpop.f32.mrb[18].mxu1  ;;  %1220 = vst [vmem:[#allocation2 + $0x88] sm:$0xff] %v1022_v34  ;;  %1252 = vst [vmem:[#allocation2 + $0x188] sm:$0xff] %v1102_v35 }
 0x20c   : > { %v1026_v38 = vpop.f32.mrb[19].mxu0  ;;  %v1106_v39 = vpop.f32.mrb[19].mxu1  ;;  %1221 = vst [vmem:[#allocation2 + $0x90] sm:$0xff] %v1024_v36  ;;  %1253 = vst [vmem:[#allocation2 + $0x190] sm:$0xff] %v1104_v37 }
 0x20d   : > { %1222 = vst [vmem:[#allocation2 + $0x98] sm:$0xff] %v1026_v38  ;;  %1254 = vst [vmem:[#allocation2 + $0x198] sm:$0xff] %v1106_v39 }
 0x211   : > { %v1030_v40 = vpop.f32.mrb[20].mxu0  ;;  %v1110_v41 = vpop.f32.mrb[20].mxu1 }
 0x212   : > { %v1032_v42 = vpop.f32.mrb[21].mxu0  ;;  %v1112_v43 = vpop.f32.mrb[21].mxu1  ;;  %1223 = vst [vmem:[#allocation2 + $0xa0] sm:$0xff] %v1030_v40  ;;  %1255 = vst [vmem:[#allocation2 + $0x1a0] sm:$0xff] %v1110_v41 }
 0x213   : > { %v1034_v44 = vpop.f32.mrb[22].mxu0  ;;  %v1114_v45 = vpop.f32.mrb[22].mxu1  ;;  %1224 = vst [vmem:[#allocation2 + $0xa8] sm:$0xff] %v1032_v42  ;;  %1256 = vst [vmem:[#allocation2 + $0x1a8] sm:$0xff] %v1112_v43 }
 0x214   : > { %v1036_v46 = vpop.f32.mrb[23].mxu0  ;;  %v1116_v47 = vpop.f32.mrb[23].mxu1  ;;  %1225 = vst [vmem:[#allocation2 + $0xb0] sm:$0xff] %v1034_v44  ;;  %1257 = vst [vmem:[#allocation2 + $0x1b0] sm:$0xff] %v1114_v45 }
 0x215   : > { %1226 = vst [vmem:[#allocation2 + $0xb8] sm:$0xff] %v1036_v46  ;;  %1258 = vst [vmem:[#allocation2 + $0x1b8] sm:$0xff] %v1116_v47 }
 0x219   : > { %v1040_v48 = vpop.f32.mrb[24].mxu0  ;;  %v1120_v49 = vpop.f32.mrb[24].mxu1 }
 0x21a   : > { %v1042_v50 = vpop.f32.mrb[25].mxu0  ;;  %v1122_v51 = vpop.f32.mrb[25].mxu1  ;;  %1227 = vst [vmem:[#allocation2 + $0xc0] sm:$0xff] %v1040_v48  ;;  %1259 = vst [vmem:[#allocation2 + $0x1c0] sm:$0xff] %v1120_v49 }
 0x21b   : > { %v1044_v52 = vpop.f32.mrb[26].mxu0  ;;  %v1124_v53 = vpop.f32.mrb[26].mxu1  ;;  %1228 = vst [vmem:[#allocation2 + $0xc8] sm:$0xff] %v1042_v50  ;;  %1260 = vst [vmem:[#allocation2 + $0x1c8] sm:$0xff] %v1122_v51 }
 0x21c   : > { %v1046_v54 = vpop.f32.mrb[27].mxu0  ;;  %v1126_v55 = vpop.f32.mrb[27].mxu1  ;;  %1229 = vst [vmem:[#allocation2 + $0xd0] sm:$0xff] %v1044_v52  ;;  %1261 = vst [vmem:[#allocation2 + $0x1d0] sm:$0xff] %v1124_v53 }
 0x21d   : > { %1230 = vst [vmem:[#allocation2 + $0xd8] sm:$0xff] %v1046_v54  ;;  %1262 = vst [vmem:[#allocation2 + $0x1d8] sm:$0xff] %v1126_v55 }
 0x21f   : > { %1271 = sbr.rel (!%p1267_p0) target bundleno = 1157 (0x485), region = 68 }
 0x221   : > { %v1050_v56 = vpop.f32.mrb[28].mxu0  ;;  %v1130_v57 = vpop.f32.mrb[28].mxu1 }
 0x222   : > { %v1052_v58 = vpop.f32.mrb[29].mxu0  ;;  %v1132_v59 = vpop.f32.mrb[29].mxu1  ;;  %1231 = vst [vmem:[#allocation2 + $0xe0] sm:$0xff] %v1050_v56  ;;  %1263 = vst [vmem:[#allocation2 + $0x1e0] sm:$0xff] %v1130_v57 }
 0x223   : > { %v1054_v60 = vpop.f32.mrb[30].mxu0  ;;  %v1134_v61 = vpop.f32.mrb[30].mxu1  ;;  %1232 = vst [vmem:[#allocation2 + $0xe8] sm:$0xff] %v1052_v58  ;;  %1264 = vst [vmem:[#allocation2 + $0x1e8] sm:$0xff] %v1132_v59 }
 0x224   : > { %v1056_v62 = vpop.f32.mrb[31].mxu0  ;;  %v1136_v63 = vpop.f32.mrb[31].mxu1  ;;  %1233 = vst [vmem:[#allocation2 + $0xf0] sm:$0xff] %v1054_v60  ;;  %1265 = vst [vmem:[#allocation2 + $0x1f0] sm:$0xff] %v1134_v61 }
 0x225   : > { %1234 = vst [vmem:[#allocation2 + $0xf8] sm:$0xff] %v1056_v62  ;;  %1266 = vst [vmem:[#allocation2 + $0x1f8] sm:$0xff] %v1136_v63 }
 0x226   : > { %v5229_v0 = vld [vmem:[#allocation2] sm:$0xff]  ;;  %v5231_v1 = vld [vmem:[#allocation2 + $0x10] sm:$0xff]  ;;  %s4718_s11 = smov 64  }
 0x227   : > { %v5233_v2 = vld [vmem:[#allocation2 + $0x20] sm:$0xff]  ;;  %v1369_v3 = vmul.f32 %v5229_v0, %v5229_v0  ;;  %v5239_v5 = vld [vmem:[#allocation2 + $0x30] sm:$0xff]  ;;  %v1370_v6 = vmul.f32 %v5231_v1, %v5231_v1 }
 0x228   : > { %v1371_v4 = vmul.f32 %v5233_v2, %v5233_v2  ;;  %v1372_v7 = vmul.f32 %v5239_v5, %v5239_v5  ;;  %v5245_v8 = vld [vmem:[#allocation2 + $0x40] sm:$0xff]  ;;  %v5247_v9 = vld [vmem:[#allocation2 + $0x50] sm:$0xff] }
 0x229   : > { %1401 = vadd.xlane.f32.xlu0 %v1369_v3  ;;  %v1373_v10 = vmul.f32 %v5245_v8, %v5245_v8  ;;  %v1374_v11 = vmul.f32 %v5247_v9, %v5247_v9  ;;  %v5253_v12 = vld [vmem:[#allocation2 + $0x60] sm:$0xff]  ;;  %v5255_v13 = vld [vmem:[#allocation2 + $0x70] sm:$0xff] }
 0x22a   : > { %1405 = vadd.xlane.f32.xlu1 %v1371_v4  ;;  %v1375_v14 = vmul.f32 %v5253_v12, %v5253_v12  ;;  %v1376_v15 = vmul.f32 %v5255_v13, %v5255_v13  ;;  %v5261_v16 = vld [vmem:[#allocation2 + $0x80] sm:$0xff]  ;;  %v5263_v17 = vld [vmem:[#allocation2 + $0x90] sm:$0xff] }
 0x22b   : > { %v1377_v18 = vmul.f32 %v5261_v16, %v5261_v16  ;;  %v1378_v19 = vmul.f32 %v5263_v17, %v5263_v17  ;;  %v5269_v20 = vld [vmem:[#allocation2 + $0xa0] sm:$0xff]  ;;  %v5271_v21 = vld [vmem:[#allocation2 + $0xb0] sm:$0xff] }
 0x22c   : > { %v1379_v22 = vmul.f32 %v5269_v20, %v5269_v20  ;;  %v1380_v23 = vmul.f32 %v5271_v21, %v5271_v21  ;;  %v5277_v24 = vld [vmem:[#allocation2 + $0xc0] sm:$0xff]  ;;  %v5279_v25 = vld [vmem:[#allocation2 + $0xd0] sm:$0xff] }
 0x22d   : > { %1403 = vadd.xlane.f32.xlu0 %v1370_v6  ;;  %v1381_v26 = vmul.f32 %v5277_v24, %v5277_v24  ;;  %v1382_v27 = vmul.f32 %v5279_v25, %v5279_v25  ;;  %v5285_v28 = vld [vmem:[#allocation2 + $0xe0] sm:$0xff]  ;;  %v5287_v29 = vld [vmem:[#allocation2 + $0xf0] sm:$0xff] }
 0x22e   : > { %1407 = vadd.xlane.f32.xlu1 %v1372_v7  ;;  %v1383_v30 = vmul.f32 %v5285_v28, %v5285_v28  ;;  %v1384_v31 = vmul.f32 %v5287_v29, %v5287_v29  ;;  %v5293_v32 = vld [vmem:[#allocation2 + $0x100] sm:$0xff]  ;;  %v5295_v33 = vld [vmem:[#allocation2 + $0x110] sm:$0xff] }
 0x22f   : > { %v1385_v34 = vmul.f32 %v5293_v32, %v5293_v32  ;;  %v1386_v35 = vmul.f32 %v5295_v33, %v5295_v33  ;;  %v5301_v36 = vld [vmem:[#allocation2 + $0x120] sm:$0xff]  ;;  %v5303_v37 = vld [vmem:[#allocation2 + $0x130] sm:$0xff] }
 0x230   : > { %v1387_v38 = vmul.f32 %v5301_v36, %v5301_v36  ;;  %v1388_v39 = vmul.f32 %v5303_v37, %v5303_v37  ;;  %v5309_v40 = vld [vmem:[#allocation2 + $0x140] sm:$0xff]  ;;  %v5311_v41 = vld [vmem:[#allocation2 + $0x150] sm:$0xff] }
 0x231   : > { %1409 = vadd.xlane.f32.xlu0 %v1373_v10  ;;  %v1389_v42 = vmul.f32 %v5309_v40, %v5309_v40  ;;  %v1390_v43 = vmul.f32 %v5311_v41, %v5311_v41  ;;  %v5317_v44 = vld [vmem:[#allocation2 + $0x160] sm:$0xff]  ;;  %v5319_v45 = vld [vmem:[#allocation2 + $0x170] sm:$0xff] }
 0x232   : > { %1411 = vadd.xlane.f32.xlu1 %v1374_v11  ;;  %v1391_v46 = vmul.f32 %v5317_v44, %v5317_v44  ;;  %v1392_v47 = vmul.f32 %v5319_v45, %v5319_v45  ;;  %v5325_v48 = vld [vmem:[#allocation2 + $0x180] sm:$0xff]  ;;  %v5327_v49 = vld [vmem:[#allocation2 + $0x190] sm:$0xff] }
 0x233   : > { %v1393_v50 = vmul.f32 %v5325_v48, %v5325_v48  ;;  %v1394_v51 = vmul.f32 %v5327_v49, %v5327_v49  ;;  %v5333_v52 = vld [vmem:[#allocation2 + $0x1a0] sm:$0xff]  ;;  %v5335_v53 = vld [vmem:[#allocation2 + $0x1b0] sm:$0xff] }
 0x234   : > { %v1395_v54 = vmul.f32 %v5333_v52, %v5333_v52  ;;  %v1396_v55 = vmul.f32 %v5335_v53, %v5335_v53  ;;  %v5341_v56 = vld [vmem:[#allocation2 + $0x1c0] sm:$0xff]  ;;  %v5343_v57 = vld [vmem:[#allocation2 + $0x1d0] sm:$0xff] }
 0x235   : > { %1413 = vadd.xlane.f32.xlu0 %v1375_v14  ;;  %v1397_v58 = vmul.f32 %v5341_v56, %v5341_v56  ;;  %v1398_v59 = vmul.f32 %v5343_v57, %v5343_v57  ;;  %v1367_v60 = vld [vmem:[#allocation2 + $0x1e0] sm:$0xff]  ;;  %v1368_v61 = vld [vmem:[#allocation2 + $0x1f0] sm:$0xff] }
 0x236   : > { %1415 = vadd.xlane.f32.xlu1 %v1376_v15  ;;  %v1399_v62 = vmul.f32 %v1367_v60, %v1367_v60  ;;  %v1400_v63 = vmul.f32 %v1368_v61, %v1368_v61 }
 0x239   : > { %1417 = vadd.xlane.f32.xlu0 %v1377_v18 }
 0x23a   : > { %1419 = vadd.xlane.f32.xlu1 %v1378_v19 }
 0x23d   : > { %1421 = vadd.xlane.f32.xlu0 %v1379_v22 }
 0x23e   : > { %1423 = vadd.xlane.f32.xlu1 %v1380_v23 }
 0x241   : > { %1425 = vadd.xlane.f32.xlu0 %v1381_v26 }
 0x242   : > { %1427 = vadd.xlane.f32.xlu1 %v1382_v27 }
 0x245   : > { %1429 = vadd.xlane.f32.xlu0 %v1383_v30 }
 0x246   : > { %1431 = vadd.xlane.f32.xlu1 %v1384_v31 }
 0x249   : > { %1433 = vadd.xlane.f32.xlu0 %v1385_v34 }
 0x24a   : > { %1435 = vadd.xlane.f32.xlu1 %v1386_v35 }
 0x24d   : > { %1437 = vadd.xlane.f32.xlu0 %v1387_v38 }
 0x24e   : > { %1439 = vadd.xlane.f32.xlu1 %v1388_v39 }
 0x251   : > { %1441 = vadd.xlane.f32.xlu0 %v1389_v42 }
 0x252   : > { %1443 = vadd.xlane.f32.xlu1 %v1390_v43 }
 0x255   : > { %1445 = vadd.xlane.f32.xlu0 %v1391_v46 }
 0x256   : > { %1447 = vadd.xlane.f32.xlu1 %v1392_v47 }
 0x259   : > { %1449 = vadd.xlane.f32.xlu0 %v1393_v50 }
 0x25a   : > { %1451 = vadd.xlane.f32.xlu1 %v1394_v51  ;;  %v5350_v51 = vld [vmem:[%s5148_s22] ss:$0 sm:$0xff] }
 0x25d   : > { %1453 = vadd.xlane.f32.xlu0 %v1395_v54 }
 0x25e   : > { %1455 = vadd.xlane.f32.xlu1 %v1396_v55 }
 0x261   : > { %1457 = vadd.xlane.f32.xlu0 %v1397_v58 }
 0x262   : > { %1459 = vadd.xlane.f32.xlu1 %v1398_v59 }
 0x265   : > { %1461 = vadd.xlane.f32.xlu0 %v1399_v62 }
 0x266   : > { %1463 = vadd.xlane.f32.xlu1 %v1400_v63 }
 0x2b6   : > { %v1402_v3 = vpop.xlane.xlu0 %1401 }
 0x2b7   : > { %v1406_v4 = vpop.xlane.xlu1 %1405  ;;  %v1466_v6 = vmul.f32 0.0078125, %v1402_v3 }
 0x2b8   : > { %v1468_v7 = vmul.f32 0.0078125, %v1406_v4 }
 0x2b9   : > { %v1498_v10 = vadd.f32 1e-06, %v1466_v6 }
 0x2ba   : > { %v1500_v11 = vadd.f32 1e-06, %v1468_v7  ;;  %v1404_v14 = vpop.xlane.xlu0 %1403 }
 0x2bb   : > { %v1408_v15 = vpop.xlane.xlu1 %1407  ;;  %4276 = vrsqrt.f32 %v1498_v10  ;;  %v1467_v18 = vmul.f32 0.0078125, %v1404_v14 }
 0x2bc   : > { %v1469_v19 = vmul.f32 0.0078125, %v1408_v15  ;;  %4278 = vrsqrt.f32 %v1500_v11 }
 0x2bd   : > { %v1499_v22 = vadd.f32 1e-06, %v1467_v18 }
 0x2be   : > { %v1501_v23 = vadd.f32 1e-06, %v1469_v19  ;;  %v1410_v26 = vpop.xlane.xlu0 %1409 }
 0x2bf   : > { %v1412_v27 = vpop.xlane.xlu1 %1411  ;;  %4280 = vrsqrt.f32 %v1499_v22  ;;  %v1470_v30 = vmul.f32 0.0078125, %v1410_v26 }
 0x2c0   : > { %v1471_v31 = vmul.f32 0.0078125, %v1412_v27  ;;  %4282 = vrsqrt.f32 %v1501_v23 }
 0x2c1   : > { %v1502_v34 = vadd.f32 1e-06, %v1470_v30 }
 0x2c2   : > { %v1503_v35 = vadd.f32 1e-06, %v1471_v31  ;;  %v1414_v38 = vpop.xlane.xlu0 %1413 }
 0x2c3   : > { %v1416_v39 = vpop.xlane.xlu1 %1415  ;;  %4284 = vrsqrt.f32 %v1502_v34  ;;  %v1472_v42 = vmul.f32 0.0078125, %v1414_v38 }
 0x2c4   : > { %v1473_v43 = vmul.f32 0.0078125, %v1416_v39  ;;  %4286 = vrsqrt.f32 %v1503_v35 }
 0x2c5   : > { %v4277_v46 = vpop.eup %4276  ;;  %v1504_v47 = vadd.f32 1e-06, %v1472_v42 }
 0x2c6   : > { %v1505_v50 = vadd.f32 1e-06, %v1473_v43  ;;  %v1418_v54 = vpop.xlane.xlu0 %1417  ;;  %v1562_v55 = vmul.f32 %v4277_v46, %v5229_v0  ;;  %v4279_v59 = vpop.eup %4278 }
 0x2c7   : > { %v1420_v58 = vpop.xlane.xlu1 %1419  ;;  %4288 = vrsqrt.f32 %v1504_v47  ;;  %v1474_v60 = vmul.f32 0.0078125, %v1418_v54  ;;  %v1564_v10 = vmul.f32 %v4279_v59, %v5233_v2 }
 0x2c8   : > { %v1475_v61 = vmul.f32 0.0078125, %v1420_v58  ;;  %v5354_v62 = vmul.f32 %v5350_v51, %v1562_v55  ;;  %4290 = vrsqrt.f32 %v1505_v50 }
 0x2c9   : > { %v4281_v63 = vpop.eup %4280  ;;  %v1506_v3 = vadd.f32 1e-06, %v1474_v60 }
 0x2ca   : > { %v1507_v4 = vadd.f32 1e-06, %v1475_v61  ;;  %v1422_v6 = vpop.xlane.xlu0 %1421  ;;  %1664 = vrot.lane.b32.xlu0 %v5354_v62, %s4718_s11  ;;  %v1563_v7 = vmul.f32 %v4281_v63, %v5231_v1  ;;  %v4283_v11 = vpop.eup %4282  ;;  %v5366_v1 = vmul.f32 %v5350_v51, %v1564_v10 }
 0x2cb   : > { %v1424_v0 = vpop.xlane.xlu1 %1423  ;;  %4292 = vrsqrt.f32 %v1506_v3  ;;  %v1476_v14 = vmul.f32 0.0078125, %v1422_v6  ;;  %v1565_v30 = vmul.f32 %v4283_v11, %v5239_v5 }
 0x2cc   : > { %v1477_v15 = vmul.f32 0.0078125, %v1424_v0  ;;  %v5361_v18 = vmul.f32 %v5350_v51, %v1563_v7  ;;  %4294 = vrsqrt.f32 %v1507_v4 }
 0x2cd   : > { %v4285_v19 = vpop.eup %4284  ;;  %v1508_v22 = vadd.f32 1e-06, %v1476_v14  ;;  %v5378_v5 = vmul.f32 %v5350_v51, %v1565_v30 }
 0x2ce   : > { %v1509_v23 = vadd.f32 1e-06, %v1477_v15  ;;  %v1426_v26 = vpop.xlane.xlu0 %1425  ;;  %1666 = vrot.lane.b32.xlu1 %v5361_v18, %s4718_s11  ;;  %v1566_v2 = vmul.f32 %v4285_v19, %v5245_v8  ;;  %v4287_v31 = vpop.eup %4286 }
 0x2cf   : > { %v1428_v27 = vpop.xlane.xlu1 %1427  ;;  %4296 = vrsqrt.f32 %v1508_v22  ;;  %v1478_v34 = vmul.f32 0.0078125, %v1426_v26  ;;  %v1567_v50 = vmul.f32 %v4287_v31, %v5247_v9 }
 0x2d0   : > { %v1479_v35 = vmul.f32 0.0078125, %v1428_v27  ;;  %v5371_v38 = vmul.f32 %v5350_v51, %v1566_v2  ;;  %4298 = vrsqrt.f32 %v1509_v23 }
 0x2d1   : > { %v4289_v39 = vpop.eup %4288  ;;  %v1510_v42 = vadd.f32 1e-06, %v1478_v34  ;;  %v5390_v9 = vmul.f32 %v5350_v51, %v1567_v50 }
 0x2d2   : > { %v1511_v43 = vadd.f32 1e-06, %v1479_v35  ;;  %v1430_v46 = vpop.xlane.xlu0 %1429  ;;  %1668 = vrot.lane.b32.xlu1 %v5366_v1, %s4718_s11  ;;  %1672 = vrot.lane.b32.xlu0 %v5371_v38, %s4718_s11  ;;  %v1568_v8 = vmul.f32 %v4289_v39, %v5253_v12  ;;  %v4291_v54 = vpop.eup %4290 }
 0x2d3   : > { %v1432_v47 = vpop.xlane.xlu1 %1431  ;;  %4300 = vrsqrt.f32 %v1510_v42  ;;  %v1480_v55 = vmul.f32 0.0078125, %v1430_v46  ;;  %v1569_v6 = vmul.f32 %v4291_v54, %v5255_v13 }
 0x2d4   : > { %v1481_v58 = vmul.f32 0.0078125, %v1432_v47  ;;  %v5383_v59 = vmul.f32 %v5350_v51, %v1568_v8  ;;  %4302 = vrsqrt.f32 %v1511_v43 }
 0x2d5   : > { %v4293_v60 = vpop.eup %4292  ;;  %v1512_v61 = vadd.f32 1e-06, %v1480_v55  ;;  %v5402_v13 = vmul.f32 %v5350_v51, %v1569_v6 }
 0x2d6   : > { %v1513_v63 = vadd.f32 1e-06, %v1481_v58  ;;  %v1434_v3 = vpop.xlane.xlu0 %1433  ;;  %1670 = vrot.lane.b32.xlu1 %v5378_v5, %s4718_s11  ;;  %1676 = vrot.lane.b32.xlu0 %v5383_v59, %s4718_s11  ;;  %v1570_v12 = vmul.f32 %v4293_v60, %v5261_v16  ;;  %v4295_v7 = vpop.eup %4294 }
 0x2d7   : > { %v1436_v4 = vpop.xlane.xlu1 %1435  ;;  %4304 = vrsqrt.f32 %v1512_v61  ;;  %v1482_v0 = vmul.f32 0.0078125, %v1434_v3  ;;  %v1571_v26 = vmul.f32 %v4295_v7, %v5263_v17 }
 0x2d8   : > { %v1483_v10 = vmul.f32 0.0078125, %v1436_v4  ;;  %v5395_v11 = vmul.f32 %v5350_v51, %v1570_v12  ;;  %4306 = vrsqrt.f32 %v1513_v63 }
 0x2d9   : > { %v4297_v14 = vpop.eup %4296  ;;  %v1514_v15 = vadd.f32 1e-06, %v1482_v0  ;;  %v5414_v17 = vmul.f32 %v5350_v51, %v1571_v26 }
 0x2da   : > { %v1515_v19 = vadd.f32 1e-06, %v1483_v10  ;;  %v1438_v22 = vpop.xlane.xlu0 %1437  ;;  %1674 = vrot.lane.b32.xlu1 %v5390_v9, %s4718_s11  ;;  %1680 = vrot.lane.b32.xlu0 %v5395_v11, %s4718_s11  ;;  %v1572_v16 = vmul.f32 %v4297_v14, %v5269_v20  ;;  %v4299_v2 = vpop.eup %4298 }
 0x2db   : > { %v1440_v23 = vpop.xlane.xlu1 %1439  ;;  %4308 = vrsqrt.f32 %v1514_v15  ;;  %v1484_v27 = vmul.f32 0.0078125, %v1438_v22  ;;  %v1573_v46 = vmul.f32 %v4299_v2, %v5271_v21 }
 0x2dc   : > { %v1485_v30 = vmul.f32 0.0078125, %v1440_v23  ;;  %v5407_v31 = vmul.f32 %v5350_v51, %v1572_v16  ;;  %4310 = vrsqrt.f32 %v1515_v19 }
 0x2dd   : > { %v4301_v34 = vpop.eup %4300  ;;  %v1516_v35 = vadd.f32 1e-06, %v1484_v27  ;;  %v5426_v21 = vmul.f32 %v5350_v51, %v1573_v46 }
 0x2de   : > { %v1517_v39 = vadd.f32 1e-06, %v1485_v30  ;;  %v1442_v42 = vpop.xlane.xlu0 %1441  ;;  %1678 = vrot.lane.b32.xlu1 %v5402_v13, %s4718_s11  ;;  %1684 = vrot.lane.b32.xlu0 %v5407_v31, %s4718_s11  ;;  %v1574_v20 = vmul.f32 %v4301_v34, %v5277_v24  ;;  %v4303_v8 = vpop.eup %4302 }
 0x2df   : > { %v1444_v43 = vpop.xlane.xlu1 %1443  ;;  %4312 = vrsqrt.f32 %v1516_v35  ;;  %v1486_v47 = vmul.f32 0.0078125, %v1442_v42  ;;  %v1575_v3 = vmul.f32 %v4303_v8, %v5279_v25 }
 0x2e0   : > { %v1487_v50 = vmul.f32 0.0078125, %v1444_v43  ;;  %v5419_v54 = vmul.f32 %v5350_v51, %v1574_v20  ;;  %4314 = vrsqrt.f32 %v1517_v39 }
 0x2e1   : > { %v4305_v55 = vpop.eup %4304  ;;  %v1518_v58 = vadd.f32 1e-06, %v1486_v47  ;;  %v5438_v25 = vmul.f32 %v5350_v51, %v1575_v3 }
 0x2e2   : > { %v1519_v60 = vadd.f32 1e-06, %v1487_v50  ;;  %v1446_v61 = vpop.xlane.xlu0 %1445  ;;  %1682 = vrot.lane.b32.xlu1 %v5414_v17, %s4718_s11  ;;  %1688 = vrot.lane.b32.xlu0 %v5419_v54, %s4718_s11  ;;  %v1576_v24 = vmul.f32 %v4305_v55, %v5285_v28  ;;  %v4307_v12 = vpop.eup %4306 }
 0x2e3   : > { %v1448_v63 = vpop.xlane.xlu1 %1447  ;;  %4316 = vrsqrt.f32 %v1518_v58  ;;  %v1488_v4 = vmul.f32 0.0078125, %v1446_v61  ;;  %v1577_v22 = vmul.f32 %v4307_v12, %v5287_v29 }
 0x2e4   : > { %v1489_v6 = vmul.f32 0.0078125, %v1448_v63  ;;  %v5431_v7 = vmul.f32 %v5350_v51, %v1576_v24  ;;  %4318 = vrsqrt.f32 %v1519_v60 }
 0x2e5   : > { %v4309_v0 = vpop.eup %4308  ;;  %v1520_v10 = vadd.f32 1e-06, %v1488_v4  ;;  %v5450_v29 = vmul.f32 %v5350_v51, %v1577_v22 }
 0x2e6   : > { %v1521_v14 = vadd.f32 1e-06, %v1489_v6  ;;  %v1450_v15 = vpop.xlane.xlu0 %1449  ;;  %1686 = vrot.lane.b32.xlu1 %v5426_v21, %s4718_s11  ;;  %1692 = vrot.lane.b32.xlu0 %v5431_v7, %s4718_s11  ;;  %v1578_v28 = vmul.f32 %v4309_v0, %v5293_v32  ;;  %v4311_v16 = vpop.eup %4310 }
 0x2e7   : > { %v1452_v19 = vpop.xlane.xlu1 %1451  ;;  %4320 = vrsqrt.f32 %v1520_v10  ;;  %v1490_v23 = vmul.f32 0.0078125, %v1450_v15  ;;  %v1579_v42 = vmul.f32 %v4311_v16, %v5295_v33 }
 0x2e8   : > { %v1491_v26 = vmul.f32 0.0078125, %v1452_v19  ;;  %v5443_v2 = vmul.f32 %v5350_v51, %v1578_v28  ;;  %4322 = vrsqrt.f32 %v1521_v14 }
 0x2e9   : > { %v4313_v27 = vpop.eup %4312  ;;  %v1522_v30 = vadd.f32 1e-06, %v1490_v23  ;;  %v5462_v33 = vmul.f32 %v5350_v51, %v1579_v42 }
 0x2ea   : > { %v1523_v34 = vadd.f32 1e-06, %v1491_v26  ;;  %v1454_v35 = vpop.xlane.xlu0 %1453  ;;  %1690 = vrot.lane.b32.xlu1 %v5438_v25, %s4718_s11  ;;  %1696 = vrot.lane.b32.xlu0 %v5443_v2, %s4718_s11  ;;  %v1580_v32 = vmul.f32 %v4313_v27, %v5301_v36  ;;  %v4315_v20 = vpop.eup %4314 }
 0x2eb   : > { %v1456_v39 = vpop.xlane.xlu1 %1455  ;;  %4324 = vrsqrt.f32 %v1522_v30  ;;  %v1492_v43 = vmul.f32 0.0078125, %v1454_v35  ;;  %v1581_v61 = vmul.f32 %v4315_v20, %v5303_v37 }
 0x2ec   : > { %v1493_v46 = vmul.f32 0.0078125, %v1456_v39  ;;  %v5455_v8 = vmul.f32 %v5350_v51, %v1580_v32  ;;  %4326 = vrsqrt.f32 %v1523_v34 }
 0x2ed   : > { %v4317_v47 = vpop.eup %4316  ;;  %v1524_v50 = vadd.f32 1e-06, %v1492_v43 }
 0x2ee   : > { %v1525_v55 = vadd.f32 1e-06, %v1493_v46  ;;  %v1458_v58 = vpop.xlane.xlu0 %1457  ;;  %1694 = vrot.lane.b32.xlu1 %v5450_v29, %s4718_s11  ;;  %1700 = vrot.lane.b32.xlu0 %v5455_v8, %s4718_s11  ;;  %v1582_v36 = vmul.f32 %v4317_v47, %v5309_v40  ;;  %v4319_v24 = vpop.eup %4318  ;;  %v5474_v40 = vmul.f32 %v5350_v51, %v1581_v61  ;;  %v5536_v46 = vld [vmem:[#allocation2 + $0x28] sm:$0xff]  ;;  %v5540_v47 = vld [vmem:[#allocation2 + $0x38] sm:$0xff] }
 0x2ef   : > { %v1460_v60 = vpop.xlane.xlu1 %1459  ;;  %4328 = vrsqrt.f32 %v1524_v50  ;;  %v1494_v63 = vmul.f32 0.0078125, %v1458_v58  ;;  %v1583_v10 = vmul.f32 %v4319_v24, %v5311_v41  ;;  %v1987_v50 = vmul.f32 %v5540_v47, %v5540_v47  ;;  %v5546_v58 = vld [vmem:[#allocation2 + $0x18] sm:$0xff]  ;;  %v5552_v61 = vld [vmem:[#allocation2 + $0x68] sm:$0xff] }
 0x2f0   : > { %v1495_v3 = vmul.f32 0.0078125, %v1460_v60  ;;  %v5467_v12 = vmul.f32 %v5350_v51, %v1582_v36  ;;  %4330 = vrsqrt.f32 %v1525_v55  ;;  %v5544_v55 = vld [vmem:[#allocation2 + $0x48] sm:$0xff]  ;;  %v1985_v60 = vmul.f32 %v5546_v58, %v5546_v58  ;;  %v5554_v24 = vld [vmem:[#allocation2 + $0x58] sm:$0xff] }
 0x2f1   : > { %v4321_v4 = vpop.eup %4320  ;;  %v1526_v6 = vadd.f32 1e-06, %v1494_v63  ;;  %v5486_v19 = vmul.f32 %v5350_v51, %v1583_v10  ;;  %v1988_v36 = vmul.f32 %v5544_v55, %v5544_v55  ;;  %v1990_v63 = vmul.f32 %v5552_v61, %v5552_v61  ;;  %v5568_v10 = vld [vmem:[#allocation2 + $0xa8] sm:$0xff] }
 0x2f2   : > { %v1527_v0 = vadd.f32 1e-06, %v1495_v3  ;;  %1698 = vrot.lane.b32.xlu1 %v5462_v33, %s4718_s11  ;;  %1704 = vrot.lane.b32.xlu0 %v5467_v12, %s4718_s11  ;;  %v1584_v37 = vmul.f32 %v4321_v4, %v5317_v44  ;;  %v4323_v14 = vpop.eup %4322  ;;  %v1989_v3 = vmul.f32 %v5554_v24, %v5554_v24  ;;  %v5560_v4 = vld [vmem:[#allocation2 + $0x88] sm:$0xff] }
 0x2f3   : > { %4332 = vrsqrt.f32 %v1526_v6  ;;  %v1585_v41 = vmul.f32 %v4323_v14, %v5319_v45  ;;  %v5562_v6 = vld [vmem:[#allocation2 + $0x78] sm:$0xff] }
 0x2f4   : > { %v5479_v15 = vmul.f32 %v5350_v51, %v1584_v37  ;;  %4334 = vrsqrt.f32 %v1527_v0  ;;  %v1992_v0 = vmul.f32 %v5560_v4, %v5560_v4  ;;  %v1991_v37 = vmul.f32 %v5562_v6, %v5562_v6  ;;  %v5570_v14 = vld [vmem:[#allocation2 + $0x98] sm:$0xff] }
 0x2f5   : > { %v4325_v28 = vpop.eup %4324  ;;  %v5498_v26 = vmul.f32 %v5350_v51, %v1585_v41  ;;  %6473 = vst [vmem:[#allocation36_spill] sm:$0xff] %v5570_v14  ;;  %v1993_v41 = vmul.f32 %v5570_v14, %v5570_v14 }
 0x2f6   : > { %1702 = vrot.lane.b32.xlu1 %v5474_v40, %s4718_s11  ;;  %1708 = vrot.lane.b32.xlu0 %v5479_v15, %s4718_s11  ;;  %v1586_v44 = vmul.f32 %v4325_v28, %v5325_v48  ;;  %v4327_v22 = vpop.eup %4326  ;;  %v1994_v28 = vmul.f32 %v5568_v10, %v5568_v10 }
 0x2f7   : > { %v1587_v48 = vmul.f32 %v4327_v22, %v5327_v49  ;;  %v5578_v22 = vld [vmem:[#allocation2 + $0xc8] sm:$0xff] }
 0x2f8   : > { %v5491_v16 = vmul.f32 %v5350_v51, %v1586_v44  ;;  %v5574_v44 = vpop.xlane.xlu0 %1461  ;;  %6474 = vst [vmem:[#allocation37_spill] sm:$0xff] %v5578_v22 }
 0x2f9   : > { %v4329_v23 = vpop.eup %4328  ;;  %v5510_v35 = vmul.f32 %v5350_v51, %v1587_v48  ;;  %v5584_v48 = vpop.xlane.xlu1 %1463 }
 0x2fa   : > { %1706 = vrot.lane.b32.xlu1 %v5486_v19, %s4718_s11  ;;  %1712 = vrot.lane.b32.xlu0 %v5491_v16, %s4718_s11  ;;  %v1588_v27 = vmul.f32 %v4329_v23, %v5333_v52  ;;  %v4331_v30 = vpop.eup %4330  ;;  %v5580_v23 = vld [vmem:[#allocation2 + $0xb8] sm:$0xff] }
 0x2fb   : > { %v1589_v52 = vmul.f32 %v4331_v30, %v5335_v53  ;;  %6475 = vst [vmem:[#allocation38_spill] sm:$0xff] %v5580_v23  ;;  %v1995_v30 = vmul.f32 %v5580_v23, %v5580_v23  ;;  %v1276_v23 = vld [vmem:[%s5136_s13 + $0x20] sm:$0xff] }
 0x2fc   : > { %v5503_v45 = vmul.f32 %v5350_v51, %v1588_v27  ;;  %v1996_v27 = vmul.f32 %v5578_v22, %v5578_v22 }
 0x2fd   : > { %v4333_v34 = vpop.eup %4332  ;;  %v5522_v42 = vmul.f32 %v5350_v51, %v1589_v52 }
 0x2fe   : > { %1710 = vrot.lane.b32.xlu1 %v5498_v26, %s4718_s11  ;;  %1716 = vrot.lane.b32.xlu0 %v5503_v45, %s4718_s11  ;;  %v1590_v32 = vmul.f32 %v4333_v34, %v5341_v56  ;;  %v4335_v39 = vpop.eup %4334  ;;  %v5532_v56 = vld [vmem:[#allocation2 + $0x8] sm:$0xff] }
 0x2ff   : > { %v1591_v20 = vmul.f32 %v4335_v39, %v5343_v57  ;;  %v1984_v43 = vmul.f32 %v5532_v56, %v5532_v56  ;;  %v1986_v57 = vmul.f32 %v5536_v46, %v5536_v46  ;;  %v5588_v34 = vld [vmem:[#allocation2 + $0xe8] sm:$0xff]  ;;  %v1304_v39 = vld [vmem:[%s5142_s16] sm:$0xff] }
 0x300   : > { %v5515_v49 = vmul.f32 %v5350_v51, %v1590_v32  ;;  %6476 = vst [vmem:[#allocation39_spill] sm:$0xff] %v5588_v34  ;;  %v5590_v32 = vld [vmem:[#allocation2 + $0xd8] sm:$0xff] }
 0x301   : > { %v5528_v53 = vmul.f32 %v5350_v51, %v1591_v20  ;;  %6477 = vst [vmem:[#allocation40_spill] sm:$0xff] %v5590_v32  ;;  %v1272_v20 = vld [vmem:[%s5136_s13] sm:$0xff] }
 0x302   : > { %1714 = vrot.lane.b32.xlu1 %v5510_v35, %s4718_s11  ;;  %1720 = vrot.lane.b32.xlu0 %v5515_v49, %s4718_s11 }
 0x306   : > { %1718 = vrot.lane.b32.xlu1 %v5522_v42, %s4718_s11 }
 0x30a   : > { %1722 = vrot.lane.b32.xlu1 %v5528_v53, %s4718_s11 }
 0x321   : > { %2016 = vadd.xlane.f32.xlu0 %v1984_v43  ;;  %v1998_v43 = vmul.f32 %v5588_v34, %v5588_v34  ;;  %v5612_v34 = vld [vmem:[#allocation2 + $0x118] sm:$0xff] }
 0x322   : > { %6481 = vst [vmem:[#allocation44_spill] sm:$0xff] %v5612_v34 }
 0x325   : > { %2020 = vadd.xlane.f32.xlu0 %v1986_v57  ;;  %v1273_v57 = vld [vmem:[%s5136_s13 + $0x8] sm:$0xff] }
 0x329   : > { %2022 = vadd.xlane.f32.xlu0 %v1987_v50  ;;  %v1305_v50 = vld [vmem:[%s5142_s16 + $0x8] sm:$0xff] }
 0x32d   : > { %2024 = vadd.xlane.f32.xlu0 %v1988_v36  ;;  %v1997_v36 = vmul.f32 %v5590_v32, %v5590_v32 }
 0x32e   : > { %2018 = vadd.xlane.f32.xlu1 %v1985_v60  ;;  %v5600_v60 = vld [vmem:[#allocation2 + $0x108] sm:$0xff] }
 0x32f   : > { %6478 = vst [vmem:[#allocation41_spill] sm:$0xff] %v5600_v60 }
 0x331   : > { %2028 = vadd.xlane.f32.xlu0 %v1990_v63 }
 0x332   : > { %2026 = vadd.xlane.f32.xlu1 %v1989_v3  ;;  %v5602_v3 = vld [vmem:[#allocation2 + $0xf8] sm:$0xff] }
 0x333   : > { %6479 = vst [vmem:[#allocation42_spill] sm:$0xff] %v5602_v3 }
 0x335   : > { %2032 = vadd.xlane.f32.xlu0 %v1992_v0 }
 0x336   : > { %2030 = vadd.xlane.f32.xlu1 %v1991_v37  ;;  %v1632_v37 = vmul.f32 %v5354_v62, %v1272_v20 }
 0x339   : > { %2036 = vadd.xlane.f32.xlu0 %v1994_v28  ;;  %v1633_v28 = vmul.f32 %v5361_v18, %v1273_v57  ;;  %v1306_v18 = vld [vmem:[%s5142_s16 + $0x10] sm:$0xff] }
 0x33a   : > { %2034 = vadd.xlane.f32.xlu1 %v1993_v41  ;;  %v1274_v57 = vld [vmem:[%s5136_s13 + $0x10] sm:$0xff] }
 0x33c   : > { %v1665_v52 = vpop.permute.xlu0 %1664 }
 0x33d   : > { %2040 = vadd.xlane.f32.xlu0 %v1996_v27  ;;  %v1728_v63 = vmul.f32 %v1665_v52, %v1304_v39  ;;  %v2000_v27 = vmul.f32 %v5600_v60, %v5600_v60  ;;  %v5610_v52 = vld [vmem:[#allocation2 + $0x128] sm:$0xff] }
 0x33e   : > { %2038 = vadd.xlane.f32.xlu1 %v1995_v30  ;;  %v1999_v30 = vmul.f32 %v5602_v3, %v5602_v3  ;;  %6480 = vst [vmem:[#allocation43_spill] sm:$0xff] %v5610_v52  ;;  %v5632_v60 = vld [vmem:[#allocation2 + $0x168] sm:$0xff] }
 0x33f   : > { %v1760_v39 = vadd.f32 %v1728_v63, %v1632_v37  ;;  %v2001_v63 = vmul.f32 %v5612_v34, %v5612_v34  ;;  %v5622_v37 = vld [vmem:[#allocation2 + $0x148] sm:$0xff] }
 0x340   : > { %v1667_v0 = vpop.permute.xlu1 %1666  ;;  %6482 = vst [vmem:[#allocation45_spill] sm:$0xff] %v5622_v37  ;;  %v2004_v34 = vmul.f32 %v5622_v37, %v5622_v37 }
 0x341   : > { %v1729_v41 = vmul.f32 %v1667_v0, %v1305_v50  ;;  %2044 = vadd.xlane.f32.xlu0 %v1998_v43  ;;  %v2002_v50 = vmul.f32 %v5610_v52, %v5610_v52  ;;  %v1307_v0 = vld [vmem:[%s5142_s16 + $0x18] sm:$0xff] }
 0x342   : > { %2042 = vadd.xlane.f32.xlu1 %v1997_v36  ;;  %v1275_v36 = vld [vmem:[%s5136_s13 + $0x18] sm:$0xff] }
 0x343   : > { %v1761_v32 = vadd.f32 %v1729_v41, %v1633_v28  ;;  %v5625_v41 = vld [vmem:[#allocation2 + $0x138] sm:$0xff]  ;;  %v1635_v52 = vmul.f32 %v5378_v5, %v1275_v36 }
 0x344   : > { %v1669_v62 = vpop.permute.xlu1 %1668  ;;  %v1673_v20 = vpop.permute.xlu0 %1672  ;;  %6483 = vst [vmem:[#allocation46_spill] sm:$0xff] %v5625_v41 }
 0x345   : > { %v3605_v43 = vpack.c.bf16 %v1761_v32, %v1760_v39  ;;  %2048 = vadd.xlane.f32.xlu0 %v2000_v27  ;;  %v1730_v28 = vmul.f32 %v1669_v62, %v1306_v18  ;;  %v1308_v32 = vld [vmem:[%s5142_s16 + $0x20] sm:$0xff]  ;;  %v1277_v62 = vld [vmem:[%s5136_s13 + $0x28] sm:$0xff] }
 0x346   : > { %2046 = vadd.xlane.f32.xlu1 %v1999_v30  ;;  %v1634_v30 = vmul.f32 %v5366_v1, %v1274_v57  ;;  %v1309_v18 = vld [vmem:[%s5142_s16 + $0x28] sm:$0xff]  ;;  %v1732_v1 = vmul.f32 %v1673_v20, %v1308_v32  ;;  %v5639_v57 = vld [vmem:[#allocation2 + $0x158] sm:$0xff] }
 0x347   : > { %3606 = vst [vmem:[%s5225_s17] sm:$0xff] %v3605_v43   ;;  %v2003_v43 = vmul.f32 %v5625_v41, %v5625_v41  ;;  %v1637_v41 = vmul.f32 %v5390_v9, %v1277_v62  ;;  %v5646_v20 = vld [vmem:[#allocation2 + $0x188] sm:$0xff]  ;;  %v1311_v32 = vld [vmem:[%s5142_s16 + $0x38] sm:$0xff]  ;;  %v1312_v9 = vld [vmem:[%s5142_s16 + $0x40] sm:$0xff] }
 0x348   : > { %v1671_v27 = vpop.permute.xlu1 %1670  ;;  %v1677_v39 = vpop.permute.xlu0 %1676  ;;  %v1762_v22 = vadd.f32 %v1730_v28, %v1634_v30  ;;  %v2005_v30 = vmul.f32 %v5639_v57, %v5639_v57 }
 0x349   : > { %v1731_v3 = vmul.f32 %v1671_v27, %v1307_v0  ;;  %2052 = vadd.xlane.f32.xlu0 %v2002_v50  ;;  %v1310_v50 = vld [vmem:[%s5142_s16 + $0x30] sm:$0xff]  ;;  %v1636_v27 = vmul.f32 %v5371_v38, %v1276_v23  ;;  %v5654_v23 = vld [vmem:[#allocation2 + $0x178] sm:$0xff] }
 0x34a   : > { %2050 = vadd.xlane.f32.xlu1 %v2001_v63  ;;  %v2006_v63 = vmul.f32 %v5632_v60, %v5632_v60  ;;  %v1734_v38 = vmul.f32 %v1677_v39, %v1310_v50  ;;  %v5661_v39 = vld [vmem:[#allocation2 + $0x1a8] sm:$0xff] }
 0x34b   : > { %v1763_v5 = vadd.f32 %v1731_v3, %v1635_v52  ;;  %v1278_v3 = vld [vmem:[%s5136_s13 + $0x30] sm:$0xff]  ;;  %v1279_v52 = vld [vmem:[%s5136_s13 + $0x38] sm:$0xff]  ;;  %v1764_v14 = vadd.f32 %v1732_v1, %v1636_v27  ;;  %v5667_v50 = vld [vmem:[%s5136_s13 + $0x48] sm:$0xff]  ;;  %v2007_v27 = vmul.f32 %v5654_v23, %v5654_v23 }
 0x34c   : > { %v1675_v36 = vpop.permute.xlu1 %1674  ;;  %v1681_v0 = vpop.permute.xlu0 %1680  ;;  %v1639_v1 = vmul.f32 %v5402_v13, %v1279_v52 }
 0x34d   : > { %v3610_v37 = vpack.c.bf16 %v1763_v5, %v1762_v22  ;;  %v1733_v28 = vmul.f32 %v1675_v36, %v1309_v18  ;;  %2056 = vadd.xlane.f32.xlu0 %v2004_v34  ;;  %v2008_v18 = vmul.f32 %v5646_v20, %v5646_v20  ;;  %v5670_v36 = vld [vmem:[%s5142_s16 + $0x48] sm:$0xff] }
 0x34e   : > { %2054 = vadd.xlane.f32.xlu1 %v2003_v43  ;;  %v1638_v43 = vmul.f32 %v5383_v59, %v1278_v3  ;;  %6484 = vst [vmem:[#allocation47_spill] sm:$0xff] %v5670_v36 }
 0x34f   : > { %3922 = vst [vmem:[%s5225_s17 + $0x8] sm:$0xff] %v3610_v37   ;;  %v1765_v22 = vadd.f32 %v1733_v28, %v1637_v41  ;;  %v5664_v41 = vld [vmem:[%s5136_s13 + $0x40] sm:$0xff]  ;;  %v5678_v28 = vld [vmem:[%s5142_s16 + $0x50] sm:$0xff] }
 0x350   : > { %v1679_v34 = vpop.permute.xlu1 %1678  ;;  %v1685_v62 = vpop.permute.xlu0 %1684  ;;  %v1766_v59 = vadd.f32 %v1734_v38, %v1638_v43  ;;  %6485 = vst [vmem:[#allocation48_spill] sm:$0xff] %v5678_v28  ;;  %v5693_v43 = vld [vmem:[%s5136_s13 + $0x58] sm:$0xff] }
 0x351   : > { %v3615_v5 = vpack.c.bf16 %v1765_v22, %v1764_v14  ;;  %v1735_v37 = vmul.f32 %v1679_v34, %v1311_v32  ;;  %2060 = vadd.xlane.f32.xlu0 %v2006_v63  ;;  %v1736_v14 = vmul.f32 %v1681_v0, %v1312_v9  ;;  %v5675_v63 = vld [vmem:[#allocation2 + $0x198] sm:$0xff]  ;;  %v2010_v32 = vmul.f32 %v5661_v39, %v5661_v39  ;;  %v5687_v9 = vld [vmem:[#allocation2 + $0x1c8] sm:$0xff]  ;;  %v5690_v34 = vld [vmem:[%s5136_s13 + $0x50] sm:$0xff] }
 0x352   : > { %2058 = vadd.xlane.f32.xlu1 %v2005_v30  ;;  %v1640_v30 = vmul.f32 %v5395_v11, %v5664_v41  ;;  %v1641_v0 = vmul.f32 %v5414_v17, %v5667_v50  ;;  %6486 = vst [vmem:[#allocation49_spill] sm:$0xff] %v5690_v34  ;;  %6487 = vst [vmem:[#allocation50_spill] sm:$0xff] %v5693_v43  ;;  %v2009_v11 = vmul.f32 %v5675_v63, %v5675_v63 }
 0x353   : > { %3923 = vst [vmem:[%s5225_s17 + $0x10] sm:$0xff] %v3615_v5   ;;  %v1767_v13 = vadd.f32 %v1735_v37, %v1639_v1  ;;  %v5696_v5 = vld [vmem:[%s5142_s16 + $0x58] sm:$0xff]  ;;  %v1738_v17 = vmul.f32 %v1685_v62, %v5678_v28  ;;  %v5723_v28 = vld [vmem:[%s5142_s16 + $0x68] sm:$0xff] }
 0x354   : > { %v1683_v3 = vpop.permute.xlu1 %1682  ;;  %v1689_v52 = vpop.permute.xlu0 %1688  ;;  %6488 = vst [vmem:[#allocation51_spill] sm:$0xff] %v5696_v5  ;;  %v1768_v1 = vadd.f32 %v1736_v14, %v1640_v30  ;;  %v5702_v37 = vld [vmem:[#allocation2 + $0x1b8] sm:$0xff]  ;;  %v1643_v30 = vmul.f32 %v5426_v21, %v5693_v43  ;;  %6492 = vst [vmem:[#allocation55_spill] sm:$0xff] %v5723_v28 }
 0x355   : > { %v3620_v38 = vpack.c.bf16 %v1767_v13, %v1766_v59  ;;  %v1737_v22 = vmul.f32 %v1683_v3, %v5670_v36  ;;  %2064 = vadd.xlane.f32.xlu0 %v2008_v18  ;;  %v5705_v59 = vld [vmem:[%s5142_s16 + $0x60] sm:$0xff]  ;;  %v2012_v3 = vmul.f32 %v5687_v9, %v5687_v9  ;;  %v1642_v36 = vmul.f32 %v5407_v31, %v5690_v34 }
 0x356   : > { %2062 = vadd.xlane.f32.xlu1 %v2007_v27  ;;  %6489 = vst [vmem:[#allocation52_spill] sm:$0xff] %v5705_v59  ;;  %v2011_v31 = vmul.f32 %v5702_v37, %v5702_v37 }
 0x357   : > { %3924 = vst [vmem:[%s5225_s17 + $0x18] sm:$0xff] %v3620_v38   ;;  %v1769_v18 = vadd.f32 %v1737_v22, %v1641_v0  ;;  %v5714_v38 = vld [vmem:[#allocation2 + $0x1e8] sm:$0xff]  ;;  %v5717_v0 = vld [vmem:[%s5136_s13 + $0x60] sm:$0xff]  ;;  %v1770_v21 = vadd.f32 %v1738_v17, %v1642_v36 }
 0x358   : > { %v1687_v27 = vpop.permute.xlu1 %1686  ;;  %v1693_v13 = vpop.permute.xlu0 %1692  ;;  %6490 = vst [vmem:[#allocation53_spill] sm:$0xff] %v5717_v0  ;;  %v5720_v22 = vld [vmem:[%s5136_s13 + $0x68] sm:$0xff]  ;;  %v1644_v36 = vmul.f32 %v5419_v54, %v5717_v0 }
 0x359   : > { %v3625_v14 = vpack.c.bf16 %v1769_v18, %v1768_v1  ;;  %v1739_v62 = vmul.f32 %v1687_v27, %v5696_v5  ;;  %2068 = vadd.xlane.f32.xlu0 %v2010_v32  ;;  %6491 = vst [vmem:[#allocation54_spill] sm:$0xff] %v5720_v22  ;;  %v1496_v1 = vmul.f32 0.0078125, %v5574_v44  ;;  %v1740_v32 = vmul.f32 %v1689_v52, %v5705_v59  ;;  %v5730_v27 = vld [vmem:[#allocation2 + $0x1d8] sm:$0xff]  ;;  %v5734_v5 = vld [vmem:[%s5142_s16 + $0x70] sm:$0xff] }
 0x35a   : > { %2066 = vadd.xlane.f32.xlu1 %v2009_v11  ;;  %v1497_v11 = vmul.f32 0.0078125, %v5584_v48  ;;  %v2014_v44 = vmul.f32 %v5714_v38, %v5714_v38  ;;  %v1645_v52 = vmul.f32 %v5438_v25, %v5720_v22  ;;  %v5744_v48 = vld [vmem:[%s5136_s13 + $0x70] sm:$0xff]  ;;  %v2013_v59 = vmul.f32 %v5730_v27, %v5730_v27 }
 0x35b   : > { %3925 = vst [vmem:[%s5225_s17 + $0x20] sm:$0xff] %v3625_v14   ;;  %v1771_v18 = vadd.f32 %v1739_v62, %v1643_v30  ;;  %v5747_v30 = vld [vmem:[%s5136_s13 + $0x78] sm:$0xff]  ;;  %v1528_v54 = vadd.f32 1e-06, %v1496_v1  ;;  %v1742_v25 = vmul.f32 %v1693_v13, %v5734_v5  ;;  %v1646_v0 = vmul.f32 %v5431_v7, %v5744_v48  ;;  %v5767_v13 = vld [vmem:[%s5136_s13 + $0x80] sm:$0xff] }
 0x35c   : > { %v1691_v43 = vpop.permute.xlu1 %1690  ;;  %v1697_v34 = vpop.permute.xlu0 %1696  ;;  %v5750_v62 = vld [vmem:[%s5142_s16 + $0x78] sm:$0xff] }
 0x35d   : > { %v3630_v17 = vpack.c.bf16 %v1771_v18, %v1770_v21  ;;  %v1741_v14 = vmul.f32 %v1691_v43, %v5723_v28  ;;  %2072 = vadd.xlane.f32.xlu0 %v2012_v3  ;;  %v1772_v21 = vadd.f32 %v1740_v32, %v1644_v36  ;;  %v5756_v3 = vld [vmem:[#allocation2 + $0x1f8] sm:$0xff]  ;;  %v1529_v18 = vadd.f32 1e-06, %v1497_v11  ;;  %v5770_v11 = vld [vmem:[%s5136_s13 + $0x88] sm:$0xff] }
 0x35e   : > { %2070 = vadd.xlane.f32.xlu1 %v2011_v31  ;;  %v5759_v31 = vld [vmem:[%s5142_s16 + $0x80] sm:$0xff]  ;;  %v1647_v32 = vmul.f32 %v5450_v29, %v5747_v30  ;;  %4336 = vrsqrt.f32 %v1528_v54  ;;  %v1774_v7 = vadd.f32 %v1742_v25, %v1646_v0  ;;  %v1649_v54 = vmul.f32 %v5462_v33, %v5770_v11  ;;  %v5788_v25 = vld [vmem:[%s5136_s13 + $0x90] sm:$0xff] }
 0x35f   : > { %3926 = vst [vmem:[%s5225_s17 + $0x28] sm:$0xff] %v3630_v17   ;;  %v1773_v43 = vadd.f32 %v1741_v14, %v1645_v52  ;;  %v5773_v17 = vld [vmem:[%s5142_s16 + $0x88] sm:$0xff]  ;;  %v2015_v52 = vmul.f32 %v5756_v3, %v5756_v3  ;;  %v1744_v29 = vmul.f32 %v1697_v34, %v5759_v31  ;;  %4338 = vrsqrt.f32 %v1529_v18  ;;  %v5791_v34 = vld [vmem:[%s5136_s13 + $0x98] sm:$0xff]  ;;  %v5799_v33 = vld [vmem:[%s5142_s16 + $0xa0] sm:$0xff] }
 0x360   : > { %v1695_v28 = vpop.permute.xlu1 %1694  ;;  %v1701_v22 = vpop.permute.xlu0 %1700  ;;  %6493 = vst [vmem:[#allocation56_spill] sm:$0xff] %v5773_v17  ;;  %6494 = vst [vmem:[#allocation57_spill] sm:$0xff] %v5791_v34  ;;  %v5794_v18 = vld [vmem:[%s5142_s16 + $0x98] sm:$0xff] }
 0x361   : > { %v3635_v1 = vpack.c.bf16 %v1773_v43, %v1772_v21  ;;  %v1743_v36 = vmul.f32 %v1695_v28, %v5750_v62  ;;  %2076 = vadd.xlane.f32.xlu0 %v2014_v44  ;;  %v1648_v21 = vmul.f32 %v5443_v2, %v5767_v13  ;;  %6495 = vst [vmem:[#allocation58_spill] sm:$0xff] %v5794_v18 }
 0x362   : > { %2074 = vadd.xlane.f32.xlu1 %v2013_v59  ;;  %v5780_v59 = vld [vmem:[%s5142_s16 + $0x90] sm:$0xff] }
 0x363   : > { %3927 = vst [vmem:[%s5225_s17 + $0x30] sm:$0xff] %v3635_v1   ;;  %v1775_v28 = vadd.f32 %v1743_v36, %v1647_v32  ;;  %v1776_v1 = vadd.f32 %v1744_v29, %v1648_v21  ;;  %v1746_v2 = vmul.f32 %v1701_v22, %v5780_v59  ;;  %v5807_v29 = vld [vmem:[%s5136_s13 + $0xa0] sm:$0xff]  ;;  %v5810_v22 = vld [vmem:[%s5136_s13 + $0xa8] sm:$0xff] }
 0x364   : > { %v1699_v44 = vpop.permute.xlu1 %1698  ;;  %v1705_v14 = vpop.permute.xlu0 %1704  ;;  %6496 = vst [vmem:[#allocation59_spill] sm:$0xff] %v5807_v29  ;;  %6497 = vst [vmem:[#allocation60_spill] sm:$0xff] %v5810_v22  ;;  %v5813_v21 = vld [vmem:[%s5142_s16 + $0xa8] sm:$0xff] }
 0x365   : > { %v3640_v43 = vpack.c.bf16 %v1775_v28, %v1774_v7  ;;  %v1745_v0 = vmul.f32 %v1699_v44, %v5773_v17  ;;  %v1650_v28 = vmul.f32 %v5455_v8, %v5788_v25  ;;  %v1651_v44 = vmul.f32 %v5474_v40, %v5791_v34  ;;  %6498 = vst [vmem:[#allocation61_spill] sm:$0xff] %v5813_v21  ;;  %v5823_v34 = vld [vmem:[%s5136_s13 + $0xb0] sm:$0xff] }
 0x366   : > { %2078 = vadd.xlane.f32.xlu1 %v2015_v52  ;;  %v1748_v8 = vmul.f32 %v1705_v14, %v5799_v33  ;;  %6500 = vst [vmem:[#allocation63_spill] sm:$0xff] %v5823_v34 }
 0x367   : > { %3928 = vst [vmem:[%s5225_s17 + $0x38] sm:$0xff] %v3640_v43   ;;  %v1777_v32 = vadd.f32 %v1745_v0, %v1649_v54  ;;  %v1778_v43 = vadd.f32 %v1746_v2, %v1650_v28  ;;  %v5818_v0 = vld [vmem:[%s5142_s16 + $0xb0] sm:$0xff]  ;;  %v1653_v2 = vmul.f32 %v5486_v19, %v5810_v22  ;;  %v5844_v22 = vld [vmem:[%s5136_s13 + $0xc0] sm:$0xff] }
 0x368   : > { %v1703_v36 = vpop.permute.xlu1 %1702  ;;  %v1709_v7 = vpop.permute.xlu0 %1708  ;;  %6499 = vst [vmem:[#allocation62_spill] sm:$0xff] %v5818_v0  ;;  %6503 = vst [vmem:[#allocation66_spill] sm:$0xff] %v5844_v22 }
 0x369   : > { %v3645_v52 = vpack.c.bf16 %v1777_v32, %v1776_v1  ;;  %v1747_v17 = vmul.f32 %v1703_v36, %v5794_v18  ;;  %v4337_v32 = vpop.eup %4336  ;;  %v1652_v36 = vmul.f32 %v5467_v12, %v5807_v29  ;;  %v1750_v12 = vmul.f32 %v1709_v7, %v5818_v0  ;;  %v5839_v29 = vld [vmem:[%s5142_s16 + $0xc0] sm:$0xff]  ;;  %v4404_v7 = vld [vmem:[#allocation2 + $0x1f0] sm:$0xff] }
 0x36a   : > { %v4339_v28 = vpop.eup %4338  ;;  %6502 = vst [vmem:[#allocation65_spill] sm:$0xff] %v5839_v29 }
 0x36b   : > { %3929 = vst [vmem:[%s5225_s17 + $0x40] sm:$0xff] %v3645_v52   ;;  %v1779_v54 = vadd.f32 %v1747_v17, %v1651_v44  ;;  %v5829_v17 = vld [vmem:[%s5136_s13 + $0xb8] sm:$0xff]  ;;  %v1780_v44 = vadd.f32 %v1748_v8, %v1652_v36  ;;  %v5848_v8 = vld [vmem:[%s5136_s13 + $0xc8] sm:$0xff]  ;;  %v1593_v36 = vmul.f32 %v4404_v7, %v4339_v28 }
 0x36c   : > { %v1707_v1 = vpop.permute.xlu1 %1706  ;;  %v1713_v40 = vpop.permute.xlu0 %1712  ;;  %v5832_v52 = vld [vmem:[%s5142_s16 + $0xb8] sm:$0xff]  ;;  %6504 = vst [vmem:[#allocation67_spill] sm:$0xff] %v5848_v8 }
 0x36d   : > { %v3650_v18 = vpack.c.bf16 %v1779_v54, %v1778_v43  ;;  %v1749_v14 = vmul.f32 %v1707_v1, %v5813_v21  ;;  %6501 = vst [vmem:[#allocation64_spill] sm:$0xff] %v5832_v52  ;;  %v1654_v54 = vmul.f32 %v5479_v15, %v5823_v34  ;;  %v1655_v1 = vmul.f32 %v5498_v26, %v5829_v17  ;;  %v5851_v34 = vld [vmem:[%s5142_s16 + $0xc8] sm:$0xff] }
 0x36e   : > { %6505 = vst [vmem:[#allocation68_spill] sm:$0xff] %v5851_v34  ;;  %v1752_v26 = vmul.f32 %v1713_v40, %v5839_v29  ;;  %v5870_v40 = vld [vmem:[%s5136_s13 + $0xd0] sm:$0xff] }
 0x36f   : > { %3930 = vst [vmem:[%s5225_s17 + $0x48] sm:$0xff] %v3650_v18   ;;  %v1781_v43 = vadd.f32 %v1749_v14, %v1653_v2  ;;  %v4405_v2 = vld [vmem:[#allocation2 + $0x1e0] sm:$0xff]  ;;  %v1782_v0 = vadd.f32 %v1750_v12, %v1654_v54  ;;  %v5864_v12 = vmul.f32 %v5350_v51, %v1593_v36  ;;  %6507 = vst [vmem:[#allocation70_spill] sm:$0xff] %v5870_v40  ;;  %v5876_v54 = vld [vmem:[%s5142_s16 + $0xd8] sm:$0xff] }
 0x370   : > { %v1711_v19 = vpop.permute.xlu1 %1710  ;;  %v1592_v14 = vmul.f32 %v4405_v2, %v4337_v32  ;;  %v1717_v15 = vpop.permute.xlu0 %1716  ;;  %v1657_v32 = vmul.f32 %v5510_v35, %v5848_v8  ;;  %6509 = vst [vmem:[#allocation72_spill] sm:$0xff] %v5876_v54 }
 0x371   : > { %v3655_v21 = vpack.c.bf16 %v1781_v43, %v1780_v44  ;;  %v1751_v18 = vmul.f32 %v1711_v19, %v5832_v52  ;;  %v1656_v43 = vmul.f32 %v5491_v16, %v5844_v22  ;;  %v5858_v19 = vld [vmem:[%s5142_s16 + $0xd0] sm:$0xff]  ;;  %v5873_v16 = vld [vmem:[%s5136_s13 + $0xd8] sm:$0xff] }
 0x372   : > { %6506 = vst [vmem:[#allocation69_spill] sm:$0xff] %v5858_v19  ;;  %6508 = vst [vmem:[#allocation71_spill] sm:$0xff] %v5873_v16  ;;  %v1754_v35 = vmul.f32 %v1717_v15, %v5858_v19 }
 0x373   : > { %3931 = vst [vmem:[%s5225_s17 + $0x50] sm:$0xff] %v3655_v21   ;;  %v1783_v44 = vadd.f32 %v1751_v18, %v1655_v1  ;;  %v5867_v21 = vmul.f32 %v5350_v51, %v1592_v14  ;;  %v1784_v1 = vadd.f32 %v1752_v26, %v1656_v43  ;;  %v5885_v18 = vld [vmem:[%s5142_s16 + $0xe0] sm:$0xff]  ;;  %v1658_v14 = vmul.f32 %v5503_v45, %v5870_v40 }
 0x374   : > { %v1715_v28 = vpop.permute.xlu1 %1714  ;;  %v1721_v51 = vpop.permute.xlu0 %1720  ;;  %6510 = vst [vmem:[#allocation73_spill] sm:$0xff] %v5885_v18  ;;  %v1659_v26 = vmul.f32 %v5522_v42, %v5873_v16  ;;  %v5893_v43 = vld [vmem:[%s5136_s13 + $0xe0] sm:$0xff] }
 0x375   : > { %v3660_v7 = vpack.c.bf16 %v1783_v44, %v1782_v0  ;;  %v1753_v2 = vmul.f32 %v1715_v28, %v5851_v34  ;;  %6511 = vst [vmem:[#allocation74_spill] sm:$0xff] %v5893_v43  ;;  %v5896_v28 = vld [vmem:[%s5136_s13 + $0xe8] sm:$0xff] }
 0x376   : > { %6512 = vst [vmem:[#allocation75_spill] sm:$0xff] %v5896_v28  ;;  %v1661_v42 = vmul.f32 %v5528_v53, %v5896_v28 }
 0x377   : > { %3932 = vst [vmem:[%s5225_s17 + $0x58] sm:$0xff] %v3660_v7   ;;  %v1785_v0 = vadd.f32 %v1753_v2, %v1657_v32  ;;  %1726 = vrot.lane.b32.xlu1 %v5864_v12, %s4718_s11  ;;  %1724 = vrot.lane.b32.xlu0 %v5867_v21, %s4718_s11  ;;  %v5899_v32 = vld [vmem:[%s5142_s16 + $0xe8] sm:$0xff]  ;;  %v1786_v7 = vadd.f32 %v1754_v35, %v1658_v14 }
 0x378   : > { %v1719_v36 = vpop.permute.xlu1 %1718  ;;  %6513 = vst [vmem:[#allocation76_spill] sm:$0xff] %v5899_v32  ;;  %v1756_v2 = vmul.f32 %v1721_v51, %v5885_v18 }
 0x379   : > { %v3665_v44 = vpack.c.bf16 %v1785_v0, %v1784_v1  ;;  %v1755_v15 = vmul.f32 %v1719_v36, %v5876_v54  ;;  %v1660_v1 = vmul.f32 %v5515_v49, %v5893_v43 }
 0x37b   : > { %3933 = vst [vmem:[%s5225_s17 + $0x60] sm:$0xff] %v3665_v44   ;;  %v1787_v19 = vadd.f32 %v1755_v15, %v1659_v26  ;;  %v1788_v54 = vadd.f32 %v1756_v2, %v1660_v1 }
 0x37c   : > { %v1723_v45 = vpop.permute.xlu1 %1722 }
 0x37d   : > { %v3670_v0 = vpack.c.bf16 %v1787_v19, %v1786_v7  ;;  %v1757_v36 = vmul.f32 %v1723_v45, %v5899_v32 }
 0x37f   : > { %3934 = vst [vmem:[%s5225_s17 + $0x68] sm:$0xff] %v3670_v0   ;;  %v1789_v16 = vadd.f32 %v1757_v36, %v1661_v42 }
 0x381   : > { %v3675_v40 = vpack.c.bf16 %v1789_v16, %v1788_v54 }
 0x383   : > { %3935 = vst [vmem:[%s5225_s17 + $0x70] sm:$0xff] %v3675_v40  }
 0x3ae   : > { %v2017_v35 = vpop.xlane.xlu0 %2016 }
 0x3af   : > { %v2080_v14 = vmul.f32 0.0078125, %v2017_v35 }
 0x3b1   : > { %v2112_v44 = vadd.f32 1e-06, %v2080_v14  ;;  %v5912_v14 = vld [vmem:[%s5148_s22] ss:$0 sm:$0xff] }
 0x3b2   : > { %v2021_v51 = vpop.xlane.xlu0 %2020 }
 0x3b3   : > { %4340 = vrsqrt.f32 %v2112_v44  ;;  %v2082_v26 = vmul.f32 0.0078125, %v2021_v51 }
 0x3b5   : > { %v2114_v15 = vadd.f32 1e-06, %v2082_v26 }
 0x3b6   : > { %v2023_v18 = vpop.xlane.xlu0 %2022 }
 0x3b7   : > { %4342 = vrsqrt.f32 %v2114_v15  ;;  %v2083_v49 = vmul.f32 0.0078125, %v2023_v18 }
 0x3b9   : > { %v2115_v19 = vadd.f32 1e-06, %v2083_v49 }
 0x3ba   : > { %v2025_v53 = vpop.xlane.xlu0 %2024 }
 0x3bb   : > { %v2084_v7 = vmul.f32 0.0078125, %v2025_v53  ;;  %v2019_v45 = vpop.xlane.xlu1 %2018  ;;  %4344 = vrsqrt.f32 %v2115_v19 }
 0x3bc   : > { %v2081_v2 = vmul.f32 0.0078125, %v2019_v45 }
 0x3bd   : > { %v4341_v1 = vpop.eup %4340  ;;  %v2116_v0 = vadd.f32 1e-06, %v2084_v7 }
 0x3be   : > { %v2113_v40 = vadd.f32 1e-06, %v2081_v2  ;;  %v2029_v16 = vpop.xlane.xlu0 %2028  ;;  %v2176_v54 = vmul.f32 %v4341_v1, %v5532_v56 }
 0x3bf   : > { %4346 = vrsqrt.f32 %v2116_v0  ;;  %v2086_v42 = vmul.f32 0.0078125, %v2029_v16  ;;  %v2027_v36 = vpop.xlane.xlu1 %2026 }
 0x3c0   : > { %4348 = vrsqrt.f32 %v2113_v40  ;;  %v2085_v35 = vmul.f32 0.0078125, %v2027_v36  ;;  %v5915_v18 = vmul.f32 %v5912_v14, %v2176_v54 }
 0x3c1   : > { %v4343_v44 = vpop.eup %4342  ;;  %v2118_v51 = vadd.f32 1e-06, %v2086_v42 }
 0x3c2   : > { %v2117_v26 = vadd.f32 1e-06, %v2085_v35  ;;  %2272 = vrot.lane.b32.xlu1 %v5915_v18, %s4718_s11  ;;  %v2033_v15 = vpop.xlane.xlu0 %2032  ;;  %v2178_v49 = vmul.f32 %v4343_v44, %v5536_v46 }
 0x3c3   : > { %4350 = vrsqrt.f32 %v2118_v51  ;;  %v2088_v56 = vmul.f32 0.0078125, %v2033_v15  ;;  %v2031_v19 = vpop.xlane.xlu1 %2030 }
 0x3c4   : > { %4352 = vrsqrt.f32 %v2117_v26  ;;  %v2087_v53 = vmul.f32 0.0078125, %v2031_v19  ;;  %v5921_v7 = vmul.f32 %v5912_v14, %v2178_v49 }
 0x3c5   : > { %v2120_v45 = vadd.f32 1e-06, %v2088_v56  ;;  %v4345_v16 = vpop.eup %4344 }
 0x3c6   : > { %v2119_v2 = vadd.f32 1e-06, %v2087_v53  ;;  %2276 = vrot.lane.b32.xlu0 %v5921_v7, %s4718_s11  ;;  %v2037_v1 = vpop.xlane.xlu0 %2036  ;;  %v2179_v56 = vmul.f32 %v4345_v16, %v5540_v47 }
 0x3c7   : > { %4354 = vrsqrt.f32 %v2120_v45  ;;  %v2090_v0 = vmul.f32 0.0078125, %v2037_v1  ;;  %v2035_v40 = vpop.xlane.xlu1 %2034 }
 0x3c8   : > { %4356 = vrsqrt.f32 %v2119_v2  ;;  %v2089_v46 = vmul.f32 0.0078125, %v2035_v40 }
 0x3c9   : > { %v4347_v54 = vpop.eup %4346  ;;  %v2122_v42 = vadd.f32 1e-06, %v2090_v0 }
 0x3ca   : > { %v4349_v36 = vpop.eup %4348  ;;  %v2121_v35 = vadd.f32 1e-06, %v2089_v46  ;;  %v2041_v44 = vpop.xlane.xlu0 %2040  ;;  %v2180_v51 = vmul.f32 %v4347_v54, %v5544_v55  ;;  %v5940_v46 = vmul.f32 %v5912_v14, %v2179_v56 }
 0x3cb   : > { %4358 = vrsqrt.f32 %v2122_v42  ;;  %v2092_v26 = vmul.f32 0.0078125, %v2041_v44  ;;  %v2039_v15 = vpop.xlane.xlu1 %2038  ;;  %v2177_v49 = vmul.f32 %v4349_v36, %v5546_v58 }
 0x3cc   : > { %4360 = vrsqrt.f32 %v2121_v35  ;;  %v2091_v19 = vmul.f32 0.0078125, %v2039_v15  ;;  %v5929_v53 = vmul.f32 %v5912_v14, %v2180_v51 }
 0x3cd   : > { %v4351_v45 = vpop.eup %4350  ;;  %v2124_v2 = vadd.f32 1e-06, %v2092_v26  ;;  %v5932_v1 = vmul.f32 %v5912_v14, %v2177_v49 }
 0x3ce   : > { %v4353_v0 = vpop.eup %4352  ;;  %v2123_v40 = vadd.f32 1e-06, %v2091_v19  ;;  %2280 = vrot.lane.b32.xlu0 %v5929_v53, %s4718_s11  ;;  %v2045_v55 = vpop.xlane.xlu0 %2044  ;;  %v2182_v58 = vmul.f32 %v4351_v45, %v5552_v61 }
 0x3cf   : > { %4362 = vrsqrt.f32 %v2124_v2  ;;  %v2094_v47 = vmul.f32 0.0078125, %v2045_v55  ;;  %v2043_v16 = vpop.xlane.xlu1 %2042  ;;  %2274 = vrot.lane.b32.xlu1 %v5932_v1, %s4718_s11  ;;  %v2181_v54 = vmul.f32 %v4353_v0, %v5554_v24 }
 0x3d0   : > { %4364 = vrsqrt.f32 %v2123_v40  ;;  %v2093_v42 = vmul.f32 0.0078125, %v2043_v16  ;;  %v5944_v36 = vmul.f32 %v5912_v14, %v2182_v58 }
 0x3d1   : > { %v4355_v35 = vpop.eup %4354  ;;  %v2126_v44 = vadd.f32 1e-06, %v2094_v47  ;;  %v5952_v24 = vmul.f32 %v5912_v14, %v2181_v54 }
 0x3d2   : > { %v4357_v51 = vpop.eup %4356  ;;  %v2125_v61 = vadd.f32 1e-06, %v2093_v42  ;;  %2284 = vrot.lane.b32.xlu0 %v5944_v36, %s4718_s11  ;;  %v2049_v26 = vpop.xlane.xlu0 %2048  ;;  %v2184_v15 = vmul.f32 %v4355_v35, %v5560_v4  ;;  %v6514_v42 = vld [vmem:[#allocation36_spill] sm:$0xff] }
 0x3d3   : > { %4366 = vrsqrt.f32 %v2126_v44  ;;  %v2096_v49 = vmul.f32 0.0078125, %v2049_v26  ;;  %v2047_v56 = vpop.xlane.xlu1 %2046  ;;  %2278 = vrot.lane.b32.xlu1 %v5940_v46, %s4718_s11  ;;  %v2183_v19 = vmul.f32 %v4357_v51, %v5562_v6 }
 0x3d4   : > { %4368 = vrsqrt.f32 %v2125_v61  ;;  %v2095_v45 = vmul.f32 0.0078125, %v2047_v56  ;;  %v5956_v2 = vmul.f32 %v5912_v14, %v2184_v15  ;;  %v6515_v56 = vld [vmem:[#allocation37_spill] sm:$0xff] }
 0x3d5   : > { %v4359_v0 = vpop.eup %4358  ;;  %v2128_v40 = vadd.f32 1e-06, %v2096_v49  ;;  %v5964_v6 = vmul.f32 %v5912_v14, %v2183_v19 }
 0x3d6   : > { %v4361_v55 = vpop.eup %4360  ;;  %v2127_v4 = vadd.f32 1e-06, %v2095_v45  ;;  %2288 = vrot.lane.b32.xlu0 %v5956_v2, %s4718_s11  ;;  %v2053_v58 = vpop.xlane.xlu0 %2052  ;;  %v2186_v47 = vmul.f32 %v4359_v0, %v5568_v10 }
 0x3d7   : > { %4370 = vrsqrt.f32 %v2128_v40  ;;  %v2098_v16 = vmul.f32 0.0078125, %v2053_v58  ;;  %v2051_v54 = vpop.xlane.xlu1 %2050  ;;  %2282 = vrot.lane.b32.xlu1 %v5952_v24, %s4718_s11  ;;  %v2185_v35 = vmul.f32 %v4361_v55, %v6514_v42  ;;  %v6516_v55 = vld [vmem:[#allocation38_spill] sm:$0xff] }
 0x3d8   : > { %4372 = vrsqrt.f32 %v2127_v4  ;;  %v2097_v44 = vmul.f32 0.0078125, %v2051_v54  ;;  %v5968_v51 = vmul.f32 %v5912_v14, %v2186_v47 }
 0x3d9   : > { %v4363_v61 = vpop.eup %4362  ;;  %v2130_v26 = vadd.f32 1e-06, %v2098_v16  ;;  %v5976_v40 = vmul.f32 %v5912_v14, %v2185_v35 }
 0x3da   : > { %v4365_v15 = vpop.eup %4364  ;;  %v2129_v10 = vadd.f32 1e-06, %v2097_v44  ;;  %2292 = vrot.lane.b32.xlu0 %v5968_v51, %s4718_s11  ;;  %v2057_v49 = vpop.xlane.xlu0 %2056  ;;  %v2188_v45 = vmul.f32 %v4363_v61, %v6515_v56 }
 0x3db   : > { %4374 = vrsqrt.f32 %v2130_v26  ;;  %v2100_v19 = vmul.f32 0.0078125, %v2057_v49  ;;  %v2055_v0 = vpop.xlane.xlu1 %2054  ;;  %2286 = vrot.lane.b32.xlu1 %v5964_v6, %s4718_s11  ;;  %v2187_v4 = vmul.f32 %v4365_v15, %v6516_v55  ;;  %v6517_v26 = vld [vmem:[#allocation39_spill] sm:$0xff] }
 0x3dc   : > { %4376 = vrsqrt.f32 %v2129_v10  ;;  %v2099_v58 = vmul.f32 0.0078125, %v2055_v0  ;;  %v5980_v47 = vmul.f32 %v5912_v14, %v2188_v45  ;;  %v6518_v10 = vld [vmem:[#allocation40_spill] sm:$0xff] }
 0x3dd   : > { %v4367_v16 = vpop.eup %4366  ;;  %v2132_v54 = vadd.f32 1e-06, %v2100_v19  ;;  %v5988_v15 = vmul.f32 %v5912_v14, %v2187_v4 }
 0x3de   : > { %v4369_v42 = vpop.eup %4368  ;;  %v2131_v44 = vadd.f32 1e-06, %v2099_v58  ;;  %2296 = vrot.lane.b32.xlu0 %v5980_v47, %s4718_s11  ;;  %v2061_v61 = vpop.xlane.xlu0 %2060  ;;  %v2190_v49 = vmul.f32 %v4367_v16, %v6517_v26 }
 0x3df   : > { %4378 = vrsqrt.f32 %v2132_v54  ;;  %v2102_v35 = vmul.f32 0.0078125, %v2061_v61  ;;  %v2059_v56 = vpop.xlane.xlu1 %2058  ;;  %2290 = vrot.lane.b32.xlu1 %v5976_v40, %s4718_s11  ;;  %v2189_v45 = vmul.f32 %v4369_v42, %v6518_v10  ;;  %v6519_v61 = vld [vmem:[#allocation41_spill] sm:$0xff] }
 0x3e0   : > { %4380 = vrsqrt.f32 %v2131_v44  ;;  %v2101_v19 = vmul.f32 0.0078125, %v2059_v56  ;;  %v5992_v0 = vmul.f32 %v5912_v14, %v2190_v49  ;;  %v6520_v44 = vld [vmem:[#allocation42_spill] sm:$0xff] }
 0x3e1   : > { %v4371_v55 = vpop.eup %4370  ;;  %v2134_v58 = vadd.f32 1e-06, %v2102_v35  ;;  %v6000_v42 = vmul.f32 %v5912_v14, %v2189_v45 }
 0x3e2   : > { %v4373_v32 = vpop.eup %4372  ;;  %v2133_v16 = vadd.f32 1e-06, %v2101_v19  ;;  %2300 = vrot.lane.b32.xlu0 %v5992_v0, %s4718_s11  ;;  %v2065_v54 = vpop.xlane.xlu0 %2064  ;;  %v2192_v26 = vmul.f32 %v4371_v55, %v6519_v61 }
 0x3e3   : > { %4382 = vrsqrt.f32 %v2134_v58  ;;  %v2104_v4 = vmul.f32 0.0078125, %v2065_v54  ;;  %v2063_v28 = vpop.xlane.xlu1 %2062  ;;  %2294 = vrot.lane.b32.xlu1 %v5988_v15, %s4718_s11  ;;  %v2191_v49 = vmul.f32 %v4373_v32, %v6520_v44  ;;  %v6521_v54 = vld [vmem:[#allocation43_spill] sm:$0xff]  ;;  %v6522_v32 = vld [vmem:[#allocation44_spill] sm:$0xff] }
 0x3e4   : > { %4384 = vrsqrt.f32 %v2133_v16  ;;  %v2103_v35 = vmul.f32 0.0078125, %v2063_v28  ;;  %v6004_v56 = vmul.f32 %v5912_v14, %v2192_v26 }
 0x3e5   : > { %v4375_v10 = vpop.eup %4374  ;;  %v2136_v19 = vadd.f32 1e-06, %v2104_v4  ;;  %v6012_v28 = vmul.f32 %v5912_v14, %v2191_v49 }
 0x3e6   : > { %v4377_v43 = vpop.eup %4376  ;;  %v2135_v55 = vadd.f32 1e-06, %v2103_v35  ;;  %2304 = vrot.lane.b32.xlu0 %v6004_v56, %s4718_s11  ;;  %v2069_v58 = vpop.xlane.xlu0 %2068  ;;  %v2194_v61 = vmul.f32 %v4375_v10, %v6521_v54 }
 0x3e7   : > { %4386 = vrsqrt.f32 %v2136_v19  ;;  %v2106_v45 = vmul.f32 0.0078125, %v2069_v58  ;;  %v2067_v34 = vpop.xlane.xlu1 %2066  ;;  %2298 = vrot.lane.b32.xlu1 %v6000_v42, %s4718_s11  ;;  %v2193_v16 = vmul.f32 %v4377_v43, %v6522_v32  ;;  %v6523_v58 = vld [vmem:[#allocation45_spill] sm:$0xff]  ;;  %v6524_v43 = vld [vmem:[#allocation46_spill] sm:$0xff] }
 0x3e8   : > { %4388 = vrsqrt.f32 %v2135_v55  ;;  %v2105_v26 = vmul.f32 0.0078125, %v2067_v34  ;;  %v6016_v4 = vmul.f32 %v5912_v14, %v2194_v61 }
 0x3e9   : > { %v4379_v44 = vpop.eup %4378  ;;  %v2138_v35 = vadd.f32 1e-06, %v2106_v45  ;;  %v6024_v34 = vmul.f32 %v5912_v14, %v2193_v16 }
 0x3ea   : > { %v4381_v8 = vpop.eup %4380  ;;  %v2137_v10 = vadd.f32 1e-06, %v2105_v26  ;;  %2308 = vrot.lane.b32.xlu0 %v6016_v4, %s4718_s11  ;;  %v2073_v19 = vpop.xlane.xlu0 %2072  ;;  %v2196_v54 = vmul.f32 %v4379_v44, %v6523_v58 }
 0x3eb   : > { %4390 = vrsqrt.f32 %v2138_v35  ;;  %v2108_v49 = vmul.f32 0.0078125, %v2073_v19  ;;  %v2071_v22 = vpop.xlane.xlu1 %2070  ;;  %2302 = vrot.lane.b32.xlu1 %v6012_v28, %s4718_s11  ;;  %v2195_v55 = vmul.f32 %v4381_v8, %v6524_v43 }
 0x3ec   : > { %4392 = vrsqrt.f32 %v2137_v10  ;;  %v2107_v61 = vmul.f32 0.0078125, %v2071_v22  ;;  %v6028_v45 = vmul.f32 %v5912_v14, %v2196_v54 }
 0x3ed   : > { %v4383_v32 = vpop.eup %4382  ;;  %v2140_v26 = vadd.f32 1e-06, %v2108_v49  ;;  %v6036_v22 = vmul.f32 %v5912_v14, %v2195_v55 }
 0x3ee   : > { %v4385_v29 = vpop.eup %4384  ;;  %v2139_v44 = vadd.f32 1e-06, %v2107_v61  ;;  %2312 = vrot.lane.b32.xlu0 %v6028_v45, %s4718_s11  ;;  %v2077_v35 = vpop.xlane.xlu0 %2076  ;;  %v2198_v19 = vmul.f32 %v4383_v32, %v5632_v60 }
 0x3ef   : > { %4394 = vrsqrt.f32 %v2140_v26  ;;  %v2110_v16 = vmul.f32 0.0078125, %v2077_v35  ;;  %v2075_v58 = vpop.xlane.xlu1 %2074  ;;  %2306 = vrot.lane.b32.xlu1 %v6024_v34, %s4718_s11  ;;  %v2197_v8 = vmul.f32 %v4385_v29, %v5639_v57  ;;  %v6046_v57 = vld [vmem:[%s5142_s16 + $0xf0] sm:$0xff] }
 0x3f0   : > { %4396 = vrsqrt.f32 %v2139_v44  ;;  %v2109_v10 = vmul.f32 0.0078125, %v2075_v58  ;;  %v6040_v54 = vmul.f32 %v5912_v14, %v2198_v19  ;;  %v6055_v35 = vld [vmem:[%s5136_s13 + $0xf0] sm:$0xff]  ;;  %v6061_v58 = vld [vmem:[%s5136_s13 + $0xf8] sm:$0xff] }
 0x3f1   : > { %v4387_v49 = vpop.eup %4386  ;;  %v2142_v60 = vadd.f32 1e-06, %v2110_v16  ;;  %v6051_v26 = vmul.f32 %v5912_v14, %v2197_v8  ;;  %6525 = vst [vmem:[#allocation36_spill] sm:$0xff] %v6055_v35  ;;  %6526 = vst [vmem:[#allocation37_spill] sm:$0xff] %v6061_v58  ;;  %v1662_v8 = vmul.f32 %v5867_v21, %v6055_v35 }
 0x3f2   : > { %v4389_v43 = vpop.eup %4388  ;;  %v2141_v61 = vadd.f32 1e-06, %v2109_v10  ;;  %2316 = vrot.lane.b32.xlu0 %v6040_v54, %s4718_s11  ;;  %v2200_v55 = vmul.f32 %v4387_v49, %v5646_v20  ;;  %v1725_v32 = vpop.permute.xlu0 %1724  ;;  %v6064_v10 = vld [vmem:[%s5142_s16 + $0xf8] sm:$0xff] }
 0x3f3   : > { %4398 = vrsqrt.f32 %v2142_v60  ;;  %v2079_v29 = vpop.xlane.xlu1 %2078  ;;  %2310 = vrot.lane.b32.xlu1 %v6036_v22, %s4718_s11  ;;  %v2199_v44 = vmul.f32 %v4389_v43, %v5654_v23  ;;  %6527 = vst [vmem:[#allocation38_spill] sm:$0xff] %v6064_v10  ;;  %v1758_v60 = vmul.f32 %v1725_v32, %v6046_v57  ;;  %v1663_v32 = vmul.f32 %v5864_v12, %v6061_v58 }
 0x3f4   : > { %4400 = vrsqrt.f32 %v2141_v61  ;;  %v2111_v19 = vmul.f32 0.0078125, %v2079_v29  ;;  %v6058_v16 = vmul.f32 %v5912_v14, %v2200_v55 }
 0x3f5   : > { %v4391_v20 = vpop.eup %4390  ;;  %v6075_v61 = vmul.f32 %v5912_v14, %v2199_v44 }
 0x3f6   : > { %v4393_v49 = vpop.eup %4392  ;;  %v2143_v52 = vadd.f32 1e-06, %v2111_v19  ;;  %2320 = vrot.lane.b32.xlu0 %v6058_v16, %s4718_s11  ;;  %v2202_v23 = vmul.f32 %v4391_v20, %v5661_v39  ;;  %v1790_v20 = vadd.f32 %v1758_v60, %v1662_v8 }
 0x3f7   : > { %v1727_v43 = vpop.permute.xlu1 %1726  ;;  %2314 = vrot.lane.b32.xlu1 %v6051_v26, %s4718_s11  ;;  %v2201_v55 = vmul.f32 %v4393_v49, %v5675_v63 }
 0x3f8   : > { %4402 = vrsqrt.f32 %v2143_v52  ;;  %v1759_v29 = vmul.f32 %v1727_v43, %v6064_v10  ;;  %v6082_v39 = vmul.f32 %v5912_v14, %v2202_v23 }
 0x3f9   : > { %v4395_v21 = vpop.eup %4394  ;;  %v6090_v63 = vmul.f32 %v5912_v14, %v2201_v55 }
 0x3fa   : > { %v4397_v19 = vpop.eup %4396  ;;  %v1791_v35 = vadd.f32 %v1759_v29, %v1663_v32  ;;  %2324 = vrot.lane.b32.xlu0 %v6082_v39, %s4718_s11  ;;  %v2204_v44 = vmul.f32 %v4395_v21, %v5687_v9  ;;  %v4407_v21 = vld [vmem:[%s5142_s16] sm:$0xff] }
 0x3fb   : > { %2318 = vrot.lane.b32.xlu1 %v6075_v61, %s4718_s11  ;;  %v2203_v52 = vmul.f32 %v4397_v19, %v5702_v37 }
 0x3fc   : > { %v3680_v12 = vpack.c.bf16 %v1791_v35, %v1790_v20  ;;  %v6094_v49 = vmul.f32 %v5912_v14, %v2204_v44 }
 0x3fd   : > { %v4399_v23 = vpop.eup %4398  ;;  %v6103_v8 = vmul.f32 %v5912_v14, %v2203_v52  ;;  %v4408_v52 = vld [vmem:[%s5136_s13] sm:$0xff] }
 0x3fe   : > { %v4401_v60 = vpop.eup %4400  ;;  %3936 = vst [vmem:[%s5225_s17 + $0x78] sm:$0xff] %v3680_v12   ;;  %2328 = vrot.lane.b32.xlu0 %v6094_v49, %s4718_s11  ;;  %v2206_v9 = vmul.f32 %v4399_v23, %v5714_v38  ;;  %v4409_v12 = vld [vmem:[%s5136_s13 + $0x8] sm:$0xff] }
 0x3ff   : > { %2322 = vrot.lane.b32.xlu1 %v6090_v63, %s4718_s11  ;;  %v2205_v37 = vmul.f32 %v4401_v60, %v5730_v27  ;;  %v2241_v23 = vmul.f32 %v4409_v12, %v5932_v1  ;;  %v4414_v12 = vld [vmem:[%s5142_s16 + $0x18] sm:$0xff] }
 0x400   : > { %v6107_v35 = vmul.f32 %v5912_v14, %v2206_v9 }
 0x401   : > { %v6114_v38 = vmul.f32 %v5912_v14, %v2205_v37  ;;  %v4411_v37 = vld [vmem:[%s5142_s16 + $0x10] sm:$0xff] }
 0x402   : > { %v4403_v43 = vpop.eup %4402  ;;  %2332 = vrot.lane.b32.xlu0 %v6107_v35, %s4718_s11 }
 0x403   : > { %2326 = vrot.lane.b32.xlu1 %v6103_v8, %s4718_s11  ;;  %v2207_v55 = vmul.f32 %v4403_v43, %v5756_v3  ;;  %v2240_v3 = vmul.f32 %v4408_v52, %v5915_v18  ;;  %v4413_v52 = vld [vmem:[%s5136_s13 + $0x18] sm:$0xff] }
 0x404   : > { %v2243_v1 = vmul.f32 %v4413_v52, %v5940_v46  ;;  %v4420_v52 = vld [vmem:[%s5136_s13 + $0x30] sm:$0xff] }
 0x405   : > { %v6120_v27 = vmul.f32 %v5912_v14, %v2207_v55  ;;  %v4410_v14 = vld [vmem:[%s5142_s16 + $0x8] sm:$0xff] }
 0x407   : > { %2330 = vrot.lane.b32.xlu1 %v6114_v38, %s4718_s11  ;;  %6528 = vst [vmem:[#allocation39_spill] sm:$0xff] %v6120_v27 }
 0x40b   : > { %2334 = vrot.lane.b32.xlu1 %v6120_v27, %s4718_s11 }
 0x434   : > { %v2273_v29 = vpop.permute.xlu1 %2272 }
 0x435   : > { %v2336_v19 = vmul.f32 %v4407_v21, %v2273_v29  ;;  %v4412_v21 = vld [vmem:[%s5136_s13 + $0x10] sm:$0xff] }
 0x436   : > { %v2242_v27 = vmul.f32 %v4412_v21, %v5921_v7 }
 0x437   : > { %v2368_v9 = vadd.f32 %v2336_v19, %v2240_v3 }
 0x438   : > { %v2277_v32 = vpop.permute.xlu0 %2276 }
 0x439   : > { %v2338_v43 = vmul.f32 %v4411_v37, %v2277_v32  ;;  %v4417_v37 = vld [vmem:[%s5136_s13 + $0x28] sm:$0xff] }
 0x43a   : > { %v2245_v46 = vmul.f32 %v4417_v37, %v5952_v24  ;;  %v4422_v24 = vld [vmem:[%s5142_s16 + $0x38] sm:$0xff] }
 0x43b   : > { %v2370_v19 = vadd.f32 %v2338_v43, %v2242_v27  ;;  %v4419_v43 = vld [vmem:[%s5142_s16 + $0x30] sm:$0xff] }
 0x440   : > { %v2281_v20 = vpop.permute.xlu0 %2280 }
 0x441   : > { %v2275_v44 = vpop.permute.xlu1 %2274 }
 0x442   : > { %v2337_v60 = vmul.f32 %v4410_v14, %v2275_v44  ;;  %v4415_v44 = vld [vmem:[%s5142_s16 + $0x20] sm:$0xff] }
 0x443   : > { %v2340_v32 = vmul.f32 %v4415_v44, %v2281_v20 }
 0x444   : > { %v2369_v55 = vadd.f32 %v2337_v60, %v2241_v23  ;;  %v2285_v10 = vpop.permute.xlu0 %2284  ;;  %v4416_v60 = vld [vmem:[%s5136_s13 + $0x20] sm:$0xff] }
 0x445   : > { %v2279_v29 = vpop.permute.xlu1 %2278  ;;  %v2244_v7 = vmul.f32 %v4416_v60, %v5929_v53  ;;  %v2342_v20 = vmul.f32 %v4419_v43, %v2285_v10  ;;  %v2246_v53 = vmul.f32 %v4420_v52, %v5944_v36  ;;  %v2249_v36 = vmul.f32 %v5976_v40, %v5667_v50  ;;  %v6534_v40 = vld [vmem:[#allocation52_spill] sm:$0xff] }
 0x446   : > { %v3685_v18 = vpack.c.bf16 %v2369_v55, %v2368_v9  ;;  %v2339_v58 = vmul.f32 %v4414_v12, %v2279_v29  ;;  %v4418_v55 = vld [vmem:[%s5142_s16 + $0x28] sm:$0xff]  ;;  %v4421_v12 = vld [vmem:[%s5136_s13 + $0x38] sm:$0xff] }
 0x447   : > { %v2372_v27 = vadd.f32 %v2340_v32, %v2244_v7 }
 0x448   : > { %3937 = vst [vmem:[%s5225_s17 + $0x80] sm:$0xff] %v3685_v18   ;;  %v2371_v3 = vadd.f32 %v2339_v58, %v2243_v1  ;;  %v2289_v23 = vpop.permute.xlu0 %2288 }
 0x449   : > { %v2283_v14 = vpop.permute.xlu1 %2282 }
 0x44a   : > { %v3690_v9 = vpack.c.bf16 %v2371_v3, %v2370_v19  ;;  %v2341_v29 = vmul.f32 %v4418_v55, %v2283_v14  ;;  %v2247_v19 = vmul.f32 %v4421_v12, %v5964_v6  ;;  %v2374_v3 = vadd.f32 %v2342_v20, %v2246_v53  ;;  %v4423_v14 = vld [vmem:[%s5142_s16 + $0x40] sm:$0xff] }
 0x44b   : > { %v2344_v32 = vmul.f32 %v4423_v14, %v2289_v23  ;;  %v6533_v53 = vld [vmem:[#allocation51_spill] sm:$0xff] }
 0x44c   : > { %3938 = vst [vmem:[%s5225_s17 + $0x88] sm:$0xff] %v3690_v9   ;;  %v2373_v58 = vadd.f32 %v2341_v29, %v2245_v46  ;;  %v2293_v21 = vpop.permute.xlu0 %2292  ;;  %v2248_v9 = vmul.f32 %v5956_v2, %v5664_v41  ;;  %v6529_v46 = vld [vmem:[#allocation47_spill] sm:$0xff]  ;;  %v6530_v29 = vld [vmem:[#allocation48_spill] sm:$0xff]  ;;  %v6532_v41 = vld [vmem:[#allocation50_spill] sm:$0xff] }
 0x44d   : > { %v2287_v18 = vpop.permute.xlu1 %2286  ;;  %v2251_v2 = vmul.f32 %v5988_v15, %v6532_v41 }
 0x44e   : > { %v3695_v1 = vpack.c.bf16 %v2373_v58, %v2372_v27  ;;  %v2343_v44 = vmul.f32 %v4422_v24, %v2287_v18  ;;  %v2376_v55 = vadd.f32 %v2344_v32, %v2248_v9  ;;  %v2346_v27 = vmul.f32 %v2293_v21, %v6530_v29  ;;  %v6531_v58 = vld [vmem:[#allocation49_spill] sm:$0xff] }
 0x44f   : > { %v2250_v18 = vmul.f32 %v5968_v51, %v6531_v58  ;;  %v6536_v51 = vld [vmem:[#allocation54_spill] sm:$0xff] }
 0x450   : > { %3939 = vst [vmem:[%s5225_s17 + $0x90] sm:$0xff] %v3695_v1   ;;  %v2375_v60 = vadd.f32 %v2343_v44, %v2247_v19  ;;  %v2297_v10 = vpop.permute.xlu0 %2296  ;;  %v6535_v44 = vld [vmem:[#allocation53_spill] sm:$0xff]  ;;  %v2253_v32 = vmul.f32 %v6000_v42, %v6536_v51 }
 0x451   : > { %v2291_v7 = vpop.permute.xlu1 %2290  ;;  %v2378_v50 = vadd.f32 %v2346_v27, %v2250_v18  ;;  %v2348_v12 = vmul.f32 %v2297_v10, %v6534_v40  ;;  %v6541_v40 = vld [vmem:[#allocation59_spill] sm:$0xff] }
 0x452   : > { %v3700_v37 = vpack.c.bf16 %v2375_v60, %v2374_v3  ;;  %v2345_v6 = vmul.f32 %v2291_v7, %v6529_v46  ;;  %v2252_v3 = vmul.f32 %v5980_v47, %v6535_v44  ;;  %v6537_v60 = vld [vmem:[#allocation55_spill] sm:$0xff]  ;;  %v2254_v46 = vmul.f32 %v5992_v0, %v5744_v48  ;;  %v6538_v0 = vld [vmem:[#allocation56_spill] sm:$0xff]  ;;  %v6544_v44 = vld [vmem:[#allocation62_spill] sm:$0xff] }
 0x453   : > { %v2255_v47 = vmul.f32 %v6012_v28, %v5747_v30  ;;  %v2257_v48 = vmul.f32 %v6024_v34, %v5770_v11 }
 0x454   : > { %3940 = vst [vmem:[%s5225_s17 + $0x98] sm:$0xff] %v3700_v37   ;;  %v2377_v43 = vadd.f32 %v2345_v6, %v2249_v36  ;;  %v2301_v23 = vpop.permute.xlu0 %2300  ;;  %v2380_v15 = vadd.f32 %v2348_v12, %v2252_v3  ;;  %v2260_v12 = vmul.f32 %v6028_v45, %v6541_v40  ;;  %v2263_v45 = vmul.f32 %v6075_v61, %v5829_v17  ;;  %v6551_v61 = vld [vmem:[#allocation69_spill] sm:$0xff] }
 0x455   : > { %v2295_v20 = vpop.permute.xlu1 %2294  ;;  %v2350_v9 = vmul.f32 %v2301_v23, %v5734_v5  ;;  %v2256_v23 = vmul.f32 %v6004_v56, %v5767_v13  ;;  %v6539_v13 = vld [vmem:[#allocation57_spill] sm:$0xff] }
 0x456   : > { %v3705_v52 = vpack.c.bf16 %v2377_v43, %v2376_v55  ;;  %v2347_v1 = vmul.f32 %v2295_v20, %v6533_v53  ;;  %v2259_v56 = vmul.f32 %v6036_v22, %v6539_v13 }
 0x457   : > { %v2382_v42 = vadd.f32 %v2350_v9, %v2254_v46 }
 0x458   : > { %3941 = vst [vmem:[%s5225_s17 + $0xa0] sm:$0xff] %v3705_v52   ;;  %v2379_v19 = vadd.f32 %v2347_v1, %v2251_v2  ;;  %v2305_v21 = vpop.permute.xlu0 %2304  ;;  %v2258_v52 = vmul.f32 %v6016_v4, %v5788_v25  ;;  %v6540_v2 = vld [vmem:[#allocation58_spill] sm:$0xff]  ;;  %v6542_v25 = vld [vmem:[#allocation60_spill] sm:$0xff] }
 0x459   : > { %v2299_v24 = vpop.permute.xlu1 %2298  ;;  %v2352_v29 = vmul.f32 %v2305_v21, %v5759_v31  ;;  %v2261_v4 = vmul.f32 %v6051_v26, %v6542_v25  ;;  %v6543_v21 = vld [vmem:[#allocation61_spill] sm:$0xff] }
 0x45a   : > { %v3710_v14 = vpack.c.bf16 %v2379_v19, %v2378_v50  ;;  %v2349_v7 = vmul.f32 %v2299_v24, %v6537_v60 }
 0x45b   : > { %v2384_v30 = vadd.f32 %v2352_v29, %v2256_v23  ;;  %v6550_v29 = vld [vmem:[#allocation68_spill] sm:$0xff] }
 0x45c   : > { %3942 = vst [vmem:[%s5225_s17 + $0xa8] sm:$0xff] %v3710_v14   ;;  %v2381_v37 = vadd.f32 %v2349_v7, %v2253_v32  ;;  %v2309_v10 = vpop.permute.xlu0 %2308  ;;  %v6545_v32 = vld [vmem:[#allocation63_spill] sm:$0xff] }
 0x45d   : > { %v2303_v36 = vpop.permute.xlu1 %2302  ;;  %v2262_v60 = vmul.f32 %v6040_v54, %v6545_v32 }
 0x45e   : > { %v3715_v6 = vpack.c.bf16 %v2381_v37, %v2380_v15  ;;  %v2351_v55 = vmul.f32 %v2303_v36, %v5750_v62  ;;  %v2354_v62 = vmul.f32 %v2309_v10, %v5780_v59  ;;  %v6546_v15 = vld [vmem:[#allocation64_spill] sm:$0xff]  ;;  %v6547_v37 = vld [vmem:[#allocation65_spill] sm:$0xff] }
 0x460   : > { %3943 = vst [vmem:[%s5225_s17 + $0xb0] sm:$0xff] %v3715_v6   ;;  %v2383_v27 = vadd.f32 %v2351_v55, %v2255_v47  ;;  %v2313_v5 = vpop.permute.xlu0 %2312  ;;  %v2386_v11 = vadd.f32 %v2354_v62, %v2258_v52  ;;  %v6548_v6 = vld [vmem:[#allocation66_spill] sm:$0xff]  ;;  %v6554_v62 = vld [vmem:[#allocation72_spill] sm:$0xff] }
 0x461   : > { %v2307_v43 = vpop.permute.xlu1 %2306  ;;  %v2356_v34 = vmul.f32 %v2313_v5, %v5799_v33  ;;  %v2264_v47 = vmul.f32 %v6058_v16, %v6548_v6  ;;  %v6553_v16 = vld [vmem:[#allocation71_spill] sm:$0xff] }
 0x462   : > { %v3720_v20 = vpack.c.bf16 %v2383_v27, %v2382_v42  ;;  %v2353_v58 = vmul.f32 %v2307_v43, %v6538_v0  ;;  %v6549_v42 = vld [vmem:[#allocation67_spill] sm:$0xff] }
 0x463   : > { %v2388_v22 = vadd.f32 %v2356_v34, %v2260_v12  ;;  %v2265_v54 = vmul.f32 %v6090_v63, %v6549_v42  ;;  %v6558_v34 = vld [vmem:[#allocation76_spill] sm:$0xff] }
 0x464   : > { %3944 = vst [vmem:[%s5225_s17 + $0xb8] sm:$0xff] %v3720_v20   ;;  %v2385_v28 = vadd.f32 %v2353_v58, %v2257_v48  ;;  %v2317_v31 = vpop.permute.xlu0 %2316  ;;  %v6552_v48 = vld [vmem:[#allocation70_spill] sm:$0xff]  ;;  %v6559_v12 = vld [vmem:[#allocation36_spill] sm:$0xff] }
 0x465   : > { %v2311_v18 = vpop.permute.xlu1 %2310  ;;  %v2358_v3 = vmul.f32 %v2317_v31, %v6544_v44  ;;  %v2266_v0 = vmul.f32 %v6082_v39, %v6552_v48  ;;  %v6555_v31 = vld [vmem:[#allocation73_spill] sm:$0xff]  ;;  %v6557_v39 = vld [vmem:[#allocation75_spill] sm:$0xff] }
 0x466   : > { %v3725_v41 = vpack.c.bf16 %v2385_v28, %v2384_v30  ;;  %v2355_v53 = vmul.f32 %v2311_v18, %v6540_v2  ;;  %v2267_v30 = vmul.f32 %v6103_v8, %v6553_v16 }
 0x467   : > { %v2390_v26 = vadd.f32 %v2358_v3, %v2262_v60 }
 0x468   : > { %3945 = vst [vmem:[%s5225_s17 + $0xc0] sm:$0xff] %v3725_v41   ;;  %v2387_v1 = vadd.f32 %v2355_v53, %v2259_v56  ;;  %v2321_v59 = vpop.permute.xlu0 %2320  ;;  %v6556_v56 = vld [vmem:[#allocation74_spill] sm:$0xff] }
 0x469   : > { %v2315_v50 = vpop.permute.xlu1 %2314  ;;  %v2360_v10 = vmul.f32 %v2321_v59, %v6547_v37  ;;  %v2268_v2 = vmul.f32 %v6094_v49, %v6556_v56 }
 0x46a   : > { %v3730_v19 = vpack.c.bf16 %v2387_v1, %v2386_v11  ;;  %v2357_v24 = vmul.f32 %v2315_v50, %v6543_v21  ;;  %v2269_v11 = vmul.f32 %v6114_v38, %v6557_v39  ;;  %v6561_v21 = vld [vmem:[#allocation39_spill] sm:$0xff] }
 0x46b   : > { %v2392_v17 = vadd.f32 %v2360_v10, %v2264_v47 }
 0x46c   : > { %3946 = vst [vmem:[%s5225_s17 + $0xc8] sm:$0xff] %v3730_v19   ;;  %v2389_v14 = vadd.f32 %v2357_v24, %v2261_v4  ;;  %v2325_v33 = vpop.permute.xlu0 %2324  ;;  %v2270_v19 = vmul.f32 %v6107_v35, %v6559_v12  ;;  %v6560_v4 = vld [vmem:[#allocation37_spill] sm:$0xff]  ;;  %v6562_v24 = vld [vmem:[#allocation38_spill] sm:$0xff] }
 0x46d   : > { %v2319_v51 = vpop.permute.xlu1 %2318  ;;  %v2362_v43 = vmul.f32 %v2325_v33, %v6551_v61  ;;  %v2271_v49 = vmul.f32 %v6561_v21, %v6560_v4 }
 0x46e   : > { %v3735_v7 = vpack.c.bf16 %v2389_v14, %v2388_v22  ;;  %v2359_v9 = vmul.f32 %v2319_v51, %v6546_v15 }
 0x46f   : > { %v2394_v63 = vadd.f32 %v2362_v43, %v2266_v0 }
 0x470   : > { %3947 = vst [vmem:[%s5225_s17 + $0xd0] sm:$0xff] %v3735_v7   ;;  %v2391_v36 = vadd.f32 %v2359_v9, %v2263_v45  ;;  %v2329_v5 = vpop.permute.xlu0 %2328 }
 0x471   : > { %v2323_v46 = vpop.permute.xlu1 %2322  ;;  %v2364_v18 = vmul.f32 %v2329_v5, %v6555_v31 }
 0x472   : > { %v3740_v55 = vpack.c.bf16 %v2391_v36, %v2390_v26  ;;  %v2361_v27 = vmul.f32 %v2323_v46, %v6550_v29 }
 0x473   : > { %v2396_v1 = vadd.f32 %v2364_v18, %v2268_v2 }
 0x474   : > { %3948 = vst [vmem:[%s5225_s17 + $0xd8] sm:$0xff] %v3740_v55   ;;  %v2393_v23 = vadd.f32 %v2361_v27, %v2265_v54  ;;  %v2333_v41 = vpop.permute.xlu0 %2332 }
 0x475   : > { %v2327_v20 = vpop.permute.xlu1 %2326  ;;  %v2366_v59 = vmul.f32 %v2333_v41, %v6046_v57 }
 0x476   : > { %v3745_v58 = vpack.c.bf16 %v2393_v23, %v2392_v17  ;;  %v2363_v28 = vmul.f32 %v2327_v20, %v6554_v62 }
 0x477   : > { %v2398_v44 = vadd.f32 %v2366_v59, %v2270_v19 }
 0x478   : > { %3949 = vst [vmem:[%s5225_s17 + $0xe0] sm:$0xff] %v3745_v58   ;;  %v2395_v52 = vadd.f32 %v2363_v28, %v2267_v30 }
 0x479   : > { %v2331_v13 = vpop.permute.xlu1 %2330 }
 0x47a   : > { %v3750_v53 = vpack.c.bf16 %v2395_v52, %v2394_v63  ;;  %v2365_v8 = vmul.f32 %v2331_v13, %v6558_v34 }
 0x47c   : > { %3950 = vst [vmem:[%s5225_s17 + $0xe8] sm:$0xff] %v3750_v53   ;;  %v2397_v50 = vadd.f32 %v2365_v8, %v2269_v11 }
 0x47d   : > { %v2335_v40 = vpop.permute.xlu1 %2334 }
 0x47e   : > { %v3755_v25 = vpack.c.bf16 %v2397_v50, %v2396_v1  ;;  %v2367_v22 = vmul.f32 %v2335_v40, %v6562_v24 }
 0x480   : > { %3951 = vst [vmem:[%s5225_s17 + $0xf0] sm:$0xff] %v3755_v25   ;;  %v2399_v38 = vadd.f32 %v2367_v22, %v2271_v49 }
 0x482   : > { %v3760_v3 = vpack.c.bf16 %v2399_v38, %v2398_v44 }
 0x484   : > { %3952 = vst [vmem:[%s5225_s17 + $0xf8] sm:$0xff] %v3760_v3  }
 0x485 PF: > { %s6563_s15 = sld [smem:[#allocation24_spill]] }
 0x48b   : > { %p2561_p12 = scmp.ge.s32.totalorder %s6563_s15, 2 }
 0x48c   : > { %v2566_v57 = vld [vmem:[#allocation2] sm:$0xff] (%p2561_p12)  ;;  %v2567_v14 = vld [vmem:[#allocation2 + $0x10] sm:$0xff] (%p2561_p12)  ;;  %v2758_v34 = vld [vmem:[#allocation2 + $0x8] sm:$0xff] (%p2561_p12) }
 0x48d   : > { %2565 = sbr.rel (!%p2561_p12) target bundleno = 1193 (0x4a9), region = 72  ;;  %v2568_v35 = vld [vmem:[#allocation2 + $0x20] sm:$0xff] (%p2561_p12)  ;;  %v3765_v33 = vpack.c.bf16 (%p2561_p12), %v2567_v14, %v2566_v57  ;;  %v2569_v51 = vld [vmem:[#allocation2 + $0x30] sm:$0xff] (%p2561_p12)  ;;  %v2759_v1 = vld [vmem:[#allocation2 + $0x18] sm:$0xff] (%p2561_p12) }
 0x48e   : > { %v2570_v32 = vld [vmem:[#allocation2 + $0x40] sm:$0xff] (%p2561_p12)  ;;  %v2571_v60 = vld [vmem:[#allocation2 + $0x50] sm:$0xff] (%p2561_p12)  ;;  %v3770_v7 = vpack.c.bf16 (%p2561_p12), %v2569_v51, %v2568_v35  ;;  %v2760_v59 = vld [vmem:[#allocation2 + $0x28] sm:$0xff] (%p2561_p12)  ;;  %v3845_v40 = vpack.c.bf16 (%p2561_p12), %v2759_v1, %v2758_v34 }
 0x48f   : > { %v3775_v45 = vpack.c.bf16 (%p2561_p12), %v2571_v60, %v2570_v32  ;;  %v2572_v15 = vld [vmem:[#allocation2 + $0x60] sm:$0xff] (%p2561_p12)  ;;  %v2573_v9 = vld [vmem:[#allocation2 + $0x70] sm:$0xff] (%p2561_p12)  ;;  %3766 = vst [vmem:[%s5225_s17] sm:$0xff] (%p2561_p12), %v3765_v33   ;;  %v2761_v50 = vld [vmem:[#allocation2 + $0x38] sm:$0xff] (%p2561_p12) }
 0x490   : > { %v2574_v26 = vld [vmem:[#allocation2 + $0x80] sm:$0xff] (%p2561_p12)  ;;  %v3780_v37 = vpack.c.bf16 (%p2561_p12), %v2573_v9, %v2572_v15  ;;  %v2575_v10 = vld [vmem:[#allocation2 + $0x90] sm:$0xff] (%p2561_p12)  ;;  %3953 = vst [vmem:[%s5225_s17 + $0x8] sm:$0xff] (%p2561_p12), %v3770_v7   ;;  %v3850_v12 = vpack.c.bf16 (%p2561_p12), %v2761_v50, %v2760_v59  ;;  %v2762_v19 = vld [vmem:[#allocation2 + $0x48] sm:$0xff] (%p2561_p12) }
 0x491   : > { %v2576_v36 = vld [vmem:[#allocation2 + $0xa0] sm:$0xff] (%p2561_p12)  ;;  %v2577_v46 = vld [vmem:[#allocation2 + $0xb0] sm:$0xff] (%p2561_p12)  ;;  %3954 = vst [vmem:[%s5225_s17 + $0x10] sm:$0xff] (%p2561_p12), %v3775_v45   ;;  %v3785_v6 = vpack.c.bf16 (%p2561_p12), %v2575_v10, %v2574_v26  ;;  %v2763_v25 = vld [vmem:[#allocation2 + $0x58] sm:$0xff] (%p2561_p12) }
 0x492   : > { %v3790_v47 = vpack.c.bf16 (%p2561_p12), %v2577_v46, %v2576_v36  ;;  %v2578_v55 = vld [vmem:[#allocation2 + $0xc0] sm:$0xff] (%p2561_p12)  ;;  %v2579_v42 = vld [vmem:[#allocation2 + $0xd0] sm:$0xff] (%p2561_p12)  ;;  %3955 = vst [vmem:[%s5225_s17 + $0x18] sm:$0xff] (%p2561_p12), %v3780_v37   ;;  %v2764_v4 = vld [vmem:[#allocation2 + $0x68] sm:$0xff] (%p2561_p12)  ;;  %v3855_v21 = vpack.c.bf16 (%p2561_p12), %v2763_v25, %v2762_v19 }
 0x493   : > { %v2580_v54 = vld [vmem:[#allocation2 + $0xe0] sm:$0xff] (%p2561_p12)  ;;  %v3795_v29 = vpack.c.bf16 (%p2561_p12), %v2579_v42, %v2578_v55  ;;  %v2581_v27 = vld [vmem:[#allocation2 + $0xf0] sm:$0xff] (%p2561_p12)  ;;  %3956 = vst [vmem:[%s5225_s17 + $0x20] sm:$0xff] (%p2561_p12), %v3785_v6   ;;  %v2765_v49 = vld [vmem:[#allocation2 + $0x78] sm:$0xff] (%p2561_p12) }
 0x494   : > { %v2582_v5 = vld [vmem:[#allocation2 + $0x100] sm:$0xff]  ;;  %v2583_v17 = vld [vmem:[#allocation2 + $0x110] sm:$0xff]  ;;  %3957 = vst [vmem:[%s5225_s17 + $0x28] sm:$0xff] %v3790_v47   ;;  %v3800_v61 = vpack.c.bf16 %v2581_v27, %v2580_v54  ;;  %v2766_v24 = vld [vmem:[#allocation2 + $0x88] sm:$0xff]  ;;  %v3860_v44 = vpack.c.bf16 %v2765_v49, %v2764_v4 }
 0x495   : > { %v3805_v43 = vpack.c.bf16 %v2583_v17, %v2582_v5  ;;  %v2584_v23 = vld [vmem:[#allocation2 + $0x120] sm:$0xff]  ;;  %v2585_v20 = vld [vmem:[#allocation2 + $0x130] sm:$0xff]  ;;  %3958 = vst [vmem:[%s5225_s17 + $0x30] sm:$0xff] %v3795_v29   ;;  %v2767_v22 = vld [vmem:[#allocation2 + $0x98] sm:$0xff] }
 0x496   : > { %v2586_v48 = vld [vmem:[#allocation2 + $0x140] sm:$0xff]  ;;  %v3810_v0 = vpack.c.bf16 %v2585_v20, %v2584_v23  ;;  %v2587_v58 = vld [vmem:[#allocation2 + $0x150] sm:$0xff]  ;;  %3959 = vst [vmem:[%s5225_s17 + $0x38] sm:$0xff] %v3800_v61   ;;  %3968 = vst [vmem:[%s5225_s17 + $0x80] sm:$0xff] %v3845_v40   ;;  %v3865_v38 = vpack.c.bf16 %v2767_v22, %v2766_v24 }
 0x497   : > { %v2588_v16 = vld [vmem:[#allocation2 + $0x160] sm:$0xff]  ;;  %v2589_v30 = vld [vmem:[#allocation2 + $0x170] sm:$0xff]  ;;  %3960 = vst [vmem:[%s5225_s17 + $0x40] sm:$0xff] %v3805_v43   ;;  %v3815_v62 = vpack.c.bf16 %v2587_v58, %v2586_v48  ;;  %3969 = vst [vmem:[%s5225_s17 + $0x88] sm:$0xff] %v3850_v12  }
 0x498   : > { %v3820_v28 = vpack.c.bf16 %v2589_v30, %v2588_v16  ;;  %v2590_v63 = vld [vmem:[#allocation2 + $0x180] sm:$0xff]  ;;  %v2591_v31 = vld [vmem:[#allocation2 + $0x190] sm:$0xff]  ;;  %3961 = vst [vmem:[%s5225_s17 + $0x48] sm:$0xff] %v3810_v0   ;;  %v2768_v3 = vld [vmem:[#allocation2 + $0xa8] sm:$0xff] }
 0x499   : > { %v2592_v18 = vld [vmem:[#allocation2 + $0x1a0] sm:$0xff]  ;;  %v3825_v52 = vpack.c.bf16 %v2591_v31, %v2590_v63  ;;  %v2593_v41 = vld [vmem:[#allocation2 + $0x1b0] sm:$0xff]  ;;  %3962 = vst [vmem:[%s5225_s17 + $0x50] sm:$0xff] %v3815_v62   ;;  %v2769_v57 = vld [vmem:[#allocation2 + $0xb8] sm:$0xff] }
 0x49a   : > { %v2594_v13 = vld [vmem:[#allocation2 + $0x1c0] sm:$0xff]  ;;  %v2595_v56 = vld [vmem:[#allocation2 + $0x1d0] sm:$0xff]  ;;  %3963 = vst [vmem:[%s5225_s17 + $0x58] sm:$0xff] %v3820_v28   ;;  %v3830_v2 = vpack.c.bf16 %v2593_v41, %v2592_v18  ;;  %v2770_v14 = vld [vmem:[#allocation2 + $0xc8] sm:$0xff]  ;;  %v3870_v35 = vpack.c.bf16 %v2769_v57, %v2768_v3 }
 0x49b   : > { %v3835_v53 = vpack.c.bf16 %v2595_v56, %v2594_v13  ;;  %v2596_v39 = vld [vmem:[#allocation2 + $0x1e0] sm:$0xff]  ;;  %v2597_v11 = vld [vmem:[#allocation2 + $0x1f0] sm:$0xff]  ;;  %3964 = vst [vmem:[%s5225_s17 + $0x60] sm:$0xff] %v3825_v52   ;;  %3970 = vst [vmem:[%s5225_s17 + $0x90] sm:$0xff] %v3855_v21  }
 0x49c   : > { %v3840_v8 = vpack.c.bf16 %v2597_v11, %v2596_v39  ;;  %3965 = vst [vmem:[%s5225_s17 + $0x68] sm:$0xff] %v3830_v2   ;;  %v2771_v33 = vld [vmem:[#allocation2 + $0xd8] sm:$0xff]  ;;  %v2772_v51 = vld [vmem:[#allocation2 + $0xe8] sm:$0xff]  ;;  %3971 = vst [vmem:[%s5225_s17 + $0x98] sm:$0xff] %v3860_v44  }
 0x49d   : > { %3966 = vst [vmem:[%s5225_s17 + $0x70] sm:$0xff] %v3835_v53   ;;  %v2773_v32 = vld [vmem:[#allocation2 + $0xf8] sm:$0xff]  ;;  %3972 = vst [vmem:[%s5225_s17 + $0xa0] sm:$0xff] %v3865_v38   ;;  %v3875_v60 = vpack.c.bf16 %v2771_v33, %v2770_v14  ;;  %v2774_v45 = vld [vmem:[#allocation2 + $0x108] sm:$0xff] }
 0x49e   : > { %3967 = vst [vmem:[%s5225_s17 + $0x78] sm:$0xff] %v3840_v8   ;;  %v3880_v7 = vpack.c.bf16 %v2773_v32, %v2772_v51  ;;  %v2775_v15 = vld [vmem:[#allocation2 + $0x118] sm:$0xff]  ;;  %v2776_v9 = vld [vmem:[#allocation2 + $0x128] sm:$0xff]  ;;  %3973 = vst [vmem:[%s5225_s17 + $0xa8] sm:$0xff] %v3870_v35  }
 0x49f   : > { %v3885_v26 = vpack.c.bf16 %v2775_v15, %v2774_v45  ;;  %v2777_v37 = vld [vmem:[#allocation2 + $0x138] sm:$0xff]  ;;  %v2778_v10 = vld [vmem:[#allocation2 + $0x148] sm:$0xff]  ;;  %3974 = vst [vmem:[%s5225_s17 + $0xb0] sm:$0xff] %v3875_v60  }
 0x4a0   : > { %v2779_v36 = vld [vmem:[#allocation2 + $0x158] sm:$0xff]  ;;  %3975 = vst [vmem:[%s5225_s17 + $0xb8] sm:$0xff] %v3880_v7   ;;  %v3890_v46 = vpack.c.bf16 %v2777_v37, %v2776_v9  ;;  %v2780_v47 = vld [vmem:[#allocation2 + $0x168] sm:$0xff] }
 0x4a1   : > { %v3895_v6 = vpack.c.bf16 %v2779_v36, %v2778_v10  ;;  %v2781_v55 = vld [vmem:[#allocation2 + $0x178] sm:$0xff]  ;;  %v2782_v42 = vld [vmem:[#allocation2 + $0x188] sm:$0xff]  ;;  %3976 = vst [vmem:[%s5225_s17 + $0xc0] sm:$0xff] %v3885_v26  }
 0x4a2   : > { %v3900_v54 = vpack.c.bf16 %v2781_v55, %v2780_v47  ;;  %v2783_v29 = vld [vmem:[#allocation2 + $0x198] sm:$0xff]  ;;  %v2784_v27 = vld [vmem:[#allocation2 + $0x1a8] sm:$0xff]  ;;  %3977 = vst [vmem:[%s5225_s17 + $0xc8] sm:$0xff] %v3890_v46  }
 0x4a3   : > { %v2785_v5 = vld [vmem:[#allocation2 + $0x1b8] sm:$0xff]  ;;  %3978 = vst [vmem:[%s5225_s17 + $0xd0] sm:$0xff] %v3895_v6   ;;  %v3905_v17 = vpack.c.bf16 %v2783_v29, %v2782_v42  ;;  %v2786_v43 = vld [vmem:[#allocation2 + $0x1c8] sm:$0xff] }
 0x4a4   : > { %v3910_v61 = vpack.c.bf16 %v2785_v5, %v2784_v27  ;;  %v2787_v23 = vld [vmem:[#allocation2 + $0x1d8] sm:$0xff]  ;;  %v2788_v20 = vld [vmem:[#allocation2 + $0x1e8] sm:$0xff]  ;;  %3979 = vst [vmem:[%s5225_s17 + $0xd8] sm:$0xff] %v3900_v54  }
 0x4a5   : > { %v3915_v48 = vpack.c.bf16 %v2787_v23, %v2786_v43  ;;  %v2789_v0 = vld [vmem:[#allocation2 + $0x1f8] sm:$0xff]  ;;  %3980 = vst [vmem:[%s5225_s17 + $0xe0] sm:$0xff] %v3905_v17  }
 0x4a6   : > { %3981 = vst [vmem:[%s5225_s17 + $0xe8] sm:$0xff] %v3910_v61   ;;  %v3920_v58 = vpack.c.bf16 %v2789_v0, %v2788_v20 }
 0x4a7   : > { %3982 = vst [vmem:[%s5225_s17 + $0xf0] sm:$0xff] %v3915_v48  }
 0x4a8   : > { %3983 = vst [vmem:[%s5225_s17 + $0xf8] sm:$0xff] %v3920_v58  }
 0x4a9 PF: > { %s2952_s3 = scalar_lea.sflag [#allocation5], %s419_s14 }
 0x4aa   : > { %s6564_s6 = sld [smem:[#allocation25_spill]]  ;;  %s6565_s24 = sld [smem:[#allocation24_spill]] }
 0x4ab   : > { %s6566_s1 = sld [smem:[#allocation32_spill]]  ;;  %s2984_s10 = sshll.u32 %s5225_s17, 4  ;;  %s2985_s10 = int_to_ptr.vmem [resolvable:$true] %s2984_s10 }
 0x4ac   : > { %s6567_s21 = sld [smem:[#allocation79_spill]]  ;;  %s4719_s13 = smov 2048  }
 0x4ad   : > { %s4720_s7 = smov 4096   ;;  %s4721_s16 = smov 32  }
 0x4ae   : > { %s4722_s22 = smov 64   ;;  %s4723_s14 = smov 4  }
 0x4af   : > { %s4724_s9 = smov [#allocation13]   ;;  %s4725_s8 = smov 0  }
 0x4b0   : > { %s3461_s27 = sshll.u32 %s6564_s6, 5  ;;  %s3601_s28 = sshll.u32 %s6565_s24, 7 }
 0x4b1   : > { %s2965_s18 = sadd.s32 %s3601_s28, %s3461_s27  ;;  %p6568_p8 = scmp.ne.s32.totalorder %s6566_s1, 0 }
 0x4b2   : > { %s3463_s5 = sshll.u32 %s2965_s18, 6 }
 0x4b3   : > { %s2967_s20 = scalar_lea.hbm %s6567_s21, %s3463_s5  ;;  %4026 = sst [smem:[#allocation14]] (%p6568_p8), %s4719_s13 }
 0x4b4   : > { %4027 = sst [smem:[#allocation14 + $0x1]] (%p6568_p8), %s4720_s7 }
 0x4b5   : > { %4028 = sst [smem:[#allocation14 + $0x2]] (%p6568_p8), %s4721_s16 }
 0x4b6   : > { %4029 = sst [smem:[#allocation14 + $0x3]] (%p6568_p8), %s4722_s22 }
 0x4b7   : > { %4030 = sst [smem:[#allocation14 + $0x4]] (%p6568_p8), %s4722_s22 }
 0x4b8   : > { %4031 = sst [smem:[#allocation14 + $0x5]] (%p6568_p8), %s4723_s14 }
 0x4b9   : > { %4032 = dma.general (%p6568_p8), %s2985_s10, 4096, %s2967_s20, %s2952_s3, %s4724_s9, [#allocation14], %s4725_s8, 0  }
 0x4ba PF: > { %s6569_s17 = sld [smem:[#allocation27_spill]]  ;;  %s6570_s11 = sld [smem:[#allocation21_spill]] }
 0x4bb   : > { %s6571_s15 = sld [smem:[#allocation35_spill]] }
 0x4c0   : > { %p4055_p4 = scmp.ge.s32.totalorder %s6569_s17, 2  ;;  %s3012_s6 = sand.u32 1, %s6570_s11  }
 0x4c1   : > { %p6572_p6 = scmp.ne.s32.totalorder %s6571_s15, 0  ;;  %s3013_s24 = scalar_lea.sflag [#allocation5], %s3012_s6 }
 0x4c3   : > { %p4051_p3 = pnand %p4055_p4, %p6572_p6 }
 0x4c5   : > { %4651 = dma.done.wait (!%p4051_p3), %s3013_s24, 4096  }
 0x4c6   : > { %4653 = vsyncadd (!%p4051_p3), %s3013_s24, 4294963200  ;;  %s27_s6 = sadd.s32 1, %s6569_s17   ;;  %s6574_s1 = sld [smem:[#allocation22_spill]] }
 0x4c7   : > { %p6296_p5 = scmp.ge.s32.totalorder %s27_s6, 8   ;;  %s6575_s20 = sld [smem:[#allocation34_spill]] }
 0x4c8   : > { %s6576_s21 = sld [smem:[#allocation23_spill]]  ;;  %s6577_s3 = sld [smem:[#allocation30_spill]] }
 0x4c9   : > { %s6578_s28 = sld [smem:[#allocation33_spill]]  ;;  %s6579_s10 = sld [smem:[#allocation26_spill]] }
 0x4ca   : > { %s6580_s5 = sld [smem:[#allocation28_spill]]  ;;  %s6581_s30 = sld [smem:[#allocation31_spill]] }
 0x4cb   : > { %s6583_s18 = smov %s4660_s19  ;;  %s6585_s22 = smov %s4676_s23 }
 0x4cc   : > { %s6584_s19 = smov %s6574_s1  ;;  %s6587_s24 = smov %s4684_s25 }
 0x4cd   : > { %s6588_s25 = smov %s4688_s26  ;;  %s6590_s27 = smov %s4700_s29 }
 0x4ce   : > { %s6586_s23 = smov %s6577_s3  ;;  %26 = sbr.rel (!%p6296_p5) target bundleno = 18 (0x12), region = 152 }
 0x4cf   : > { %s6589_s26 = smov %s6578_s28  ;;  %s6591_s28 = smov %s6579_s10 }
 0x4d0   : > { %s6592_s29 = smov %s6580_s5 }
 0x4d5   :  { %3018 = vsyncpa [#allocation4], 1 }
 0x4d6   :  { %3020 = vsyncpa [#allocation4 + $0x1], 1 }
 0x4d7   :  { %3021 = vsyncpa [#allocation7], 1 }
 0x4d8   :  { %3023 = vsyncpa [#allocation7 + $0x1], 1 }
 0x4d9   :  { %3024 = vsyncpa [#allocation10], 1 }
 0x4da   :  { %3026 = vsyncpa [#allocation10 + $0x1], 1 }
 0x4db   :  { %3027 = vsyncpa [#allocation5], 1 }
 0x4dc   :  { %3029 = vsyncpa [#allocation5 + $0x1], 1 }

</bundles_post_ra>
